<compile_context>
chip_gen: v6e
topology: v6e:2x2x1
jax: 0.10.0
libtpu: 0.0.40
codegen_flags: <defaults>
</compile_context>

<pallas_src>
import jax
import jax.numpy as jnp
from jax.experimental import pallas as pl
from jax.experimental.pallas import tpu as pltpu


def _gelu_tanh(x):
    # tanh-approximate GELU (tanh goes to the EUP slot).
    # TODO(synk): PyTorch nn.GELU defaults to the exact erf form; the tanh
    # approximation (<1e-3 abs difference) is used as the TPU-friendly act_layer.
    c = 0.7978845608028654  # sqrt(2/pi)
    return 0.5 * x * (1.0 + jnp.tanh(c * (x + 0.044715 * (x * x * x))))


def _device_kind():
    try:
        return jax.devices()[0].device_kind.lower()
    except Exception:
        return ""


def _gelu_compute_dtype():
    kind = _device_kind()
    # v6e / v7x have bf16 VPU + EUP: halving the elementwise width roughly halves the
    # GELU slot work (which rivals MXU time at small D).  v5e has no bf16 VPU/EUP.
    if ("v6" in kind) or ("v7" in kind) or ("7x" in kind):
        return jnp.bfloat16
    return jnp.float32


def _make_ffn_kernel(act_dtype, has_identity):
    def kernel(*refs):
        if has_identity:
            x_ref, idn_ref, w1_ref, b1_ref, w2_ref, b2_ref, o_ref, acc_ref = refs
        else:
            x_ref, w1_ref, b1_ref, w2_ref, b2_ref, o_ref, acc_ref = refs
            idn_ref = x_ref  # identity = x (single DMA of x reused for the residual)

        k = pl.program_id(1)

        @pl.when(k == 0)
        def _init():
            acc_ref[...] = jnp.zeros_like(acc_ref)

        x = x_ref[...]
        xb = x if x.dtype == jnp.bfloat16 else x.astype(jnp.bfloat16)  # single cast
        # fc1 hidden chunk on the MXU (bf16 operands, f32 accumulation) + bias.
        h = jnp.dot(xb, w1_ref[...], preferred_element_type=jnp.float32) + b1_ref[...]
        h = _gelu_tanh(h.astype(act_dtype))
        # fc2 hidden chunk: accumulate into the (tm, D) f32 scratch.
        acc_ref[...] += jnp.dot(h.astype(jnp.bfloat16), w2_ref[...],
                                preferred_element_type=jnp.float32)

        @pl.when(k == pl.num_programs(1) - 1)
        def _finalize():
            # Dropout / DropPath are Identity at rate 0 (eval); residual fused here.
            resid = idn_ref[...].astype(jnp.float32)
            o_ref[...] = (acc_ref[...] + b2_ref[...] + resid).astype(o_ref.dtype)

    return kernel


def prepare_ffn_params(w1, b1, w2, b2, *, hidden_chunk=2048):
    """Transpose / bf16-cast / pad the PyTorch-layout (out, in) weights ONCE so the
    per-call forward never re-pays the transpose+cast HBM traffic."""
    H, D = w1.shape
    nh = max(1, -(-H // hidden_chunk))                  # number of hidden-dim chunks
    th = (-(-H // nh) + 127) // 128 * 128               # chunk size, multiple of 128
    H_pad = th * nh
    # Zero-padded hidden columns give gelu(0 + 0) = 0, so they contribute nothing.
    w1t = jnp.zeros((D, H_pad), jnp.bfloat16)
    w1t = w1t.at[:, :H].set(jnp.asarray(w1, jnp.float32).T.astype(jnp.bfloat16))
    b1r = jnp.zeros((1, H_pad), jnp.float32).at[:, :H].set(jnp.asarray(b1, jnp.float32))
    w2t = jnp.zeros((H_pad, D), jnp.bfloat16)
    w2t = w2t.at[:H, :].set(jnp.asarray(w2, jnp.float32).T.astype(jnp.bfloat16))
    b2r = jnp.asarray(b2, jnp.float32).reshape(1, D)
    return {"w1t": w1t, "b1": b1r, "w2t": w2t, "b2": b2r,
            "D": D, "H": H, "H_pad": H_pad, "th": th, "nh": nh}


def ffn_forward(x, params, identity=None, *, drop_rate=0.0, drop_path_rate=0.0,
                block_rows=256):
    """FFN forward: out = fc2(gelu(fc1(x))) + identity (identity defaults to x)."""
    if drop_rate != 0.0 or drop_path_rate != 0.0:
        # TODO(synk): training-mode Dropout/DropPath would need pltpu.prng_seed /
        # pltpu.prng_random_bits in-kernel; only the rate-0 (eval) path is implemented.
        raise NotImplementedError("Only drop_rate == drop_path_rate == 0 is supported.")

    D, th, nh = params["D"], params["th"], params["nh"]
    w1t, b1r, w2t, b2r = params["w1t"], params["b1"], params["w2t"], params["b2"]

    orig_shape = x.shape
    assert orig_shape[-1] == D
    xm = x.reshape(-1, D)                    # tokens as rows, features on lanes
    M = xm.shape[0]

    # Row tile: 256 fills the MXU M dim on v6e/v7x and is (8,128)-aligned on v5e.
    # Pad M up to a multiple of the tile instead of collapsing the grid to one step.
    tm = min(block_rows, ((M + 7) // 8) * 8)
    M_pad = -(-M // tm) * tm
    num_row_tiles = M_pad // tm
    if M_pad != M:
        xm = jnp.pad(xm, ((0, M_pad - M), (0, 0)))

    has_identity = identity is not None
    if has_identity:
        idm = identity.reshape(-1, D)
        if M_pad != M:
            idm = jnp.pad(idm, ((0, M_pad - M), (0, 0)))

    out_dtype = x.dtype
    act_dtype = _gelu_compute_dtype()
    kernel = _make_ffn_kernel(act_dtype, has_identity)
    grid = (num_row_tiles, nh)

    # VMEM budget: weight/bias chunks (+double-buffer only when chunked), row tiles of
    # x / identity / out (double-buffered), the f32 accumulator, and (tm, th) hidden
    # temporaries, with ~50% headroom; clamped below physical VMEM (64 MiB on v7x).
    wbuf = 1 if nh == 1 else 2
    need = wbuf * (D * th * 2 + th * D * 2 + th * 4) + D * 4
    need += 2 * tm * D * xm.dtype.itemsize
    if has_identity:
        need += 2 * tm * D * idm.dtype.itemsize
    need += 2 * tm * D * jnp.dtype(out_dtype).itemsize
    need += tm * D * 4
    need += tm * th * 6
    kind = _device_kind()
    phys_cap = (56 << 20) if (("v7" in kind) or ("7x" in kind)) else (100 << 20)
    vmem_limit = int(min(max(need * 3 // 2 + (2 << 20), 16 << 20), phys_cap))

    def run(single_buffer_weights):
        resident = {"pipeline_mode": pl.Buffered(1)} if single_buffer_weights else {}
        row_spec = pl.BlockSpec((tm, D), lambda i, k: (i, 0))
        in_specs = [row_spec]
        operands = [xm]
        if has_identity:
            in_specs.append(row_spec)
            operands.append(idm)
        in_specs += [
            pl.BlockSpec((D, th), lambda i, k: (0, k), **resident),  # W1^T chunk
            pl.BlockSpec((1, th), lambda i, k: (0, k), **resident),  # b1 chunk
            pl.BlockSpec((th, D), lambda i, k: (k, 0), **resident),  # W2^T chunk
            pl.BlockSpec((1, D), lambda i, k: (0, 0), **resident),   # b2
        ]
        operands += [w1t, b1r, w2t, b2r]
        return pl.pallas_call(
            kernel,
            out_shape=jax.ShapeDtypeStruct((M_pad, D), out_dtype),
            grid=grid,
            in_specs=in_specs,
            out_specs=pl.BlockSpec((tm, D), lambda i, k: (i, 0)),
            scratch_shapes=[pltpu.VMEM((tm, D), jnp.float32)],
            compiler_params=pltpu.CompilerParams(
                dimension_semantics=("parallel", "arbitrary"),
                vmem_limit_bytes=vmem_limit),
        )(*operands)

    if nh == 1:
        # Constant-index weight blocks are never re-fetched: single-buffer them to
        # halve resident weight VMEM (matters at Swin scale on v7x's 64 MiB VMEM).
        try:
            out = run(True)
        except Exception:
            out = run(False)  # fall back if pl.Buffered(1) is unsupported here
    else:
        out = run(False)      # chunked weights: keep double-buffering for DMA overlap

    if M_pad != M:
        out = out[:M]
    return out.reshape(orig_shape)


def ffn_reference(x, w1, b1, w2, b2, identity=None, *, act_dtype=jnp.float32):
    """Pure-JAX reference mirroring the kernel's mixed-precision choices."""
    if identity is None:
        identity = x
    xf = x.astype(jnp.float32)
    h = xf @ jnp.asarray(w1, jnp.float32).T + jnp.asarray(b1, jnp.float32)
    h = _gelu_tanh(h.astype(act_dtype)).astype(jnp.float32)
    h = h.astype(jnp.bfloat16).astype(jnp.float32)   # mirror bf16 activations into fc2
    y = h @ jnp.asarray(w2, jnp.float32).T + jnp.asarray(b2, jnp.float32)
    return (y + identity.astype(jnp.float32)).astype(x.dtype)


if __name__ == "__main__":
    key = jax.random.PRNGKey(0)
    B, L, D = 2, 200, 128        # M = 400 tokens -> padded to 512 (2 row tiles of 256)
    mlp_ratio = 4.0
    H = int(D * mlp_ratio)       # 512
    drop_rate = 0.0              # nn.Dropout(0.) / DropPath(0.) == Identity
    drop_path_rate = 0.0

    def bf16_repr(a):
        # Keep test data bf16-representable so the bf16 MXU path is lossless.
        return a.astype(jnp.bfloat16).astype(jnp.float32)

    ks = jax.random.split(key, 5)
    x = bf16_repr(jax.random.normal(ks[0], (B, L, D), jnp.float32))

    # PyTorch-style uniform init bounds (1/sqrt(fan_in)).
    bound1 = 1.0 / (D ** 0.5)
    w1 = bf16_repr(jax.random.uniform(ks[1], (H, D), jnp.float32, -bound1, bound1))
    b1 = bf16_repr(jax.random.uniform(ks[2], (H,), jnp.float32, -bound1, bound1))
    bound2 = 1.0 / (H ** 0.5)
    w2 = bf16_repr(jax.random.uniform(ks[3], (D, H), jnp.float32, -bound2, bound2))
    b2 = bf16_repr(jax.random.uniform(ks[4], (D,), jnp.float32, -bound2, bound2))

    params = prepare_ffn_params(w1, b1, w2, b2)   # transpose/cast/pad hoisted (once)
    out = ffn_forward(x, params, drop_rate=drop_rate, drop_path_rate=drop_path_rate,
                      block_rows=256)
    out = jax.block_until_ready(out)

    ref = ffn_reference(x, w1, b1, w2, b2, act_dtype=_gelu_compute_dtype())
    max_err = float(jnp.max(jnp.abs(out - ref)))
    # Tolerance covers bf16 GELU/tanh implementation differences on v6e/v7x.
    assert jnp.allclose(out, ref, atol=2e-2, rtol=2e-2), f"max abs diff = {max_err}"
    print("KERNEL_OK")
</pallas_src>

<mosaic_0001>
module attributes {stable_mosaic.version = 11 : i64} {
  func.func @kernel(%arg0: i32, %arg1: i32, %arg2: memref<256x128xf32, #tpu.memory_space<vmem>>, %arg3: memref<128x512xbf16, #tpu.memory_space<vmem>>, %arg4: memref<1x512xf32, #tpu.memory_space<vmem>>, %arg5: memref<512x128xbf16, #tpu.memory_space<vmem>>, %arg6: memref<1x128xf32, #tpu.memory_space<vmem>>, %arg7: memref<256x128xf32, #tpu.memory_space<vmem>>, %arg8: memref<256x128xf32, #tpu.memory_space<vmem>>) attributes {dimension_semantics = [#tpu.dimension_semantics<parallel>, #tpu.dimension_semantics<arbitrary>], iteration_bounds = array<i64: 2, 1>, scalar_prefetch = 0 : i64, scratch_operands = 1 : i64, tpu.core_type = #tpu.core_type<tc>, window_params = [{transform_indices = @transform_0, window_bounds = array<i64: 256, 128>}, {pipeline_mode = #tpu.pipeline_mode<synchronous>, transform_indices = @transform_1, window_bounds = array<i64: 128, 512>}, {pipeline_mode = #tpu.pipeline_mode<synchronous>, transform_indices = @transform_2, window_bounds = array<i64: 1, 512>}, {pipeline_mode = #tpu.pipeline_mode<synchronous>, transform_indices = @transform_3, window_bounds = array<i64: 512, 128>}, {pipeline_mode = #tpu.pipeline_mode<synchronous>, transform_indices = @transform_4, window_bounds = array<i64: 1, 128>}, {transform_indices = @transform_5, window_bounds = array<i64: 256, 128>}]} {
    %c0_i32 = arith.constant 0 : i32
    %0 = arith.cmpi eq, %arg1, %c0_i32 : i32
    %1 = arith.extui %0 : i1 to i32
    %c0_i32_0 = arith.constant 0 : i32
    %2 = arith.cmpi ne, %1, %c0_i32_0 : i32
    scf.if %2 {
      %cst_19 = arith.constant 0.000000e+00 : f32
      %32 = vector.broadcast %cst_19 : f32 to vector<256x128xf32>
      %c0_20 = arith.constant 0 : index
      %c0_21 = arith.constant 0 : index
      %33 = vector.load %arg8[%c0_20, %c0_21] : memref<256x128xf32, #tpu.memory_space<vmem>>, vector<256x128xf32>
      tpu.vector_store %arg8[%c0_20, %c0_21], %32 {strides = array<i32>} : memref<256x128xf32, #tpu.memory_space<vmem>>, vector<256x128xf32>,
    } else {
    }
    %c0 = arith.constant 0 : index
    %c0_1 = arith.constant 0 : index
    %3 = vector.load %arg2[%c0, %c0_1] : memref<256x128xf32, #tpu.memory_space<vmem>>, vector<256x128xf32>
    %4 = arith.truncf %3 : vector<256x128xf32> to vector<256x128xbf16>
    %c0_2 = arith.constant 0 : index
    %c0_3 = arith.constant 0 : index
    %5 = vector.load %arg3[%c0_2, %c0_3] : memref<128x512xbf16, #tpu.memory_space<vmem>>, vector<128x512xbf16>
    %cst = arith.constant dense<0.000000e+00> : vector<256x512xf32>
    %6 = tpu.matmul %4, %5, %cst {dimension_numbers = #tpu.dot_dimension_numbers<[1], [0], [0], [1], [0, 0, 1, 1], [], []>} : vector<256x128xbf16>, vector<128x512xbf16>, vector<256x512xf32> -> vector<256x512xf32>
    %c0_4 = arith.constant 0 : index
    %c0_5 = arith.constant 0 : index
    %7 = vector.load %arg4[%c0_4, %c0_5] : memref<1x512xf32, #tpu.memory_space<vmem>>, vector<1x512xf32>
    %8 = vector.broadcast %7 : vector<1x512xf32> to vector<256x512xf32>
    %9 = arith.addf %6, %8 : vector<256x512xf32>
    %cst_6 = arith.constant 5.000000e-01 : f32
    %10 = vector.broadcast %cst_6 : f32 to vector<256x512xf32>
    %11 = arith.mulf %10, %9 : vector<256x512xf32>
    %12 = arith.mulf %9, %9 : vector<256x512xf32>
    %13 = arith.mulf %12, %9 : vector<256x512xf32>
    %cst_7 = arith.constant 4.471500e-02 : f32
    %14 = vector.broadcast %cst_7 : f32 to vector<256x512xf32>
    %15 = arith.mulf %14, %13 : vector<256x512xf32>
    %16 = arith.addf %9, %15 : vector<256x512xf32>
    %cst_8 = arith.constant 0.797884583 : f32
    %17 = vector.broadcast %cst_8 : f32 to vector<256x512xf32>
    %18 = arith.mulf %17, %16 : vector<256x512xf32>
    %19 = math.tanh %18 : vector<256x512xf32>
    %cst_9 = arith.constant 1.000000e+00 : f32
    %20 = vector.broadcast %cst_9 : f32 to vector<256x512xf32>
    %21 = arith.addf %20, %19 : vector<256x512xf32>
    %22 = arith.mulf %11, %21 : vector<256x512xf32>
    %c0_10 = arith.constant 0 : index
    %c0_11 = arith.constant 0 : index
    %23 = vector.load %arg8[%c0_10, %c0_11] : memref<256x128xf32, #tpu.memory_space<vmem>>, vector<256x128xf32>
    %24 = arith.truncf %22 : vector<256x512xf32> to vector<256x512xbf16>
    %c0_12 = arith.constant 0 : index
    %c0_13 = arith.constant 0 : index
    %25 = vector.load %arg5[%c0_12, %c0_13] : memref<512x128xbf16, #tpu.memory_space<vmem>>, vector<512x128xbf16>
    %cst_14 = arith.constant dense<0.000000e+00> : vector<256x128xf32>
    %26 = tpu.matmul %24, %25, %cst_14 {dimension_numbers = #tpu.dot_dimension_numbers<[1], [0], [0], [1], [0, 0, 1, 1], [], []>} : vector<256x512xbf16>, vector<512x128xbf16>, vector<256x128xf32> -> vector<256x128xf32>
    %27 = arith.addf %23, %26 : vector<256x128xf32>
    %c0_15 = arith.constant 0 : index
    %c0_16 = arith.constant 0 : index
    %28 = vector.load %arg8[%c0_15, %c0_16] : memref<256x128xf32, #tpu.memory_space<vmem>>, vector<256x128xf32>
    tpu.vector_store %arg8[%c0_15, %c0_16], %27 {strides = array<i32>} : memref<256x128xf32, #tpu.memory_space<vmem>>, vector<256x128xf32>,
    %c0_i32_17 = arith.constant 0 : i32
    %29 = arith.cmpi eq, %arg1, %c0_i32_17 : i32
    %30 = arith.extui %29 : i1 to i32
    %c0_i32_18 = arith.constant 0 : i32
    %31 = arith.cmpi ne, %30, %c0_i32_18 : i32
    scf.if %31 {
      %c0_19 = arith.constant 0 : index
      %c0_20 = arith.constant 0 : index
      %32 = vector.load %arg2[%c0_19, %c0_20] : memref<256x128xf32, #tpu.memory_space<vmem>>, vector<256x128xf32>
      %c0_21 = arith.constant 0 : index
      %c0_22 = arith.constant 0 : index
      %33 = vector.load %arg8[%c0_21, %c0_22] : memref<256x128xf32, #tpu.memory_space<vmem>>, vector<256x128xf32>
      %c0_23 = arith.constant 0 : index
      %c0_24 = arith.constant 0 : index
      %34 = vector.load %arg6[%c0_23, %c0_24] : memref<1x128xf32, #tpu.memory_space<vmem>>, vector<1x128xf32>
      %35 = vector.broadcast %34 : vector<1x128xf32> to vector<256x128xf32>
      %36 = arith.addf %33, %35 : vector<256x128xf32>
      %37 = arith.addf %36, %32 : vector<256x128xf32>
      %c0_25 = arith.constant 0 : index
      %c0_26 = arith.constant 0 : index
      %38 = vector.load %arg7[%c0_25, %c0_26] : memref<256x128xf32, #tpu.memory_space<vmem>>, vector<256x128xf32>
      tpu.vector_store %arg7[%c0_25, %c0_26], %37 {strides = array<i32>} : memref<256x128xf32, #tpu.memory_space<vmem>>, vector<256x128xf32>,
    } else {
    }
    return
  }
  func.func @transform_0(%arg0: i32, %arg1: i32) -> (i32, i32) {
    %c0_i32 = arith.constant 0 : i32
    %c0_i32_0 = arith.constant 0 : i32
    return %arg0, %c0_i32 : i32, i32
  }
  func.func @transform_1(%arg0: i32, %arg1: i32) -> (i32, i32) {
    %c0_i32 = arith.constant 0 : i32
    %c0_i32_0 = arith.constant 0 : i32
    return %c0_i32, %arg1 : i32, i32
  }
  func.func @transform_2(%arg0: i32, %arg1: i32) -> (i32, i32) {
    %c0_i32 = arith.constant 0 : i32
    %c0_i32_0 = arith.constant 0 : i32
    return %c0_i32, %arg1 : i32, i32
  }
  func.func @transform_3(%arg0: i32, %arg1: i32) -> (i32, i32) {
    %c0_i32 = arith.constant 0 : i32
    %c0_i32_0 = arith.constant 0 : i32
    return %arg1, %c0_i32 : i32, i32
  }
  func.func @transform_4(%arg0: i32, %arg1: i32) -> (i32, i32) {
    %c0_i32 = arith.constant 0 : i32
    %c0_i32_0 = arith.constant 0 : i32
    %c0_i32_1 = arith.constant 0 : i32
    return %c0_i32, %c0_i32_0 : i32, i32
  }
  func.func @transform_5(%arg0: i32, %arg1: i32) -> (i32, i32) {
    %c0_i32 = arith.constant 0 : i32
    %c0_i32_0 = arith.constant 0 : i32
    return %arg0, %c0_i32 : i32, i32
  }
}

module attributes {stable_mosaic.version = 11 : i64} {
  func.func @kernel(%arg0: i32, %arg1: i32, %arg2: memref<256x128xf32, #tpu.memory_space<vmem>>, %arg3: memref<128x512xbf16, #tpu.memory_space<vmem>>, %arg4: memref<1x512xf32, #tpu.memory_space<vmem>>, %arg5: memref<512x128xbf16, #tpu.memory_space<vmem>>, %arg6: memref<1x128xf32, #tpu.memory_space<vmem>>, %arg7: memref<256x128xf32, #tpu.memory_space<vmem>>, %arg8: memref<256x128xf32, #tpu.memory_space<vmem>>) attributes {dimension_semantics = [#tpu.dimension_semantics<parallel>, #tpu.dimension_semantics<arbitrary>], iteration_bounds = array<i64: 2, 1>, scalar_prefetch = 0 : i64, scratch_operands = 1 : i64, tpu.core_type = #tpu.core_type<tc>, window_params = [{transform_indices = @transform_0, window_bounds = array<i64: 256, 128>}, {transform_indices = @transform_1, window_bounds = array<i64: 128, 512>}, {transform_indices = @transform_2, window_bounds = array<i64: 1, 512>}, {transform_indices = @transform_3, window_bounds = array<i64: 512, 128>}, {pipeline_mode = #tpu.pipeline_mode<synchronous>, transform_indices = @transform_4, window_bounds = array<i64: 1, 128>}, {transform_indices = @transform_5, window_bounds = array<i64: 256, 128>}]} {
    %c0_i32 = arith.constant 0 : i32
    %0 = arith.cmpi eq, %arg1, %c0_i32 : i32
    %1 = arith.extui %0 : i1 to i32
    %c0_i32_0 = arith.constant 0 : i32
    %2 = arith.cmpi ne, %1, %c0_i32_0 : i32
    scf.if %2 {
      %cst_19 = arith.constant 0.000000e+00 : f32
      %32 = vector.broadcast %cst_19 : f32 to vector<256x128xf32>
      %c0_20 = arith.constant 0 : index
      %c0_21 = arith.constant 0 : index
      %33 = vector.load %arg8[%c0_20, %c0_21] : memref<256x128xf32, #tpu.memory_space<vmem>>, vector<256x128xf32>
      tpu.vector_store %arg8[%c0_20, %c0_21], %32 {strides = array<i32>} : memref<256x128xf32, #tpu.memory_space<vmem>>, vector<256x128xf32>,
    } else {
    }
    %c0 = arith.constant 0 : index
    %c0_1 = arith.constant 0 : index
    %3 = vector.load %arg2[%c0, %c0_1] : memref<256x128xf32, #tpu.memory_space<vmem>>, vector<256x128xf32>
    %4 = arith.truncf %3 : vector<256x128xf32> to vector<256x128xbf16>
    %c0_2 = arith.constant 0 : index
    %c0_3 = arith.constant 0 : index
    %5 = vector.load %arg3[%c0_2, %c0_3] : memref<128x512xbf16, #tpu.memory_space<vmem>>, vector<128x512xbf16>
    %cst = arith.constant dense<0.000000e+00> : vector<256x512xf32>
    %6 = tpu.matmul %4, %5, %cst {dimension_numbers = #tpu.dot_dimension_numbers<[1], [0], [0], [1], [0, 0, 1, 1], [], []>} : vector<256x128xbf16>, vector<128x512xbf16>, vector<256x512xf32> -> vector<256x512xf32>
    %c0_4 = arith.constant 0 : index
    %c0_5 = arith.constant 0 : index
    %7 = vector.load %arg4[%c0_4, %c0_5] : memref<1x512xf32, #tpu.memory_space<vmem>>, vector<1x512xf32>
    %8 = vector.broadcast %7 : vector<1x512xf32> to vector<256x512xf32>
    %9 = arith.addf %6, %8 : vector<256x512xf32>
    %cst_6 = arith.constant 5.000000e-01 : f32
    %10 = vector.broadcast %cst_6 : f32 to vector<256x512xf32>
    %11 = arith.mulf %10, %9 : vector<256x512xf32>
    %12 = arith.mulf %9, %9 : vector<256x512xf32>
    %13 = arith.mulf %12, %9 : vector<256x512xf32>
    %cst_7 = arith.constant 4.471500e-02 : f32
    %14 = vector.broadcast %cst_7 : f32 to vector<256x512xf32>
    %15 = arith.mulf %14, %13 : vector<256x512xf32>
    %16 = arith.addf %9, %15 : vector<256x512xf32>
    %cst_8 = arith.constant 0.797884583 : f32
    %17 = vector.broadcast %cst_8 : f32 to vector<256x512xf32>
    %18 = arith.mulf %17, %16 : vector<256x512xf32>
    %19 = math.tanh %18 : vector<256x512xf32>
    %cst_9 = arith.constant 1.000000e+00 : f32
    %20 = vector.broadcast %cst_9 : f32 to vector<256x512xf32>
    %21 = arith.addf %20, %19 : vector<256x512xf32>
    %22 = arith.mulf %11, %21 : vector<256x512xf32>
    %c0_10 = arith.constant 0 : index
    %c0_11 = arith.constant 0 : index
    %23 = vector.load %arg8[%c0_10, %c0_11] : memref<256x128xf32, #tpu.memory_space<vmem>>, vector<256x128xf32>
    %24 = arith.truncf %22 : vector<256x512xf32> to vector<256x512xbf16>
    %c0_12 = arith.constant 0 : index
    %c0_13 = arith.constant 0 : index
    %25 = vector.load %arg5[%c0_12, %c0_13] : memref<512x128xbf16, #tpu.memory_space<vmem>>, vector<512x128xbf16>
    %cst_14 = arith.constant dense<0.000000e+00> : vector<256x128xf32>
    %26 = tpu.matmul %24, %25, %cst_14 {dimension_numbers = #tpu.dot_dimension_numbers<[1], [0], [0], [1], [0, 0, 1, 1], [], []>} : vector<256x512xbf16>, vector<512x128xbf16>, vector<256x128xf32> -> vector<256x128xf32>
    %27 = arith.addf %23, %26 : vector<256x128xf32>
    %c0_15 = arith.constant 0 : index
    %c0_16 = arith.constant 0 : index
    %28 = vector.load %arg8[%c0_15, %c0_16] : memref<256x128xf32, #tpu.memory_space<vmem>>, vector<256x128xf32>
    tpu.vector_store %arg8[%c0_15, %c0_16], %27 {strides = array<i32>} : memref<256x128xf32, #tpu.memory_space<vmem>>, vector<256x128xf32>,
    %c0_i32_17 = arith.constant 0 : i32
    %29 = arith.cmpi eq, %arg1, %c0_i32_17 : i32
    %30 = arith.extui %29 : i1 to i32
    %c0_i32_18 = arith.constant 0 : i32
    %31 = arith.cmpi ne, %30, %c0_i32_18 : i32
    scf.if %31 {
      %c0_19 = arith.constant 0 : index
      %c0_20 = arith.constant 0 : index
      %32 = vector.load %arg2[%c0_19, %c0_20] : memref<256x128xf32, #tpu.memory_space<vmem>>, vector<256x128xf32>
      %c0_21 = arith.constant 0 : index
      %c0_22 = arith.constant 0 : index
      %33 = vector.load %arg8[%c0_21, %c0_22] : memref<256x128xf32, #tpu.memory_space<vmem>>, vector<256x128xf32>
      %c0_23 = arith.constant 0 : index
      %c0_24 = arith.constant 0 : index
      %34 = vector.load %arg6[%c0_23, %c0_24] : memref<1x128xf32, #tpu.memory_space<vmem>>, vector<1x128xf32>
      %35 = vector.broadcast %34 : vector<1x128xf32> to vector<256x128xf32>
      %36 = arith.addf %33, %35 : vector<256x128xf32>
      %37 = arith.addf %36, %32 : vector<256x128xf32>
      %c0_25 = arith.constant 0 : index
      %c0_26 = arith.constant 0 : index
      %38 = vector.load %arg7[%c0_25, %c0_26] : memref<256x128xf32, #tpu.memory_space<vmem>>, vector<256x128xf32>
      tpu.vector_store %arg7[%c0_25, %c0_26], %37 {strides = array<i32>} : memref<256x128xf32, #tpu.memory_space<vmem>>, vector<256x128xf32>,
    } else {
    }
    return
  }
  func.func @transform_0(%arg0: i32, %arg1: i32) -> (i32, i32) {
    %c0_i32 = arith.constant 0 : i32
    %c0_i32_0 = arith.constant 0 : i32
    return %arg0, %c0_i32 : i32, i32
  }
  func.func @transform_1(%arg0: i32, %arg1: i32) -> (i32, i32) {
    %c0_i32 = arith.constant 0 : i32
    %c0_i32_0 = arith.constant 0 : i32
    return %c0_i32, %arg1 : i32, i32
  }
  func.func @transform_2(%arg0: i32, %arg1: i32) -> (i32, i32) {
    %c0_i32 = arith.constant 0 : i32
    %c0_i32_0 = arith.constant 0 : i32
    return %c0_i32, %arg1 : i32, i32
  }
  func.func @transform_3(%arg0: i32, %arg1: i32) -> (i32, i32) {
    %c0_i32 = arith.constant 0 : i32
    %c0_i32_0 = arith.constant 0 : i32
    return %arg1, %c0_i32 : i32, i32
  }
  func.func @transform_4(%arg0: i32, %arg1: i32) -> (i32, i32) {
    %c0_i32 = arith.constant 0 : i32
    %c0_i32_0 = arith.constant 0 : i32
    %c0_i32_1 = arith.constant 0 : i32
    return %c0_i32, %c0_i32_0 : i32, i32
  }
  func.func @transform_5(%arg0: i32, %arg1: i32) -> (i32, i32) {
    %c0_i32 = arith.constant 0 : i32
    %c0_i32_0 = arith.constant 0 : i32
    return %arg0, %c0_i32 : i32, i32
  }
}

</mosaic_0001>

<bundles_post_ra>
// kernel: tpu_custom_call.1
= control target key start
LH: loop header
LB: loop body
LE: loop exit
PB: predicated region body
PF: predicated region fallthrough
CT: control target
= control target key end

     0   :  { %s5993_s0 = inlined_call_operand.hbm [shape: f32[512,128], index: 0, kind: input, shape index: {}]   ;;  %s5994_s1 = inlined_call_operand.hbm [shape: bf16[128,512], index: 1, kind: input, shape index: {}]   ;;  %s5995_s2 = inlined_call_operand.hbm [shape: f32[1,512], index: 2, kind: input, shape index: {}]   ;;  %s5996_s3 = inlined_call_operand.hbm [shape: bf16[512,128], index: 3, kind: input, shape index: {}]   ;;  %s5997_s4 = inlined_call_operand.vmem [shape: f32[1,128], index: 4, kind: input, shape index: {}]   ;;  %s5998_s5 = inlined_call_operand.hbm [shape: f32[512,128], index: 5, kind: output, shape index: {}]  }
   0x1   :  { %6066 = sst [smem:[#allocation53_spill]] %s5994_s1 }
   0x2   :  { %10 = vsyncpa [#allocation4], 0 }
   0x3   :  { %12 = vsyncpa [#allocation4 + $0x1], 0 }
   0x4   :  { %13 = vsyncpa [#allocation7], 0 }
   0x5   :  { %14 = vsyncpa [#allocation10], 0 }
   0x6   :  { %15 = vsyncpa [#allocation5], 0 }
   0x7   :  { %17 = vsyncpa [#allocation5 + $0x1], 0  ;;  %s4191_s18 = smov 0   ;;  %s4193_s19 = smov 0  }
   0x8   :  { %s4195_s20 = smov 0   ;;  %s4197_s21 = smov 0  }
   0x9   :  { %s4199_s22 = smov 0   ;;  %s4201_s23 = smov 0  }
   0xa LB: > { %s3201_s24 = sadd.s32 4294967295, %s4145_s23   ;;  %s3202_s25 = sadd.s32 4294967294, %s4145_s23   ;;  %s4145_s23 = sphi %s4201_s23, %s23_s23   ;;  %s4141_s22 = sphi %s4199_s22, %s6295_s22   ;;  %s4137_s21 = sphi %s4197_s21, %s6294_s21   ;;  %s4133_s20 = sphi %s4195_s20, %s6293_s20   ;;  %s4129_s19 = sphi %s4193_s19, %s6292_s19   ;;  %s4125_s18 = sphi %s4191_s18, %s6291_s18  }
   0xb   : > { %p55_p0 = scmp.ne.s32.totalorder %s4129_s19, %s4125_s18  ;;  %p4225_p1 = scmp.eq.s32.totalorder %s3201_s24, 0 }
   0xc   : > { %p4229_p2 = scmp.eq.s32.totalorder %s3201_s24, 1  ;;  %p184_p3 = scmp.eq.s32.totalorder %s3202_s25, 1 }
   0xd   : > { %s6067_s26 = scalar_select %p4225_p1, 1, 0 }
   0xe   : > { %p4235_p4 = por %p4225_p1, %p55_p0  ;;  %p3203_p5 = scmp.ge.s32.totalorder %s4145_s23, 1 }
   0xf   : > { %p4240_p6 = por %p184_p3, %p55_p0  ;;  %p191_p7 = scmp.lt.s32.totalorder %s4145_s23, 3 }
  0x10   : > { %s6069_s28 = scalar_select %p4235_p4, 1, 0 }
  0x11   : > { %s6070_s29 = scalar_select %p4240_p6, 1, 0 }
  0x12   : > { %p4245_p8 = pnand %p3203_p5, %p191_p7  ;;  %s4147_s6 = smov [#allocation6]  }
  0x13   : > { %s206_s7 = sshll.u32 %s4147_s6, 4  ;;  %s4148_s9 = smov [#allocation8]   ;;  %s207_s7 = int_to_ptr.vmem [resolvable:$true] %s206_s7 }
  0x14   : > { %s6071_s30 = scalar_select %p4245_p8, 1, 0 }
  0x15   : > { %p3529_p9 = pneg %p4245_p8  ;;  %s223_s10 = sshll.u32 %s4148_s9, 4  ;;  %s224_s10 = int_to_ptr.vmem [resolvable:$true] %s223_s10 }
  0x16   : > { %s4149_s11 = smov [#allocation9]   ;;  %s3962_s13 = scalar_lea.vmem %s207_s7, 4096 }
  0x17   : > { %p4254_p11 = pnand %p3529_p9, %p4225_p1  ;;  %s236_s12 = sshll.u32 %s4149_s11, 4  ;;  %s237_s12 = int_to_ptr.vmem [resolvable:$true] %s236_s12 }
  0x18   : > { %p3963_p13 = scmp.ne.s32.totalorder %s207_s7, %s3962_s13  ;;  %p3970_p5 = scmp.lt.s32.totalorder %s207_s7, %s207_s7 }
  0x19   : > { %p3953_p12 = pneg %p4254_p11  ;;  %p3971_p7 = scmp.lt.s32.totalorder %s3962_s13, %s3962_s13 }
  0x1b   : > { %p3965_p0 = pnand %p3963_p13, %p3953_p12  ;;  %p3972_p9 = por %p3971_p7, %p3970_p5 }
  0x1d   : > { %p3966_p3 = pneg %p3965_p0 }
  0x1f   : > { %p3973_p10 = pnand %p3972_p9, %p3966_p3 }
  0x21   : > { %3976 = shalt.err (!%p3973_p10)
}
  0x22   : > { %s4150_s14 = smov 256   ;;  %s4151_s15 = smov 16  }
  0x23   : > { %s6073_s1 = sld [smem:[#allocation53_spill]]  ;;  %s3988_s24 = scalar_lea.vmem %s224_s10, 64 }
  0x24   : > { %p3989_p6 = scmp.ne.s32.totalorder %s224_s10, %s3988_s24  ;;  %p3996_p1 = scmp.lt.s32.totalorder %s224_s10, %s224_s10 }
  0x25   : > { %p3997_p4 = scmp.lt.s32.totalorder %s3988_s24, %s3988_s24 }
  0x26   : > { %p3991_p13 = pnand %p3989_p6, %p3953_p12 }
  0x27   : > { %p3998_p5 = por %p3997_p4, %p3996_p1 }
  0x28   : > { %p3992_p0 = pneg %p3991_p13 }
  0x29   : > { %3532 = dma.hbm_to_vmem [thread:$0]  (!%p4254_p11), %s6073_s1, 4096, %s207_s7, [#allocation7], %s4150_s14, %s4150_s14, %s4151_s15  }
  0x2a   : > { %p3999_p3 = pnand %p3998_p5, %p3992_p0 }
  0x2c   : > { %4002 = shalt.err (!%p3999_p3)
}
  0x2d   : > { %3535 = dma.hbm_to_vmem [thread:$0]  (!%p4254_p11), %s5995_s2, 64, %s224_s10, [#allocation7]  }
  0x2e   : > { %s4014_s7 = scalar_lea.vmem %s237_s12, 4096  ;;  %p4022_p9 = scmp.lt.s32.totalorder %s237_s12, %s237_s12 }
  0x2f   : > { %p4015_p10 = scmp.ne.s32.totalorder %s237_s12, %s4014_s7  ;;  %p4023_p13 = scmp.lt.s32.totalorder %s4014_s7, %s4014_s7 }
  0x31   : > { %p4017_p7 = pnand %p4015_p10, %p3953_p12  ;;  %p4024_p8 = por %p4023_p13, %p4022_p9 }
  0x33   : > { %p4018_p6 = pneg %p4017_p7 }
  0x35   : > { %p4025_p1 = pnand %p4024_p8, %p4018_p6 }
  0x37   : > { %4028 = shalt.err (!%p4025_p1)
}
  0x38   : > { %s4152_s9 = smov 64   ;;  %s4153_s10 = smov 4  }
  0x39   : > { %3538 = dma.hbm_to_vmem [thread:$0]  (!%p4254_p11), %s5996_s3, 4096, %s237_s12, [#allocation10], %s4152_s9, %s4152_s9, %s4153_s10  }
  0x3a   : > { %s42_s14 = sadd.s32 1, %s4133_s20  ;;  %s35_s15 = sadd.s32 1, %s4141_s22 }
  0x3b   : > { %p49_p4 = scmp.ne.s32.totalorder %s4133_s20, %s4129_s19  ;;  %p37_p8 = scmp.ge.s32.totalorder %s35_s15, 2 }
  0x3c   : > { %p50_p12 = scmp.eq.s32.totalorder %s4145_s23, 0  ;;  %p3550_p5 = scmp.lt.s32.totalorder %s4145_s23, 2 }
  0x3d   : > { %p4291_p0 = por %p4229_p2, %p49_p4  ;;  %s6297_s15 = smov (%p37_p8, %s35_s15), 0 }
  0x3e   : > { %p51_p3 = por %p50_p12, %p49_p4  ;;  %s253_s8 = sand.u32 1, %s4133_s20  }
  0x3f   : > { %s39_s17 = ssub.s32 %s4141_s22, %s6297_s15  ;;  %s3208_s12 = sshll.u32 %s253_s8, 8 }
  0x40   : > { %p40_p10 = scmp.eq.s32.totalorder %s39_s17, 0  ;;  %s3287_s24 = sshll.u32 %s4141_s22, 12 }
  0x41   : > { %s263_s27 = scalar_lea.hbm %s5993_s0, %s3287_s24  ;;  %s257_s9 = scalar_lea.vmem [#allocation3], %s3208_s12 }
  0x42   : > { %s4303_s25 = scalar_select %p40_p10, %s4133_s20, %s42_s14  }
  0x43   : > { %s264_s10 = sshll.u32 %s257_s9, 4  ;;  %p4310_p2 = pnand %p3550_p5, %p51_p3  ;;  %s265_s10 = int_to_ptr.vmem [resolvable:$true] %s264_s10 }
  0x44   : > { %s254_s13 = scalar_lea.sflag [#allocation4], %s253_s8  ;;  %s4042_s17 = scalar_lea.vmem %s265_s10, 4096 }
  0x45   : > { %p4031_p11 = pneg %p4310_p2  ;;  %p4043_p7 = scmp.ne.s32.totalorder %s265_s10, %s4042_s17 }
  0x46   : > { %s4154_s14 = smov [#allocation3]  }
  0x47   : > { %p4045_p6 = pnand %p4043_p7, %p4031_p11  ;;  %s4047_s1 = sshll.u32 %s4154_s14, 4  ;;  %s4048_s1 = int_to_ptr.vmem [resolvable:$false] %s4047_s1 }
  0x48   : > { %s4049_s24 = scalar_lea.vmem %s4048_s1, 8192  ;;  %p4050_p13 = scmp.lt.s32.totalorder %s265_s10, %s4048_s1 }
  0x49   : > { %p4046_p9 = pneg %p4045_p6  ;;  %p4051_p1 = scmp.lt.s32.totalorder %s4049_s24, %s4042_s17 }
  0x4b   : > { %p4052_p4 = por %p4051_p1, %p4050_p13 }
  0x4d   : > { %p4053_p8 = pnand %p4052_p4, %p4046_p9 }
  0x4f   : > { %4056 = shalt.err (!%p4053_p8)
}
  0x50   : > { %s4155_s12 = smov 128   ;;  %s4156_s6 = smov 8  }
  0x51   : > { %3542 = dma.hbm_to_vmem [thread:$0]  (!%p4310_p2), %s263_s27, 4096, %s265_s10, %s254_s13, %s4155_s12, %s4155_s12, %s4156_s6  }
  0x52   : > { %p6076_p12 = scmp.ne.s32.totalorder %s6071_s30, 0 }
  0x54   : > { %276 = sbr.rel (%p6076_p12) target bundleno = 898 (0x382), region = 40 }
  0x59   : > { %s4321_s8 = sand.u32 1, %s4129_s19   ;;  %p6077_p5 = scmp.ne.s32.totalorder %s6069_s28, 0 }
  0x5a   : > { %s3212_s1 = sshll.u32 %s4321_s8, 8  ;;  %s279_s7 = scalar_lea.sflag [#allocation4], %s4321_s8 }
  0x5b   : > { %s4327_s9 = scalar_lea.vmem [#allocation3], %s3212_s1 }
  0x5c   : > { %4108 = dma.done.wait (%p6077_p5), %s279_s7, 4096  }
  0x5d   : > { %4110 = vsyncadd (%p6077_p5), %s279_s7, 4294963200  ;;  %p6078_p3 = scmp.ne.s32.totalorder %s6067_s26, 0 }
  0x5f   : > { %4112 = dma.done.wait (%p6078_p3), [#allocation7], 4160  }
  0x60   : > { %4114 = vsyncadd (%p6078_p3), [#allocation7], 4294963136 }
  0x61   : > { %4116 = dma.done.wait (%p6078_p3), [#allocation10], 4096  }
  0x62   : > { %4118 = vsyncadd (%p6078_p3), [#allocation10], 4294963200  ;;  %v4157_v0 = vmov 0   ;;  %v3615_v1 = vld [vmem:[#allocation6 + $0xe4] ss:$16 sps:$4 sm:$0xff]   ;;  %v364_v34 = vld [vmem:[%s4327_s9 + $0x8] sm:$0xff] }
  0x63   : > { %657 = vmatprep.mubr.bf16.mxu0 %v4157_v0  ;;  %850 = vmatprep.mubr.bf16.mxu1 %v4157_v0  ;;  %v3617_v2 = vld [vmem:[#allocation6 + $0xec] ss:$16 sps:$4 sm:$0xff]   ;;  %v3619_v3 = vld [vmem:[#allocation6 + $0xe0] ss:$16 sps:$4 sm:$0xff]   ;;  %v3620_v4 = vld [vmem:[#allocation6 + $0xe8] ss:$16 sps:$4 sm:$0xff]  }
  0x64   : > { %625 = vmatprep.subr.bf16.mxu0 %v3615_v1  ;;  %818 = vmatprep.subr.bf16.mxu1 %v3617_v2  ;;  %v3621_v5 = vld [vmem:[#allocation6 + $0xc4] ss:$16 sps:$4 sm:$0xff]   ;;  %v3623_v6 = vld [vmem:[#allocation6 + $0xcc] ss:$16 sps:$4 sm:$0xff]   ;;  %v3625_v7 = vld [vmem:[#allocation6 + $0xc0] ss:$16 sps:$4 sm:$0xff]  }
  0x65   : > { %626 = vmatpush1.bf16.msra.mxu0 %v3619_v3  ;;  %819 = vmatpush1.bf16.msra.mxu1 %v3620_v4  ;;  %v3626_v8 = vld [vmem:[#allocation6 + $0xc8] ss:$16 sps:$4 sm:$0xff]   ;;  %v3627_v9 = vld [vmem:[#allocation6 + $0xa4] ss:$16 sps:$4 sm:$0xff]   ;;  %v3629_v10 = vld [vmem:[#allocation6 + $0xac] ss:$16 sps:$4 sm:$0xff]  }
  0x66   : > { %627 = vmatprep.subr.bf16.mxu0 %v3621_v5  ;;  %820 = vmatprep.subr.bf16.mxu1 %v3623_v6  ;;  %v3631_v11 = vld [vmem:[#allocation6 + $0xa0] ss:$16 sps:$4 sm:$0xff]   ;;  %v3632_v12 = vld [vmem:[#allocation6 + $0xa8] ss:$16 sps:$4 sm:$0xff]   ;;  %v3633_v13 = vld [vmem:[#allocation6 + $0x84] ss:$16 sps:$4 sm:$0xff]  }
  0x67   : > { %v3635_v14 = vld [vmem:[#allocation6 + $0x8c] ss:$16 sps:$4 sm:$0xff]   ;;  %v3637_v15 = vld [vmem:[#allocation6 + $0x80] ss:$16 sps:$4 sm:$0xff]   ;;  %v3638_v16 = vld [vmem:[#allocation6 + $0x88] ss:$16 sps:$4 sm:$0xff]  }
  0x68   : > { %v3639_v17 = vld [vmem:[#allocation6 + $0x64] ss:$16 sps:$4 sm:$0xff]   ;;  %v3641_v18 = vld [vmem:[#allocation6 + $0x6c] ss:$16 sps:$4 sm:$0xff]   ;;  %v3643_v19 = vld [vmem:[#allocation6 + $0x60] ss:$16 sps:$4 sm:$0xff]  }
  0x69   : > { %628 = vmatpush1.bf16.msra.mxu0 %v3625_v7  ;;  %821 = vmatpush1.bf16.msra.mxu1 %v3626_v8  ;;  %v3644_v20 = vld [vmem:[#allocation6 + $0x68] ss:$16 sps:$4 sm:$0xff]   ;;  %v3645_v21 = vld [vmem:[#allocation6 + $0x44] ss:$16 sps:$4 sm:$0xff]   ;;  %v3647_v22 = vld [vmem:[#allocation6 + $0x4c] ss:$16 sps:$4 sm:$0xff]  }
  0x6a   : > { %629 = vmatprep.subr.bf16.mxu0 %v3627_v9  ;;  %822 = vmatprep.subr.bf16.mxu1 %v3629_v10  ;;  %v3649_v23 = vld [vmem:[#allocation6 + $0x40] ss:$16 sps:$4 sm:$0xff]   ;;  %v3650_v24 = vld [vmem:[#allocation6 + $0x48] ss:$16 sps:$4 sm:$0xff]   ;;  %v3651_v25 = vld [vmem:[#allocation6 + $0x24] ss:$16 sps:$4 sm:$0xff]  }
  0x6b   : > { %v3653_v26 = vld [vmem:[#allocation6 + $0x2c] ss:$16 sps:$4 sm:$0xff]   ;;  %v3655_v27 = vld [vmem:[#allocation6 + $0x20] ss:$16 sps:$4 sm:$0xff]   ;;  %v3656_v28 = vld [vmem:[#allocation6 + $0x28] ss:$16 sps:$4 sm:$0xff]  }
  0x6c   : > { %v3657_v29 = vld [vmem:[#allocation6 + $0x4] ss:$16 sps:$4 sm:$0xff]   ;;  %v3659_v30 = vld [vmem:[#allocation6 + $0xc] ss:$16 sps:$4 sm:$0xff]   ;;  %v3661_v31 = vld [vmem:[#allocation6] ss:$16 sps:$4 sm:$0xff]  }
  0x6d   : > { %630 = vmatpush1.bf16.msra.mxu0 %v3631_v11  ;;  %823 = vmatpush1.bf16.msra.mxu1 %v3632_v12  ;;  %v3662_v32 = vld [vmem:[#allocation6 + $0x8] ss:$16 sps:$4 sm:$0xff]   ;;  %v363_v33 = vld [vmem:[%s4327_s9] sm:$0xff]  ;;  %v365_v39 = vld [vmem:[%s4327_s9 + $0x10] sm:$0xff]  ;;  %s5848_s30 = scalar_lea.vmem [#allocation11], %s3212_s1  ;;  %s3288_s27 = sshll.u32 %s4137_s21, 12 }
  0x6e   : > { %631 = vmatprep.subr.bf16.mxu0 %v3633_v13  ;;  %824 = vmatprep.subr.bf16.mxu1 %v3635_v14  ;;  %v3663_v35 = vld [vmem:[#allocation9 + $0x78] sm:$0xff]   ;;  %v395_v36 = vpack.c.bf16 %v364_v34, %v363_v33  ;;  %v3667_v42 = vld [vmem:[#allocation9 + $0x70] sm:$0xff]   ;;  %v3671_v47 = vld [vmem:[#allocation9 + $0x68] sm:$0xff]   ;;  %s3085_s10 = sshll.u32 %s5848_s30, 4  ;;  %s5942_s17 = scalar_lea.hbm %s5998_s5, %s3288_s27  ;;  %s5944_s10 = int_to_ptr.vmem [resolvable:$true] %s3085_s10 }
  0x6f   : > { %v3664_v37 = vld [vmem:[#allocation9 + $0xf8] sm:$0xff]   ;;  %v3668_v43 = vld [vmem:[#allocation9 + $0xf0] sm:$0xff]   ;;  %v3672_v48 = vld [vmem:[#allocation9 + $0xe8] sm:$0xff]   ;;  %s3072_s14 = scalar_lea.sflag [#allocation5], %s4321_s8  ;;  %s4057_s24 = scalar_lea.vmem %s5944_s10, 4096 }
  0x70   : > { %v3665_v38 = vld [vmem:[#allocation9 + $0x38] sm:$0xff]   ;;  %v3669_v44 = vld [vmem:[#allocation9 + $0x30] sm:$0xff]   ;;  %v368_v50 = vld [vmem:[%s4327_s9 + $0x28] sm:$0xff]  ;;  %p4058_p10 = scmp.ne.s32.totalorder %s5944_s10, %s4057_s24  ;;  %s4158_s21 = smov [#allocation11]  }
  0x71   : > { %632 = vmatpush1.bf16.msra.mxu0 %v3637_v15  ;;  %825 = vmatpush1.bf16.msra.mxu1 %v3638_v16  ;;  %v3666_v40 = vld [vmem:[#allocation9 + $0xb8] sm:$0xff]   ;;  %v3670_v46 = vld [vmem:[#allocation9 + $0xb0] sm:$0xff]   ;;  %v3673_v51 = vld [vmem:[#allocation9 + $0x28] sm:$0xff]   ;;  %s4061_s12 = sshll.u32 %s4158_s21, 4  ;;  %s4062_s12 = int_to_ptr.vmem [resolvable:$false] %s4061_s12 }
  0x72   : > { %633 = vmatprep.subr.bf16.mxu0 %v3639_v17  ;;  %826 = vmatprep.subr.bf16.mxu1 %v3641_v18  ;;  %v366_v41 = vld [vmem:[%s4327_s9 + $0x18] sm:$0xff]  ;;  %v367_v49 = vld [vmem:[%s4327_s9 + $0x20] sm:$0xff]  ;;  %v3674_v52 = vld [vmem:[#allocation9 + $0xa8] sm:$0xff]   ;;  %p4059_p2 = pnand %p4058_p10, %p4291_p0  ;;  %s4063_s6 = scalar_lea.vmem %s4062_s12, 8192 }
  0x73   : > { %v396_v45 = vpack.c.bf16 %v366_v41, %v365_v39  ;;  %v3675_v53 = vld [vmem:[#allocation9 + $0x60] sm:$0xff]   ;;  %v397_v56 = vpack.c.bf16 %v368_v50, %v367_v49  ;;  %v3679_v58 = vld [vmem:[#allocation9 + $0x58] sm:$0xff]   ;;  %v369_v60 = vld [vmem:[%s4327_s9 + $0x30] sm:$0xff]  ;;  %v445_v50 = vlaneseq  ;;  %p4064_p7 = scmp.lt.s32.totalorder %s5944_s10, %s4062_s12  ;;  %p4065_p6 = scmp.lt.s32.totalorder %s4063_s6, %s4057_s24 }
  0x74   : > { %v3676_v54 = vld [vmem:[#allocation9 + $0xe0] sm:$0xff]   ;;  %v3680_v59 = vld [vmem:[#allocation9 + $0xd8] sm:$0xff]   ;;  %v3683_v1 = vld [vmem:[#allocation9 + $0x50] sm:$0xff]   ;;  %p4060_p11 = pneg %p4059_p2 }
  0x75   : > { %634 = vmatpush1.bf16.msra.mxu0 %v3643_v19  ;;  %827 = vmatpush1.bf16.msra.mxu1 %v3644_v20  ;;  %v3677_v55 = vld [vmem:[#allocation9 + $0x20] sm:$0xff]   ;;  %v370_v61 = vld [vmem:[%s4327_s9 + $0x38] sm:$0xff]  ;;  %v373_v9 = vld [vmem:[%s4327_s9 + $0x50] sm:$0xff]  ;;  %p4066_p9 = por %p4065_p6, %p4064_p7 }
  0x76   : > { %635 = vmatprep.subr.bf16.mxu0 %v3645_v21  ;;  %828 = vmatprep.subr.bf16.mxu1 %v3647_v22  ;;  %v3678_v57 = vld [vmem:[#allocation9 + $0xa0] sm:$0xff]   ;;  %v3681_v62 = vld [vmem:[#allocation9 + $0x18] sm:$0xff]   ;;  %v3684_v2 = vld [vmem:[#allocation9 + $0xd0] sm:$0xff]   ;;  %v398_v4 = vpack.c.bf16 %v370_v61, %v369_v60 }
  0x77   : > { %v3682_v63 = vld [vmem:[#allocation9 + $0x98] sm:$0xff]   ;;  %v3685_v3 = vld [vmem:[#allocation9 + $0x10] sm:$0xff]   ;;  %v372_v7 = vld [vmem:[%s4327_s9 + $0x48] sm:$0xff]  ;;  %p4067_p13 = pnand %p4066_p9, %p4060_p11 }
  0x78   : > { %v3686_v5 = vld [vmem:[#allocation9 + $0x90] sm:$0xff]   ;;  %v371_v6 = vld [vmem:[%s4327_s9 + $0x40] sm:$0xff]  ;;  %v376_v13 = vld [vmem:[%s4327_s9 + $0x68] sm:$0xff] }
  0x79   : > { %636 = vmatpush1.bf16.msra.mxu0 %v3649_v23  ;;  %829 = vmatpush1.bf16.msra.mxu1 %v3650_v24  ;;  %v399_v8 = vpack.c.bf16 %v372_v7, %v371_v6  ;;  %v374_v10 = vld [vmem:[%s4327_s9 + $0x58] sm:$0xff]  ;;  %v375_v12 = vld [vmem:[%s4327_s9 + $0x60] sm:$0xff]  ;;  %v377_v15 = vld [vmem:[%s4327_s9 + $0x70] sm:$0xff] }
  0x7a   : > { %637 = vmatprep.subr.bf16.mxu0 %v3651_v25  ;;  %830 = vmatprep.subr.bf16.mxu1 %v3653_v26  ;;  %v400_v11 = vpack.c.bf16 %v374_v10, %v373_v9  ;;  %v401_v14 = vpack.c.bf16 %v376_v13, %v375_v12  ;;  %v378_v16 = vld [vmem:[%s4327_s9 + $0x78] sm:$0xff]  ;;  %v379_v18 = vld [vmem:[%s4327_s9 + $0x80] sm:$0xff]  ;;  %v380_v19 = vld [vmem:[%s4327_s9 + $0x88] sm:$0xff] }
  0x7b   : > { %v402_v17 = vpack.c.bf16 %v378_v16, %v377_v15  ;;  %v403_v20 = vpack.c.bf16 %v380_v19, %v379_v18  ;;  %v381_v21 = vld [vmem:[%s4327_s9 + $0x90] sm:$0xff]  ;;  %v382_v22 = vld [vmem:[%s4327_s9 + $0x98] sm:$0xff]  ;;  %v383_v24 = vld [vmem:[%s4327_s9 + $0xa0] sm:$0xff] }
  0x7c   : > { %v404_v23 = vpack.c.bf16 %v382_v22, %v381_v21  ;;  %v384_v25 = vld [vmem:[%s4327_s9 + $0xa8] sm:$0xff]  ;;  %v389_v33 = vld [vmem:[%s4327_s9 + $0xd0] sm:$0xff]  ;;  %v390_v34 = vld [vmem:[%s4327_s9 + $0xd8] sm:$0xff] }
  0x7d   : > { %638 = vmatpush1.bf16.msra.mxu0 %v3655_v27  ;;  %831 = vmatpush1.bf16.msra.mxu1 %v3656_v28  ;;  %v405_v26 = vpack.c.bf16 %v384_v25, %v383_v24  ;;  %v385_v27 = vld [vmem:[%s4327_s9 + $0xb0] sm:$0xff]  ;;  %v386_v28 = vld [vmem:[%s4327_s9 + $0xb8] sm:$0xff]  ;;  %v408_v39 = vpack.c.bf16 %v390_v34, %v389_v33  ;;  %v392_v41 = vld [vmem:[%s4327_s9 + $0xe8] sm:$0xff] }
  0x7e   : > { %639 = vmatprep.subr.bf16.mxu0 %v3657_v29  ;;  %832 = vmatprep.subr.bf16.mxu1 %v3659_v30  ;;  %v406_v29 = vpack.c.bf16 %v386_v28, %v385_v27  ;;  %v387_v30 = vld [vmem:[%s4327_s9 + $0xc0] sm:$0xff] }
  0x7f   : > { %v3694_v49 = vld [vmem:[#allocation9 + $0x80] sm:$0xff]  }
  0x81   : > { %640 = vmatpush1.bf16.msra.mxu0 %v3661_v31  ;;  %833 = vmatpush1.bf16.msra.mxu1 %v3662_v32  ;;  %v388_v31 = vld [vmem:[%s4327_s9 + $0xc8] sm:$0xff] }
  0x82   : > { %3289 = vmatprep.subr.bf16.mxu0 %v3663_v35  ;;  %3401 = vmatprep.subr.bf16.mxu1 %v3664_v37  ;;  %v407_v32 = vpack.c.bf16 %v388_v31, %v387_v30  ;;  %v3687_v35 = vld [vmem:[#allocation9 + $0x48] sm:$0xff]  }
  0x83   : > { %v3689_v37 = vld [vmem:[#allocation9 + $0x8] sm:$0xff]  }
  0x84   : > { %658 = vmatmul.mubr.bf16.vlgmr.msra.gmra.mxu0 %v395_v36  ;;  %851 = vmatmul.mubr.bf16.vlgmr.msra.gmra.mxu1 %v395_v36  ;;  %v3688_v36 = vld [vmem:[#allocation9 + $0xc8] sm:$0xff]  }
  0x85   : > { %667 = vmatprep.mubr.bf16.mxu0 %v4157_v0  ;;  %860 = vmatprep.mubr.bf16.mxu1 %v4157_v0 }
  0x86   : > { %3290 = vmatpush3.bf16.msra.mxu0 %v3665_v38  ;;  %3402 = vmatpush3.bf16.msra.mxu1 %v3666_v40  ;;  %v3690_v38 = vld [vmem:[#allocation9 + $0x88] sm:$0xff]   ;;  %v391_v40 = vld [vmem:[%s4327_s9 + $0xe0] sm:$0xff] }
  0x87   : > { %3291 = vmatprep.subr.bf16.mxu0 %v3667_v42  ;;  %3403 = vmatprep.subr.bf16.mxu1 %v3668_v43  ;;  %v409_v42 = vpack.c.bf16 %v392_v41, %v391_v40  ;;  %v393_v43 = vld [vmem:[%s4327_s9 + $0xf0] sm:$0xff] }
  0x8a   : > { %3292 = vmatpush3.bf16.msra.mxu0 %v3669_v44  ;;  %3404 = vmatpush3.bf16.msra.mxu1 %v3670_v46  ;;  %v394_v44 = vld [vmem:[%s4327_s9 + $0xf8] sm:$0xff]  ;;  %v3692_v46 = vld [vmem:[#allocation9 + $0xc0] sm:$0xff]  }
  0x8b   : > { %3293 = vmatprep.subr.bf16.mxu0 %v3671_v47  ;;  %3405 = vmatprep.subr.bf16.mxu1 %v3672_v48  ;;  %v410_v47 = vpack.c.bf16 %v394_v44, %v393_v43  ;;  %v3693_v48 = vld [vmem:[#allocation9] sm:$0xff]  }
  0x8c   : > { %668 = vmatmul.mubr.bf16.gmra.mxu0 %v396_v45  ;;  %861 = vmatmul.mubr.bf16.gmra.mxu1 %v396_v45  ;;  %v3691_v45 = vld [vmem:[#allocation9 + $0x40] sm:$0xff]  }
  0x8d   : > { %677 = vmatprep.mubr.bf16.mxu0 %v4157_v0  ;;  %870 = vmatprep.mubr.bf16.mxu1 %v4157_v0 }
  0x8e   : > { %3294 = vmatpush3.bf16.msra.mxu0 %v3673_v51  ;;  %3406 = vmatpush3.bf16.msra.mxu1 %v3674_v52  ;;  %v446_v51 = vshrl.u32 %v445_v50, 7 }
  0x8f   : > { %3295 = vmatprep.subr.bf16.mxu0 %v3675_v53  ;;  %3407 = vmatprep.subr.bf16.mxu1 %v3676_v54  ;;  %v443_v54 = vld [vmem:[#allocation8] sm:$0xf] }
  0x90   : > { %v447_v52 = vsub.s32 0, %v446_v51  ;;  %v455_v53 = vsub.s32 2, %v446_v51 }
  0x92   : > { %3296 = vmatpush3.bf16.msra.mxu0 %v3677_v55  ;;  %3408 = vmatpush3.bf16.msra.mxu1 %v3678_v57  ;;  %v451_v55 = vsub.s32 1, %v446_v51  ;;  %v4407_v57 = vrot.slane %v443_v54, %v455_v53 }
  0x93   : > { %3297 = vmatprep.subr.bf16.mxu0 %v3679_v58  ;;  %3409 = vmatprep.subr.bf16.mxu1 %v3680_v59 }
  0x94   : > { %678 = vmatmul.mubr.bf16.gmra.mxu0 %v397_v56  ;;  %871 = vmatmul.mubr.bf16.gmra.mxu1 %v397_v56  ;;  %v4405_v56 = vrot.slane %v443_v54, %v447_v52  ;;  %v4409_v60 = vrot.slane %v443_v54, %v451_v55 }
  0x95   : > { %687 = vmatprep.mubr.bf16.mxu0 %v4157_v0  ;;  %880 = vmatprep.mubr.bf16.mxu1 %v4157_v0 }
  0x96   : > { %3298 = vmatpush3.bf16.msra.mxu0 %v3681_v62  ;;  %3410 = vmatpush3.bf16.msra.mxu1 %v3682_v63 }
  0x97   : > { %3299 = vmatprep.subr.bf16.mxu0 %v3683_v1  ;;  %3411 = vmatprep.subr.bf16.mxu1 %v3684_v2 }
  0x9a   : > { %3300 = vmatpush3.bf16.msra.mxu0 %v3685_v3  ;;  %3412 = vmatpush3.bf16.msra.mxu1 %v3686_v5 }
  0x9b   : > { %3301 = vmatprep.subr.bf16.mxu0 %v3687_v35  ;;  %3413 = vmatprep.subr.bf16.mxu1 %v3688_v36 }
  0x9c   : > { %688 = vmatmul.mubr.bf16.gmra.mxu0 %v398_v4  ;;  %881 = vmatmul.mubr.bf16.gmra.mxu1 %v398_v4 }
  0x9d   : > { %697 = vmatprep.mubr.bf16.mxu0 %v4157_v0  ;;  %890 = vmatprep.mubr.bf16.mxu1 %v4157_v0 }
  0x9e   : > { %3302 = vmatpush3.bf16.msra.mxu0 %v3689_v37  ;;  %3414 = vmatpush3.bf16.msra.mxu1 %v3690_v38 }
  0x9f   : > { %3303 = vmatprep.subr.bf16.mxu0 %v3691_v45  ;;  %3415 = vmatprep.subr.bf16.mxu1 %v3692_v46 }
  0xa2   : > { %3304 = vmatpush3.bf16.msra.mxu0 %v3693_v48  ;;  %3416 = vmatpush3.bf16.msra.mxu1 %v3694_v49 }
  0xa4   : > { %698 = vmatmul.mubr.bf16.gmra.mxu0 %v399_v8  ;;  %891 = vmatmul.mubr.bf16.gmra.mxu1 %v399_v8 }
  0xa5   : > { %707 = vmatprep.mubr.bf16.mxu0 %v4157_v0  ;;  %900 = vmatprep.mubr.bf16.mxu1 %v4157_v0 }
  0xac   : > { %708 = vmatmul.mubr.bf16.gmra.mxu0 %v400_v11  ;;  %901 = vmatmul.mubr.bf16.gmra.mxu1 %v400_v11 }
  0xad   : > { %717 = vmatprep.mubr.bf16.mxu0 %v4157_v0  ;;  %910 = vmatprep.mubr.bf16.mxu1 %v4157_v0 }
  0xb4   : > { %718 = vmatmul.mubr.bf16.gmra.mxu0 %v401_v14  ;;  %911 = vmatmul.mubr.bf16.gmra.mxu1 %v401_v14 }
  0xb5   : > { %727 = vmatprep.mubr.bf16.mxu0 %v4157_v0  ;;  %920 = vmatprep.mubr.bf16.mxu1 %v4157_v0 }
  0xbc   : > { %728 = vmatmul.mubr.bf16.gmra.mxu0 %v402_v17  ;;  %921 = vmatmul.mubr.bf16.gmra.mxu1 %v402_v17 }
  0xbd   : > { %737 = vmatprep.mubr.bf16.mxu0 %v4157_v0  ;;  %930 = vmatprep.mubr.bf16.mxu1 %v4157_v0 }
  0xc4   : > { %738 = vmatmul.mubr.bf16.gmra.mxu0 %v403_v20  ;;  %931 = vmatmul.mubr.bf16.gmra.mxu1 %v403_v20 }
  0xc5   : > { %747 = vmatprep.mubr.bf16.mxu0 %v4157_v0  ;;  %940 = vmatprep.mubr.bf16.mxu1 %v4157_v0 }
  0xcc   : > { %748 = vmatmul.mubr.bf16.gmra.mxu0 %v404_v23  ;;  %941 = vmatmul.mubr.bf16.gmra.mxu1 %v404_v23 }
  0xcd   : > { %757 = vmatprep.mubr.bf16.mxu0 %v4157_v0  ;;  %950 = vmatprep.mubr.bf16.mxu1 %v4157_v0 }
  0xd4   : > { %758 = vmatmul.mubr.bf16.gmra.mxu0 %v405_v26  ;;  %951 = vmatmul.mubr.bf16.gmra.mxu1 %v405_v26 }
  0xd5   : > { %767 = vmatprep.mubr.bf16.mxu0 %v4157_v0  ;;  %960 = vmatprep.mubr.bf16.mxu1 %v4157_v0 }
  0xdc   : > { %768 = vmatmul.mubr.bf16.gmra.mxu0 %v406_v29  ;;  %961 = vmatmul.mubr.bf16.gmra.mxu1 %v406_v29 }
  0xdd   : > { %777 = vmatprep.mubr.bf16.mxu0 %v4157_v0  ;;  %970 = vmatprep.mubr.bf16.mxu1 %v4157_v0 }
  0xe4   : > { %778 = vmatmul.mubr.bf16.gmra.mxu0 %v407_v32  ;;  %971 = vmatmul.mubr.bf16.gmra.mxu1 %v407_v32 }
  0xe5   : > { %787 = vmatprep.mubr.bf16.mxu0 %v4157_v0  ;;  %980 = vmatprep.mubr.bf16.mxu1 %v4157_v0 }
  0xec   : > { %788 = vmatmul.mubr.bf16.gmra.mxu0 %v408_v39  ;;  %981 = vmatmul.mubr.bf16.gmra.mxu1 %v408_v39 }
  0xed   : > { %797 = vmatprep.mubr.bf16.mxu0 %v4157_v0  ;;  %990 = vmatprep.mubr.bf16.mxu1 %v4157_v0 }
  0xf4   : > { %798 = vmatmul.mubr.bf16.gmra.mxu0 %v409_v42  ;;  %991 = vmatmul.mubr.bf16.gmra.mxu1 %v409_v42 }
  0xf5   : > { %807 = vmatprep.mubr.bf16.mxu0 %v4157_v0  ;;  %1000 = vmatprep.mubr.bf16.mxu1 %v4157_v0  ;;  %v459_v0 = vsub.s32 3, %v446_v51 }
  0xf7   : > { %v4411_v61 = vrot.slane %v443_v54, %v459_v0 }
  0xfc   : > { %808 = vmatmul.mubr.bf16.gmra.mxu0 %v410_v47  ;;  %1001 = vmatmul.mubr.bf16.gmra.mxu1 %v410_v47 }
 0x144   : > { %v659_v58 = vpop.f32.mrf.mxu0  ;;  %v852_v59 = vpop.f32.mrf.mxu1 }
 0x145   : > { %v660_v62 = vadd.f32 %v659_v58, %v4405_v56  ;;  %v853_v63 = vadd.f32 %v852_v59, %v4407_v57 }
 0x146   : > { %v661_v1 = vpop.f32.mrf.mxu0  ;;  %v854_v2 = vpop.f32.mrf.mxu1 }
 0x147   : > { %v1139_v3 = vmul.f32 %v660_v62, %v660_v62  ;;  %v1141_v4 = vmul.f32 %v853_v63, %v853_v63  ;;  %v4415_v5 = vmul.f32 0.5, %v660_v62  ;;  %v4417_v6 = vmul.f32 0.5, %v853_v63 }
 0x148   : > { %v662_v7 = vadd.f32 %v661_v1, %v4409_v60  ;;  %v855_v8 = vadd.f32 %v854_v2, %v4411_v61  ;;  %v663_v9 = vpop.f32.mrf.mxu0  ;;  %v856_v10 = vpop.f32.mrf.mxu1 }
 0x149   : > { %v1267_v11 = vmul.f32 %v1139_v3, %v660_v62  ;;  %v1269_v12 = vmul.f32 %v1141_v4, %v853_v63  ;;  %v664_v13 = vadd.f32 %v663_v9, %v4405_v56  ;;  %v857_v14 = vadd.f32 %v856_v10, %v4407_v57 }
 0x14a   : > { %v1140_v15 = vmul.f32 %v662_v7, %v662_v7  ;;  %v1142_v16 = vmul.f32 %v855_v8, %v855_v8  ;;  %v665_v17 = vpop.f32.mrf.mxu0  ;;  %v858_v18 = vpop.f32.mrf.mxu1  ;;  %v4423_v19 = vmul.f32 0.5, %v662_v7  ;;  %v4425_v20 = vmul.f32 0.5, %v855_v8 }
 0x14b   : > { %v1395_v21 = vmul.f32 0.044715, %v1267_v11  ;;  %v1397_v22 = vmul.f32 0.044715, %v1269_v12  ;;  %v4427_v23 = vmul.f32 0.5, %v664_v13  ;;  %v1143_v24 = vmul.f32 %v664_v13, %v664_v13 }
 0x14c   : > { %v1268_v25 = vmul.f32 %v1140_v15, %v662_v7  ;;  %v1270_v26 = vmul.f32 %v1142_v16, %v855_v8  ;;  %v4429_v27 = vmul.f32 0.5, %v857_v14  ;;  %v1145_v28 = vmul.f32 %v857_v14, %v857_v14  ;;  %v669_v29 = vpop.f32.mrf.mxu0  ;;  %v862_v30 = vpop.f32.mrf.mxu1 }
 0x14d   : > { %v1523_v31 = vadd.f32 %v1395_v21, %v660_v62  ;;  %v1525_v32 = vadd.f32 %v1397_v22, %v853_v63  ;;  %v1271_v33 = vmul.f32 %v1143_v24, %v664_v13  ;;  %v4432_v34 = vadd.f32 %v665_v17, %v4409_v60 }
 0x14e   : > { %v1396_v35 = vmul.f32 0.044715, %v1268_v25  ;;  %v1398_v36 = vmul.f32 0.044715, %v1270_v26  ;;  %v1273_v37 = vmul.f32 %v1145_v28, %v857_v14  ;;  %v4435_v38 = vadd.f32 %v858_v18, %v4411_v61  ;;  %v671_v39 = vpop.f32.mrf.mxu0  ;;  %v864_v40 = vpop.f32.mrf.mxu1 }
 0x14f   : > { %v1651_v41 = vmul.f32 0.7978846, %v1523_v31  ;;  %v1653_v42 = vmul.f32 0.7978846, %v1525_v32  ;;  %v1399_v43 = vmul.f32 0.044715, %v1271_v33  ;;  %v1144_v44 = vmul.f32 %v4432_v34, %v4432_v34 }
 0x150   : > { %v1524_v45 = vadd.f32 %v1396_v35, %v662_v7  ;;  %v1526_v46 = vadd.f32 %v1398_v36, %v855_v8  ;;  %v1401_v47 = vmul.f32 0.044715, %v1273_v37  ;;  %v1146_v48 = vmul.f32 %v4435_v38, %v4435_v38  ;;  %v673_v49 = vpop.f32.mrf.mxu0  ;;  %v866_v50 = vpop.f32.mrf.mxu1 }
 0x151   : > { %3695 = vtanh.f32 %v1651_v41  ;;  %v1527_v51 = vadd.f32 %v1399_v43, %v664_v13  ;;  %v1272_v52 = vmul.f32 %v1144_v44, %v4432_v34  ;;  %v4443_v53 = vadd.f32 %v669_v29, %v4405_v56 }
 0x152   : > { %3697 = vtanh.f32 %v1653_v42  ;;  %v1652_v54 = vmul.f32 0.7978846, %v1524_v45  ;;  %v1654_v55 = vmul.f32 0.7978846, %v1526_v46  ;;  %v1529_v0 = vadd.f32 %v1401_v47, %v857_v14  ;;  %v675_v1 = vpop.f32.mrf.mxu0  ;;  %v868_v7 = vpop.f32.mrf.mxu1 }
 0x153   : > { %v1655_v58 = vmul.f32 0.7978846, %v1527_v51  ;;  %v1400_v59 = vmul.f32 0.044715, %v1272_v52  ;;  %v1274_v62 = vmul.f32 %v1146_v48, %v4435_v38  ;;  %v1147_v63 = vmul.f32 %v4443_v53, %v4443_v53 }
 0x154   : > { %3699 = vtanh.f32 %v1652_v54  ;;  %v1657_v2 = vmul.f32 0.7978846, %v1529_v0  ;;  %v4449_v3 = vadd.f32 %v862_v30, %v4407_v57  ;;  %v4452_v4 = vadd.f32 %v671_v39, %v4409_v60  ;;  %v679_v17 = vpop.f32.mrf.mxu0  ;;  %v872_v25 = vpop.f32.mrf.mxu1 }
 0x155   : > { %3701 = vtanh.f32 %v1654_v55  ;;  %v1528_v8 = vadd.f32 %v1400_v59, %v4432_v34  ;;  %v1402_v9 = vmul.f32 0.044715, %v1274_v62  ;;  %v1275_v10 = vmul.f32 %v1147_v63, %v4443_v53 }
 0x156   : > { %3703 = vtanh.f32 %v1655_v58  ;;  %v1149_v11 = vmul.f32 %v4449_v3, %v4449_v3  ;;  %v1148_v12 = vmul.f32 %v4452_v4, %v4452_v4  ;;  %v4461_v13 = vadd.f32 %v864_v40, %v4411_v61  ;;  %v681_v39 = vpop.f32.mrf.mxu0  ;;  %v874_v44 = vpop.f32.mrf.mxu1 }
 0x157   : > { %3705 = vtanh.f32 %v1657_v2  ;;  %v1656_v14 = vmul.f32 0.7978846, %v1528_v8  ;;  %v1530_v15 = vadd.f32 %v1402_v9, %v4435_v38  ;;  %v1403_v16 = vmul.f32 0.044715, %v1275_v10 }
 0x158   : > { %v1277_v18 = vmul.f32 %v1149_v11, %v4449_v3  ;;  %v1276_v21 = vmul.f32 %v1148_v12, %v4452_v4  ;;  %v1150_v22 = vmul.f32 %v4461_v13, %v4461_v13  ;;  %v4469_v24 = vadd.f32 %v673_v49, %v4405_v56  ;;  %v683_v62 = vpop.f32.mrf.mxu0 }
 0x159   : > { %3707 = vtanh.f32 %v1656_v14  ;;  %v1658_v26 = vmul.f32 0.7978846, %v1530_v15  ;;  %v1531_v28 = vadd.f32 %v1403_v16, %v4443_v53  ;;  %v4473_v29 = vadd.f32 %v866_v50, %v4407_v57 }
 0x15a   : > { %v1405_v30 = vmul.f32 0.044715, %v1277_v18  ;;  %v1404_v31 = vmul.f32 0.044715, %v1276_v21  ;;  %v1278_v32 = vmul.f32 %v1150_v22, %v4461_v13  ;;  %v1151_v33 = vmul.f32 %v4469_v24, %v4469_v24 }
 0x15b   : > { %3709 = vtanh.f32 %v1658_v26  ;;  %v1659_v35 = vmul.f32 0.7978846, %v1531_v28  ;;  %v1153_v36 = vmul.f32 %v4473_v29, %v4473_v29  ;;  %v4481_v37 = vadd.f32 %v675_v1, %v4409_v60  ;;  %v685_v28 = vpop.f32.mrf.mxu0 }
 0x15c   : > { %v1533_v40 = vadd.f32 %v1405_v30, %v4449_v3  ;;  %v1532_v41 = vadd.f32 %v1404_v31, %v4452_v4  ;;  %v1406_v42 = vmul.f32 0.044715, %v1278_v32  ;;  %v1279_v43 = vmul.f32 %v1151_v33, %v4469_v24 }
 0x15d   : > { %3711 = vtanh.f32 %v1659_v35  ;;  %v1281_v45 = vmul.f32 %v1153_v36, %v4473_v29  ;;  %v1152_v46 = vmul.f32 %v4481_v37, %v4481_v37  ;;  %v4490_v47 = vadd.f32 %v868_v7, %v4411_v61  ;;  %v876_v7 = vpop.f32.mrf.mxu1 }
 0x15e   : > { %v3696_v48 = vpop.eup %3695  ;;  %v1661_v49 = vmul.f32 0.7978846, %v1533_v40  ;;  %v1660_v50 = vmul.f32 0.7978846, %v1532_v41  ;;  %v1534_v51 = vadd.f32 %v1406_v42, %v4461_v13  ;;  %v1407_v52 = vmul.f32 0.044715, %v1279_v43 }
 0x15f   : > { %v3698_v54 = vpop.eup %3697  ;;  %v1907_v55 = vadd.f32 1.0, %v3696_v48  ;;  %v1409_v0 = vmul.f32 0.044715, %v1281_v45  ;;  %v1280_v58 = vmul.f32 %v1152_v46, %v4481_v37  ;;  %v1154_v59 = vmul.f32 %v4490_v47, %v4490_v47  ;;  %v878_v33 = vpop.f32.mrf.mxu1 }
 0x160   : > { %v1909_v63 = vadd.f32 1.0, %v3698_v54  ;;  %3713 = vtanh.f32 %v1661_v49  ;;  %v1662_v1 = vmul.f32 0.7978846, %v1534_v51  ;;  %v1535_v2 = vadd.f32 %v1407_v52, %v4469_v24  ;;  %v689_v48 = vpop.f32.mrf.mxu0 }
 0x161   : > { %v4497_v8 = vpop.eup %3699  ;;  %v4500_v9 = vmul.f32 %v1907_v55, %v4415_v5  ;;  %3715 = vtanh.f32 %v1660_v50  ;;  %v1537_v10 = vadd.f32 %v1409_v0, %v4473_v29  ;;  %v1408_v11 = vmul.f32 0.044715, %v1280_v58  ;;  %v882_v54 = vpop.f32.mrf.mxu1 }
 0x162   : > { %v4503_v12 = vpop.eup %3701  ;;  %v4506_v14 = vmul.f32 %v1909_v63, %v4417_v6  ;;  %3717 = vtanh.f32 %v1662_v1  ;;  %v1663_v15 = vmul.f32 0.7978846, %v1535_v2  ;;  %v1282_v16 = vmul.f32 %v1154_v59, %v4490_v47 }
 0x163   : > { %v3704_v18 = vpop.eup %3703  ;;  %v1665_v21 = vmul.f32 0.7978846, %v1537_v10  ;;  %v1536_v22 = vadd.f32 %v1408_v11, %v4481_v37  ;;  %v4511_v5 = vadd.f32 %v679_v17, %v4405_v56  ;;  %v4514_v26 = vadd.f32 %v872_v25, %v4407_v57  ;;  %v691_v11 = vpop.f32.mrf.mxu0 }
 0x164   : > { %v3706_v30 = vpop.eup %3705  ;;  %v1911_v31 = vadd.f32 1.0, %v3704_v18  ;;  %3719 = vtanh.f32 %v1663_v15  ;;  %v1410_v6 = vmul.f32 0.044715, %v1282_v16  ;;  %v4517_v32 = vadd.f32 %v681_v39, %v4409_v60 }
 0x165   : > { %6079 = vst [vmem:[#allocation16_spill] sm:$0xff] %v4511_v5  ;;  %6080 = vst [vmem:[#allocation17_spill] sm:$0xff] %v4514_v26  ;;  %v1913_v35 = vadd.f32 1.0, %v3706_v30  ;;  %3721 = vtanh.f32 %v1665_v21  ;;  %v1664_v36 = vmul.f32 0.7978846, %v1536_v22  ;;  %v1155_v40 = vmul.f32 %v4511_v5, %v4511_v5  ;;  %v884_v22 = vpop.f32.mrf.mxu1 }
 0x166   : > { %v4521_v17 = vpop.eup %3707  ;;  %v4524_v25 = vmul.f32 %v1911_v31, %v4427_v23  ;;  %v1538_v41 = vadd.f32 %v1410_v6, %v4490_v47  ;;  %v1157_v42 = vmul.f32 %v4514_v26, %v4514_v26  ;;  %v1156_v39 = vmul.f32 %v4517_v32, %v4517_v32 }
 0x167   : > { %v4532_v43 = vmul.f32 %v1913_v35, %v4429_v27  ;;  %3723 = vtanh.f32 %v1664_v36  ;;  %v1283_v45 = vmul.f32 %v1155_v40, %v4511_v5  ;;  %v4536_v46 = vadd.f32 %v874_v44, %v4411_v61 }
 0x168   : > { %v4538_v23 = vpop.eup %3709  ;;  %v1666_v49 = vmul.f32 0.7978846, %v1538_v41  ;;  %v1285_v50 = vmul.f32 %v1157_v42, %v4514_v26  ;;  %v1284_v51 = vmul.f32 %v1156_v39, %v4517_v32  ;;  %v4543_v52 = vadd.f32 %v683_v62, %v4405_v56 }
 0x169   : > { %v1411_v27 = vmul.f32 0.044715, %v1283_v45  ;;  %v1158_v55 = vmul.f32 %v4536_v46, %v4536_v46  ;;  %v4548_v0 = vadd.f32 %v876_v7, %v4407_v57  ;;  %v4551_v44 = vadd.f32 %v685_v28, %v4409_v60 }
 0x16a   : > { %6081 = vst [vmem:[#allocation18_spill] sm:$0xff] %v4543_v52  ;;  %v4553_v58 = vpop.eup %3711  ;;  %3725 = vtanh.f32 %v1666_v49  ;;  %v1413_v59 = vmul.f32 0.044715, %v1285_v50  ;;  %v1412_v63 = vmul.f32 0.044715, %v1284_v51  ;;  %v1159_v62 = vmul.f32 %v4543_v52, %v4543_v52  ;;  %v693_v51 = vpop.f32.mrf.mxu0 }
 0x16b   : > { %6082 = vst [vmem:[#allocation19_spill] sm:$0xff] %v4548_v0  ;;  %v1539_v1 = vadd.f32 %v1411_v27, %v4511_v5  ;;  %v1286_v2 = vmul.f32 %v1158_v55, %v4536_v46  ;;  %v1161_v10 = vmul.f32 %v4548_v0, %v4548_v0  ;;  %v1160_v7 = vmul.f32 %v4551_v44, %v4551_v44 }
 0x16c   : > { %v1541_v15 = vadd.f32 %v1413_v59, %v4514_v26  ;;  %v1540_v16 = vadd.f32 %v1412_v63, %v4517_v32  ;;  %v1287_v18 = vmul.f32 %v1159_v62, %v4543_v52  ;;  %v4567_v21 = vadd.f32 %v878_v33, %v4411_v61  ;;  %v886_v63 = vpop.f32.mrf.mxu1 }
 0x16d   : > { %v4569_v28 = vpop.eup %3713  ;;  %v1667_v30 = vmul.f32 0.7978846, %v1539_v1  ;;  %v1414_v31 = vmul.f32 0.044715, %v1286_v2  ;;  %v1289_v6 = vmul.f32 %v1161_v10, %v4548_v0  ;;  %v1288_v35 = vmul.f32 %v1160_v7, %v4551_v44 }
 0x16e   : > { %6083 = vst [vmem:[#allocation20_spill] sm:$0xff] %v4567_v21  ;;  %v4573_v36 = vpop.eup %3715  ;;  %v1669_v40 = vmul.f32 0.7978846, %v1541_v15  ;;  %v1668_v41 = vmul.f32 0.7978846, %v1540_v16  ;;  %v1162_v39 = vmul.f32 %v4567_v21, %v4567_v21  ;;  %v4583_v59 = vadd.f32 %v689_v48, %v4405_v56 }
 0x16f   : > { %v1415_v42 = vmul.f32 0.044715, %v1287_v18  ;;  %v4577_v45 = vpop.eup %3717  ;;  %3727 = vtanh.f32 %v1667_v30  ;;  %v1542_v33 = vadd.f32 %v1414_v31, %v4536_v46  ;;  %v1417_v49 = vmul.f32 0.044715, %v1289_v6 }
 0x170   : > { %v1416_v50 = vmul.f32 0.044715, %v1288_v35  ;;  %3729 = vtanh.f32 %v1669_v40  ;;  %v1290_v55 = vmul.f32 %v1162_v39, %v4567_v21  ;;  %6084 = vst [vmem:[#allocation21_spill] sm:$0xff] %v4583_v59  ;;  %v1163_v18 = vmul.f32 %v4583_v59, %v4583_v59  ;;  %v695_v35 = vpop.f32.mrf.mxu0 }
 0x171   : > { %v1543_v27 = vadd.f32 %v1415_v42, %v4543_v52  ;;  %v4585_v62 = vpop.eup %3719  ;;  %3731 = vtanh.f32 %v1668_v41  ;;  %v1670_v1 = vmul.f32 0.7978846, %v1542_v33  ;;  %v1545_v2 = vadd.f32 %v1417_v49, %v4548_v0  ;;  %v888_v33 = vpop.f32.mrf.mxu1 }
 0x172   : > { %v1544_v10 = vadd.f32 %v1416_v50, %v4551_v44  ;;  %v4589_v7 = vpop.eup %3721  ;;  %v1418_v16 = vmul.f32 0.044715, %v1290_v55  ;;  %v4594_v30 = vadd.f32 %v882_v54, %v4407_v57  ;;  %v4597_v6 = vadd.f32 %v691_v11, %v4409_v60 }
 0x173   : > { %v1671_v15 = vmul.f32 0.7978846, %v1543_v27  ;;  %3733 = vtanh.f32 %v1670_v1  ;;  %v1673_v48 = vmul.f32 0.7978846, %v1545_v2  ;;  %v1291_v42 = vmul.f32 %v1163_v18, %v4583_v59 }
 0x174   : > { %6085 = vst [vmem:[#allocation22_spill] sm:$0xff] %v4594_v30  ;;  %v1672_v31 = vmul.f32 0.7978846, %v1544_v10  ;;  %6086 = vst [vmem:[#allocation23_spill] sm:$0xff] %v4597_v6  ;;  %v4599_v40 = vpop.eup %3723  ;;  %v1546_v41 = vadd.f32 %v1418_v16, %v4567_v21  ;;  %v1165_v39 = vmul.f32 %v4594_v30, %v4594_v30  ;;  %v1164_v54 = vmul.f32 %v4597_v6, %v4597_v6 }
 0x175   : > { %3735 = vtanh.f32 %v1671_v15  ;;  %v4608_v49 = vadd.f32 %v884_v22, %v4411_v61  ;;  %v4611_v11 = vadd.f32 %v693_v51, %v4405_v56  ;;  %v1419_v27 = vmul.f32 0.044715, %v1291_v42  ;;  %v699_v51 = vpop.f32.mrf.mxu0 }
 0x176   : > { %3737 = vtanh.f32 %v1673_v48  ;;  %v1674_v50 = vmul.f32 0.7978846, %v1546_v41  ;;  %v1293_v55 = vmul.f32 %v1165_v39, %v4594_v30  ;;  %v1292_v2 = vmul.f32 %v1164_v54, %v4597_v6 }
 0x177   : > { %6087 = vst [vmem:[#allocation24_spill] sm:$0xff] %v4608_v49  ;;  %6088 = vst [vmem:[#allocation25_spill] sm:$0xff] %v4611_v11  ;;  %3739 = vtanh.f32 %v1672_v31  ;;  %v4614_v1 = vpop.eup %3725  ;;  %v1166_v10 = vmul.f32 %v4608_v49, %v4608_v49  ;;  %v1167_v15 = vmul.f32 %v4611_v11, %v4611_v11  ;;  %v4622_v22 = vadd.f32 %v886_v63, %v4407_v57  ;;  %v892_v31 = vpop.f32.mrf.mxu1 }
 0x178   : > { %3741 = vtanh.f32 %v1674_v50  ;;  %v1547_v16 = vadd.f32 %v1419_v27, %v4583_v59  ;;  %v1421_v18 = vmul.f32 0.044715, %v1293_v55  ;;  %v4626_v48 = vadd.f32 %v695_v35, %v4409_v60  ;;  %v701_v59 = vpop.f32.mrf.mxu0 }
 0x179   : > { %6089 = vst [vmem:[#allocation26_spill] sm:$0xff] %v4622_v22  ;;  %v1420_v41 = vmul.f32 0.044715, %v1292_v2  ;;  %v1294_v42 = vmul.f32 %v1166_v10, %v4608_v49  ;;  %v1295_v39 = vmul.f32 %v1167_v15, %v4611_v11  ;;  %v1169_v54 = vmul.f32 %v4622_v22, %v4622_v22 }
 0x17a   : > { %6090 = vst [vmem:[#allocation27_spill] sm:$0xff] %v4626_v48  ;;  %v1675_v0 = vmul.f32 0.7978846, %v1547_v16  ;;  %v1549_v63 = vadd.f32 %v1421_v18, %v4594_v30  ;;  %v1168_v50 = vmul.f32 %v4626_v48, %v4626_v48  ;;  %v4636_v27 = vadd.f32 %v888_v33, %v4411_v61  ;;  %v894_v30 = vpop.f32.mrf.mxu1 }
 0x17b   : > { %v1548_v35 = vadd.f32 %v1420_v41, %v4597_v6  ;;  %v1422_v55 = vmul.f32 0.044715, %v1294_v42  ;;  %v1423_v2 = vmul.f32 0.044715, %v1295_v39  ;;  %v1297_v10 = vmul.f32 %v1169_v54, %v4622_v22 }
 0x17c   : > { %6091 = vst [vmem:[#allocation28_spill] sm:$0xff] %v4636_v27  ;;  %v4640_v15 = vpop.eup %3727  ;;  %3743 = vtanh.f32 %v1675_v0  ;;  %v1677_v26 = vmul.f32 0.7978846, %v1549_v63  ;;  %v1296_v16 = vmul.f32 %v1168_v50, %v4626_v48  ;;  %v1170_v18 = vmul.f32 %v4636_v27, %v4636_v27 }
 0x17d   : > { %6092 = vst [vmem:[#allocation29_spill] sm:$0xff] %v4640_v15  ;;  %v4645_v52 = vpop.eup %3729  ;;  %v1676_v33 = vmul.f32 0.7978846, %v1548_v35  ;;  %v1550_v41 = vadd.f32 %v1422_v55, %v4608_v49  ;;  %v1551_v42 = vadd.f32 %v1423_v2, %v4611_v11  ;;  %v1425_v39 = vmul.f32 0.044715, %v1297_v10  ;;  %v703_v35 = vpop.f32.mrf.mxu0 }
 0x17e   : > { %6093 = vst [vmem:[#allocation30_spill] sm:$0xff] %v4645_v52  ;;  %v4649_v54 = vpop.eup %3731  ;;  %3745 = vtanh.f32 %v1677_v26  ;;  %v1424_v6 = vmul.f32 0.044715, %v1296_v16  ;;  %v1298_v0 = vmul.f32 %v1170_v18, %v4636_v27  ;;  %v4653_v63 = vadd.f32 %v699_v51, %v4405_v56  ;;  %v896_v16 = vpop.f32.mrf.mxu1 }
 0x17f   : > { %3747 = vtanh.f32 %v1676_v33  ;;  %v1678_v50 = vmul.f32 0.7978846, %v1550_v41  ;;  %v1679_v15 = vmul.f32 0.7978846, %v1551_v42  ;;  %v1553_v52 = vadd.f32 %v1425_v39, %v4622_v22 }
 0x180   : > { %6094 = vst [vmem:[#allocation31_spill] sm:$0xff] %v4653_v63  ;;  %v4656_v5 = vpop.eup %3733  ;;  %v1552_v55 = vadd.f32 %v1424_v6, %v4626_v48  ;;  %v1426_v2 = vmul.f32 0.044715, %v1298_v0  ;;  %v1171_v26 = vmul.f32 %v4653_v63, %v4653_v63  ;;  %v4662_v10 = vadd.f32 %v892_v31, %v4407_v57 }
 0x181   : > { %6095 = vst [vmem:[#allocation32_spill] sm:$0xff] %v4656_v5  ;;  %3749 = vtanh.f32 %v1678_v50  ;;  %v1681_v18 = vmul.f32 0.7978846, %v1553_v52  ;;  %v4667_v33 = vadd.f32 %v701_v59, %v4409_v60  ;;  %v4670_v41 = vadd.f32 %v894_v30, %v4411_v61  ;;  %v705_v50 = vpop.f32.mrf.mxu0 }
 0x182   : > { %6096 = vst [vmem:[#allocation33_spill] sm:$0xff] %v4662_v10  ;;  %v4664_v51 = vpop.eup %3735  ;;  %3751 = vtanh.f32 %v1679_v15  ;;  %v1680_v6 = vmul.f32 0.7978846, %v1552_v55  ;;  %v1554_v39 = vadd.f32 %v1426_v2, %v4636_v27  ;;  %v1299_v31 = vmul.f32 %v1171_v26, %v4653_v63  ;;  %v898_v26 = vpop.f32.mrf.mxu1 }
 0x183   : > { %6097 = vst [vmem:[#allocation34_spill] sm:$0xff] %v4664_v51  ;;  %6098 = vst [vmem:[#allocation35_spill] sm:$0xff] %v4667_v33  ;;  %v4672_v42 = vpop.eup %3737  ;;  %3753 = vtanh.f32 %v1681_v18  ;;  %v1173_v52 = vmul.f32 %v4662_v10, %v4662_v10  ;;  %v1172_v59 = vmul.f32 %v4667_v33, %v4667_v33  ;;  %v1174_v30 = vmul.f32 %v4670_v41, %v4670_v41 }
 0x184   : > { %6099 = vst [vmem:[#allocation36_spill] sm:$0xff] %v4670_v41  ;;  %6100 = vst [vmem:[#allocation37_spill] sm:$0xff] %v4672_v42  ;;  %v4676_v0 = vpop.eup %3739  ;;  %3755 = vtanh.f32 %v1680_v6  ;;  %v1682_v15 = vmul.f32 0.7978846, %v1554_v39  ;;  %v1427_v55 = vmul.f32 0.044715, %v1299_v31  ;;  %v4685_v2 = vadd.f32 %v703_v35, %v4405_v56 }
 0x185   : > { %v4687_v22 = vpop.eup %3741  ;;  %v1301_v18 = vmul.f32 %v1173_v52, %v4662_v10  ;;  %v1300_v11 = vmul.f32 %v1172_v59, %v4667_v33  ;;  %v1302_v27 = vmul.f32 %v1174_v30, %v4670_v41  ;;  %v4693_v49 = vadd.f32 %v896_v16, %v4407_v57 }
 0x186   : > { %6101 = vst [vmem:[#allocation38_spill] sm:$0xff] %v4685_v2  ;;  %6102 = vst [vmem:[#allocation39_spill] sm:$0xff] %v4687_v22  ;;  %3757 = vtanh.f32 %v1682_v15  ;;  %v1555_v6 = vadd.f32 %v1427_v55, %v4653_v63  ;;  %v1175_v39 = vmul.f32 %v4685_v2, %v4685_v2  ;;  %v4699_v35 = vadd.f32 %v705_v50, %v4409_v60  ;;  %v709_v55 = vpop.f32.mrf.mxu0  ;;  %v902_v63 = vpop.f32.mrf.mxu1 }
 0x187   : > { %v1429_v31 = vmul.f32 0.044715, %v1301_v18  ;;  %v1428_v48 = vmul.f32 0.044715, %v1300_v11  ;;  %v1430_v42 = vmul.f32 0.044715, %v1302_v27  ;;  %v1177_v52 = vmul.f32 %v4693_v49, %v4693_v49 }
 0x188   : > { %v1683_v59 = vmul.f32 0.7978846, %v1555_v6  ;;  %v1303_v30 = vmul.f32 %v1175_v39, %v4685_v2  ;;  %v1176_v16 = vmul.f32 %v4699_v35, %v4699_v35  ;;  %v4707_v15 = vadd.f32 %v898_v26, %v4411_v61 }
 0x189   : > { %v4709_v51 = vpop.eup %3743  ;;  %v1557_v50 = vadd.f32 %v1429_v31, %v4662_v10  ;;  %v1556_v11 = vadd.f32 %v1428_v48, %v4667_v33  ;;  %v1558_v27 = vadd.f32 %v1430_v42, %v4670_v41  ;;  %v1305_v18 = vmul.f32 %v1177_v52, %v4693_v49  ;;  %v904_v10 = vpop.f32.mrf.mxu1 }
 0x18a   : > { %6103 = vst [vmem:[#allocation40_spill] sm:$0xff] %v4709_v51  ;;  %3759 = vtanh.f32 %v1683_v59  ;;  %v1431_v6 = vmul.f32 0.044715, %v1303_v30  ;;  %v1304_v39 = vmul.f32 %v1176_v16, %v4699_v35  ;;  %v1178_v26 = vmul.f32 %v4707_v15, %v4707_v15  ;;  %v711_v16 = vpop.f32.mrf.mxu0 }
 0x18b   : > { %v4718_v22 = vpop.eup %3745  ;;  %v1685_v5 = vmul.f32 0.7978846, %v1557_v50  ;;  %v1684_v21 = vmul.f32 0.7978846, %v1556_v11  ;;  %v1686_v51 = vmul.f32 0.7978846, %v1558_v27  ;;  %v4721_v31 = vadd.f32 %v709_v55, %v4405_v56 }
 0x18c   : > { %6104 = vst [vmem:[#allocation41_spill] sm:$0xff] %v4718_v22  ;;  %v4723_v48 = vpop.eup %3747  ;;  %v1559_v42 = vadd.f32 %v1431_v6, %v4685_v2  ;;  %v1433_v52 = vmul.f32 0.044715, %v1305_v18  ;;  %v1432_v59 = vmul.f32 0.044715, %v1304_v39  ;;  %v1306_v30 = vmul.f32 %v1178_v26, %v4707_v15 }
 0x18d   : > { %6105 = vst [vmem:[#allocation42_spill] sm:$0xff] %v4721_v31  ;;  %3761 = vtanh.f32 %v1685_v5  ;;  %v1016_v41 = vmul.f32 0.5, %v4432_v34  ;;  %v1908_v50 = vadd.f32 1.0, %v4497_v8  ;;  %v1912_v11 = vadd.f32 1.0, %v4521_v17 }
 0x18e   : > { %v4730_v27 = vpop.eup %3749  ;;  %3763 = vtanh.f32 %v1684_v21  ;;  %v1687_v55 = vmul.f32 0.7978846, %v1559_v42  ;;  %v1561_v33 = vadd.f32 %v1433_v52, %v4693_v49  ;;  %v1560_v18 = vadd.f32 %v1432_v59, %v4699_v35  ;;  %v713_v21 = vpop.f32.mrf.mxu0 }
 0x18f   : > { %v4734_v6 = vpop.eup %3751  ;;  %3765 = vtanh.f32 %v1686_v51  ;;  %v1434_v39 = vmul.f32 0.044715, %v1306_v30  ;;  %v2036_v5 = vmul.f32 %v1908_v50, %v4423_v19  ;;  %v2040_v26 = vmul.f32 %v1912_v11, %v1016_v41  ;;  %v906_v42 = vpop.f32.mrf.mxu1 }
 0x190   : > { %v4737_v34 = vpop.eup %3753  ;;  %3767 = vtanh.f32 %v1687_v55  ;;  %v1689_v8 = vmul.f32 0.7978846, %v1561_v33  ;;  %v1688_v17 = vmul.f32 0.7978846, %v1560_v18  ;;  %v1018_v2 = vmul.f32 0.5, %v4435_v38 }
 0x191   : > { %v4740_v22 = vpop.eup %3755  ;;  %v1562_v52 = vadd.f32 %v1434_v39, %v4707_v15  ;;  %v2196_v59 = vpack.c.bf16 %v2040_v26, %v2036_v5  ;;  %v1910_v51 = vadd.f32 1.0, %v4503_v12  ;;  %v1914_v30 = vadd.f32 1.0, %v4538_v23 }
 0x192   : > { %3769 = vtanh.f32 %v1689_v8  ;;  %v1179_v19 = vmul.f32 %v4721_v31, %v4721_v31  ;;  %v4748_v33 = vadd.f32 %v902_v63, %v4407_v57  ;;  %v2195_v38 = vpack.c.bf16 %v4524_v25, %v4500_v9  ;;  %v715_v9 = vpop.f32.mrf.mxu0  ;;  %v908_v25 = vpop.f32.mrf.mxu1 }
 0x193   : > { %v4752_v41 = vpop.eup %3757  ;;  %3771 = vtanh.f32 %v1688_v17  ;;  %v1690_v50 = vmul.f32 0.7978846, %v1562_v52  ;;  %2547 = vmatprep.mubr.bf16.mxu0 %v2196_v59  ;;  %v2038_v11 = vmul.f32 %v1910_v51, %v4425_v20  ;;  %v2042_v12 = vmul.f32 %v1914_v30, %v1018_v2 }
 0x194   : > { %6106 = vst [vmem:[#allocation43_spill] sm:$0xff] %v4748_v33  ;;  %v1307_v23 = vmul.f32 %v1179_v19, %v4721_v31  ;;  %v1181_v55 = vmul.f32 %v4748_v33, %v4748_v33  ;;  %2548 = vmatmul.mubr.bf16.vlgmr.msra.gmra.mxu0 %v2195_v38  ;;  %v2197_v63 = vpack.c.bf16 %v4532_v43, %v4506_v14 }
 0x195   : > { %v4761_v18 = vadd.f32 %v711_v16, %v4409_v60  ;;  %3773 = vtanh.f32 %v1690_v50  ;;  %v2198_v39 = vpack.c.bf16 %v2042_v12, %v2038_v11  ;;  %v4764_v5 = vadd.f32 %v904_v10, %v4411_v61 }
 0x196   : > { %v4767_v20 = vadd.f32 %v713_v21, %v4405_v56  ;;  %v1435_v2 = vmul.f32 0.044715, %v1307_v23  ;;  %v1309_v26 = vmul.f32 %v1181_v55, %v4748_v33  ;;  %v4773_v14 = vadd.f32 %v906_v42, %v4407_v57 }
 0x197   : > { %6107 = vst [vmem:[#allocation44_spill] sm:$0xff] %v4761_v18  ;;  %v1180_v8 = vmul.f32 %v4761_v18, %v4761_v18  ;;  %v4775_v43 = vpop.eup %3759  ;;  %2708 = vmatprep.mubr.bf16.mxu1 %v2198_v39  ;;  %v1182_v16 = vmul.f32 %v4764_v5, %v4764_v5  ;;  %v4782_v17 = vadd.f32 %v715_v9, %v4409_v60 }
 0x198   : > { %v1183_v10 = vmul.f32 %v4767_v20, %v4767_v20  ;;  %v4785_v21 = vadd.f32 %v908_v25, %v4411_v61  ;;  %v1563_v52 = vadd.f32 %v1435_v2, %v4721_v31  ;;  %v1437_v59 = vmul.f32 0.044715, %v1309_v26  ;;  %2709 = vmatmul.mubr.bf16.vlgmr.msra.gmra.mxu1 %v2197_v63 }
 0x199   : > { %v1308_v42 = vmul.f32 %v1180_v8, %v4761_v18  ;;  %v1185_v51 = vmul.f32 %v4773_v14, %v4773_v14  ;;  %v1310_v30 = vmul.f32 %v1182_v16, %v4764_v5  ;;  %v1184_v38 = vmul.f32 %v4782_v17, %v4782_v17 }
 0x19a   : > { %v1311_v19 = vmul.f32 %v1183_v10, %v4767_v20  ;;  %v1186_v50 = vmul.f32 %v4785_v21, %v4785_v21  ;;  %v4797_v11 = vpop.eup %3761  ;;  %v1691_v12 = vmul.f32 0.7978846, %v1563_v52  ;;  %v1565_v23 = vadd.f32 %v1437_v59, %v4748_v33  ;;  %v719_v33 = vpop.f32.mrf.mxu0 }
 0x19b   : > { %v1436_v55 = vmul.f32 0.044715, %v1308_v42  ;;  %v1313_v63 = vmul.f32 %v1185_v51, %v4773_v14  ;;  %v4801_v9 = vpop.eup %3763  ;;  %v1438_v25 = vmul.f32 0.044715, %v1310_v30  ;;  %v1312_v2 = vmul.f32 %v1184_v38, %v4782_v17 }
 0x19c   : > { %v1439_v39 = vmul.f32 0.044715, %v1311_v19  ;;  %v1314_v26 = vmul.f32 %v1186_v50, %v4785_v21  ;;  %v4805_v8 = vpop.eup %3765  ;;  %3775 = vtanh.f32 %v1691_v12  ;;  %v1693_v16 = vmul.f32 0.7978846, %v1565_v23 }
 0x19d   : > { %v1564_v10 = vadd.f32 %v1436_v55, %v4761_v18  ;;  %v1441_v52 = vmul.f32 0.044715, %v1313_v63  ;;  %v4808_v31 = vpop.eup %3767  ;;  %v1566_v59 = vadd.f32 %v1438_v25, %v4764_v5  ;;  %v1440_v51 = vmul.f32 0.044715, %v1312_v2 }
 0x19e   : > { %v1567_v42 = vadd.f32 %v1439_v39, %v4767_v20  ;;  %v1442_v30 = vmul.f32 0.044715, %v1314_v26  ;;  %3777 = vtanh.f32 %v1693_v16  ;;  %v1020_v50 = vmul.f32 0.5, %v4452_v4  ;;  %v912_v16 = vpop.f32.mrf.mxu1 }
 0x19f   : > { %v1692_v19 = vmul.f32 0.7978846, %v1564_v10  ;;  %v1569_v38 = vadd.f32 %v1441_v52, %v4773_v14  ;;  %v4814_v12 = vpop.eup %3769  ;;  %v1694_v23 = vmul.f32 0.7978846, %v1566_v59  ;;  %v1568_v63 = vadd.f32 %v1440_v51, %v4782_v17 }
 0x1a0   : > { %v1695_v55 = vmul.f32 0.7978846, %v1567_v42  ;;  %v1570_v18 = vadd.f32 %v1442_v30, %v4785_v21  ;;  %v4818_v25 = vpop.eup %3771  ;;  %v1024_v2 = vmul.f32 0.5, %v4481_v37  ;;  %v1916_v26 = vadd.f32 1.0, %v4573_v36 }
 0x1a1   : > { %3779 = vtanh.f32 %v1692_v19  ;;  %v1697_v39 = vmul.f32 0.7978846, %v1569_v38  ;;  %v1696_v4 = vmul.f32 0.7978846, %v1568_v63  ;;  %v1920_v52 = vadd.f32 1.0, %v4599_v40  ;;  %v721_v19 = vpop.f32.mrf.mxu0 }
 0x1a2   : > { %3781 = vtanh.f32 %v1694_v23  ;;  %v1698_v10 = vmul.f32 0.7978846, %v1570_v18  ;;  %v4823_v59 = vpop.eup %3773  ;;  %v2044_v42 = vmul.f32 %v1916_v26, %v1020_v50  ;;  %v1022_v51 = vmul.f32 0.5, %v4461_v13  ;;  %v914_v23 = vpop.f32.mrf.mxu1 }
 0x1a3   : > { %3783 = vtanh.f32 %v1695_v55  ;;  %v1026_v30 = vmul.f32 0.5, %v4490_v47  ;;  %v2048_v38 = vmul.f32 %v1920_v52, %v1024_v2  ;;  %v1918_v37 = vadd.f32 1.0, %v4577_v45 }
 0x1a4   : > { %3785 = vtanh.f32 %v1697_v39  ;;  %v1922_v36 = vadd.f32 1.0, %v4614_v1  ;;  %v4830_v18 = vadd.f32 %v719_v33, %v4405_v56  ;;  %v4833_v40 = vadd.f32 %v912_v16, %v4407_v57  ;;  %v723_v39 = vpop.f32.mrf.mxu0 }
 0x1a5   : > { %3787 = vtanh.f32 %v1696_v4  ;;  %v1019_v50 = vmul.f32 0.5, %v4443_v53  ;;  %v2200_v13 = vpack.c.bf16 %v2048_v38, %v2044_v42  ;;  %v2046_v47 = vmul.f32 %v1918_v37, %v1022_v51  ;;  %v916_v51 = vpop.f32.mrf.mxu1 }
 0x1a6   : > { %6108 = vst [vmem:[#allocation45_spill] sm:$0xff] %v4830_v18  ;;  %6109 = vst [vmem:[#allocation46_spill] sm:$0xff] %v4833_v40  ;;  %3789 = vtanh.f32 %v1698_v10  ;;  %v2050_v55 = vmul.f32 %v1922_v36, %v1026_v30  ;;  %v1187_v63 = vmul.f32 %v4830_v18, %v4830_v18  ;;  %v1189_v45 = vmul.f32 %v4833_v40, %v4833_v40 }
 0x1a7   : > { %v1023_v1 = vmul.f32 0.5, %v4469_v24  ;;  %v1915_v33 = vadd.f32 1.0, %v4553_v58  ;;  %2555 = vmatprep.mubr.bf16.mxu0 %v2200_v13  ;;  %v1919_v53 = vadd.f32 1.0, %v4585_v62  ;;  %v1021_v26 = vmul.f32 0.5, %v4449_v3 }
 0x1a8   : > { %v2202_v2 = vpack.c.bf16 %v2050_v55, %v2046_v47  ;;  %v1025_v16 = vmul.f32 0.5, %v4473_v29  ;;  %v1315_v4 = vmul.f32 %v1187_v63, %v4830_v18  ;;  %v1317_v10 = vmul.f32 %v1189_v45, %v4833_v40 }
 0x1a9   : > { %v2043_v52 = vmul.f32 %v1915_v33, %v1019_v50  ;;  %v1917_v42 = vadd.f32 1.0, %v4569_v28  ;;  %v4848_v24 = vpop.eup %3775  ;;  %v2047_v58 = vmul.f32 %v1919_v53, %v1023_v1  ;;  %v1921_v30 = vadd.f32 1.0, %v4589_v7  ;;  %v725_v28 = vpop.f32.mrf.mxu0 }
 0x1aa   : > { %2716 = vmatprep.mubr.bf16.mxu1 %v2202_v2  ;;  %v4852_v62 = vadd.f32 %v721_v19, %v4409_v60  ;;  %v4855_v3 = vadd.f32 %v914_v23, %v4411_v61  ;;  %v1443_v29 = vmul.f32 0.044715, %v1315_v4  ;;  %v1445_v38 = vmul.f32 0.044715, %v1317_v10  ;;  %v918_v1 = vpop.f32.mrf.mxu1 }
 0x1ab   : > { %v2045_v37 = vmul.f32 %v1917_v42, %v1021_v26  ;;  %v4858_v36 = vadd.f32 %v723_v39, %v4405_v56  ;;  %v4860_v50 = vpop.eup %3777  ;;  %v2199_v13 = vpack.c.bf16 %v2047_v58, %v2043_v52  ;;  %v2049_v47 = vmul.f32 %v1921_v30, %v1025_v16 }
 0x1ac   : > { %6110 = vst [vmem:[#allocation47_spill] sm:$0xff] %v4855_v3  ;;  %v1188_v7 = vmul.f32 %v4852_v62, %v4852_v62  ;;  %v1190_v19 = vmul.f32 %v4855_v3, %v4855_v3  ;;  %v1571_v23 = vadd.f32 %v1443_v29, %v4830_v18  ;;  %v1573_v55 = vadd.f32 %v1445_v38, %v4833_v40  ;;  %v6117_v18 = vld [vmem:[#allocation39_spill] sm:$0xff] }
 0x1ad   : > { %6111 = vst [vmem:[#allocation48_spill] sm:$0xff] %v4858_v36  ;;  %v1191_v63 = vmul.f32 %v4858_v36, %v4858_v36  ;;  %v4871_v45 = vadd.f32 %v916_v51, %v4407_v57  ;;  %2556 = vmatmul.mubr.bf16.gmra.mxu0 %v2199_v13  ;;  %v2201_v39 = vpack.c.bf16 %v2049_v47, %v2045_v37  ;;  %v1028_v47 = vmul.f32 0.5, %v4517_v32 }
 0x1ae   : > { %v4873_v33 = vpop.eup %3779  ;;  %v1316_v2 = vmul.f32 %v1188_v7, %v4852_v62  ;;  %v1318_v53 = vmul.f32 %v1190_v19, %v4855_v3  ;;  %v4878_v26 = vadd.f32 %v725_v28, %v4409_v60  ;;  %v1699_v4 = vmul.f32 0.7978846, %v1571_v23  ;;  %v729_v7 = vpop.f32.mrf.mxu0 }
 0x1af   : > { %6112 = vst [vmem:[#allocation49_spill] sm:$0xff] %v4871_v45  ;;  %v4880_v16 = vpop.eup %3781  ;;  %v1701_v10 = vmul.f32 0.7978846, %v1573_v55  ;;  %v1319_v52 = vmul.f32 %v1191_v63, %v4858_v36  ;;  %v1193_v42 = vmul.f32 %v4871_v45, %v4871_v45  ;;  %2717 = vmatmul.mubr.bf16.gmra.mxu1 %v2201_v39  ;;  %v4890_v38 = vadd.f32 %v918_v1, %v4411_v61 }
 0x1b0   : > { %v4885_v51 = vpop.eup %3783  ;;  %v1444_v58 = vmul.f32 0.044715, %v1316_v2  ;;  %v1446_v30 = vmul.f32 0.044715, %v1318_v53  ;;  %v1192_v29 = vmul.f32 %v4878_v26, %v4878_v26  ;;  %3791 = vtanh.f32 %v1699_v4 }
 0x1b1   : > { %6113 = vst [vmem:[#allocation50_spill] sm:$0xff] %v4890_v38  ;;  %v4892_v37 = vpop.eup %3785  ;;  %v1447_v28 = vmul.f32 0.044715, %v1319_v52  ;;  %v1321_v13 = vmul.f32 %v1193_v42, %v4871_v45  ;;  %3793 = vtanh.f32 %v1701_v10  ;;  %v1194_v53 = vmul.f32 %v4890_v38, %v4890_v38 }
 0x1b2   : > { %v4896_v19 = vpop.eup %3787  ;;  %v1572_v23 = vadd.f32 %v1444_v58, %v4852_v62  ;;  %v1574_v55 = vadd.f32 %v1446_v30, %v4855_v3  ;;  %v1320_v63 = vmul.f32 %v1192_v29, %v4878_v26  ;;  %v1032_v32 = vmul.f32 0.5, %v4551_v44 }
 0x1b3   : > { %v4901_v1 = vpop.eup %3789  ;;  %v1575_v39 = vadd.f32 %v1447_v28, %v4858_v36  ;;  %v1449_v2 = vmul.f32 0.044715, %v1321_v13  ;;  %v4908_v10 = vadd.f32 %v729_v7, %v4405_v56  ;;  %v1322_v29 = vmul.f32 %v1194_v53, %v4890_v38  ;;  %v731_v53 = vpop.f32.mrf.mxu0 }
 0x1b4   : > { %v1700_v4 = vmul.f32 0.7978846, %v1572_v23  ;;  %v1702_v52 = vmul.f32 0.7978846, %v1574_v55  ;;  %v1448_v42 = vmul.f32 0.044715, %v1320_v63  ;;  %v922_v23 = vpop.f32.mrf.mxu1 }
 0x1b5   : > { %6114 = vst [vmem:[#allocation51_spill] sm:$0xff] %v4908_v10  ;;  %v1703_v58 = vmul.f32 0.7978846, %v1575_v39  ;;  %v1577_v30 = vadd.f32 %v1449_v2, %v4871_v45  ;;  %v1924_v40 = vadd.f32 1.0, %v4649_v54  ;;  %v1928_v13 = vadd.f32 1.0, %v4676_v0  ;;  %v6115_v2 = vld [vmem:[#allocation20_spill] sm:$0xff] }
 0x1b6   : > { %3795 = vtanh.f32 %v1700_v4  ;;  %v1576_v28 = vadd.f32 %v1448_v42, %v4878_v26  ;;  %v1030_v44 = vmul.f32 0.5, %v4536_v46  ;;  %v1450_v63 = vmul.f32 0.044715, %v1322_v29  ;;  %v6116_v4 = vld [vmem:[#allocation32_spill] sm:$0xff] }
 0x1b7   : > { %3797 = vtanh.f32 %v1702_v52  ;;  %v1705_v55 = vmul.f32 0.7978846, %v1577_v30  ;;  %v2052_v7 = vmul.f32 %v1924_v40, %v1028_v47  ;;  %v2056_v36 = vmul.f32 %v1928_v13, %v1032_v32  ;;  %v924_v47 = vpop.f32.mrf.mxu1  ;;  %v6119_v29 = vld [vmem:[#allocation16_spill] sm:$0xff] }
 0x1b8   : > { %3799 = vtanh.f32 %v1703_v58  ;;  %v1704_v39 = vmul.f32 0.7978846, %v1576_v28  ;;  %v1034_v45 = vmul.f32 0.5, %v6115_v2  ;;  %v1578_v54 = vadd.f32 %v1450_v63, %v4890_v38  ;;  %v6121_v63 = vld [vmem:[#allocation29_spill] sm:$0xff]  ;;  %v6122_v2 = vld [vmem:[#allocation34_spill] sm:$0xff] }
 0x1b9   : > { %3801 = vtanh.f32 %v1705_v55  ;;  %v1926_v42 = vadd.f32 1.0, %v6116_v4  ;;  %v1930_v0 = vadd.f32 1.0, %v6117_v18  ;;  %v2204_v46 = vpack.c.bf16 %v2056_v36, %v2052_v7  ;;  %v6120_v55 = vld [vmem:[#allocation18_spill] sm:$0xff]  ;;  %v926_v38 = vpop.f32.mrf.mxu1 }
 0x1ba   : > { %3803 = vtanh.f32 %v1704_v39  ;;  %v1195_v52 = vmul.f32 %v4908_v10, %v4908_v10  ;;  %v4923_v40 = vadd.f32 %v922_v23, %v4407_v57  ;;  %v1706_v32 = vmul.f32 0.7978846, %v1578_v54  ;;  %v733_v39 = vpop.f32.mrf.mxu0  ;;  %v6123_v54 = vld [vmem:[#allocation17_spill] sm:$0xff] }
 0x1bb   : > { %v2054_v58 = vmul.f32 %v1926_v42, %v1030_v44  ;;  %v2058_v30 = vmul.f32 %v1930_v0, %v1034_v45  ;;  %v1027_v28 = vmul.f32 0.5, %v6119_v29  ;;  %2563 = vmatprep.mubr.bf16.mxu0 %v2204_v46  ;;  %v1031_v36 = vmul.f32 0.5, %v6120_v55 }
 0x1bc   : > { %6118 = vst [vmem:[#allocation20_spill] sm:$0xff] %v4923_v40  ;;  %v1323_v13 = vmul.f32 %v1195_v52, %v4908_v10  ;;  %v1197_v18 = vmul.f32 %v4923_v40, %v4923_v40  ;;  %v1923_v7 = vadd.f32 1.0, %v6121_v63  ;;  %3805 = vtanh.f32 %v1706_v32  ;;  %v6125_v52 = vld [vmem:[#allocation19_spill] sm:$0xff]  ;;  %v6127_v63 = vld [vmem:[#allocation30_spill] sm:$0xff] }
 0x1bd   : > { %v2206_v23 = vpack.c.bf16 %v2058_v30, %v2054_v58  ;;  %v1927_v4 = vadd.f32 1.0, %v6122_v2  ;;  %v1029_v44 = vmul.f32 0.5, %v6123_v54  ;;  %v4933_v45 = vpop.eup %3791  ;;  %v1033_v29 = vmul.f32 0.5, %v6125_v52  ;;  %v6128_v58 = vld [vmem:[#allocation37_spill] sm:$0xff] }
 0x1be   : > { %6124 = vst [vmem:[#allocation32_spill] sm:$0xff] %v4933_v45  ;;  %v1451_v42 = vmul.f32 0.044715, %v1323_v13  ;;  %v1325_v0 = vmul.f32 %v1197_v18, %v4923_v40  ;;  %v2051_v46 = vmul.f32 %v1923_v7, %v1027_v28  ;;  %v4937_v3 = vpop.eup %3793  ;;  %v1925_v32 = vadd.f32 1.0, %v6127_v63  ;;  %v735_v7 = vpop.f32.mrf.mxu0 }
 0x1bf   : > { %6126 = vst [vmem:[#allocation39_spill] sm:$0xff] %v4937_v3  ;;  %2724 = vmatprep.mubr.bf16.mxu1 %v2206_v23  ;;  %v2055_v55 = vmul.f32 %v1927_v4, %v1031_v36  ;;  %v1929_v30 = vadd.f32 1.0, %v6128_v58  ;;  %v4942_v2 = vadd.f32 %v731_v53, %v4409_v60  ;;  %v4946_v18 = vadd.f32 %v924_v47, %v4411_v61 }
 0x1c0   : > { %v1579_v54 = vadd.f32 %v1451_v42, %v4908_v10  ;;  %v1453_v13 = vmul.f32 0.044715, %v1325_v0  ;;  %v4949_v28 = vadd.f32 %v733_v39, %v4405_v56  ;;  %v2053_v23 = vmul.f32 %v1925_v32, %v1029_v44  ;;  %v928_v0 = vpop.f32.mrf.mxu1 }
 0x1c1   : > { %6129 = vst [vmem:[#allocation16_spill] sm:$0xff] %v4942_v2  ;;  %6130 = vst [vmem:[#allocation18_spill] sm:$0xff] %v4946_v18  ;;  %v2203_v52 = vpack.c.bf16 %v2055_v55, %v2051_v46  ;;  %v2057_v36 = vmul.f32 %v1929_v30, %v1033_v29  ;;  %v1196_v4 = vmul.f32 %v4942_v2, %v4942_v2 }
 0x1c2   : > { %6131 = vst [vmem:[#allocation29_spill] sm:$0xff] %v4949_v28  ;;  %v1707_v63 = vmul.f32 0.7978846, %v1579_v54  ;;  %v1581_v53 = vadd.f32 %v1453_v13, %v4923_v40  ;;  %v1198_v42 = vmul.f32 %v4946_v18, %v4946_v18  ;;  %v1199_v47 = vmul.f32 %v4949_v28, %v4949_v28 }
 0x1c3   : > { %v4958_v58 = vpop.eup %3795  ;;  %2564 = vmatmul.mubr.bf16.gmra.mxu0 %v2203_v52  ;;  %v2205_v39 = vpack.c.bf16 %v2057_v36, %v2053_v23  ;;  %v1324_v44 = vmul.f32 %v1196_v4, %v4942_v2  ;;  %v4962_v46 = vadd.f32 %v926_v38, %v4407_v57  ;;  %v4965_v29 = vadd.f32 %v735_v7, %v4409_v60 }
 0x1c4   : > { %v4967_v55 = vpop.eup %3797  ;;  %3807 = vtanh.f32 %v1707_v63  ;;  %v1709_v32 = vmul.f32 0.7978846, %v1581_v53  ;;  %v1326_v30 = vmul.f32 %v1198_v42, %v4946_v18  ;;  %v1327_v54 = vmul.f32 %v1199_v47, %v4949_v28  ;;  %v6136_v53 = vld [vmem:[#allocation23_spill] sm:$0xff] }
 0x1c5   : > { %6132 = vst [vmem:[#allocation34_spill] sm:$0xff] %v4962_v46  ;;  %6133 = vst [vmem:[#allocation17_spill] sm:$0xff] %v4967_v55  ;;  %v4971_v13 = vpop.eup %3799  ;;  %2725 = vmatmul.mubr.bf16.gmra.mxu1 %v2205_v39  ;;  %v1452_v52 = vmul.f32 0.044715, %v1324_v44  ;;  %v1201_v23 = vmul.f32 %v4962_v46, %v4962_v46  ;;  %v1200_v38 = vmul.f32 %v4965_v29, %v4965_v29  ;;  %v1036_v42 = vmul.f32 0.5, %v6136_v53 }
 0x1c6   : > { %6134 = vst [vmem:[#allocation19_spill] sm:$0xff] %v4971_v13  ;;  %v4978_v7 = vadd.f32 %v928_v0, %v4411_v61  ;;  %v4980_v36 = vpop.eup %3801  ;;  %3809 = vtanh.f32 %v1709_v32  ;;  %v1454_v4 = vmul.f32 0.044715, %v1326_v30  ;;  %v1455_v63 = vmul.f32 0.044715, %v1327_v54  ;;  %v6138_v32 = vld [vmem:[#allocation27_spill] sm:$0xff] }
 0x1c7   : > { %6135 = vst [vmem:[#allocation30_spill] sm:$0xff] %v4980_v36  ;;  %v4983_v47 = vpop.eup %3803  ;;  %v1580_v39 = vadd.f32 %v1452_v52, %v4942_v2  ;;  %v1329_v44 = vmul.f32 %v1201_v23, %v4962_v46  ;;  %v1328_v40 = vmul.f32 %v1200_v38, %v4965_v29  ;;  %v1040_v30 = vmul.f32 0.5, %v6138_v32  ;;  %v739_v2 = vpop.f32.mrf.mxu0 }
 0x1c8   : > { %6137 = vst [vmem:[#allocation37_spill] sm:$0xff] %v4983_v47  ;;  %v1202_v10 = vmul.f32 %v4978_v7, %v4978_v7  ;;  %v1582_v0 = vadd.f32 %v1454_v4, %v4946_v18  ;;  %v1583_v36 = vadd.f32 %v1455_v63, %v4949_v28  ;;  %v1932_v54 = vadd.f32 1.0, %v4723_v48  ;;  %v932_v48 = vpop.f32.mrf.mxu1 }
 0x1c9   : > { %v1708_v53 = vmul.f32 0.7978846, %v1580_v39  ;;  %v1457_v3 = vmul.f32 0.044715, %v1329_v44  ;;  %v1456_v13 = vmul.f32 0.044715, %v1328_v40  ;;  %v4995_v23 = vpop.eup %3805 }
 0x1ca   : > { %v1330_v52 = vmul.f32 %v1202_v10, %v4978_v7  ;;  %v1710_v38 = vmul.f32 0.7978846, %v1582_v0  ;;  %v1711_v45 = vmul.f32 0.7978846, %v1583_v36  ;;  %v1936_v55 = vadd.f32 1.0, %v4740_v22  ;;  %v6139_v40 = vld [vmem:[#allocation24_spill] sm:$0xff]  ;;  %v741_v22 = vpop.f32.mrf.mxu0 }
 0x1cb   : > { %v2060_v47 = vmul.f32 %v1932_v54, %v1036_v42  ;;  %3811 = vtanh.f32 %v1708_v53  ;;  %v1585_v4 = vadd.f32 %v1457_v3, %v4962_v46  ;;  %v1584_v63 = vadd.f32 %v1456_v13, %v4965_v29  ;;  %v6140_v10 = vld [vmem:[#allocation28_spill] sm:$0xff]  ;;  %v6143_v53 = vld [vmem:[#allocation21_spill] sm:$0xff] }
 0x1cc   : > { %v1458_v32 = vmul.f32 0.044715, %v1330_v52  ;;  %3813 = vtanh.f32 %v1710_v38  ;;  %v2064_v39 = vmul.f32 %v1936_v55, %v1040_v30  ;;  %v1038_v44 = vmul.f32 0.5, %v6139_v40  ;;  %v934_v52 = vpop.f32.mrf.mxu1 }
 0x1cd   : > { %v1042_v28 = vmul.f32 0.5, %v6140_v10  ;;  %3815 = vtanh.f32 %v1711_v45  ;;  %v1713_v18 = vmul.f32 0.7978846, %v1585_v4  ;;  %v1712_v0 = vmul.f32 0.7978846, %v1584_v63  ;;  %v6145_v63 = vld [vmem:[#allocation40_spill] sm:$0xff] }
 0x1ce   : > { %v1586_v36 = vadd.f32 %v1458_v32, %v4978_v7  ;;  %v2208_v42 = vpack.c.bf16 %v2064_v39, %v2060_v47  ;;  %v1934_v54 = vadd.f32 1.0, %v4730_v27  ;;  %v1938_v3 = vadd.f32 1.0, %v4752_v41 }
 0x1cf   : > { %v5006_v13 = vadd.f32 %v739_v2, %v4405_v56  ;;  %3817 = vtanh.f32 %v1713_v18  ;;  %v5009_v30 = vadd.f32 %v932_v48, %v4407_v57  ;;  %v1035_v45 = vmul.f32 0.5, %v6143_v53  ;;  %v6144_v2 = vld [vmem:[#allocation25_spill] sm:$0xff]  ;;  %v743_v48 = vpop.f32.mrf.mxu0 }
 0x1d0   : > { %v1714_v55 = vmul.f32 0.7978846, %v1586_v36  ;;  %3819 = vtanh.f32 %v1712_v0  ;;  %2571 = vmatprep.mubr.bf16.mxu0 %v2208_v42  ;;  %v2062_v38 = vmul.f32 %v1934_v54, %v1038_v44  ;;  %v2066_v4 = vmul.f32 %v1938_v3, %v1042_v28  ;;  %v6146_v28 = vld [vmem:[#allocation22_spill] sm:$0xff] }
 0x1d1   : > { %6141 = vst [vmem:[#allocation23_spill] sm:$0xff] %v5006_v13  ;;  %6142 = vst [vmem:[#allocation27_spill] sm:$0xff] %v5009_v30  ;;  %v1203_v27 = vmul.f32 %v5006_v13, %v5006_v13  ;;  %v5014_v47 = vpop.eup %3807  ;;  %v1205_v41 = vmul.f32 %v5009_v30, %v5009_v30  ;;  %v1039_v18 = vmul.f32 0.5, %v6144_v2  ;;  %v1931_v32 = vadd.f32 1.0, %v6145_v63  ;;  %v6148_v54 = vld [vmem:[#allocation26_spill] sm:$0xff]  ;;  %v936_v2 = vpop.f32.mrf.mxu1 }
 0x1d2   : > { %3821 = vtanh.f32 %v1714_v55  ;;  %v2210_v39 = vpack.c.bf16 %v2066_v4, %v2062_v38  ;;  %v1935_v44 = vadd.f32 1.0, %v4734_v6  ;;  %v1037_v10 = vmul.f32 0.5, %v6146_v28  ;;  %v6149_v55 = vld [vmem:[#allocation41_spill] sm:$0xff] }
 0x1d3   : > { %v1331_v40 = vmul.f32 %v1203_v27, %v5006_v13  ;;  %v5023_v0 = vpop.eup %3809  ;;  %v1333_v36 = vmul.f32 %v1205_v41, %v5009_v30  ;;  %v2059_v42 = vmul.f32 %v1931_v32, %v1035_v45  ;;  %v1041_v3 = vmul.f32 0.5, %v6148_v54  ;;  %v745_v41 = vpop.f32.mrf.mxu0 }
 0x1d4   : > { %6147 = vst [vmem:[#allocation24_spill] sm:$0xff] %v5023_v0  ;;  %v1933_v53 = vadd.f32 1.0, %v6149_v55  ;;  %2732 = vmatprep.mubr.bf16.mxu1 %v2210_v39  ;;  %v2063_v46 = vmul.f32 %v1935_v44, %v1039_v18  ;;  %v1937_v38 = vadd.f32 1.0, %v4737_v34  ;;  %v5030_v4 = vadd.f32 %v741_v22, %v4409_v60 }
 0x1d5   : > { %v1459_v63 = vmul.f32 0.044715, %v1331_v40  ;;  %v1461_v6 = vmul.f32 0.044715, %v1333_v36  ;;  %v5033_v28 = vadd.f32 %v934_v52, %v4411_v61  ;;  %v5036_v45 = vadd.f32 %v743_v48, %v4405_v56  ;;  %v938_v48 = vpop.f32.mrf.mxu1 }
 0x1d6   : > { %6150 = vst [vmem:[#allocation28_spill] sm:$0xff] %v5030_v4  ;;  %v2061_v27 = vmul.f32 %v1933_v53, %v1037_v10  ;;  %v2207_v54 = vpack.c.bf16 %v2063_v46, %v2059_v42  ;;  %v2065_v39 = vmul.f32 %v1937_v38, %v1041_v3  ;;  %v1204_v18 = vmul.f32 %v5030_v4, %v5030_v4 }
 0x1d7   : > { %6151 = vst [vmem:[#allocation21_spill] sm:$0xff] %v5033_v28  ;;  %6152 = vst [vmem:[#allocation25_spill] sm:$0xff] %v5036_v45  ;;  %v1587_v32 = vadd.f32 %v1459_v63, %v5006_v13  ;;  %v1589_v34 = vadd.f32 %v1461_v6, %v5009_v30  ;;  %v1206_v22 = vmul.f32 %v5033_v28, %v5033_v28  ;;  %v1940_v13 = vadd.f32 1.0, %v4801_v9 }
 0x1d8   : > { %v1207_v52 = vmul.f32 %v5036_v45, %v5036_v45  ;;  %v5047_v40 = vadd.f32 %v936_v2, %v4407_v57  ;;  %v5049_v44 = vpop.eup %3811  ;;  %2572 = vmatmul.mubr.bf16.gmra.mxu0 %v2207_v54  ;;  %v2209_v46 = vpack.c.bf16 %v2065_v39, %v2061_v27  ;;  %v1332_v36 = vmul.f32 %v1204_v18, %v5030_v4 }
 0x1d9   : > { %v1715_v10 = vmul.f32 0.7978846, %v1587_v32  ;;  %v5053_v42 = vadd.f32 %v745_v41, %v4409_v60  ;;  %v5055_v3 = vpop.eup %3813  ;;  %v1717_v55 = vmul.f32 0.7978846, %v1589_v34  ;;  %v1334_v53 = vmul.f32 %v1206_v22, %v5033_v28 }
 0x1da   : > { %v1335_v63 = vmul.f32 %v1207_v52, %v5036_v45  ;;  %v1209_v2 = vmul.f32 %v5047_v40, %v5047_v40  ;;  %v5061_v38 = vpop.eup %3815  ;;  %2733 = vmatmul.mubr.bf16.gmra.mxu1 %v2209_v46  ;;  %v1460_v6 = vmul.f32 0.044715, %v1332_v36  ;;  %v5066_v41 = vadd.f32 %v938_v48, %v4411_v61 }
 0x1db   : > { %3823 = vtanh.f32 %v1715_v10  ;;  %v1208_v27 = vmul.f32 %v5053_v42, %v5053_v42  ;;  %v1462_v32 = vmul.f32 0.044715, %v1334_v53  ;;  %v6154_v10 = vld [vmem:[#allocation35_spill] sm:$0xff] }
 0x1dc   : > { %3825 = vtanh.f32 %v1717_v55  ;;  %v1463_v54 = vmul.f32 0.044715, %v1335_v63  ;;  %v1337_v39 = vmul.f32 %v1209_v2, %v5047_v40  ;;  %v5069_v18 = vpop.eup %3817  ;;  %v1588_v34 = vadd.f32 %v1460_v6, %v5030_v4  ;;  %v749_v4 = vpop.f32.mrf.mxu0 }
 0x1dd   : > { %6153 = vst [vmem:[#allocation40_spill] sm:$0xff] %v5069_v18  ;;  %v1336_v22 = vmul.f32 %v1208_v27, %v5053_v42  ;;  %v1210_v52 = vmul.f32 %v5066_v41, %v5066_v41  ;;  %v1044_v46 = vmul.f32 0.5, %v6154_v10  ;;  %v5076_v36 = vpop.eup %3819  ;;  %v1590_v48 = vadd.f32 %v1462_v32, %v5033_v28  ;;  %v6155_v28 = vld [vmem:[#allocation36_spill] sm:$0xff] }
 0x1de   : > { %v1591_v55 = vadd.f32 %v1463_v54, %v5036_v45  ;;  %v1465_v53 = vmul.f32 0.044715, %v1337_v39  ;;  %v1048_v63 = vmul.f32 0.5, %v4699_v35  ;;  %v1716_v30 = vmul.f32 0.7978846, %v1588_v34  ;;  %v942_v45 = vpop.f32.mrf.mxu1 }
 0x1df   : > { %v5081_v2 = vpop.eup %3821  ;;  %v1464_v6 = vmul.f32 0.044715, %v1336_v22  ;;  %v1338_v27 = vmul.f32 %v1210_v52, %v5066_v41  ;;  %v1718_v18 = vmul.f32 0.7978846, %v1590_v48  ;;  %v1944_v32 = vadd.f32 1.0, %v4818_v25 }
 0x1e0   : > { %v1719_v10 = vmul.f32 0.7978846, %v1591_v55  ;;  %v1593_v0 = vadd.f32 %v1465_v53, %v5047_v40  ;;  %3827 = vtanh.f32 %v1716_v30  ;;  %v2068_v35 = vmul.f32 %v1940_v13, %v1044_v46  ;;  %v751_v53 = vpop.f32.mrf.mxu0 }
 0x1e1   : > { %v1592_v54 = vadd.f32 %v1464_v6, %v5053_v42  ;;  %v1466_v39 = vmul.f32 0.044715, %v1338_v27  ;;  %3829 = vtanh.f32 %v1718_v18  ;;  %v2072_v22 = vmul.f32 %v1944_v32, %v1048_v63  ;;  %v944_v18 = vpop.f32.mrf.mxu1 }
 0x1e2   : > { %v1721_v34 = vmul.f32 0.7978846, %v1593_v0  ;;  %v1046_v52 = vmul.f32 0.5, %v6155_v28  ;;  %3831 = vtanh.f32 %v1719_v10  ;;  %v1050_v55 = vmul.f32 0.5, %v4707_v15  ;;  %v6158_v15 = vld [vmem:[#allocation31_spill] sm:$0xff]  ;;  %v6159_v10 = vld [vmem:[#allocation38_spill] sm:$0xff] }
 0x1e3   : > { %v1720_v9 = vmul.f32 0.7978846, %v1592_v54  ;;  %v1594_v48 = vadd.f32 %v1466_v39, %v5066_v41  ;;  %v2212_v25 = vpack.c.bf16 %v2072_v22, %v2068_v35  ;;  %v1942_v30 = vadd.f32 1.0, %v4805_v8  ;;  %v753_v54 = vpop.f32.mrf.mxu0 }
 0x1e4   : > { %3833 = vtanh.f32 %v1721_v34  ;;  %v1946_v6 = vadd.f32 1.0, %v4823_v59  ;;  %v5094_v0 = vadd.f32 %v749_v4, %v4405_v56  ;;  %v5097_v28 = vadd.f32 %v942_v45, %v4407_v57  ;;  %v6160_v34 = vld [vmem:[#allocation33_spill] sm:$0xff] }
 0x1e5   : > { %3835 = vtanh.f32 %v1720_v9  ;;  %v1722_v13 = vmul.f32 0.7978846, %v1594_v48  ;;  %2579 = vmatprep.mubr.bf16.mxu0 %v2212_v25  ;;  %v2070_v46 = vmul.f32 %v1942_v30, %v1046_v52  ;;  %v1043_v27 = vmul.f32 0.5, %v6158_v15 }
 0x1e6   : > { %6156 = vst [vmem:[#allocation22_spill] sm:$0xff] %v5094_v0  ;;  %6157 = vst [vmem:[#allocation26_spill] sm:$0xff] %v5097_v28  ;;  %v2074_v63 = vmul.f32 %v1946_v6, %v1050_v55  ;;  %v1047_v32 = vmul.f32 0.5, %v6159_v10  ;;  %v1211_v8 = vmul.f32 %v5094_v0, %v5094_v0  ;;  %v1213_v59 = vmul.f32 %v5097_v28, %v5097_v28 }
 0x1e7   : > { %3837 = vtanh.f32 %v1722_v13  ;;  %v1939_v4 = vadd.f32 1.0, %v4775_v43  ;;  %v1943_v35 = vadd.f32 1.0, %v4808_v31  ;;  %v1045_v22 = vmul.f32 0.5, %v6160_v34  ;;  %v946_v43 = vpop.f32.mrf.mxu1 }
 0x1e8   : > { %v5106_v45 = vpop.eup %3823  ;;  %v2214_v39 = vpack.c.bf16 %v2074_v63, %v2070_v46  ;;  %v1049_v52 = vmul.f32 0.5, %v4693_v49  ;;  %v1339_v48 = vmul.f32 %v1211_v8, %v5094_v0  ;;  %v1341_v55 = vmul.f32 %v1213_v59, %v5097_v28 }
 0x1e9   : > { %v5111_v9 = vpop.eup %3825  ;;  %v2067_v25 = vmul.f32 %v1939_v4, %v1043_v27  ;;  %v1941_v30 = vadd.f32 1.0, %v4797_v11  ;;  %v2071_v6 = vmul.f32 %v1943_v35, %v1047_v32  ;;  %v1945_v13 = vadd.f32 1.0, %v4814_v12  ;;  %v755_v27 = vpop.f32.mrf.mxu0 }
 0x1ea   : > { %2740 = vmatprep.mubr.bf16.mxu1 %v2214_v39  ;;  %v5118_v31 = vadd.f32 %v751_v53, %v4409_v60  ;;  %v5121_v46 = vadd.f32 %v944_v18, %v4411_v61  ;;  %v1467_v49 = vmul.f32 0.044715, %v1339_v48  ;;  %v1469_v63 = vmul.f32 0.044715, %v1341_v55 }
 0x1eb   : > { %v2069_v15 = vmul.f32 %v1941_v30, %v1045_v22  ;;  %v5124_v10 = vadd.f32 %v753_v54, %v4405_v56  ;;  %v2211_v8 = vpack.c.bf16 %v2071_v6, %v2067_v25  ;;  %v2073_v11 = vmul.f32 %v1945_v13, %v1049_v52  ;;  %v948_v54 = vpop.f32.mrf.mxu1 }
 0x1ec   : > { %6161 = vst [vmem:[#allocation41_spill] sm:$0xff] %v5121_v46  ;;  %v1212_v32 = vmul.f32 %v5118_v31, %v5118_v31  ;;  %v1214_v12 = vmul.f32 %v5121_v46, %v5121_v46  ;;  %v1595_v53 = vadd.f32 %v1467_v49, %v5094_v0  ;;  %v1597_v18 = vadd.f32 %v1469_v63, %v5097_v28 }
 0x1ed   : > { %6162 = vst [vmem:[#allocation35_spill] sm:$0xff] %v5124_v10  ;;  %v1215_v59 = vmul.f32 %v5124_v10, %v5124_v10  ;;  %v5135_v4 = vadd.f32 %v946_v43, %v4407_v57  ;;  %v5137_v39 = vpop.eup %3827  ;;  %2580 = vmatmul.mubr.bf16.gmra.mxu0 %v2211_v8  ;;  %v2213_v35 = vpack.c.bf16 %v2073_v11, %v2069_v15 }
 0x1ee   : > { %v1340_v34 = vmul.f32 %v1212_v32, %v5118_v31  ;;  %v1342_v22 = vmul.f32 %v1214_v12, %v5121_v46  ;;  %v5142_v52 = vadd.f32 %v755_v27, %v4409_v60  ;;  %v5144_v48 = vpop.eup %3829  ;;  %v1723_v55 = vmul.f32 0.7978846, %v1595_v53  ;;  %v6163_v32 = vld [vmem:[#allocation44_spill] sm:$0xff]  ;;  %v759_v53 = vpop.f32.mrf.mxu0 }
 0x1ef   : > { %v1725_v25 = vmul.f32 0.7978846, %v1597_v18  ;;  %v1343_v30 = vmul.f32 %v1215_v59, %v5124_v10  ;;  %v1217_v43 = vmul.f32 %v5135_v4, %v5135_v4  ;;  %v5149_v6 = vpop.eup %3831  ;;  %2741 = vmatmul.mubr.bf16.gmra.mxu1 %v2213_v35  ;;  %v5154_v15 = vadd.f32 %v948_v54, %v4411_v61 }
 0x1f0   : > { %v1468_v13 = vmul.f32 0.044715, %v1340_v34  ;;  %v1470_v49 = vmul.f32 0.044715, %v1342_v22  ;;  %v1216_v63 = vmul.f32 %v5142_v52, %v5142_v52  ;;  %3839 = vtanh.f32 %v1723_v55 }
 0x1f1   : > { %v5156_v27 = vpop.eup %3833  ;;  %v1471_v8 = vmul.f32 0.044715, %v1343_v30  ;;  %v1345_v11 = vmul.f32 %v1217_v43, %v5135_v4  ;;  %v1052_v12 = vmul.f32 0.5, %v6163_v32  ;;  %3841 = vtanh.f32 %v1725_v25 }
 0x1f2   : > { %v5160_v18 = vpop.eup %3835  ;;  %v1596_v59 = vadd.f32 %v1468_v13, %v5118_v31  ;;  %v1598_v35 = vadd.f32 %v1470_v49, %v5121_v46  ;;  %v1344_v34 = vmul.f32 %v1216_v63, %v5142_v52  ;;  %v1218_v55 = vmul.f32 %v5154_v15, %v5154_v15 }
 0x1f3   : > { %v1599_v54 = vadd.f32 %v1471_v8, %v5124_v10  ;;  %v1473_v22 = vmul.f32 0.044715, %v1345_v11  ;;  %v1056_v30 = vmul.f32 0.5, %v4782_v17  ;;  %v5172_v25 = vadd.f32 %v759_v53, %v4405_v56 }
 0x1f4   : > { %v5169_v43 = vpop.eup %3837  ;;  %v1724_v32 = vmul.f32 0.7978846, %v1596_v59  ;;  %v1726_v28 = vmul.f32 0.7978846, %v1598_v35  ;;  %v1472_v0 = vmul.f32 0.044715, %v1344_v34  ;;  %v1346_v63 = vmul.f32 %v1218_v55, %v5154_v15  ;;  %v952_v59 = vpop.f32.mrf.mxu1 }
 0x1f5   : > { %6164 = vst [vmem:[#allocation36_spill] sm:$0xff] %v5172_v25  ;;  %v1727_v13 = vmul.f32 0.7978846, %v1599_v54  ;;  %v1601_v49 = vadd.f32 %v1473_v22, %v5135_v4  ;;  %v1948_v8 = vadd.f32 1.0, %v4873_v33  ;;  %v1952_v17 = vadd.f32 1.0, %v4896_v19  ;;  %v761_v55 = vpop.f32.mrf.mxu0 }
 0x1f6   : > { %3843 = vtanh.f32 %v1724_v32  ;;  %v1600_v11 = vadd.f32 %v1472_v0, %v5142_v52  ;;  %v1054_v10 = vmul.f32 0.5, %v4764_v5  ;;  %v1474_v34 = vmul.f32 0.044715, %v1346_v63  ;;  %v954_v32 = vpop.f32.mrf.mxu1 }
 0x1f7   : > { %3845 = vtanh.f32 %v1726_v28  ;;  %v1729_v35 = vmul.f32 0.7978846, %v1601_v49  ;;  %v2076_v53 = vmul.f32 %v1948_v8, %v1052_v12  ;;  %v2080_v46 = vmul.f32 %v1952_v17, %v1056_v30  ;;  %v6166_v49 = vld [vmem:[#allocation42_spill] sm:$0xff] }
 0x1f8   : > { %3847 = vtanh.f32 %v1727_v13  ;;  %v1728_v54 = vmul.f32 0.7978846, %v1600_v11  ;;  %v1058_v22 = vmul.f32 0.5, %v4785_v21  ;;  %v1602_v33 = vadd.f32 %v1474_v34, %v5154_v15  ;;  %v763_v11 = vpop.f32.mrf.mxu0 }
 0x1f9   : > { %3849 = vtanh.f32 %v1729_v35  ;;  %v1950_v0 = vadd.f32 1.0, %v4880_v16  ;;  %v1954_v19 = vadd.f32 1.0, %v4901_v1  ;;  %v2216_v5 = vpack.c.bf16 %v2080_v46, %v2076_v53  ;;  %v6167_v35 = vld [vmem:[#allocation43_spill] sm:$0xff] }
 0x1fa   : > { %3851 = vtanh.f32 %v1728_v54  ;;  %v1219_v28 = vmul.f32 %v5172_v25, %v5172_v25  ;;  %v5187_v12 = vadd.f32 %v952_v59, %v4407_v57  ;;  %v1730_v30 = vmul.f32 0.7978846, %v1602_v33 }
 0x1fb   : > { %v2078_v13 = vmul.f32 %v1950_v0, %v1054_v10  ;;  %v2082_v21 = vmul.f32 %v1954_v19, %v1058_v22  ;;  %v1051_v63 = vmul.f32 0.5, %v6166_v49  ;;  %2587 = vmatprep.mubr.bf16.mxu0 %v2216_v5  ;;  %v1055_v1 = vmul.f32 0.5, %v4767_v20  ;;  %v956_v0 = vpop.f32.mrf.mxu1 }
 0x1fc   : > { %6165 = vst [vmem:[#allocation31_spill] sm:$0xff] %v5187_v12  ;;  %v1347_v8 = vmul.f32 %v1219_v28, %v5172_v25  ;;  %v1221_v16 = vmul.f32 %v5187_v12, %v5187_v12  ;;  %v1947_v46 = vadd.f32 1.0, %v4848_v24  ;;  %3853 = vtanh.f32 %v1730_v30 }
 0x1fd   : > { %v2218_v17 = vpack.c.bf16 %v2082_v21, %v2078_v13  ;;  %v1951_v59 = vadd.f32 1.0, %v4885_v51  ;;  %v1053_v10 = vmul.f32 0.5, %v6167_v35  ;;  %v5197_v34 = vpop.eup %3839  ;;  %v1057_v33 = vmul.f32 0.5, %v4773_v14  ;;  %v765_v21 = vpop.f32.mrf.mxu0 }
 0x1fe   : > { %v1475_v53 = vmul.f32 0.044715, %v1347_v8  ;;  %v1349_v54 = vmul.f32 %v1221_v16, %v5187_v12  ;;  %v2075_v22 = vmul.f32 %v1947_v46, %v1051_v63  ;;  %v5201_v19 = vpop.eup %3841  ;;  %v1949_v24 = vadd.f32 1.0, %v4860_v50 }
 0x1ff   : > { %2748 = vmatprep.mubr.bf16.mxu1 %v2218_v17  ;;  %v2079_v20 = vmul.f32 %v1951_v59, %v1055_v1  ;;  %v1953_v5 = vadd.f32 1.0, %v4892_v37  ;;  %v5206_v51 = vadd.f32 %v761_v55, %v4409_v60  ;;  %v5210_v13 = vadd.f32 %v954_v32, %v4411_v61  ;;  %v958_v1 = vpop.f32.mrf.mxu1 }
 0x200   : > { %v1603_v28 = vadd.f32 %v1475_v53, %v5172_v25  ;;  %v1477_v30 = vmul.f32 0.044715, %v1349_v54  ;;  %v5213_v14 = vadd.f32 %v763_v11, %v4405_v56  ;;  %v2077_v63 = vmul.f32 %v1949_v24, %v1053_v10 }
 0x201   : > { %6168 = vst [vmem:[#allocation38_spill] sm:$0xff] %v5206_v51  ;;  %6169 = vst [vmem:[#allocation33_spill] sm:$0xff] %v5210_v13  ;;  %v2215_v49 = vpack.c.bf16 %v2079_v20, %v2075_v22  ;;  %v2081_v8 = vmul.f32 %v1953_v5, %v1057_v33  ;;  %v1220_v50 = vmul.f32 %v5206_v51, %v5206_v51 }
 0x202   : > { %6170 = vst [vmem:[#allocation44_spill] sm:$0xff] %v5213_v14  ;;  %v1731_v37 = vmul.f32 0.7978846, %v1603_v28  ;;  %v1605_v55 = vadd.f32 %v1477_v30, %v5187_v12  ;;  %v1222_v16 = vmul.f32 %v5210_v13, %v5210_v13  ;;  %v1223_v32 = vmul.f32 %v5213_v14, %v5213_v14  ;;  %v6174_v12 = vld [vmem:[#allocation37_spill] sm:$0xff] }
 0x203   : > { %v5222_v46 = vpop.eup %3843  ;;  %2588 = vmatmul.mubr.bf16.gmra.mxu0 %v2215_v49  ;;  %v2217_v11 = vpack.c.bf16 %v2081_v8, %v2077_v63  ;;  %v1348_v17 = vmul.f32 %v1220_v50, %v5206_v51  ;;  %v5226_v59 = vadd.f32 %v956_v0, %v4407_v57  ;;  %v5229_v35 = vadd.f32 %v765_v21, %v4409_v60 }
 0x204   : > { %v5231_v10 = vpop.eup %3845  ;;  %3855 = vtanh.f32 %v1731_v37  ;;  %v1733_v53 = vmul.f32 0.7978846, %v1605_v55  ;;  %v1350_v54 = vmul.f32 %v1222_v16, %v5210_v13  ;;  %v1351_v22 = vmul.f32 %v1223_v32, %v5213_v14 }
 0x205   : > { %6171 = vst [vmem:[#allocation42_spill] sm:$0xff] %v5226_v59  ;;  %6172 = vst [vmem:[#allocation43_spill] sm:$0xff] %v5229_v35  ;;  %v5235_v33 = vpop.eup %3847  ;;  %2749 = vmatmul.mubr.bf16.gmra.mxu1 %v2217_v11  ;;  %v1476_v20 = vmul.f32 0.044715, %v1348_v17  ;;  %v1225_v24 = vmul.f32 %v5226_v59, %v5226_v59  ;;  %v1224_v0 = vmul.f32 %v5229_v35, %v5229_v35  ;;  %v1060_v49 = vmul.f32 0.5, %v4852_v62 }
 0x206   : > { %v5242_v5 = vadd.f32 %v958_v1, %v4411_v61  ;;  %v5244_v28 = vpop.eup %3849  ;;  %3857 = vtanh.f32 %v1733_v53  ;;  %v1478_v30 = vmul.f32 0.044715, %v1350_v54  ;;  %v1479_v21 = vmul.f32 0.044715, %v1351_v22  ;;  %v769_v22 = vpop.f32.mrf.mxu0 }
 0x207   : > { %v5247_v63 = vpop.eup %3851  ;;  %v1604_v8 = vadd.f32 %v1476_v20, %v5206_v51  ;;  %v1353_v50 = vmul.f32 %v1225_v24, %v5226_v59  ;;  %v1352_v37 = vmul.f32 %v1224_v0, %v5229_v35  ;;  %v1064_v1 = vmul.f32 0.5, %v4878_v26 }
 0x208   : > { %6173 = vst [vmem:[#allocation52_spill] sm:$0xff] %v5242_v5  ;;  %v1226_v55 = vmul.f32 %v5242_v5, %v5242_v5  ;;  %v1606_v16 = vadd.f32 %v1478_v30, %v5210_v13  ;;  %v1607_v32 = vadd.f32 %v1479_v21, %v5213_v14  ;;  %v1956_v11 = vadd.f32 1.0, %v4958_v58  ;;  %v962_v58 = vpop.f32.mrf.mxu1 }
 0x209   : > { %v1732_v62 = vmul.f32 0.7978846, %v1604_v8  ;;  %v1481_v17 = vmul.f32 0.044715, %v1353_v50  ;;  %v1480_v53 = vmul.f32 0.044715, %v1352_v37  ;;  %v5259_v20 = vpop.eup %3853 }
 0x20a   : > { %v1354_v54 = vmul.f32 %v1226_v55, %v5242_v5  ;;  %v1734_v24 = vmul.f32 0.7978846, %v1606_v16  ;;  %v1735_v0 = vmul.f32 0.7978846, %v1607_v32  ;;  %v1960_v25 = vadd.f32 1.0, %v6174_v12  ;;  %v6175_v50 = vld [vmem:[#allocation47_spill] sm:$0xff]  ;;  %v771_v12 = vpop.f32.mrf.mxu0 }
 0x20b   : > { %v2084_v51 = vmul.f32 %v1956_v11, %v1060_v49  ;;  %3859 = vtanh.f32 %v1732_v62  ;;  %v1609_v30 = vadd.f32 %v1481_v17, %v5226_v59  ;;  %v1608_v26 = vadd.f32 %v1480_v53, %v5229_v35  ;;  %v6176_v55 = vld [vmem:[#allocation50_spill] sm:$0xff]  ;;  %v6177_v11 = vld [vmem:[#allocation17_spill] sm:$0xff] }
 0x20c   : > { %v1482_v21 = vmul.f32 0.044715, %v1354_v54  ;;  %3861 = vtanh.f32 %v1734_v24  ;;  %v2088_v8 = vmul.f32 %v1960_v25, %v1064_v1  ;;  %v1062_v37 = vmul.f32 0.5, %v6175_v50  ;;  %v964_v54 = vpop.f32.mrf.mxu1  ;;  %v773_v50 = vpop.f32.mrf.mxu0 }
 0x20d   : > { %v1066_v14 = vmul.f32 0.5, %v6176_v55  ;;  %3863 = vtanh.f32 %v1735_v0  ;;  %v1737_v13 = vmul.f32 0.7978846, %v1609_v30  ;;  %v1736_v16 = vmul.f32 0.7978846, %v1608_v26 }
 0x20e   : > { %v1610_v32 = vadd.f32 %v1482_v21, %v5242_v5  ;;  %v2220_v49 = vpack.c.bf16 %v2088_v8, %v2084_v51  ;;  %v1958_v62 = vadd.f32 1.0, %v6177_v11  ;;  %v1962_v17 = vadd.f32 1.0, %v4995_v23  ;;  %v6180_v51 = vld [vmem:[#allocation45_spill] sm:$0xff]  ;;  %v6183_v8 = vld [vmem:[#allocation32_spill] sm:$0xff] }
 0x20f   : > { %v5270_v53 = vadd.f32 %v769_v22, %v4405_v56  ;;  %3865 = vtanh.f32 %v1737_v13  ;;  %v5273_v1 = vadd.f32 %v962_v58, %v4407_v57  ;;  %v1059_v26 = vmul.f32 0.5, %v6180_v51  ;;  %v6182_v13 = vld [vmem:[#allocation48_spill] sm:$0xff]  ;;  %v6187_v51 = vld [vmem:[#allocation49_spill] sm:$0xff] }
 0x210   : > { %v1738_v25 = vmul.f32 0.7978846, %v1610_v32  ;;  %2595 = vmatprep.mubr.bf16.mxu0 %v2220_v49  ;;  %v2086_v24 = vmul.f32 %v1958_v62, %v1062_v37  ;;  %v2090_v0 = vmul.f32 %v1962_v17, %v1066_v14  ;;  %3867 = vtanh.f32 %v1736_v16  ;;  %v6184_v14 = vld [vmem:[#allocation19_spill] sm:$0xff]  ;;  %v6185_v49 = vld [vmem:[#allocation46_spill] sm:$0xff] }
 0x211   : > { %6178 = vst [vmem:[#allocation37_spill] sm:$0xff] %v5270_v53  ;;  %6179 = vst [vmem:[#allocation47_spill] sm:$0xff] %v5273_v1  ;;  %v1227_v30 = vmul.f32 %v5270_v53, %v5270_v53  ;;  %v5278_v21 = vpop.eup %3855  ;;  %v1229_v23 = vmul.f32 %v5273_v1, %v5273_v1  ;;  %v1063_v22 = vmul.f32 0.5, %v6182_v13  ;;  %v1955_v58 = vadd.f32 1.0, %v6183_v8  ;;  %v966_v13 = vpop.f32.mrf.mxu1 }
 0x212   : > { %6181 = vst [vmem:[#allocation50_spill] sm:$0xff] %v5278_v21  ;;  %v2222_v55 = vpack.c.bf16 %v2090_v0, %v2086_v24  ;;  %v1959_v32 = vadd.f32 1.0, %v6184_v14  ;;  %v1061_v11 = vmul.f32 0.5, %v6185_v49  ;;  %v1065_v59 = vmul.f32 0.5, %v6187_v51  ;;  %v6188_v21 = vld [vmem:[#allocation39_spill] sm:$0xff]  ;;  %v6189_v24 = vld [vmem:[#allocation30_spill] sm:$0xff] }
 0x213   : > { %v1355_v37 = vmul.f32 %v1227_v30, %v5270_v53  ;;  %v5287_v62 = vpop.eup %3857  ;;  %v1357_v17 = vmul.f32 %v1229_v23, %v5273_v1  ;;  %v2083_v16 = vmul.f32 %v1955_v58, %v1059_v26  ;;  %v1957_v5 = vadd.f32 1.0, %v6188_v21  ;;  %v775_v23 = vpop.f32.mrf.mxu0 }
 0x214   : > { %6186 = vst [vmem:[#allocation17_spill] sm:$0xff] %v5287_v62  ;;  %2756 = vmatprep.mubr.bf16.mxu1 %v2222_v55  ;;  %v2087_v35 = vmul.f32 %v1959_v32, %v1063_v22  ;;  %v1961_v0 = vadd.f32 1.0, %v6189_v24  ;;  %v5294_v30 = vadd.f32 %v771_v12, %v4409_v60  ;;  %v5297_v62 = vadd.f32 %v964_v54, %v4411_v61 }
 0x215   : > { %v1483_v8 = vmul.f32 0.044715, %v1355_v37  ;;  %v1485_v14 = vmul.f32 0.044715, %v1357_v17  ;;  %v2085_v49 = vmul.f32 %v1957_v5, %v1061_v11  ;;  %v5300_v26 = vadd.f32 %v773_v50, %v4405_v56  ;;  %v968_v50 = vpop.f32.mrf.mxu1 }
 0x216   : > { %6190 = vst [vmem:[#allocation45_spill] sm:$0xff] %v5294_v30  ;;  %6191 = vst [vmem:[#allocation48_spill] sm:$0xff] %v5297_v62  ;;  %v2219_v58 = vpack.c.bf16 %v2087_v35, %v2083_v16  ;;  %v2089_v55 = vmul.f32 %v1961_v0, %v1065_v59  ;;  %v1228_v22 = vmul.f32 %v5294_v30, %v5294_v30  ;;  %3869 = vtanh.f32 %v1738_v25 }
 0x217   : > { %6192 = vst [vmem:[#allocation32_spill] sm:$0xff] %v5300_v26  ;;  %v1611_v21 = vadd.f32 %v1483_v8, %v5270_v53  ;;  %v1613_v37 = vadd.f32 %v1485_v14, %v5273_v1  ;;  %v1230_v12 = vmul.f32 %v5297_v62, %v5297_v62  ;;  %v1231_v5 = vmul.f32 %v5300_v26, %v5300_v26 }
 0x218   : > { %v5311_v54 = vadd.f32 %v966_v13, %v4407_v57  ;;  %v5313_v32 = vpop.eup %3859  ;;  %2596 = vmatmul.mubr.bf16.gmra.mxu0 %v2219_v58  ;;  %v2221_v59 = vpack.c.bf16 %v2089_v55, %v2085_v49  ;;  %v1356_v35 = vmul.f32 %v1228_v22, %v5294_v30  ;;  %v5317_v17 = vadd.f32 %v775_v23, %v4409_v60 }
 0x219   : > { %v1739_v11 = vmul.f32 0.7978846, %v1611_v21  ;;  %v5319_v16 = vpop.eup %3861  ;;  %v1741_v51 = vmul.f32 0.7978846, %v1613_v37  ;;  %v1358_v8 = vmul.f32 %v1230_v12, %v5297_v62  ;;  %v1359_v24 = vmul.f32 %v1231_v5, %v5300_v26 }
 0x21a   : > { %6193 = vst [vmem:[#allocation19_spill] sm:$0xff] %v5311_v54  ;;  %6194 = vst [vmem:[#allocation46_spill] sm:$0xff] %v5317_v17  ;;  %v1233_v13 = vmul.f32 %v5311_v54, %v5311_v54  ;;  %v5325_v0 = vpop.eup %3863  ;;  %2757 = vmatmul.mubr.bf16.gmra.mxu1 %v2221_v59  ;;  %v1484_v14 = vmul.f32 0.044715, %v1356_v35  ;;  %v1232_v49 = vmul.f32 %v5317_v17, %v5317_v17  ;;  %v1072_v53 = vmul.f32 0.5, %v4965_v29 }
 0x21b   : > { %v5330_v23 = vadd.f32 %v968_v50, %v4411_v61  ;;  %3871 = vtanh.f32 %v1739_v11  ;;  %v1486_v21 = vmul.f32 0.044715, %v1358_v8  ;;  %v1487_v58 = vmul.f32 0.044715, %v1359_v24  ;;  %v6196_v11 = vld [vmem:[#allocation16_spill] sm:$0xff] }
 0x21c   : > { %v1361_v55 = vmul.f32 %v1233_v13, %v5311_v54  ;;  %v5333_v22 = vpop.eup %3865  ;;  %3873 = vtanh.f32 %v1741_v51  ;;  %v1612_v37 = vadd.f32 %v1484_v14, %v5294_v30  ;;  %v1360_v25 = vmul.f32 %v1232_v49, %v5317_v17  ;;  %v972_v30 = vpop.f32.mrf.mxu1 }
 0x21d   : > { %6195 = vst [vmem:[#allocation49_spill] sm:$0xff] %v5330_v23  ;;  %v1234_v12 = vmul.f32 %v5330_v23, %v5330_v23  ;;  %v1614_v5 = vadd.f32 %v1486_v21, %v5297_v62  ;;  %v1615_v50 = vadd.f32 %v1487_v58, %v5300_v26  ;;  %v1068_v35 = vmul.f32 0.5, %v6196_v11  ;;  %v5342_v8 = vpop.eup %3867  ;;  %v779_v26 = vpop.f32.mrf.mxu0 }
 0x21e   : > { %v1489_v59 = vmul.f32 0.044715, %v1361_v55  ;;  %v1740_v24 = vmul.f32 0.7978846, %v1612_v37  ;;  %v1488_v13 = vmul.f32 0.044715, %v1360_v25 }
 0x21f   : > { %v1362_v51 = vmul.f32 %v1234_v12, %v5330_v23  ;;  %v1964_v14 = vadd.f32 1.0, %v5049_v44  ;;  %v1742_v1 = vmul.f32 0.7978846, %v1614_v5  ;;  %v1968_v21 = vadd.f32 1.0, %v5076_v36  ;;  %v6197_v12 = vld [vmem:[#allocation18_spill] sm:$0xff] }
 0x220   : > { %v1617_v49 = vadd.f32 %v1489_v59, %v5311_v54  ;;  %3875 = vtanh.f32 %v1740_v24  ;;  %v1743_v58 = vmul.f32 0.7978846, %v1615_v50  ;;  %v1616_v62 = vadd.f32 %v1488_v13, %v5317_v17  ;;  %v6205_v54 = vld [vmem:[#allocation40_spill] sm:$0xff] }
 0x221   : > { %v1490_v55 = vmul.f32 0.044715, %v1362_v51  ;;  %v2092_v37 = vmul.f32 %v1964_v14, %v1068_v35  ;;  %v2096_v25 = vmul.f32 %v1968_v21, %v1072_v53  ;;  %3877 = vtanh.f32 %v1742_v1  ;;  %v781_v35 = vpop.f32.mrf.mxu0  ;;  %v974_v14 = vpop.f32.mrf.mxu1 }
 0x222   : > { %v1745_v11 = vmul.f32 0.7978846, %v1617_v49  ;;  %v1070_v5 = vmul.f32 0.5, %v6197_v12  ;;  %v1074_v29 = vmul.f32 0.5, %v4978_v7  ;;  %v1966_v36 = vadd.f32 1.0, %v5055_v3  ;;  %v6201_v12 = vld [vmem:[#allocation20_spill] sm:$0xff] }
 0x223   : > { %v1618_v44 = vadd.f32 %v1490_v55, %v5330_v23  ;;  %v2224_v59 = vpack.c.bf16 %v2096_v25, %v2092_v37  ;;  %v1970_v50 = vadd.f32 1.0, %v5081_v2  ;;  %3879 = vtanh.f32 %v1743_v58  ;;  %v6198_v55 = vld [vmem:[#allocation51_spill] sm:$0xff]  ;;  %v6199_v37 = vld [vmem:[#allocation29_spill] sm:$0xff]  ;;  %v5359_v25 = vpop.eup %3869  ;;  %v976_v23 = vpop.f32.mrf.mxu1 }
 0x224   : > { %v780_v24 = vadd.f32 %v779_v26, %v4405_v56  ;;  %v973_v13 = vadd.f32 %v972_v30, %v4407_v57  ;;  %3881 = vtanh.f32 %v1745_v11  ;;  %v1744_v53 = vmul.f32 0.7978846, %v1616_v62 }
 0x225   : > { %2603 = vmatprep.mubr.bf16.mxu0 %v2224_v59  ;;  %v2094_v1 = vmul.f32 %v1966_v36, %v1070_v5  ;;  %v2098_v51 = vmul.f32 %v1970_v50, %v1074_v29  ;;  %v1746_v49 = vmul.f32 0.7978846, %v1618_v44  ;;  %v1067_v7 = vmul.f32 0.5, %v6198_v55  ;;  %v6202_v59 = vld [vmem:[#allocation34_spill] sm:$0xff]  ;;  %v6203_v29 = vld [vmem:[#allocation24_spill] sm:$0xff]  ;;  %v783_v50 = vpop.f32.mrf.mxu0 }
 0x226   : > { %v1235_v21 = vmul.f32 %v780_v24, %v780_v24  ;;  %v1071_v3 = vmul.f32 0.5, %v6199_v37  ;;  %v1237_v58 = vmul.f32 %v973_v13, %v973_v13  ;;  %v1963_v26 = vadd.f32 1.0, %v5014_v47 }
 0x227   : > { %v2226_v2 = vpack.c.bf16 %v2098_v51, %v2094_v1  ;;  %v1967_v30 = vadd.f32 1.0, %v5061_v38  ;;  %v1069_v5 = vmul.f32 0.5, %v6201_v12  ;;  %v1073_v44 = vmul.f32 0.5, %v6202_v59 }
 0x228   : > { %v5363_v11 = vpop.eup %3871  ;;  %v1363_v62 = vmul.f32 %v1235_v21, %v780_v24  ;;  %v1965_v36 = vadd.f32 1.0, %v6203_v29  ;;  %v1365_v37 = vmul.f32 %v1237_v58, %v973_v13  ;;  %v2091_v1 = vmul.f32 %v1963_v26, %v1067_v7 }
 0x229   : > { %6200 = vst [vmem:[#allocation39_spill] sm:$0xff] %v5363_v11  ;;  %v5368_v55 = vpop.eup %3873  ;;  %2764 = vmatprep.mubr.bf16.mxu1 %v2226_v2  ;;  %v2095_v51 = vmul.f32 %v1967_v30, %v1071_v3  ;;  %v1969_v47 = vadd.f32 1.0, %v6205_v54  ;;  %v5372_v21 = vadd.f32 %v781_v35, %v4409_v60  ;;  %v5375_v12 = vadd.f32 %v974_v14, %v4411_v61  ;;  %v785_v35 = vpop.f32.mrf.mxu0 }
 0x22a   : > { %6204 = vst [vmem:[#allocation30_spill] sm:$0xff] %v5368_v55  ;;  %v1491_v38 = vmul.f32 0.044715, %v1363_v62  ;;  %v2093_v17 = vmul.f32 %v1965_v36, %v1069_v5  ;;  %v1493_v59 = vmul.f32 0.044715, %v1365_v37  ;;  %v784_v55 = vadd.f32 %v783_v50, %v4405_v56  ;;  %v978_v62 = vpop.f32.mrf.mxu1 }
 0x22b   : > { %6206 = vst [vmem:[#allocation16_spill] sm:$0xff] %v5375_v12  ;;  %v2223_v29 = vpack.c.bf16 %v2095_v51, %v2091_v1  ;;  %v2097_v11 = vmul.f32 %v1969_v47, %v1073_v44  ;;  %v1236_v7 = vmul.f32 %v5372_v21, %v5372_v21  ;;  %v1238_v54 = vmul.f32 %v5375_v12, %v5375_v12 }
 0x22c   : > { %v1619_v2 = vadd.f32 %v1491_v38, %v780_v24  ;;  %v5383_v3 = vadd.f32 %v976_v23, %v4407_v57  ;;  %3883 = vtanh.f32 %v1744_v53  ;;  %v1621_v14 = vadd.f32 %v1493_v59, %v973_v13 }
 0x22d   : > { %v5385_v58 = vpop.eup %3875  ;;  %2604 = vmatmul.mubr.bf16.gmra.mxu0 %v2223_v29  ;;  %v2225_v26 = vpack.c.bf16 %v2097_v11, %v2093_v17  ;;  %v1239_v30 = vmul.f32 %v784_v55, %v784_v55  ;;  %3885 = vtanh.f32 %v1746_v49  ;;  %v1364_v44 = vmul.f32 %v1236_v7, %v5372_v21 }
 0x22e   : > { %v1747_v5 = vmul.f32 0.7978846, %v1619_v2  ;;  %v1366_v36 = vmul.f32 %v1238_v54, %v5375_v12  ;;  %v5389_v50 = vpop.eup %3877  ;;  %v5391_v37 = vmul.f32 0.5, %v780_v24  ;;  %v1241_v53 = vmul.f32 %v5383_v3, %v5383_v3 }
 0x22f   : > { %2765 = vmatmul.mubr.bf16.gmra.mxu1 %v2225_v26  ;;  %v1367_v23 = vmul.f32 %v1239_v30, %v784_v55  ;;  %v5396_v1 = vadd.f32 %v785_v35, %v4409_v60  ;;  %v5398_v17 = vmul.f32 0.5, %v973_v13  ;;  %v1492_v49 = vmul.f32 0.044715, %v1364_v44  ;;  %v6209_v30 = vld [vmem:[#allocation28_spill] sm:$0xff] }
 0x230   : > { %6207 = vst [vmem:[#allocation18_spill] sm:$0xff] %v5391_v37  ;;  %v1494_v11 = vmul.f32 0.044715, %v1366_v36  ;;  %v5401_v51 = vadd.f32 %v978_v62, %v4411_v61  ;;  %v5403_v47 = vpop.eup %3879  ;;  %v1749_v38 = vmul.f32 0.7978846, %v1621_v14  ;;  %v1369_v59 = vmul.f32 %v1241_v53, %v5383_v3  ;;  %v789_v37 = vpop.f32.mrf.mxu0 }
 0x231   : > { %6208 = vst [vmem:[#allocation51_spill] sm:$0xff] %v5398_v17  ;;  %v1495_v24 = vmul.f32 0.044715, %v1367_v23  ;;  %v1240_v29 = vmul.f32 %v5396_v1, %v5396_v1  ;;  %v5408_v2 = vpop.eup %3881  ;;  %3887 = vtanh.f32 %v1747_v5  ;;  %v1620_v13 = vadd.f32 %v1492_v49, %v5372_v21 }
 0x232   : > { %v1622_v7 = vadd.f32 %v1494_v11, %v5375_v12  ;;  %v1242_v54 = vmul.f32 %v5401_v51, %v5401_v51  ;;  %v1497_v26 = vmul.f32 0.044715, %v1369_v59  ;;  %v1076_v62 = vmul.f32 0.5, %v6209_v30 }
 0x233   : > { %v1623_v35 = vadd.f32 %v1495_v24, %v784_v55  ;;  %v1368_v14 = vmul.f32 %v1240_v29, %v5396_v1  ;;  %v1748_v44 = vmul.f32 0.7978846, %v1620_v13  ;;  %v1080_v23 = vmul.f32 0.5, %v5053_v42  ;;  %v982_v42 = vpop.f32.mrf.mxu1 }
 0x234   : > { %v1370_v36 = vmul.f32 %v1242_v54, %v5401_v51  ;;  %v1972_v5 = vadd.f32 1.0, %v5137_v39  ;;  %v1750_v53 = vmul.f32 0.7978846, %v1622_v7  ;;  %v1625_v49 = vadd.f32 %v1497_v26, %v5383_v3  ;;  %v6210_v7 = vld [vmem:[#allocation21_spill] sm:$0xff] }
 0x235   : > { %v1496_v11 = vmul.f32 0.044715, %v1368_v14  ;;  %v1976_v17 = vadd.f32 1.0, %v5160_v18  ;;  %3889 = vtanh.f32 %v1749_v38  ;;  %v5421_v24 = vmul.f32 0.5, %v784_v55 }
 0x236   : > { %v1751_v59 = vmul.f32 0.7978846, %v1623_v35  ;;  %v1498_v29 = vmul.f32 0.044715, %v1370_v36  ;;  %v1753_v30 = vmul.f32 0.7978846, %v1625_v49  ;;  %v2100_v54 = vmul.f32 %v1972_v5, %v1076_v62  ;;  %v791_v36 = vpop.f32.mrf.mxu0  ;;  %v984_v5 = vpop.f32.mrf.mxu1 }
 0x237   : > { %v1624_v13 = vadd.f32 %v1496_v11, %v5396_v1  ;;  %v2104_v12 = vmul.f32 %v1976_v17, %v1080_v23  ;;  %3891 = vtanh.f32 %v1748_v44  ;;  %v1078_v26 = vmul.f32 0.5, %v6210_v7  ;;  %v6212_v49 = vld [vmem:[#allocation23_spill] sm:$0xff] }
 0x238   : > { %v1626_v39 = vadd.f32 %v1498_v29, %v5401_v51  ;;  %v1974_v14 = vadd.f32 1.0, %v5144_v48  ;;  %3893 = vtanh.f32 %v1750_v53  ;;  %v1082_v55 = vmul.f32 0.5, %v5066_v41 }
 0x239   : > { %v2228_v18 = vpack.c.bf16 %v2104_v12, %v2100_v54  ;;  %v1978_v38 = vadd.f32 1.0, %v5169_v43  ;;  %v5429_v35 = vpop.eup %3883  ;;  %3895 = vtanh.f32 %v1751_v59  ;;  %v5432_v62 = vmul.f32 0.5, %v5383_v3  ;;  %v6213_v59 = vld [vmem:[#allocation25_spill] sm:$0xff] }
 0x23a   : > { %v790_v17 = vadd.f32 %v789_v37, %v4405_v56  ;;  %v983_v44 = vadd.f32 %v982_v42, %v4407_v57  ;;  %v5436_v23 = vpop.eup %3885  ;;  %3897 = vtanh.f32 %v1753_v30  ;;  %v1752_v48 = vmul.f32 0.7978846, %v1624_v13 }
 0x23b   : > { %6211 = vst [vmem:[#allocation29_spill] sm:$0xff] %v5432_v62  ;;  %2611 = vmatprep.mubr.bf16.mxu0 %v2228_v18  ;;  %v2102_v12 = vmul.f32 %v1974_v14, %v1078_v26  ;;  %v2106_v41 = vmul.f32 %v1978_v38, %v1082_v55  ;;  %v1754_v43 = vmul.f32 0.7978846, %v1626_v39  ;;  %v1075_v11 = vmul.f32 0.5, %v6212_v49  ;;  %v6214_v62 = vld [vmem:[#allocation27_spill] sm:$0xff]  ;;  %v793_v14 = vpop.f32.mrf.mxu0 }
 0x23c   : > { %v1243_v53 = vmul.f32 %v790_v17, %v790_v17  ;;  %v1079_v3 = vmul.f32 0.5, %v6213_v59  ;;  %v1245_v54 = vmul.f32 %v983_v44, %v983_v44  ;;  %v1971_v37 = vadd.f32 1.0, %v5106_v45 }
 0x23d   : > { %v2230_v29 = vpack.c.bf16 %v2106_v41, %v2102_v12  ;;  %v1975_v42 = vadd.f32 1.0, %v5149_v6  ;;  %v1077_v30 = vmul.f32 0.5, %v6214_v62  ;;  %v1081_v13 = vmul.f32 0.5, %v5047_v40  ;;  %v986_v41 = vpop.f32.mrf.mxu1 }
 0x23e   : > { %v1371_v7 = vmul.f32 %v1243_v53, %v790_v17  ;;  %v1973_v26 = vadd.f32 1.0, %v5111_v9  ;;  %v5445_v39 = vpop.eup %3887  ;;  %v1373_v18 = vmul.f32 %v1245_v54, %v983_v44  ;;  %v2099_v55 = vmul.f32 %v1971_v37, %v1075_v11 }
 0x23f   : > { %2772 = vmatprep.mubr.bf16.mxu1 %v2230_v29  ;;  %v2103_v38 = vmul.f32 %v1975_v42, %v1079_v3  ;;  %v1977_v12 = vadd.f32 1.0, %v5156_v27  ;;  %v5449_v6 = vadd.f32 %v791_v36, %v4409_v60  ;;  %v5452_v62 = vadd.f32 %v984_v5, %v4411_v61  ;;  %v795_v36 = vpop.f32.mrf.mxu0 }
 0x240   : > { %v1499_v45 = vmul.f32 0.044715, %v1371_v7  ;;  %v2101_v49 = vmul.f32 %v1973_v26, %v1077_v30  ;;  %v1501_v40 = vmul.f32 0.044715, %v1373_v18  ;;  %v794_v59 = vadd.f32 %v793_v14, %v4405_v56  ;;  %v988_v7 = vpop.f32.mrf.mxu1 }
 0x241   : > { %6215 = vst [vmem:[#allocation20_spill] sm:$0xff] %v5452_v62  ;;  %v2227_v9 = vpack.c.bf16 %v2103_v38, %v2099_v55  ;;  %v2105_v53 = vmul.f32 %v1977_v12, %v1081_v13  ;;  %v1244_v11 = vmul.f32 %v5449_v6, %v5449_v6  ;;  %v1246_v27 = vmul.f32 %v5452_v62, %v5452_v62 }
 0x242   : > { %v1627_v29 = vadd.f32 %v1499_v45, %v790_v17  ;;  %v5460_v3 = vadd.f32 %v986_v41, %v4407_v57  ;;  %v5462_v54 = vpop.eup %3889  ;;  %3899 = vtanh.f32 %v1752_v48  ;;  %v1629_v5 = vadd.f32 %v1501_v40, %v983_v44 }
 0x243   : > { %2612 = vmatmul.mubr.bf16.gmra.mxu0 %v2227_v9  ;;  %v2229_v37 = vpack.c.bf16 %v2105_v53, %v2101_v49  ;;  %v1247_v42 = vmul.f32 %v794_v59, %v794_v59  ;;  %3901 = vtanh.f32 %v1754_v43  ;;  %v1372_v13 = vmul.f32 %v1244_v11, %v5449_v6 }
 0x244   : > { %v1755_v30 = vmul.f32 0.7978846, %v1627_v29  ;;  %v1374_v26 = vmul.f32 %v1246_v27, %v5452_v62  ;;  %v5466_v14 = vpop.eup %3891  ;;  %v5468_v18 = vmul.f32 0.5, %v790_v17  ;;  %v1249_v48 = vmul.f32 %v5460_v3, %v5460_v3 }
 0x245   : > { %2773 = vmatmul.mubr.bf16.gmra.mxu1 %v2229_v37  ;;  %v1375_v55 = vmul.f32 %v1247_v42, %v794_v59  ;;  %v5473_v38 = vadd.f32 %v795_v36, %v4409_v60  ;;  %v5475_v12 = vpop.eup %3893  ;;  %v5477_v43 = vmul.f32 0.5, %v983_v44  ;;  %v1500_v41 = vmul.f32 0.044715, %v1372_v13 }
 0x246   : > { %6216 = vst [vmem:[#allocation34_spill] sm:$0xff] %v5468_v18  ;;  %v1502_v45 = vmul.f32 0.044715, %v1374_v26  ;;  %v5480_v49 = vadd.f32 %v988_v7, %v4411_v61  ;;  %v5482_v40 = vpop.eup %3895  ;;  %v1757_v17 = vmul.f32 0.7978846, %v1629_v5  ;;  %v1377_v53 = vmul.f32 %v1249_v48, %v5460_v3  ;;  %v799_v18 = vpop.f32.mrf.mxu0 }
 0x247   : > { %6217 = vst [vmem:[#allocation24_spill] sm:$0xff] %v5477_v43  ;;  %v1503_v9 = vmul.f32 0.044715, %v1375_v55  ;;  %v1248_v29 = vmul.f32 %v5473_v38, %v5473_v38  ;;  %v5487_v11 = vpop.eup %3897  ;;  %3903 = vtanh.f32 %v1755_v30  ;;  %v1628_v44 = vadd.f32 %v1500_v41, %v5449_v6 }
 0x248   : > { %v1630_v27 = vadd.f32 %v1502_v45, %v5452_v62  ;;  %v1250_v36 = vmul.f32 %v5480_v49, %v5480_v49  ;;  %v1505_v42 = vmul.f32 0.044715, %v1377_v53  ;;  %v1084_v7 = vmul.f32 0.5, %v5118_v31 }
 0x249   : > { %v1631_v37 = vadd.f32 %v1503_v9, %v794_v59  ;;  %v1376_v5 = vmul.f32 %v1248_v29, %v5473_v38  ;;  %v1756_v13 = vmul.f32 0.7978846, %v1628_v44  ;;  %v1088_v55 = vmul.f32 0.5, %v5142_v52  ;;  %v992_v52 = vpop.f32.mrf.mxu1 }
 0x24a   : > { %v1378_v26 = vmul.f32 %v1250_v36, %v5480_v49  ;;  %v1980_v30 = vadd.f32 1.0, %v5222_v46  ;;  %v1758_v48 = vmul.f32 0.7978846, %v1630_v27  ;;  %v1633_v41 = vadd.f32 %v1505_v42, %v5460_v3  ;;  %v6219_v27 = vld [vmem:[#allocation41_spill] sm:$0xff] }
 0x24b   : > { %v1504_v45 = vmul.f32 0.044715, %v1376_v5  ;;  %v1984_v43 = vadd.f32 1.0, %v5247_v63  ;;  %3905 = vtanh.f32 %v1757_v17  ;;  %v5500_v9 = vmul.f32 0.5, %v794_v59 }
 0x24c   : > { %v1759_v53 = vmul.f32 0.7978846, %v1631_v37  ;;  %v1506_v29 = vmul.f32 0.044715, %v1378_v26  ;;  %v1761_v31 = vmul.f32 0.7978846, %v1633_v41  ;;  %v2108_v36 = vmul.f32 %v1980_v30, %v1084_v7  ;;  %v801_v37 = vpop.f32.mrf.mxu0  ;;  %v994_v30 = vpop.f32.mrf.mxu1 }
 0x24d   : > { %6218 = vst [vmem:[#allocation40_spill] sm:$0xff] %v5500_v9  ;;  %v1632_v44 = vadd.f32 %v1504_v45, %v5473_v38  ;;  %v2112_v62 = vmul.f32 %v1984_v43, %v1088_v55  ;;  %3907 = vtanh.f32 %v1756_v13  ;;  %v1086_v42 = vmul.f32 0.5, %v6219_v27  ;;  %v6221_v41 = vld [vmem:[#allocation22_spill] sm:$0xff]  ;;  %v6233_v9 = vld [vmem:[#allocation43_spill] sm:$0xff] }
 0x24e   : > { %v1634_v46 = vadd.f32 %v1506_v29, %v5480_v49  ;;  %v1982_v5 = vadd.f32 1.0, %v5231_v10  ;;  %3909 = vtanh.f32 %v1758_v48  ;;  %v1090_v59 = vmul.f32 0.5, %v5154_v15  ;;  %v803_v27 = vpop.f32.mrf.mxu0 }
 0x24f   : > { %v2232_v63 = vpack.c.bf16 %v2112_v62, %v2108_v36  ;;  %v1986_v17 = vadd.f32 1.0, %v5259_v20  ;;  %v5508_v26 = vpop.eup %3899  ;;  %3911 = vtanh.f32 %v1759_v53  ;;  %v5511_v43 = vmul.f32 0.5, %v5460_v3  ;;  %v6222_v53 = vld [vmem:[#allocation35_spill] sm:$0xff] }
 0x250   : > { %v800_v7 = vadd.f32 %v799_v18, %v4405_v56  ;;  %v993_v13 = vadd.f32 %v992_v52, %v4407_v57  ;;  %v5515_v55 = vpop.eup %3901  ;;  %3913 = vtanh.f32 %v1761_v31  ;;  %v1760_v10 = vmul.f32 0.7978846, %v1632_v44  ;;  %v6223_v31 = vld [vmem:[#allocation26_spill] sm:$0xff] }
 0x251   : > { %6220 = vst [vmem:[#allocation28_spill] sm:$0xff] %v5511_v43  ;;  %2619 = vmatprep.mubr.bf16.mxu0 %v2232_v63  ;;  %v2110_v62 = vmul.f32 %v1982_v5, %v1086_v42  ;;  %v2114_v15 = vmul.f32 %v1986_v17, %v1090_v59  ;;  %v1762_v20 = vmul.f32 0.7978846, %v1634_v46  ;;  %v1083_v45 = vmul.f32 0.5, %v6221_v41 }
 0x252   : > { %v1251_v48 = vmul.f32 %v800_v7, %v800_v7  ;;  %v1087_v29 = vmul.f32 0.5, %v6222_v53  ;;  %v1253_v36 = vmul.f32 %v993_v13, %v993_v13  ;;  %v1979_v18 = vadd.f32 1.0, %v5197_v34 }
 0x253   : > { %v2234_v3 = vpack.c.bf16 %v2114_v15, %v2110_v62  ;;  %v1983_v52 = vadd.f32 1.0, %v5235_v33  ;;  %v1085_v44 = vmul.f32 0.5, %v6223_v31  ;;  %v1089_v42 = vmul.f32 0.5, %v5135_v4  ;;  %v996_v15 = vpop.f32.mrf.mxu1 }
 0x254   : > { %v1379_v43 = vmul.f32 %v1251_v48, %v800_v7  ;;  %v1981_v5 = vadd.f32 1.0, %v5201_v19  ;;  %v5524_v46 = vpop.eup %3903  ;;  %v1381_v63 = vmul.f32 %v1253_v36, %v993_v13  ;;  %v2107_v59 = vmul.f32 %v1979_v18, %v1083_v45 }
 0x255   : > { %2780 = vmatprep.mubr.bf16.mxu1 %v2234_v3  ;;  %v2111_v17 = vmul.f32 %v1983_v52, %v1087_v29  ;;  %v1985_v62 = vadd.f32 1.0, %v5244_v28  ;;  %v5528_v33 = vadd.f32 %v801_v37, %v4409_v60  ;;  %v5531_v48 = vadd.f32 %v994_v30, %v4411_v61  ;;  %v805_v3 = vpop.f32.mrf.mxu0  ;;  %v998_v52 = vpop.f32.mrf.mxu1 }
 0x256   : > { %v1507_v34 = vmul.f32 0.044715, %v1379_v43  ;;  %v2109_v41 = vmul.f32 %v1981_v5, %v1085_v44  ;;  %v1509_v4 = vmul.f32 0.044715, %v1381_v63  ;;  %v804_v31 = vadd.f32 %v803_v27, %v4405_v56 }
 0x257   : > { %6224 = vst [vmem:[#allocation21_spill] sm:$0xff] %v5528_v33  ;;  %6225 = vst [vmem:[#allocation23_spill] sm:$0xff] %v5531_v48  ;;  %v2231_v53 = vpack.c.bf16 %v2111_v17, %v2107_v59  ;;  %v2113_v19 = vmul.f32 %v1985_v62, %v1089_v42  ;;  %v1252_v45 = vmul.f32 %v5528_v33, %v5528_v33  ;;  %3915 = vtanh.f32 %v1760_v10  ;;  %v809_v62 = vpop.f32.mrf.mxu0 }
 0x258   : > { %v1635_v36 = vadd.f32 %v1507_v34, %v800_v7  ;;  %v1254_v28 = vmul.f32 %v5531_v48, %v5531_v48  ;;  %v5539_v43 = vadd.f32 %v996_v15, %v4407_v57  ;;  %v5541_v37 = vpop.eup %3905  ;;  %v1637_v30 = vadd.f32 %v1509_v4, %v993_v13 }
 0x259   : > { %6226 = vst [vmem:[#allocation25_spill] sm:$0xff] %v5541_v37  ;;  %2620 = vmatmul.mubr.bf16.gmra.mxu0 %v2231_v53  ;;  %v2233_v29 = vpack.c.bf16 %v2113_v19, %v2109_v41  ;;  %v1255_v18 = vmul.f32 %v804_v31, %v804_v31  ;;  %3917 = vtanh.f32 %v1762_v20  ;;  %v1380_v44 = vmul.f32 %v1252_v45, %v5528_v33  ;;  %v1002_v45 = vpop.f32.mrf.mxu1 }
 0x25a   : > { %v1763_v27 = vmul.f32 0.7978846, %v1635_v36  ;;  %v1382_v42 = vmul.f32 %v1254_v28, %v5531_v48  ;;  %v5545_v5 = vpop.eup %3907  ;;  %v5547_v63 = vmul.f32 0.5, %v800_v7  ;;  %v1257_v10 = vmul.f32 %v5539_v43, %v5539_v43 }
 0x25b   : > { %2781 = vmatmul.mubr.bf16.gmra.mxu1 %v2233_v29  ;;  %v1383_v59 = vmul.f32 %v1255_v18, %v804_v31  ;;  %v5552_v17 = vadd.f32 %v805_v3, %v4409_v60  ;;  %v5554_v15 = vpop.eup %3909  ;;  %v5556_v20 = vmul.f32 0.5, %v993_v13  ;;  %v1508_v34 = vmul.f32 0.044715, %v1380_v44 }
 0x25c   : > { %6227 = vst [vmem:[#allocation27_spill] sm:$0xff] %v5547_v63  ;;  %v1510_v41 = vmul.f32 0.044715, %v1382_v42  ;;  %v5559_v4 = vadd.f32 %v998_v52, %v4411_v61  ;;  %v5561_v7 = vpop.eup %3911  ;;  %v1765_v53 = vmul.f32 0.7978846, %v1637_v30  ;;  %v1385_v36 = vmul.f32 %v1257_v10, %v5539_v43  ;;  %v6232_v42 = vld [vmem:[#allocation38_spill] sm:$0xff]  ;;  %v5574_v10 = vpop.f32.mrf.mxu0 }
 0x25d   : > { %6228 = vst [vmem:[#allocation41_spill] sm:$0xff] %v5556_v20  ;;  %6230 = vst [vmem:[#allocation35_spill] sm:$0xff] %v5561_v7  ;;  %v1511_v19 = vmul.f32 0.044715, %v1383_v59  ;;  %v1256_v3 = vmul.f32 %v5552_v17, %v5552_v17  ;;  %v5566_v28 = vpop.eup %3913  ;;  %3919 = vtanh.f32 %v1763_v27  ;;  %v1636_v13 = vadd.f32 %v1508_v34, %v5528_v33 }
 0x25e   : > { %6229 = vst [vmem:[#allocation22_spill] sm:$0xff] %v5559_v4  ;;  %6231 = vst [vmem:[#allocation26_spill] sm:$0xff] %v5566_v28  ;;  %v1638_v29 = vadd.f32 %v1510_v41, %v5531_v48  ;;  %v1258_v18 = vmul.f32 %v5559_v4, %v5559_v4  ;;  %v1513_v44 = vmul.f32 0.044715, %v1385_v36  ;;  %v1092_v59 = vmul.f32 0.5, %v6232_v42  ;;  %v1004_v36 = vpop.f32.mrf.mxu1 }
 0x25f   : > { %v1639_v52 = vadd.f32 %v1511_v19, %v804_v31  ;;  %v1384_v30 = vmul.f32 %v1256_v3, %v5552_v17  ;;  %v1764_v20 = vmul.f32 0.7978846, %v1636_v13  ;;  %v1096_v27 = vmul.f32 0.5, %v6233_v9  ;;  %v813_v9 = vpop.f32.mrf.mxu0 }
 0x260   : > { %v1386_v63 = vmul.f32 %v1258_v18, %v5559_v4  ;;  %v1988_v34 = vadd.f32 1.0, %v5313_v32  ;;  %v1766_v33 = vmul.f32 0.7978846, %v1638_v29  ;;  %v1641_v41 = vadd.f32 %v1513_v44, %v5539_v43  ;;  %v6235_v29 = vld [vmem:[#allocation33_spill] sm:$0xff] }
 0x261   : > { %v1512_v48 = vmul.f32 0.044715, %v1384_v30  ;;  %v1992_v19 = vadd.f32 1.0, %v5342_v8  ;;  %3921 = vtanh.f32 %v1765_v53  ;;  %v5581_v3 = vmul.f32 0.5, %v804_v31  ;;  %v6236_v53 = vld [vmem:[#allocation52_spill] sm:$0xff] }
 0x262   : > { %v1767_v42 = vmul.f32 0.7978846, %v1639_v52  ;;  %v1514_v28 = vmul.f32 0.044715, %v1386_v63  ;;  %v1769_v37 = vmul.f32 0.7978846, %v1641_v41  ;;  %v2116_v18 = vmul.f32 %v1988_v34, %v1092_v59  ;;  %v1006_v63 = vpop.f32.mrf.mxu1  ;;  %v815_v59 = vpop.f32.mrf.mxu0 }
 0x263   : > { %6234 = vst [vmem:[#allocation38_spill] sm:$0xff] %v5581_v3  ;;  %v1640_v13 = vadd.f32 %v1512_v48, %v5552_v17  ;;  %v2120_v7 = vmul.f32 %v1992_v19, %v1096_v27  ;;  %3923 = vtanh.f32 %v1764_v20  ;;  %v1094_v44 = vmul.f32 0.5, %v6235_v29  ;;  %v6240_v29 = vld [vmem:[#allocation50_spill] sm:$0xff] }
 0x264   : > { %v1642_v32 = vadd.f32 %v1514_v28, %v5559_v4  ;;  %v1990_v30 = vadd.f32 1.0, %v5319_v16  ;;  %3925 = vtanh.f32 %v1766_v33  ;;  %v1098_v31 = vmul.f32 0.5, %v6236_v53  ;;  %v5589_v41 = vpop.eup %3915 }
 0x265   : > { %v2236_v8 = vpack.c.bf16 %v2120_v7, %v2116_v18  ;;  %v1994_v52 = vadd.f32 1.0, %v5359_v25  ;;  %3927 = vtanh.f32 %v1767_v42  ;;  %v5592_v48 = vmul.f32 0.5, %v5539_v43  ;;  %v6238_v43 = vld [vmem:[#allocation36_spill] sm:$0xff] }
 0x266   : > { %v5595_v20 = vadd.f32 %v809_v62, %v4405_v56  ;;  %v5598_v28 = vadd.f32 %v1002_v45, %v4407_v57  ;;  %v5600_v16 = vpop.eup %3917  ;;  %3929 = vtanh.f32 %v1769_v37  ;;  %v1768_v33 = vmul.f32 0.7978846, %v1640_v13  ;;  %v6239_v42 = vld [vmem:[#allocation44_spill] sm:$0xff]  ;;  %v1008_v13 = vpop.f32.mrf.mxu1 }
 0x267   : > { %6237 = vst [vmem:[#allocation43_spill] sm:$0xff] %v5592_v48  ;;  %2627 = vmatprep.mubr.bf16.mxu0 %v2236_v8  ;;  %v2118_v7 = vmul.f32 %v1990_v30, %v1094_v44  ;;  %v2122_v25 = vmul.f32 %v1994_v52, %v1098_v31  ;;  %v1770_v27 = vmul.f32 0.7978846, %v1642_v32  ;;  %v1091_v19 = vmul.f32 0.5, %v6238_v43  ;;  %v5610_v44 = vpop.f32.mrf.mxu0  ;;  %v6242_v30 = vld [vmem:[#allocation31_spill] sm:$0xff]  ;;  %v6243_v31 = vld [vmem:[#allocation42_spill] sm:$0xff] }
 0x268   : > { %v1259_v34 = vmul.f32 %v5595_v20, %v5595_v20  ;;  %v1095_v62 = vmul.f32 0.5, %v6239_v42  ;;  %v1261_v45 = vmul.f32 %v5598_v28, %v5598_v28  ;;  %v1987_v53 = vadd.f32 1.0, %v6240_v29  ;;  %6241 = vst [vmem:[#allocation33_spill] sm:$0xff] %v5610_v44  ;;  %v6244_v43 = vld [vmem:[#allocation17_spill] sm:$0xff]  ;;  %v5620_v3 = vpop.f32.mrf.mxu1 }
 0x269   : > { %v2238_v18 = vpack.c.bf16 %v2122_v25, %v2118_v7  ;;  %v1991_v37 = vadd.f32 1.0, %v5325_v0  ;;  %v1093_v8 = vmul.f32 0.5, %v6242_v30  ;;  %v1097_v52 = vmul.f32 0.5, %v6243_v31 }
 0x26a   : > { %v1387_v32 = vmul.f32 %v1259_v34, %v5595_v20  ;;  %v1989_v48 = vadd.f32 1.0, %v6244_v43  ;;  %v5616_v42 = vpop.eup %3919  ;;  %v1389_v7 = vmul.f32 %v1261_v45, %v5598_v28  ;;  %v2115_v25 = vmul.f32 %v1987_v53, %v1091_v19  ;;  %v5632_v19 = vpop.f32.mrf.mxu0 }
 0x26b   : > { %2788 = vmatprep.mubr.bf16.mxu1 %v2238_v18  ;;  %v2119_v29 = vmul.f32 %v1991_v37, %v1095_v62  ;;  %v1993_v0 = vadd.f32 1.0, %v5333_v22  ;;  %v5624_v34 = vadd.f32 %v5574_v10, %v4409_v60  ;;  %v5627_v30 = vadd.f32 %v1004_v36, %v4411_v61  ;;  %v5647_v37 = vpop.f32.mrf.mxu1 }
 0x26c   : > { %v1515_v44 = vmul.f32 0.044715, %v1387_v32  ;;  %v2117_v4 = vmul.f32 %v1989_v48, %v1093_v8  ;;  %v1517_v31 = vmul.f32 0.044715, %v1389_v7  ;;  %v5630_v45 = vadd.f32 %v813_v9, %v4405_v56  ;;  %6245 = vst [vmem:[#allocation52_spill] sm:$0xff] %v5647_v37  ;;  %v5659_v7 = vpop.f32.mrf.mxu0 }
 0x26d   : > { %v2235_v43 = vpack.c.bf16 %v2119_v29, %v2115_v25  ;;  %v2121_v18 = vmul.f32 %v1993_v0, %v1097_v52  ;;  %v1260_v48 = vmul.f32 %v5624_v34, %v5624_v34  ;;  %v1262_v10 = vmul.f32 %v5627_v30, %v5627_v30  ;;  %6246 = vst [vmem:[#allocation36_spill] sm:$0xff] %v5659_v7 }
 0x26e   : > { %v1643_v22 = vadd.f32 %v1515_v44, %v5595_v20  ;;  %v5640_v62 = vadd.f32 %v1006_v63, %v4407_v57  ;;  %v5642_v36 = vpop.eup %3921  ;;  %3931 = vtanh.f32 %v1768_v33  ;;  %v1645_v53 = vadd.f32 %v1517_v31, %v5598_v28 }
 0x26f   : > { %2628 = vmatmul.mubr.bf16.gmra.mxu0 %v2235_v43  ;;  %v2237_v56 = vpack.c.bf16 %v2121_v18, %v2117_v4  ;;  %v1263_v9 = vmul.f32 %v5630_v45, %v5630_v45  ;;  %3933 = vtanh.f32 %v1770_v27  ;;  %v1388_v32 = vmul.f32 %v1260_v48, %v5624_v34 }
 0x270   : > { %v1771_v44 = vmul.f32 0.7978846, %v1643_v22  ;;  %v1390_v8 = vmul.f32 %v1262_v10, %v5627_v30  ;;  %v5651_v57 = vpop.eup %3923  ;;  %v1773_v63 = vmul.f32 0.7978846, %v1645_v53  ;;  %v1265_v4 = vmul.f32 %v5640_v62, %v5640_v62 }
 0x271   : > { %2789 = vmatmul.mubr.bf16.gmra.mxu1 %v2237_v56  ;;  %v1391_v33 = vmul.f32 %v1263_v9, %v5630_v45  ;;  %v5657_v52 = vadd.f32 %v815_v59, %v4409_v60  ;;  %v5661_v27 = vpop.eup %3925  ;;  %v1516_v25 = vmul.f32 0.044715, %v1388_v32  ;;  %v5664_v0 = vadd.f32 %v1008_v13, %v4411_v61  ;;  %v5671_v59 = vpop.f32.mrf.mxu1  ;;  %v6248_v13 = vld [vmem:[#allocation45_spill] sm:$0xff]  ;;  %v6249_v32 = vld [vmem:[#allocation46_spill] sm:$0xff] }
 0x272   : > { %3935 = vtanh.f32 %v1771_v44  ;;  %v1518_v29 = vmul.f32 0.044715, %v1390_v8  ;;  %v5666_v31 = vpop.eup %3927  ;;  %v1393_v18 = vmul.f32 %v1265_v4, %v5640_v62  ;;  %6247 = vst [vmem:[#allocation44_spill] sm:$0xff] %v5671_v59  ;;  %v1100_v53 = vmul.f32 0.5, %v6248_v13 }
 0x273   : > { %3937 = vtanh.f32 %v1773_v63  ;;  %v1519_v43 = vmul.f32 0.044715, %v1391_v33  ;;  %v1264_v60 = vmul.f32 %v5657_v52, %v5657_v52  ;;  %v5673_v22 = vpop.eup %3929  ;;  %v1644_v48 = vadd.f32 %v1516_v25, %v5624_v34  ;;  %v5683_v63 = vpop.f32.mrf.mxu0 }
 0x274   : > { %v1646_v10 = vadd.f32 %v1518_v29, %v5627_v30  ;;  %v1266_v61 = vmul.f32 %v5664_v0, %v5664_v0  ;;  %v1521_v9 = vmul.f32 0.044715, %v1393_v18  ;;  %v1104_v8 = vmul.f32 0.5, %v6249_v32  ;;  %6250 = vst [vmem:[#allocation50_spill] sm:$0xff] %v5683_v63  ;;  %v6254_v63 = vld [vmem:[#allocation49_spill] sm:$0xff] }
 0x275   : > { %v1647_v56 = vadd.f32 %v1519_v43, %v5630_v45  ;;  %v1392_v44 = vmul.f32 %v1264_v60, %v5657_v52  ;;  %v1772_v33 = vmul.f32 0.7978846, %v1644_v48  ;;  %v1996_v29 = vadd.f32 1.0, %v5385_v58  ;;  %v5689_v43 = vpop.f32.mrf.mxu1 }
 0x276   : > { %v1774_v4 = vmul.f32 0.7978846, %v1646_v10  ;;  %v1394_v25 = vmul.f32 %v1266_v61, %v5664_v0  ;;  %v1649_v7 = vadd.f32 %v1521_v9, %v5640_v62  ;;  %v2000_v13 = vadd.f32 1.0, %v5429_v35  ;;  %6251 = vst [vmem:[#allocation31_spill] sm:$0xff] %v5689_v43  ;;  %v6252_v61 = vld [vmem:[#allocation48_spill] sm:$0xff] }
 0x277   : > { %v1775_v59 = vmul.f32 0.7978846, %v1647_v56  ;;  %v1520_v37 = vmul.f32 0.044715, %v1392_v44  ;;  %v5692_v18 = vmul.f32 0.5, %v5595_v20  ;;  %3939 = vtanh.f32 %v1772_v33  ;;  %v5696_v56 = vpop.f32.mrf.mxu0 }
 0x278   : > { %v1522_v60 = vmul.f32 0.044715, %v1394_v25  ;;  %v2124_v32 = vmul.f32 %v1996_v29, %v1100_v53  ;;  %3941 = vtanh.f32 %v1774_v4  ;;  %v2128_v10 = vmul.f32 %v2000_v13, %v1104_v8  ;;  %6253 = vst [vmem:[#allocation42_spill] sm:$0xff] %v5696_v56  ;;  %v5702_v4 = vpop.f32.mrf.mxu1  ;;  %v6256_v29 = vld [vmem:[#allocation37_spill] sm:$0xff] }
 0x279   : > { %v1648_v48 = vadd.f32 %v1520_v37, %v5657_v52  ;;  %v1102_v58 = vmul.f32 0.5, %v6252_v61  ;;  %3943 = vtanh.f32 %v1775_v59  ;;  %v1777_v9 = vmul.f32 0.7978846, %v1649_v7  ;;  %6255 = vst [vmem:[#allocation17_spill] sm:$0xff] %v5702_v4  ;;  %v6257_v59 = vld [vmem:[#allocation32_spill] sm:$0xff] }
 0x27a   : > { %v1650_v35 = vadd.f32 %v1522_v60, %v5664_v0  ;;  %v1998_v44 = vadd.f32 1.0, %v5389_v50  ;;  %v2240_v20 = vpack.c.bf16 %v2128_v10, %v2124_v32  ;;  %v1106_v33 = vmul.f32 0.5, %v6254_v63  ;;  %v6258_v60 = vld [vmem:[#allocation39_spill] sm:$0xff] }
 0x27b   : > { %v1776_v43 = vmul.f32 0.7978846, %v1648_v48  ;;  %v2002_v53 = vadd.f32 1.0, %v5436_v23  ;;  %v5704_v37 = vpop.eup %3931  ;;  %v1099_v13 = vmul.f32 0.5, %v6256_v29  ;;  %v1103_v7 = vmul.f32 0.5, %v6257_v59  ;;  %v5712_v23 = vpop.f32.mrf.mxu0  ;;  %v6259_v48 = vld [vmem:[#allocation47_spill] sm:$0xff] }
 0x27c   : > { %v1778_v8 = vmul.f32 0.7978846, %v1650_v35  ;;  %v2126_v25 = vmul.f32 %v1998_v44, %v1102_v58  ;;  %v5708_v61 = vpop.eup %3933  ;;  %2635 = vmatprep.mubr.bf16.mxu0 %v2240_v20  ;;  %v1995_v32 = vadd.f32 1.0, %v6258_v60  ;;  %v1999_v63 = vadd.f32 1.0, %v5403_v47  ;;  %v6260_v35 = vld [vmem:[#allocation19_spill] sm:$0xff]  ;;  %v6261_v44 = vld [vmem:[#allocation30_spill] sm:$0xff] }
 0x27d   : > { %3945 = vtanh.f32 %v1776_v43  ;;  %v2130_v50 = vmul.f32 %v2002_v53, %v1106_v33  ;;  %v1101_v10 = vmul.f32 0.5, %v6259_v48  ;;  %v1105_v58 = vmul.f32 0.5, %v6260_v35  ;;  %v5720_v33 = vpop.f32.mrf.mxu1 }
 0x27e   : > { %3947 = vtanh.f32 %v1778_v8  ;;  %v1997_v29 = vadd.f32 1.0, %v6261_v44  ;;  %v2123_v56 = vmul.f32 %v1995_v32, %v1099_v13  ;;  %v2127_v43 = vmul.f32 %v1999_v63, %v1103_v7  ;;  %v6262_v13 = vld [vmem:[#allocation16_spill] sm:$0xff] }
 0x27f   : > { %v5717_v4 = vpop.eup %3935  ;;  %v2242_v59 = vpack.c.bf16 %v2130_v50, %v2126_v25  ;;  %v2001_v20 = vadd.f32 1.0, %v5408_v2  ;;  %v1108_v8 = vmul.f32 0.5, %v5372_v21  ;;  %v1112_v60 = vmul.f32 0.5, %v5396_v1  ;;  %v5729_v50 = vpop.f32.mrf.mxu0 }
 0x280   : > { %v5722_v53 = vpop.eup %3937  ;;  %v2125_v47 = vmul.f32 %v1997_v29, %v1101_v10  ;;  %v2004_v48 = vadd.f32 1.0, %v5466_v14  ;;  %v2239_v35 = vpack.c.bf16 %v2127_v43, %v2123_v56  ;;  %v2008_v25 = vadd.f32 1.0, %v5508_v26 }
 0x281   : > { %2796 = vmatprep.mubr.bf16.mxu1 %v2242_v59  ;;  %v2129_v44 = vmul.f32 %v2001_v20, %v1105_v58  ;;  %v1110_v7 = vmul.f32 0.5, %v6262_v13  ;;  %v1114_v32 = vmul.f32 0.5, %v5401_v51  ;;  %v2006_v63 = vadd.f32 1.0, %v5475_v12  ;;  %v5736_v58 = vpop.f32.mrf.mxu1 }
 0x282   : > { %v2132_v2 = vmul.f32 %v2004_v48, %v1108_v8  ;;  %v2010_v21 = vadd.f32 1.0, %v5515_v55  ;;  %2636 = vmatmul.mubr.bf16.gmra.mxu0 %v2239_v35  ;;  %v2136_v10 = vmul.f32 %v2008_v25, %v1112_v60  ;;  %v2003_v14 = vadd.f32 1.0, %v5445_v39  ;;  %v6263_v55 = vld [vmem:[#allocation18_spill] sm:$0xff]  ;;  %v5744_v39 = vpop.f32.mrf.mxu0  ;;  %v6264_v60 = vld [vmem:[#allocation51_spill] sm:$0xff]  ;;  %v6265_v35 = vld [vmem:[#allocation29_spill] sm:$0xff] }
 0x283   : > { %v2241_v1 = vpack.c.bf16 %v2129_v44, %v2125_v47  ;;  %v2007_v56 = vadd.f32 1.0, %v5482_v40  ;;  %v2134_v26 = vmul.f32 %v2006_v63, %v1110_v7  ;;  %v2005_v59 = vadd.f32 1.0, %v5462_v54  ;;  %v5756_v7 = vpop.f32.mrf.mxu1 }
 0x284   : > { %v2138_v29 = vmul.f32 %v2010_v21, %v1114_v32  ;;  %v2009_v43 = vadd.f32 1.0, %v5487_v11  ;;  %v5740_v51 = vpop.eup %3939  ;;  %3949 = vtanh.f32 %v1777_v9  ;;  %v2244_v12 = vpack.c.bf16 %v2136_v10, %v2132_v2  ;;  %v6266_v2 = vld [vmem:[#allocation20_spill] sm:$0xff] }
 0x285   : > { %2797 = vmatmul.mubr.bf16.gmra.mxu1 %v2241_v1  ;;  %v2131_v20 = vmul.f32 %v2003_v14, %v6263_v55  ;;  %v2135_v47 = vmul.f32 %v2007_v56, %v5421_v24  ;;  %v5746_v40 = vpop.eup %3941  ;;  %v2133_v48 = vmul.f32 %v2005_v59, %v6264_v60  ;;  %v1116_v11 = vmul.f32 0.5, %v5449_v6  ;;  %v6268_v59 = vld [vmem:[#allocation25_spill] sm:$0xff] }
 0x286   : > { %v2246_v8 = vpack.c.bf16 %v2138_v29, %v2134_v26  ;;  %v2137_v54 = vmul.f32 %v2009_v43, %v6265_v35  ;;  %v5751_v44 = vpop.eup %3943  ;;  %2643 = vmatprep.mubr.bf16.mxu0 %v2244_v12  ;;  %v1120_v25 = vmul.f32 0.5, %v5473_v38  ;;  %v2012_v13 = vadd.f32 1.0, %v5545_v5  ;;  %v6267_v38 = vld [vmem:[#allocation35_spill] sm:$0xff]  ;;  %v5764_v5 = vpop.f32.mrf.mxu0  ;;  %v6269_v12 = vld [vmem:[#allocation26_spill] sm:$0xff]  ;;  %v6271_v35 = vld [vmem:[#allocation40_spill] sm:$0xff] }
 0x287   : > { %v2243_v9 = vpack.c.bf16 %v2135_v47, %v2131_v20  ;;  %v2016_v24 = vadd.f32 1.0, %v5589_v41  ;;  %v1118_v32 = vmul.f32 0.5, %v6266_v2  ;;  %v1122_v63 = vmul.f32 0.5, %v5480_v49  ;;  %v6270_v47 = vld [vmem:[#allocation34_spill] sm:$0xff] }
 0x288   : > { %2804 = vmatprep.mubr.bf16.mxu1 %v2246_v8  ;;  %v2014_v21 = vadd.f32 1.0, %v5554_v15  ;;  %v2018_v6 = vadd.f32 1.0, %v5600_v16  ;;  %v2140_v1 = vmul.f32 %v2012_v13, %v1116_v11  ;;  %v2011_v14 = vadd.f32 1.0, %v5524_v46  ;;  %v5772_v8 = vpop.f32.mrf.mxu1 }
 0x289   : > { %v2144_v10 = vmul.f32 %v2016_v24, %v1120_v25  ;;  %v2015_v56 = vadd.f32 1.0, %v6267_v38  ;;  %v2013_v43 = vadd.f32 1.0, %v6268_v59  ;;  %v2017_v55 = vadd.f32 1.0, %v6269_v12  ;;  %v6272_v25 = vld [vmem:[#allocation24_spill] sm:$0xff]  ;;  %v6273_v24 = vld [vmem:[#allocation21_spill] sm:$0xff] }
 0x28a   : > { %v3946_v41 = vpop.eup %3945  ;;  %v2142_v26 = vmul.f32 %v2014_v21, %v1118_v32  ;;  %v2146_v29 = vmul.f32 %v2018_v6, %v1122_v63  ;;  %v5769_v15 = vmul.f32 0.5, %v5598_v28  ;;  %2644 = vmatmul.mubr.bf16.gmra.mxu0 %v2243_v9  ;;  %v2245_v16 = vpack.c.bf16 %v2137_v54, %v2133_v48  ;;  %v6274_v32 = vld [vmem:[#allocation28_spill] sm:$0xff]  ;;  %v5781_v9 = vpop.f32.mrf.mxu0  ;;  %v6275_v21 = vld [vmem:[#allocation23_spill] sm:$0xff] }
 0x28b   : > { %v3948_v49 = vpop.eup %3947  ;;  %v2248_v20 = vpack.c.bf16 %v2144_v10, %v2140_v1  ;;  %v2139_v46 = vmul.f32 %v2011_v14, %v6270_v47  ;;  %v2143_v11 = vmul.f32 %v2015_v56, %v6271_v35  ;;  %v2141_v13 = vmul.f32 %v2013_v43, %v6272_v25  ;;  %v6276_v1 = vld [vmem:[#allocation22_spill] sm:$0xff]  ;;  %v6277_v35 = vld [vmem:[#allocation27_spill] sm:$0xff] }
 0x28c   : > { %v2250_v60 = vpack.c.bf16 %v2146_v29, %v2142_v26  ;;  %v1124_v2 = vmul.f32 0.5, %v6273_v24  ;;  %v2145_v63 = vmul.f32 %v2017_v55, %v6274_v32  ;;  %v1128_v28 = vmul.f32 0.5, %v5552_v17  ;;  %v3320_v47 = vpop.f32.mrf.mxu0 }
 0x28d   : > { %2805 = vmatmul.mubr.bf16.gmra.mxu1 %v2245_v16  ;;  %2651 = vmatprep.mubr.bf16.mxu0 %v2248_v20  ;;  %v2020_v48 = vadd.f32 1.0, %v5651_v57  ;;  %v2024_v54 = vadd.f32 1.0, %v5704_v37  ;;  %v1126_v6 = vmul.f32 0.5, %v6275_v21  ;;  %v1130_v10 = vmul.f32 0.5, %v6276_v1  ;;  %v3430_v57 = vpop.f32.mrf.mxu1 }
 0x28e   : > { %2812 = vmatprep.mubr.bf16.mxu1 %v2250_v60  ;;  %v2022_v14 = vadd.f32 1.0, %v5661_v27  ;;  %v2026_v38 = vadd.f32 1.0, %v5708_v61  ;;  %v2019_v29 = vadd.f32 1.0, %v5616_v42  ;;  %v2023_v17 = vadd.f32 1.0, %v5666_v31  ;;  %v6278_v42 = vld [vmem:[#allocation38_spill] sm:$0xff] }
 0x28f   : > { %v2148_v56 = vmul.f32 %v2020_v48, %v1124_v2  ;;  %v2152_v26 = vmul.f32 %v2024_v54, %v1128_v28  ;;  %v2021_v43 = vadd.f32 1.0, %v5642_v36  ;;  %v2025_v12 = vadd.f32 1.0, %v5673_v22  ;;  %v6279_v2 = vld [vmem:[#allocation43_spill] sm:$0xff] }
 0x290   : > { %v2150_v59 = vmul.f32 %v2022_v14, %v1126_v6  ;;  %v2154_v37 = vmul.f32 %v2026_v38, %v1130_v10  ;;  %v1135_v55 = vmul.f32 0.5, %v5630_v45  ;;  %v2247_v16 = vpack.c.bf16 %v2143_v11, %v2139_v46  ;;  %v3432_v46 = vpop.f32.mrf.mxu1  ;;  %v6280_v11 = vld [vmem:[#allocation41_spill] sm:$0xff]  ;;  %v3321_v6 = vpop.f32.mrf.mxu0 }
 0x291   : > { %v2249_v20 = vpack.c.bf16 %v2145_v63, %v2141_v13  ;;  %v2252_v27 = vpack.c.bf16 %v2152_v26, %v2148_v56  ;;  %v3950_v61 = vpop.eup %3949  ;;  %v2147_v25 = vmul.f32 %v2019_v29, %v6277_v35  ;;  %v2151_v24 = vmul.f32 %v2023_v17, %v6278_v42  ;;  %v5818_v17 = vld [vmem:[%s5997_s4] ss:$0 sm:$0xff] }
 0x292   : > { %v2254_v60 = vpack.c.bf16 %v2154_v37, %v2150_v59  ;;  %v1132_v31 = vmul.f32 0.5, %v5624_v34  ;;  %2652 = vmatmul.mubr.bf16.gmra.mxu0 %v2247_v16  ;;  %v2153_v32 = vmul.f32 %v2025_v12, %v6279_v2  ;;  %v1136_v36 = vmul.f32 0.5, %v5657_v52  ;;  %v3433_v56 = vpop.f32.mrf.mxu1  ;;  %v6284_v59 = vld [vmem:[#allocation50_spill] sm:$0xff]  ;;  %v6285_v37 = vld [vmem:[#allocation44_spill] sm:$0xff] }
 0x293   : > { %v2028_v22 = vadd.f32 1.0, %v5740_v51  ;;  %v2032_v45 = vadd.f32 1.0, %v3946_v41  ;;  %2659 = vmatprep.mubr.bf16.mxu0 %v2252_v27  ;;  %v2149_v13 = vmul.f32 %v2021_v43, %v6280_v11  ;;  %v1138_v63 = vmul.f32 0.5, %v5664_v0  ;;  %v6286_v43 = vld [vmem:[#allocation31_spill] sm:$0xff]  ;;  %v6287_v16 = vld [vmem:[#allocation42_spill] sm:$0xff] }
 0x294   : > { %v2030_v28 = vadd.f32 1.0, %v5746_v40  ;;  %v2034_v48 = vadd.f32 1.0, %v3948_v49  ;;  %v1134_v34 = vmul.f32 0.5, %v5627_v30  ;;  %v2027_v21 = vadd.f32 1.0, %v5717_v4  ;;  %v6281_v49 = vld [vmem:[#allocation33_spill] sm:$0xff]  ;;  %v2904_v35 = vld [vmem:[%s4327_s9] sm:$0xff] }
 0x295   : > { %2813 = vmatmul.mubr.bf16.gmra.mxu1 %v2249_v20  ;;  %v2160_v54 = vmul.f32 %v2032_v45, %v1136_v36  ;;  %v2031_v52 = vadd.f32 1.0, %v5751_v44  ;;  %v1137_v51 = vmul.f32 0.5, %v5640_v62  ;;  %v2251_v41 = vpack.c.bf16 %v2151_v24, %v2147_v25  ;;  %v6282_v62 = vld [vmem:[#allocation52_spill] sm:$0xff] }
 0x296   : > { %2820 = vmatprep.mubr.bf16.mxu1 %v2254_v60  ;;  %v2156_v1 = vmul.f32 %v2028_v22, %v1132_v31  ;;  %v2162_v10 = vmul.f32 %v2034_v48, %v1138_v63  ;;  %v2253_v14 = vpack.c.bf16 %v2153_v32, %v2149_v13  ;;  %v2158_v0 = vmul.f32 %v2030_v28, %v1134_v34  ;;  %v2905_v32 = vld [vmem:[%s4327_s9 + $0x8] sm:$0xff]  ;;  %v2907_v13 = vld [vmem:[%s4327_s9 + $0x18] sm:$0xff]  ;;  %v2908_v63 = vld [vmem:[%s4327_s9 + $0x20] sm:$0xff] }
 0x297   : > { %v2029_v40 = vadd.f32 1.0, %v5722_v53  ;;  %v3307_v38 = vadd.f32 %v5632_v19, %v6281_v49  ;;  %v5809_v4 = vmul.f32 %v2027_v21, %v5692_v18  ;;  %v2033_v44 = vadd.f32 1.0, %v3950_v61  ;;  %v6283_v53 = vld [vmem:[#allocation36_spill] sm:$0xff] }
 0x298   : > { %v2256_v30 = vpack.c.bf16 %v2160_v54, %v2156_v1  ;;  %v3419_v26 = vadd.f32 %v6282_v62, %v5620_v3  ;;  %v5813_v29 = vmul.f32 %v2031_v52, %v1135_v55  ;;  %v3310_v19 = vadd.f32 %v6284_v59, %v6283_v53  ;;  %v3323_v20 = vpop.f32.mrf.mxu0  ;;  %v6288_v55 = vld [vmem:[#allocation17_spill] sm:$0xff] }
 0x299   : > { %v3422_v12 = vadd.f32 %v6286_v43, %v6285_v37  ;;  %v3313_v18 = vadd.f32 %v5712_v23, %v6287_v16  ;;  %v2258_v27 = vpack.c.bf16 %v2162_v10, %v2158_v0  ;;  %v3425_v61 = vadd.f32 %v5720_v33, %v6288_v55  ;;  %v2909_v21 = vld [vmem:[%s4327_s9 + $0x28] sm:$0xff] }
 0x29a   : > { %v2711_v3 = vadd.f32 %v3419_v26, %v3307_v38  ;;  %v3316_v60 = vadd.f32 %v5744_v39, %v5729_v50  ;;  %2660 = vmatmul.mubr.bf16.gmra.mxu0 %v2251_v41  ;;  %v3428_v42 = vadd.f32 %v5756_v7, %v5736_v58  ;;  %v3319_v23 = vadd.f32 %v5781_v9, %v5764_v5  ;;  %v3435_v31 = vpop.f32.mrf.mxu1  ;;  %v3324_v2 = vpop.f32.mrf.mxu0  ;;  %v2906_v58 = vld [vmem:[%s4327_s9 + $0x10] sm:$0xff] }
 0x29b   : > { %v2714_v25 = vadd.f32 %v3422_v12, %v3310_v19  ;;  %v3431_v24 = vadd.f32 %v3430_v57, %v5772_v8  ;;  %2667 = vmatprep.mubr.bf16.mxu0 %v2256_v30  ;;  %v2719_v50 = vadd.f32 %v3425_v61, %v3313_v18  ;;  %v3322_v39 = vadd.f32 %v3321_v6, %v3320_v47 }
 0x29c   : > { %v2975_v33 = vadd.f32 %v5818_v17, %v2711_v3  ;;  %v3434_v36 = vadd.f32 %v3433_v56, %v3432_v46  ;;  %v2722_v7 = vadd.f32 %v3428_v42, %v3316_v60  ;;  %v3325_v9 = vadd.f32 %v3324_v2, %v3323_v20  ;;  %v3436_v8 = vpop.f32.mrf.mxu1  ;;  %v3326_v57 = vpop.f32.mrf.mxu0  ;;  %v2910_v56 = vld [vmem:[%s4327_s9 + $0x30] sm:$0xff]  ;;  %v2912_v60 = vld [vmem:[%s4327_s9 + $0x40] sm:$0xff] }
 0x29d   : > { %2821 = vmatmul.mubr.bf16.gmra.mxu1 %v2253_v14  ;;  %v2976_v22 = vadd.f32 %v5818_v17, %v2714_v25  ;;  %v2727_v5 = vadd.f32 %v3431_v24, %v3319_v23  ;;  %v2977_v11 = vadd.f32 %v5818_v17, %v2719_v50  ;;  %v3437_v47 = vadd.f32 %v3436_v8, %v3435_v31  ;;  %v2913_v31 = vld [vmem:[%s4327_s9 + $0x48] sm:$0xff] }
 0x29e   : > { %2828 = vmatprep.mubr.bf16.mxu1 %v2258_v27  ;;  %v3007_v45 = vadd.f32 %v2975_v33, %v2904_v35  ;;  %v2730_v28 = vadd.f32 %v3434_v36, %v3322_v39  ;;  %v2161_v46 = vmul.f32 %v2033_v44, %v1137_v51  ;;  %v2978_v54 = vadd.f32 %v5818_v17, %v2722_v7  ;;  %v3438_v52 = vpop.f32.mrf.mxu1  ;;  %v3327_v6 = vpop.f32.mrf.mxu0 }
 0x29f   : > { %v3008_v48 = vadd.f32 %v2976_v22, %v2905_v32  ;;  %v2979_v34 = vadd.f32 %v5818_v17, %v2727_v5  ;;  %v3009_v41 = vadd.f32 %v2977_v11, %v2906_v58  ;;  %v2735_v51 = vadd.f32 %v3437_v47, %v3325_v9 }
 0x2a0   : > { %3039 = vst [vmem:[%s5848_s30] sm:$0xff] %v3007_v45  ;;  %v2980_v1 = vadd.f32 %v5818_v17, %v2730_v28  ;;  %v3328_v10 = vadd.f32 %v3327_v6, %v3326_v57  ;;  %v2255_v14 = vpack.c.bf16 %v5813_v29, %v5809_v4  ;;  %v2157_v0 = vmul.f32 %v2029_v40, %v5769_v15  ;;  %v3439_v30 = vpop.f32.mrf.mxu1  ;;  %v2911_v40 = vld [vmem:[%s4327_s9 + $0x38] sm:$0xff]  ;;  %v2914_v45 = vld [vmem:[%s4327_s9 + $0x50] sm:$0xff] }
 0x2a1   : > { %3040 = vst [vmem:[%s5848_s30 + $0x8] sm:$0xff] %v3008_v48  ;;  %v3010_v49 = vadd.f32 %v2978_v54, %v2907_v13  ;;  %v3011_v38 = vadd.f32 %v2979_v34, %v2908_v63  ;;  %3041 = vst [vmem:[%s5848_s30 + $0x10] sm:$0xff] %v3009_v41  ;;  %v2981_v62 = vadd.f32 %v5818_v17, %v2735_v51 }
 0x2a2   : > { %v3012_v44 = vadd.f32 %v2980_v1, %v2909_v21  ;;  %v3440_v26 = vadd.f32 %v3439_v30, %v3438_v52  ;;  %2668 = vmatmul.mubr.bf16.gmra.mxu0 %v2255_v14  ;;  %v2257_v53 = vpack.c.bf16 %v2161_v46, %v2157_v0  ;;  %v2915_v46 = vld [vmem:[%s4327_s9 + $0x58] sm:$0xff] }
 0x2a3   : > { %3042 = vst [vmem:[%s5848_s30 + $0x18] sm:$0xff] %v3010_v49  ;;  %3043 = vst [vmem:[%s5848_s30 + $0x20] sm:$0xff] %v3011_v38  ;;  %v3013_v4 = vadd.f32 %v2981_v62, %v2910_v56  ;;  %v2916_v38 = vld [vmem:[%s4327_s9 + $0x60] sm:$0xff] }
 0x2a4   : > { %3044 = vst [vmem:[%s5848_s30 + $0x28] sm:$0xff] %v3012_v44  ;;  %v2738_v15 = vadd.f32 %v3440_v26, %v3328_v10 }
 0x2a5   : > { %2829 = vmatmul.mubr.bf16.gmra.mxu1 %v2257_v53  ;;  %3045 = vst [vmem:[%s5848_s30 + $0x30] sm:$0xff] %v3013_v4  ;;  %v2917_v53 = vld [vmem:[%s4327_s9 + $0x68] sm:$0xff] }
 0x2a6   : > { %v2982_v29 = vadd.f32 %v5818_v17, %v2738_v15 }
 0x2a8   : > { %v3014_v59 = vadd.f32 %v2982_v29, %v2911_v40 }
 0x2aa   : > { %3046 = vst [vmem:[%s5848_s30 + $0x38] sm:$0xff] %v3014_v59 }
 0x2ad   : > { %v3329_v19 = vpop.f32.mrf.mxu0 }
 0x2af   : > { %v3441_v37 = vpop.f32.mrf.mxu1  ;;  %v3330_v43 = vpop.f32.mrf.mxu0 }
 0x2b0   : > { %v3331_v12 = vadd.f32 %v3330_v43, %v3329_v19 }
 0x2b1   : > { %v3442_v16 = vpop.f32.mrf.mxu1  ;;  %v3332_v18 = vpop.f32.mrf.mxu0 }
 0x2b2   : > { %v3443_v20 = vadd.f32 %v3442_v16, %v3441_v37 }
 0x2b3   : > { %v3444_v27 = vpop.f32.mrf.mxu1  ;;  %v3333_v3 = vpop.f32.mrf.mxu0 }
 0x2b4   : > { %v2743_v55 = vadd.f32 %v3443_v20, %v3331_v12  ;;  %v3334_v61 = vadd.f32 %v3333_v3, %v3332_v18  ;;  %v2918_v3 = vld [vmem:[%s4327_s9 + $0x70] sm:$0xff] }
 0x2b5   : > { %v3445_v35 = vpop.f32.mrf.mxu1 }
 0x2b6   : > { %v2983_v25 = vadd.f32 %v5818_v17, %v2743_v55  ;;  %v3446_v42 = vadd.f32 %v3445_v35, %v3444_v27 }
 0x2b8   : > { %v3015_v23 = vadd.f32 %v2983_v25, %v2912_v60  ;;  %v2746_v24 = vadd.f32 %v3446_v42, %v3334_v61  ;;  %v2919_v42 = vld [vmem:[%s4327_s9 + $0x78] sm:$0xff] }
 0x2ba   : > { %3047 = vst [vmem:[%s5848_s30 + $0x40] sm:$0xff] %v3015_v23  ;;  %v2984_v2 = vadd.f32 %v5818_v17, %v2746_v24 }
 0x2bc   : > { %v3016_v33 = vadd.f32 %v2984_v2, %v2913_v31 }
 0x2be   : > { %3048 = vst [vmem:[%s5848_s30 + $0x48] sm:$0xff] %v3016_v33 }
 0x2c3   : > { %v3335_v32 = vpop.f32.mrf.mxu0 }
 0x2c5   : > { %v3447_v50 = vpop.f32.mrf.mxu1  ;;  %v3336_v39 = vpop.f32.mrf.mxu0 }
 0x2c6   : > { %v3337_v36 = vadd.f32 %v3336_v39, %v3335_v32 }
 0x2c7   : > { %v3448_v22 = vpop.f32.mrf.mxu1  ;;  %v3338_v58 = vpop.f32.mrf.mxu0 }
 0x2c8   : > { %v3449_v7 = vadd.f32 %v3448_v22, %v3447_v50 }
 0x2c9   : > { %v3450_v5 = vpop.f32.mrf.mxu1  ;;  %v3339_v9 = vpop.f32.mrf.mxu0 }
 0x2ca   : > { %v2751_v8 = vadd.f32 %v3449_v7, %v3337_v36  ;;  %v3340_v57 = vadd.f32 %v3339_v9, %v3338_v58  ;;  %v2920_v9 = vld [vmem:[%s4327_s9 + $0x80] sm:$0xff] }
 0x2cb   : > { %v3451_v11 = vpop.f32.mrf.mxu1 }
 0x2cc   : > { %v2985_v13 = vadd.f32 %v5818_v17, %v2751_v8  ;;  %v3452_v63 = vadd.f32 %v3451_v11, %v3450_v5 }
 0x2ce   : > { %v3017_v28 = vadd.f32 %v2985_v13, %v2914_v45  ;;  %v2754_v47 = vadd.f32 %v3452_v63, %v3340_v57  ;;  %v2921_v63 = vld [vmem:[%s4327_s9 + $0x88] sm:$0xff] }
 0x2d0   : > { %3049 = vst [vmem:[%s5848_s30 + $0x50] sm:$0xff] %v3017_v28  ;;  %v2986_v48 = vadd.f32 %v5818_v17, %v2754_v47 }
 0x2d2   : > { %v3018_v54 = vadd.f32 %v2986_v48, %v2915_v46 }
 0x2d4   : > { %3050 = vst [vmem:[%s5848_s30 + $0x58] sm:$0xff] %v3018_v54 }
 0x2d8   : > { %v3341_v34 = vpop.f32.mrf.mxu0 }
 0x2da   : > { %v3453_v21 = vpop.f32.mrf.mxu1  ;;  %v3342_v52 = vpop.f32.mrf.mxu0 }
 0x2db   : > { %v3343_v6 = vadd.f32 %v3342_v52, %v3341_v34 }
 0x2dc   : > { %v3454_v41 = vpop.f32.mrf.mxu1  ;;  %v3344_v1 = vpop.f32.mrf.mxu0 }
 0x2dd   : > { %v3455_v51 = vadd.f32 %v3454_v41, %v3453_v21 }
 0x2de   : > { %v3456_v10 = vpop.f32.mrf.mxu1  ;;  %v3345_v14 = vpop.f32.mrf.mxu0 }
 0x2df   : > { %v2759_v0 = vadd.f32 %v3455_v51, %v3343_v6  ;;  %v3346_v49 = vadd.f32 %v3345_v14, %v3344_v1  ;;  %v2922_v14 = vld [vmem:[%s4327_s9 + $0x90] sm:$0xff] }
 0x2e0   : > { %v3457_v56 = vpop.f32.mrf.mxu1 }
 0x2e1   : > { %v2987_v30 = vadd.f32 %v5818_v17, %v2759_v0  ;;  %v3458_v44 = vadd.f32 %v3457_v56, %v3456_v10 }
 0x2e3   : > { %v3019_v62 = vadd.f32 %v2987_v30, %v2916_v38  ;;  %v2762_v26 = vadd.f32 %v3458_v44, %v3346_v49  ;;  %v2923_v44 = vld [vmem:[%s4327_s9 + $0x98] sm:$0xff] }
 0x2e5   : > { %3051 = vst [vmem:[%s5848_s30 + $0x60] sm:$0xff] %v3019_v62  ;;  %v2988_v4 = vadd.f32 %v5818_v17, %v2762_v26 }
 0x2e7   : > { %v3020_v15 = vadd.f32 %v2988_v4, %v2917_v53 }
 0x2e9   : > { %3052 = vst [vmem:[%s5848_s30 + $0x68] sm:$0xff] %v3020_v15 }
 0x2ed   : > { %v3347_v40 = vpop.f32.mrf.mxu0 }
 0x2ef   : > { %v3459_v29 = vpop.f32.mrf.mxu1  ;;  %v3348_v59 = vpop.f32.mrf.mxu0 }
 0x2f0   : > { %v3349_v19 = vadd.f32 %v3348_v59, %v3347_v40 }
 0x2f1   : > { %v3460_v37 = vpop.f32.mrf.mxu1  ;;  %v3350_v43 = vpop.f32.mrf.mxu0 }
 0x2f2   : > { %v3461_v12 = vadd.f32 %v3460_v37, %v3459_v29 }
 0x2f3   : > { %v3462_v16 = vpop.f32.mrf.mxu1  ;;  %v3351_v18 = vpop.f32.mrf.mxu0 }
 0x2f4   : > { %v2767_v20 = vadd.f32 %v3461_v12, %v3349_v19  ;;  %v3352_v27 = vadd.f32 %v3351_v18, %v3350_v43  ;;  %v2924_v18 = vld [vmem:[%s4327_s9 + $0xa0] sm:$0xff] }
 0x2f5   : > { %v3463_v55 = vpop.f32.mrf.mxu1 }
 0x2f6   : > { %v2989_v61 = vadd.f32 %v5818_v17, %v2767_v20  ;;  %v3464_v60 = vadd.f32 %v3463_v55, %v3462_v16 }
 0x2f8   : > { %v3021_v35 = vadd.f32 %v2989_v61, %v2918_v3  ;;  %v2770_v25 = vadd.f32 %v3464_v60, %v3352_v27  ;;  %v2925_v60 = vld [vmem:[%s4327_s9 + $0xa8] sm:$0xff] }
 0x2fa   : > { %3053 = vst [vmem:[%s5848_s30 + $0x70] sm:$0xff] %v3021_v35  ;;  %v2990_v23 = vadd.f32 %v5818_v17, %v2770_v25 }
 0x2fc   : > { %v3022_v24 = vadd.f32 %v2990_v23, %v2919_v42 }
 0x2fe   : > { %3054 = vst [vmem:[%s5848_s30 + $0x78] sm:$0xff] %v3022_v24 }
 0x303   : > { %v3353_v31 = vpop.f32.mrf.mxu0 }
 0x305   : > { %v3465_v2 = vpop.f32.mrf.mxu1  ;;  %v3354_v33 = vpop.f32.mrf.mxu0 }
 0x306   : > { %v3355_v32 = vadd.f32 %v3354_v33, %v3353_v31 }
 0x307   : > { %v3466_v50 = vpop.f32.mrf.mxu1  ;;  %v3356_v39 = vpop.f32.mrf.mxu0 }
 0x308   : > { %v3467_v36 = vadd.f32 %v3466_v50, %v3465_v2 }
 0x309   : > { %v3468_v22 = vpop.f32.mrf.mxu1  ;;  %v3357_v58 = vpop.f32.mrf.mxu0 }
 0x30a   : > { %v2775_v7 = vadd.f32 %v3467_v36, %v3355_v32  ;;  %v3358_v5 = vadd.f32 %v3357_v58, %v3356_v39  ;;  %v2926_v58 = vld [vmem:[%s4327_s9 + $0xb0] sm:$0xff] }
 0x30b   : > { %v3469_v8 = vpop.f32.mrf.mxu1 }
 0x30c   : > { %v2991_v57 = vadd.f32 %v5818_v17, %v2775_v7  ;;  %v3470_v45 = vadd.f32 %v3469_v8, %v3468_v22 }
 0x30e   : > { %v3023_v11 = vadd.f32 %v2991_v57, %v2920_v9  ;;  %v2778_v13 = vadd.f32 %v3470_v45, %v3358_v5 }
 0x310   : > { %3055 = vst [vmem:[%s5848_s30 + $0x80] sm:$0xff] %v3023_v11  ;;  %v2992_v28 = vadd.f32 %v5818_v17, %v2778_v13 }
 0x312   : > { %v3024_v47 = vadd.f32 %v2992_v28, %v2921_v63  ;;  %v2927_v28 = vld [vmem:[%s4327_s9 + $0xb8] sm:$0xff] }
 0x314   : > { %3056 = vst [vmem:[%s5848_s30 + $0x88] sm:$0xff] %v3024_v47 }
 0x319   : > { %v3359_v46 = vpop.f32.mrf.mxu0 }
 0x31b   : > { %v3471_v48 = vpop.f32.mrf.mxu1  ;;  %v3360_v54 = vpop.f32.mrf.mxu0 }
 0x31c   : > { %v3361_v34 = vadd.f32 %v3360_v54, %v3359_v46 }
 0x31d   : > { %v3472_v21 = vpop.f32.mrf.mxu1  ;;  %v3362_v52 = vpop.f32.mrf.mxu0 }
 0x31e   : > { %v3473_v6 = vadd.f32 %v3472_v21, %v3471_v48 }
 0x31f   : > { %v3474_v41 = vpop.f32.mrf.mxu1  ;;  %v3363_v1 = vpop.f32.mrf.mxu0 }
 0x320   : > { %v2783_v51 = vadd.f32 %v3473_v6, %v3361_v34  ;;  %v3364_v10 = vadd.f32 %v3363_v1, %v3362_v52  ;;  %v2928_v1 = vld [vmem:[%s4327_s9 + $0xc0] sm:$0xff] }
 0x321   : > { %v3475_v0 = vpop.f32.mrf.mxu1 }
 0x322   : > { %v2993_v49 = vadd.f32 %v5818_v17, %v2783_v51  ;;  %v3476_v38 = vadd.f32 %v3475_v0, %v3474_v41 }
 0x324   : > { %v3025_v56 = vadd.f32 %v2993_v49, %v2922_v14  ;;  %v2786_v30 = vadd.f32 %v3476_v38, %v3364_v10 }
 0x326   : > { %3057 = vst [vmem:[%s5848_s30 + $0x90] sm:$0xff] %v3025_v56  ;;  %v2994_v62 = vadd.f32 %v5818_v17, %v2786_v30 }
 0x328   : > { %v3026_v26 = vadd.f32 %v2994_v62, %v2923_v44  ;;  %v2929_v62 = vld [vmem:[%s4327_s9 + $0xc8] sm:$0xff] }
 0x32a   : > { %3058 = vst [vmem:[%s5848_s30 + $0x98] sm:$0xff] %v3026_v26 }
 0x32f   : > { %v3365_v53 = vpop.f32.mrf.mxu0 }
 0x331   : > { %v3477_v4 = vpop.f32.mrf.mxu1  ;;  %v3366_v15 = vpop.f32.mrf.mxu0 }
 0x332   : > { %v3367_v40 = vadd.f32 %v3366_v15, %v3365_v53 }
 0x333   : > { %v3478_v29 = vpop.f32.mrf.mxu1  ;;  %v3368_v59 = vpop.f32.mrf.mxu0 }
 0x334   : > { %v3479_v19 = vadd.f32 %v3478_v29, %v3477_v4 }
 0x335   : > { %v3480_v37 = vpop.f32.mrf.mxu1  ;;  %v3369_v43 = vpop.f32.mrf.mxu0 }
 0x336   : > { %v2791_v12 = vadd.f32 %v3479_v19, %v3367_v40  ;;  %v3370_v16 = vadd.f32 %v3369_v43, %v3368_v59  ;;  %v2930_v43 = vld [vmem:[%s4327_s9 + $0xd0] sm:$0xff] }
 0x337   : > { %v3481_v20 = vpop.f32.mrf.mxu1 }
 0x338   : > { %v2995_v27 = vadd.f32 %v5818_v17, %v2791_v12  ;;  %v3482_v3 = vadd.f32 %v3481_v20, %v3480_v37 }
 0x33a   : > { %v3027_v55 = vadd.f32 %v2995_v27, %v2924_v18  ;;  %v2794_v61 = vadd.f32 %v3482_v3, %v3370_v16 }
 0x33c   : > { %3059 = vst [vmem:[%s5848_s30 + $0xa0] sm:$0xff] %v3027_v55  ;;  %v2996_v35 = vadd.f32 %v5818_v17, %v2794_v61 }
 0x33e   : > { %v3028_v25 = vadd.f32 %v2996_v35, %v2925_v60  ;;  %v2931_v35 = vld [vmem:[%s4327_s9 + $0xd8] sm:$0xff] }
 0x340   : > { %3060 = vst [vmem:[%s5848_s30 + $0xa8] sm:$0xff] %v3028_v25 }
 0x342   : > { %v3371_v42 = vpop.f32.mrf.mxu0 }
 0x344   : > { %v3372_v24 = vpop.f32.mrf.mxu0 }
 0x345   : > { %v3483_v23 = vpop.f32.mrf.mxu1  ;;  %v3373_v31 = vadd.f32 %v3372_v24, %v3371_v42 }
 0x346   : > { %v3374_v33 = vpop.f32.mrf.mxu0 }
 0x347   : > { %v3484_v2 = vpop.f32.mrf.mxu1 }
 0x348   : > { %v3485_v32 = vadd.f32 %v3484_v2, %v3483_v23  ;;  %v3375_v39 = vpop.f32.mrf.mxu0 }
 0x349   : > { %v3486_v50 = vpop.f32.mrf.mxu1  ;;  %v3376_v22 = vadd.f32 %v3375_v39, %v3374_v33  ;;  %v2932_v39 = vld [vmem:[%s4327_s9 + $0xe0] sm:$0xff] }
 0x34a   : > { %v2799_v36 = vadd.f32 %v3485_v32, %v3373_v31  ;;  %v3377_v5 = vpop.f32.mrf.mxu0 }
 0x34b   : > { %v3487_v7 = vpop.f32.mrf.mxu1 }
 0x34c   : > { %v2997_v9 = vadd.f32 %v5818_v17, %v2799_v36  ;;  %v3488_v8 = vadd.f32 %v3487_v7, %v3486_v50  ;;  %v3378_v45 = vpop.f32.mrf.mxu0 }
 0x34d   : > { %v3489_v57 = vpop.f32.mrf.mxu1  ;;  %v3379_v63 = vadd.f32 %v3378_v45, %v3377_v5 }
 0x34e   : > { %v3029_v11 = vadd.f32 %v2997_v9, %v2926_v58  ;;  %v2802_v13 = vadd.f32 %v3488_v8, %v3376_v22  ;;  %v3380_v46 = vpop.f32.mrf.mxu0 }
 0x34f   : > { %v3490_v47 = vpop.f32.mrf.mxu1 }
 0x350   : > { %3061 = vst [vmem:[%s5848_s30 + $0xb0] sm:$0xff] %v3029_v11  ;;  %v2998_v48 = vadd.f32 %v5818_v17, %v2802_v13  ;;  %v3491_v54 = vadd.f32 %v3490_v47, %v3489_v57  ;;  %v3381_v21 = vpop.f32.mrf.mxu0  ;;  %v2933_v11 = vld [vmem:[%s4327_s9 + $0xe8] sm:$0xff] }
 0x351   : > { %v3492_v34 = vpop.f32.mrf.mxu1  ;;  %v3382_v41 = vadd.f32 %v3381_v21, %v3380_v46 }
 0x352   : > { %v3030_v52 = vadd.f32 %v2998_v48, %v2927_v28  ;;  %v2807_v6 = vadd.f32 %v3491_v54, %v3379_v63  ;;  %v3383_v10 = vpop.f32.mrf.mxu0 }
 0x353   : > { %v3493_v51 = vpop.f32.mrf.mxu1 }
 0x354   : > { %3062 = vst [vmem:[%s5848_s30 + $0xb8] sm:$0xff] %v3030_v52  ;;  %v2999_v14 = vadd.f32 %v5818_v17, %v2807_v6  ;;  %v3494_v0 = vadd.f32 %v3493_v51, %v3492_v34  ;;  %v3384_v38 = vpop.f32.mrf.mxu0  ;;  %v2934_v52 = vld [vmem:[%s4327_s9 + $0xf0] sm:$0xff] }
 0x355   : > { %v3495_v49 = vpop.f32.mrf.mxu1  ;;  %v3385_v44 = vadd.f32 %v3384_v38, %v3383_v10 }
 0x356   : > { %v3031_v56 = vadd.f32 %v2999_v14, %v2928_v1  ;;  %v2810_v30 = vadd.f32 %v3494_v0, %v3382_v41  ;;  %v3386_v53 = vpop.f32.mrf.mxu0  ;;  %v2935_v14 = vld [vmem:[%s4327_s9 + $0xf8] sm:$0xff] }
 0x357   : > { %v3496_v26 = vpop.f32.mrf.mxu1 }
 0x358   : > { %3063 = vst [vmem:[%s5848_s30 + $0xc0] sm:$0xff] %v3031_v56  ;;  %v3000_v4 = vadd.f32 %v5818_v17, %v2810_v30  ;;  %v3497_v15 = vadd.f32 %v3496_v26, %v3495_v49  ;;  %v3387_v29 = vpop.f32.mrf.mxu0 }
 0x359   : > { %v3498_v40 = vpop.f32.mrf.mxu1  ;;  %v3388_v37 = vadd.f32 %v3387_v29, %v3386_v53 }
 0x35a   : > { %v3032_v59 = vadd.f32 %v3000_v4, %v2929_v62  ;;  %v2815_v19 = vadd.f32 %v3497_v15, %v3385_v44  ;;  %v3389_v16 = vpop.f32.mrf.mxu0 }
 0x35b   : > { %v3499_v12 = vpop.f32.mrf.mxu1 }
 0x35c   : > { %3064 = vst [vmem:[%s5848_s30 + $0xc8] sm:$0xff] %v3032_v59  ;;  %v3001_v18 = vadd.f32 %v5818_v17, %v2815_v19  ;;  %v3500_v20 = vadd.f32 %v3499_v12, %v3498_v40  ;;  %v3390_v3 = vpop.f32.mrf.mxu0 }
 0x35d   : > { %v3501_v27 = vpop.f32.mrf.mxu1  ;;  %v3391_v60 = vadd.f32 %v3390_v3, %v3389_v16 }
 0x35e   : > { %v3033_v55 = vadd.f32 %v3001_v18, %v2930_v43  ;;  %v2818_v61 = vadd.f32 %v3500_v20, %v3388_v37  ;;  %v3392_v42 = vpop.f32.mrf.mxu0 }
 0x35f   : > { %v3502_v25 = vpop.f32.mrf.mxu1 }
 0x360   : > { %3065 = vst [vmem:[%s5848_s30 + $0xd0] sm:$0xff] %v3033_v55  ;;  %v3002_v23 = vadd.f32 %v5818_v17, %v2818_v61  ;;  %v3503_v24 = vadd.f32 %v3502_v25, %v3501_v27  ;;  %v3393_v2 = vpop.f32.mrf.mxu0 }
 0x361   : > { %v3504_v31 = vpop.f32.mrf.mxu1  ;;  %v3394_v50 = vadd.f32 %v3393_v2, %v3392_v42 }
 0x362   : > { %v3034_v33 = vadd.f32 %v3002_v23, %v2931_v35  ;;  %v2823_v32 = vadd.f32 %v3503_v24, %v3391_v60  ;;  %v3395_v22 = vpop.f32.mrf.mxu0 }
 0x363   : > { %v3505_v36 = vpop.f32.mrf.mxu1 }
 0x364   : > { %3066 = vst [vmem:[%s5848_s30 + $0xd8] sm:$0xff] %v3034_v33  ;;  %v3003_v58 = vadd.f32 %v5818_v17, %v2823_v32  ;;  %v3506_v7 = vadd.f32 %v3505_v36, %v3504_v31  ;;  %v3396_v9 = vpop.f32.mrf.mxu0 }
 0x365   : > { %v3507_v5 = vpop.f32.mrf.mxu1  ;;  %v3397_v45 = vadd.f32 %v3396_v9, %v3395_v22 }
 0x366   : > { %v3035_v8 = vadd.f32 %v3003_v58, %v2932_v39  ;;  %v2826_v57 = vadd.f32 %v3506_v7, %v3394_v50  ;;  %v3398_v63 = vpop.f32.mrf.mxu0 }
 0x367   : > { %v3508_v13 = vpop.f32.mrf.mxu1 }
 0x368   : > { %3067 = vst [vmem:[%s5848_s30 + $0xe0] sm:$0xff] %v3035_v8  ;;  %v3004_v28 = vadd.f32 %v5818_v17, %v2826_v57  ;;  %v3509_v47 = vadd.f32 %v3508_v13, %v3507_v5  ;;  %v3399_v48 = vpop.f32.mrf.mxu0 }
 0x369   : > { %v3510_v46 = vpop.f32.mrf.mxu1  ;;  %v3400_v21 = vadd.f32 %v3399_v48, %v3398_v63 }
 0x36a   : > { %v3036_v54 = vadd.f32 %v3004_v28, %v2933_v11  ;;  %v2831_v34 = vadd.f32 %v3509_v47, %v3397_v45 }
 0x36b   : > { %v3511_v6 = vpop.f32.mrf.mxu1 }
 0x36c   : > { %3068 = vst [vmem:[%s5848_s30 + $0xe8] sm:$0xff] %v3036_v54  ;;  %v3005_v41 = vadd.f32 %v5818_v17, %v2831_v34  ;;  %v3512_v1 = vadd.f32 %v3511_v6, %v3510_v46 }
 0x36e   : > { %v3037_v51 = vadd.f32 %v3005_v41, %v2934_v52  ;;  %v2834_v10 = vadd.f32 %v3512_v1, %v3400_v21 }
 0x370   : > { %3069 = vst [vmem:[%s5848_s30 + $0xf0] sm:$0xff] %v3037_v51  ;;  %v3006_v0 = vadd.f32 %v5818_v17, %v2834_v10 }
 0x372   : > { %v3038_v49 = vadd.f32 %v3006_v0, %v2935_v14 }
 0x374   : > { %3070 = vst [vmem:[%s5848_s30 + $0xf8] sm:$0xff] %v3038_v49 }
 0x375   : > { %4070 = shalt.err (!%p4067_p13)
}
 0x376   : > { %s4071_s1 = scalar_lea.hbm %s5942_s17, 4096  ;;  %s4075_s26 = scalar_lea.hbm %s5998_s5, 8192 }
 0x377   : > { %p4072_p1 = scmp.ne.s32.totalorder %s5942_s17, %s4071_s1  ;;  %p4076_p12 = scmp.lt.s32.totalorder %s5942_s17, %s5998_s5 }
 0x378   : > { %p4077_p5 = scmp.lt.s32.totalorder %s4075_s26, %s4071_s1 }
 0x379   : > { %p4073_p4 = pnand %p4072_p1, %p4291_p0 }
 0x37a   : > { %p4078_p3 = por %p4077_p5, %p4076_p12 }
 0x37b   : > { %p4074_p8 = pneg %p4073_p4 }
 0x37d   : > { %p4079_p10 = pnand %p4078_p3, %p4074_p8 }
 0x37f   : > { %4082 = shalt.err (!%p4079_p10)
}
 0x380   : > { %s4159_s27 = smov 128   ;;  %s4160_s11 = smov 8  }
 0x381   : > { %3527 = dma.vmem_to_hbm [thread:$0]  (%p4291_p0), %s5944_s10, 4096, %s5942_s17, %s3072_s14, %s4159_s27, %s4159_s27, %s4160_s11  }
 0x382 PF: > { %s3100_s13 = sand.u32 1, %s4125_s18   ;;  %p6289_p2 = scmp.ne.s32.totalorder %s6070_s29, 0 }
 0x383   : > { %p6290_p11 = scmp.ge.s32.totalorder %s4145_s23, 2  ;;  %s3101_s24 = scalar_lea.sflag [#allocation5], %s3100_s13 }
 0x385   : > { %p3544_p7 = pnand %p6290_p11, %p6289_p2 }
 0x387   : > { %p3545_p6 = pneg %p3544_p7 }
 0x389   : > { %4120 = dma.done.wait (%p3545_p6), %s3101_s24, 4096  }
 0x38a   : > { %4122 = vsyncadd (%p3545_p6), %s3101_s24, 4294963200  ;;  %s23_s23 = sadd.s32 1, %s4145_s23   ;;  %s6291_s18 = smov %s4129_s19 }
 0x38b   : > { %p20_p9 = scmp.ge.s32.totalorder %s23_s23, 4   ;;  %s6292_s19 = smov %s4133_s20 }
 0x38c   : > { %s6293_s20 = smov %s4303_s25  ;;  %s6294_s21 = smov %s4141_s22 }
 0x38d   : > { %s6295_s22 = smov %s6297_s15  ;;  %22 = sbr.rel (!%p20_p9) target bundleno = 10 (0xa), region = 108 }
 0x392   :  { %3106 = vsyncpa [#allocation4], 1 }
 0x393   :  { %3108 = vsyncpa [#allocation4 + $0x1], 1 }
 0x394   :  { %3109 = vsyncpa [#allocation7], 1 }
 0x395   :  { %3110 = vsyncpa [#allocation10], 1 }
 0x396   :  { %3111 = vsyncpa [#allocation5], 1 }
 0x397   :  { %3113 = vsyncpa [#allocation5 + $0x1], 1 }

// kernel: tpu_custom_call.1
= control target key start
LH: loop header
LB: loop body
LE: loop exit
PB: predicated region body
PF: predicated region fallthrough
CT: control target
= control target key end

     0   :  { %s5993_s0 = inlined_call_operand.hbm [shape: f32[512,128], index: 0, kind: input, shape index: {}]   ;;  %s5994_s1 = inlined_call_operand.hbm [shape: bf16[128,512], index: 1, kind: input, shape index: {}]   ;;  %s5995_s2 = inlined_call_operand.hbm [shape: f32[1,512], index: 2, kind: input, shape index: {}]   ;;  %s5996_s3 = inlined_call_operand.hbm [shape: bf16[512,128], index: 3, kind: input, shape index: {}]   ;;  %s5997_s4 = inlined_call_operand.vmem [shape: f32[1,128], index: 4, kind: input, shape index: {}]   ;;  %s5998_s5 = inlined_call_operand.hbm [shape: f32[512,128], index: 5, kind: output, shape index: {}]  }
   0x1   :  { %6066 = sst [smem:[#allocation53_spill]] %s5994_s1 }
   0x2   :  { %10 = vsyncpa [#allocation4], 0 }
   0x3   :  { %12 = vsyncpa [#allocation4 + $0x1], 0 }
   0x4   :  { %13 = vsyncpa [#allocation7], 0 }
   0x5   :  { %14 = vsyncpa [#allocation10], 0 }
   0x6   :  { %15 = vsyncpa [#allocation5], 0 }
   0x7   :  { %17 = vsyncpa [#allocation5 + $0x1], 0  ;;  %s4191_s18 = smov 0   ;;  %s4193_s19 = smov 0  }
   0x8   :  { %s4195_s20 = smov 0   ;;  %s4197_s21 = smov 0  }
   0x9   :  { %s4199_s22 = smov 0   ;;  %s4201_s23 = smov 0  }
   0xa LB: > { %s3201_s24 = sadd.s32 4294967295, %s4145_s23   ;;  %s3202_s25 = sadd.s32 4294967294, %s4145_s23   ;;  %s4145_s23 = sphi %s4201_s23, %s23_s23   ;;  %s4141_s22 = sphi %s4199_s22, %s6295_s22   ;;  %s4137_s21 = sphi %s4197_s21, %s6294_s21   ;;  %s4133_s20 = sphi %s4195_s20, %s6293_s20   ;;  %s4129_s19 = sphi %s4193_s19, %s6292_s19   ;;  %s4125_s18 = sphi %s4191_s18, %s6291_s18  }
   0xb   : > { %p55_p0 = scmp.ne.s32.totalorder %s4129_s19, %s4125_s18  ;;  %p4225_p1 = scmp.eq.s32.totalorder %s3201_s24, 0 }
   0xc   : > { %p4229_p2 = scmp.eq.s32.totalorder %s3201_s24, 1  ;;  %p184_p3 = scmp.eq.s32.totalorder %s3202_s25, 1 }
   0xd   : > { %s6067_s26 = scalar_select %p4225_p1, 1, 0 }
   0xe   : > { %p4235_p4 = por %p4225_p1, %p55_p0  ;;  %p3203_p5 = scmp.ge.s32.totalorder %s4145_s23, 1 }
   0xf   : > { %p4240_p6 = por %p184_p3, %p55_p0  ;;  %p191_p7 = scmp.lt.s32.totalorder %s4145_s23, 3 }
  0x10   : > { %s6069_s28 = scalar_select %p4235_p4, 1, 0 }
  0x11   : > { %s6070_s29 = scalar_select %p4240_p6, 1, 0 }
  0x12   : > { %p4245_p8 = pnand %p3203_p5, %p191_p7  ;;  %s4147_s6 = smov [#allocation6]  }
  0x13   : > { %s206_s7 = sshll.u32 %s4147_s6, 4  ;;  %s4148_s9 = smov [#allocation8]   ;;  %s207_s7 = int_to_ptr.vmem [resolvable:$true] %s206_s7 }
  0x14   : > { %s6071_s30 = scalar_select %p4245_p8, 1, 0 }
  0x15   : > { %p3529_p9 = pneg %p4245_p8  ;;  %s223_s10 = sshll.u32 %s4148_s9, 4  ;;  %s224_s10 = int_to_ptr.vmem [resolvable:$true] %s223_s10 }
  0x16   : > { %s4149_s11 = smov [#allocation9]   ;;  %s3962_s13 = scalar_lea.vmem %s207_s7, 4096 }
  0x17   : > { %p4254_p11 = pnand %p3529_p9, %p4225_p1  ;;  %s236_s12 = sshll.u32 %s4149_s11, 4  ;;  %s237_s12 = int_to_ptr.vmem [resolvable:$true] %s236_s12 }
  0x18   : > { %p3963_p13 = scmp.ne.s32.totalorder %s207_s7, %s3962_s13  ;;  %p3970_p5 = scmp.lt.s32.totalorder %s207_s7, %s207_s7 }
  0x19   : > { %p3953_p12 = pneg %p4254_p11  ;;  %p3971_p7 = scmp.lt.s32.totalorder %s3962_s13, %s3962_s13 }
  0x1b   : > { %p3965_p0 = pnand %p3963_p13, %p3953_p12  ;;  %p3972_p9 = por %p3971_p7, %p3970_p5 }
  0x1d   : > { %p3966_p3 = pneg %p3965_p0 }
  0x1f   : > { %p3973_p10 = pnand %p3972_p9, %p3966_p3 }
  0x21   : > { %3976 = shalt.err (!%p3973_p10)
}
  0x22   : > { %s4150_s14 = smov 256   ;;  %s4151_s15 = smov 16  }
  0x23   : > { %s6073_s1 = sld [smem:[#allocation53_spill]]  ;;  %s3988_s24 = scalar_lea.vmem %s224_s10, 64 }
  0x24   : > { %p3989_p6 = scmp.ne.s32.totalorder %s224_s10, %s3988_s24  ;;  %p3996_p1 = scmp.lt.s32.totalorder %s224_s10, %s224_s10 }
  0x25   : > { %p3997_p4 = scmp.lt.s32.totalorder %s3988_s24, %s3988_s24 }
  0x26   : > { %p3991_p13 = pnand %p3989_p6, %p3953_p12 }
  0x27   : > { %p3998_p5 = por %p3997_p4, %p3996_p1 }
  0x28   : > { %p3992_p0 = pneg %p3991_p13 }
  0x29   : > { %3532 = dma.hbm_to_vmem [thread:$0]  (!%p4254_p11), %s6073_s1, 4096, %s207_s7, [#allocation7], %s4150_s14, %s4150_s14, %s4151_s15  }
  0x2a   : > { %p3999_p3 = pnand %p3998_p5, %p3992_p0 }
  0x2c   : > { %4002 = shalt.err (!%p3999_p3)
}
  0x2d   : > { %3535 = dma.hbm_to_vmem [thread:$0]  (!%p4254_p11), %s5995_s2, 64, %s224_s10, [#allocation7]  }
  0x2e   : > { %s4014_s7 = scalar_lea.vmem %s237_s12, 4096  ;;  %p4022_p9 = scmp.lt.s32.totalorder %s237_s12, %s237_s12 }
  0x2f   : > { %p4015_p10 = scmp.ne.s32.totalorder %s237_s12, %s4014_s7  ;;  %p4023_p13 = scmp.lt.s32.totalorder %s4014_s7, %s4014_s7 }
  0x31   : > { %p4017_p7 = pnand %p4015_p10, %p3953_p12  ;;  %p4024_p8 = por %p4023_p13, %p4022_p9 }
  0x33   : > { %p4018_p6 = pneg %p4017_p7 }
  0x35   : > { %p4025_p1 = pnand %p4024_p8, %p4018_p6 }
  0x37   : > { %4028 = shalt.err (!%p4025_p1)
}
  0x38   : > { %s4152_s9 = smov 64   ;;  %s4153_s10 = smov 4  }
  0x39   : > { %3538 = dma.hbm_to_vmem [thread:$0]  (!%p4254_p11), %s5996_s3, 4096, %s237_s12, [#allocation10], %s4152_s9, %s4152_s9, %s4153_s10  }
  0x3a   : > { %s42_s14 = sadd.s32 1, %s4133_s20  ;;  %s35_s15 = sadd.s32 1, %s4141_s22 }
  0x3b   : > { %p49_p4 = scmp.ne.s32.totalorder %s4133_s20, %s4129_s19  ;;  %p37_p8 = scmp.ge.s32.totalorder %s35_s15, 2 }
  0x3c   : > { %p50_p12 = scmp.eq.s32.totalorder %s4145_s23, 0  ;;  %p3550_p5 = scmp.lt.s32.totalorder %s4145_s23, 2 }
  0x3d   : > { %p4291_p0 = por %p4229_p2, %p49_p4  ;;  %s6297_s15 = smov (%p37_p8, %s35_s15), 0 }
  0x3e   : > { %p51_p3 = por %p50_p12, %p49_p4  ;;  %s253_s8 = sand.u32 1, %s4133_s20  }
  0x3f   : > { %s39_s17 = ssub.s32 %s4141_s22, %s6297_s15  ;;  %s3208_s12 = sshll.u32 %s253_s8, 8 }
  0x40   : > { %p40_p10 = scmp.eq.s32.totalorder %s39_s17, 0  ;;  %s3287_s24 = sshll.u32 %s4141_s22, 12 }
  0x41   : > { %s263_s27 = scalar_lea.hbm %s5993_s0, %s3287_s24  ;;  %s257_s9 = scalar_lea.vmem [#allocation3], %s3208_s12 }
  0x42   : > { %s4303_s25 = scalar_select %p40_p10, %s4133_s20, %s42_s14  }
  0x43   : > { %s264_s10 = sshll.u32 %s257_s9, 4  ;;  %p4310_p2 = pnand %p3550_p5, %p51_p3  ;;  %s265_s10 = int_to_ptr.vmem [resolvable:$true] %s264_s10 }
  0x44   : > { %s254_s13 = scalar_lea.sflag [#allocation4], %s253_s8  ;;  %s4042_s17 = scalar_lea.vmem %s265_s10, 4096 }
  0x45   : > { %p4031_p11 = pneg %p4310_p2  ;;  %p4043_p7 = scmp.ne.s32.totalorder %s265_s10, %s4042_s17 }
  0x46   : > { %s4154_s14 = smov [#allocation3]  }
  0x47   : > { %p4045_p6 = pnand %p4043_p7, %p4031_p11  ;;  %s4047_s1 = sshll.u32 %s4154_s14, 4  ;;  %s4048_s1 = int_to_ptr.vmem [resolvable:$false] %s4047_s1 }
  0x48   : > { %s4049_s24 = scalar_lea.vmem %s4048_s1, 8192  ;;  %p4050_p13 = scmp.lt.s32.totalorder %s265_s10, %s4048_s1 }
  0x49   : > { %p4046_p9 = pneg %p4045_p6  ;;  %p4051_p1 = scmp.lt.s32.totalorder %s4049_s24, %s4042_s17 }
  0x4b   : > { %p4052_p4 = por %p4051_p1, %p4050_p13 }
  0x4d   : > { %p4053_p8 = pnand %p4052_p4, %p4046_p9 }
  0x4f   : > { %4056 = shalt.err (!%p4053_p8)
}
  0x50   : > { %s4155_s12 = smov 128   ;;  %s4156_s6 = smov 8  }
  0x51   : > { %3542 = dma.hbm_to_vmem [thread:$0]  (!%p4310_p2), %s263_s27, 4096, %s265_s10, %s254_s13, %s4155_s12, %s4155_s12, %s4156_s6  }
  0x52   : > { %p6076_p12 = scmp.ne.s32.totalorder %s6071_s30, 0 }
  0x54   : > { %276 = sbr.rel (%p6076_p12) target bundleno = 898 (0x382), region = 40 }
  0x59   : > { %s4321_s8 = sand.u32 1, %s4129_s19   ;;  %p6077_p5 = scmp.ne.s32.totalorder %s6069_s28, 0 }
  0x5a   : > { %s3212_s1 = sshll.u32 %s4321_s8, 8  ;;  %s279_s7 = scalar_lea.sflag [#allocation4], %s4321_s8 }
  0x5b   : > { %s4327_s9 = scalar_lea.vmem [#allocation3], %s3212_s1 }
  0x5c   : > { %4108 = dma.done.wait (%p6077_p5), %s279_s7, 4096  }
  0x5d   : > { %4110 = vsyncadd (%p6077_p5), %s279_s7, 4294963200  ;;  %p6078_p3 = scmp.ne.s32.totalorder %s6067_s26, 0 }
  0x5f   : > { %4112 = dma.done.wait (%p6078_p3), [#allocation7], 4160  }
  0x60   : > { %4114 = vsyncadd (%p6078_p3), [#allocation7], 4294963136 }
  0x61   : > { %4116 = dma.done.wait (%p6078_p3), [#allocation10], 4096  }
  0x62   : > { %4118 = vsyncadd (%p6078_p3), [#allocation10], 4294963200  ;;  %v4157_v0 = vmov 0   ;;  %v3615_v1 = vld [vmem:[#allocation6 + $0xe4] ss:$16 sps:$4 sm:$0xff]   ;;  %v364_v34 = vld [vmem:[%s4327_s9 + $0x8] sm:$0xff] }
  0x63   : > { %657 = vmatprep.mubr.bf16.mxu0 %v4157_v0  ;;  %850 = vmatprep.mubr.bf16.mxu1 %v4157_v0  ;;  %v3617_v2 = vld [vmem:[#allocation6 + $0xec] ss:$16 sps:$4 sm:$0xff]   ;;  %v3619_v3 = vld [vmem:[#allocation6 + $0xe0] ss:$16 sps:$4 sm:$0xff]   ;;  %v3620_v4 = vld [vmem:[#allocation6 + $0xe8] ss:$16 sps:$4 sm:$0xff]  }
  0x64   : > { %625 = vmatprep.subr.bf16.mxu0 %v3615_v1  ;;  %818 = vmatprep.subr.bf16.mxu1 %v3617_v2  ;;  %v3621_v5 = vld [vmem:[#allocation6 + $0xc4] ss:$16 sps:$4 sm:$0xff]   ;;  %v3623_v6 = vld [vmem:[#allocation6 + $0xcc] ss:$16 sps:$4 sm:$0xff]   ;;  %v3625_v7 = vld [vmem:[#allocation6 + $0xc0] ss:$16 sps:$4 sm:$0xff]  }
  0x65   : > { %626 = vmatpush1.bf16.msra.mxu0 %v3619_v3  ;;  %819 = vmatpush1.bf16.msra.mxu1 %v3620_v4  ;;  %v3626_v8 = vld [vmem:[#allocation6 + $0xc8] ss:$16 sps:$4 sm:$0xff]   ;;  %v3627_v9 = vld [vmem:[#allocation6 + $0xa4] ss:$16 sps:$4 sm:$0xff]   ;;  %v3629_v10 = vld [vmem:[#allocation6 + $0xac] ss:$16 sps:$4 sm:$0xff]  }
  0x66   : > { %627 = vmatprep.subr.bf16.mxu0 %v3621_v5  ;;  %820 = vmatprep.subr.bf16.mxu1 %v3623_v6  ;;  %v3631_v11 = vld [vmem:[#allocation6 + $0xa0] ss:$16 sps:$4 sm:$0xff]   ;;  %v3632_v12 = vld [vmem:[#allocation6 + $0xa8] ss:$16 sps:$4 sm:$0xff]   ;;  %v3633_v13 = vld [vmem:[#allocation6 + $0x84] ss:$16 sps:$4 sm:$0xff]  }
  0x67   : > { %v3635_v14 = vld [vmem:[#allocation6 + $0x8c] ss:$16 sps:$4 sm:$0xff]   ;;  %v3637_v15 = vld [vmem:[#allocation6 + $0x80] ss:$16 sps:$4 sm:$0xff]   ;;  %v3638_v16 = vld [vmem:[#allocation6 + $0x88] ss:$16 sps:$4 sm:$0xff]  }
  0x68   : > { %v3639_v17 = vld [vmem:[#allocation6 + $0x64] ss:$16 sps:$4 sm:$0xff]   ;;  %v3641_v18 = vld [vmem:[#allocation6 + $0x6c] ss:$16 sps:$4 sm:$0xff]   ;;  %v3643_v19 = vld [vmem:[#allocation6 + $0x60] ss:$16 sps:$4 sm:$0xff]  }
  0x69   : > { %628 = vmatpush1.bf16.msra.mxu0 %v3625_v7  ;;  %821 = vmatpush1.bf16.msra.mxu1 %v3626_v8  ;;  %v3644_v20 = vld [vmem:[#allocation6 + $0x68] ss:$16 sps:$4 sm:$0xff]   ;;  %v3645_v21 = vld [vmem:[#allocation6 + $0x44] ss:$16 sps:$4 sm:$0xff]   ;;  %v3647_v22 = vld [vmem:[#allocation6 + $0x4c] ss:$16 sps:$4 sm:$0xff]  }
  0x6a   : > { %629 = vmatprep.subr.bf16.mxu0 %v3627_v9  ;;  %822 = vmatprep.subr.bf16.mxu1 %v3629_v10  ;;  %v3649_v23 = vld [vmem:[#allocation6 + $0x40] ss:$16 sps:$4 sm:$0xff]   ;;  %v3650_v24 = vld [vmem:[#allocation6 + $0x48] ss:$16 sps:$4 sm:$0xff]   ;;  %v3651_v25 = vld [vmem:[#allocation6 + $0x24] ss:$16 sps:$4 sm:$0xff]  }
  0x6b   : > { %v3653_v26 = vld [vmem:[#allocation6 + $0x2c] ss:$16 sps:$4 sm:$0xff]   ;;  %v3655_v27 = vld [vmem:[#allocation6 + $0x20] ss:$16 sps:$4 sm:$0xff]   ;;  %v3656_v28 = vld [vmem:[#allocation6 + $0x28] ss:$16 sps:$4 sm:$0xff]  }
  0x6c   : > { %v3657_v29 = vld [vmem:[#allocation6 + $0x4] ss:$16 sps:$4 sm:$0xff]   ;;  %v3659_v30 = vld [vmem:[#allocation6 + $0xc] ss:$16 sps:$4 sm:$0xff]   ;;  %v3661_v31 = vld [vmem:[#allocation6] ss:$16 sps:$4 sm:$0xff]  }
  0x6d   : > { %630 = vmatpush1.bf16.msra.mxu0 %v3631_v11  ;;  %823 = vmatpush1.bf16.msra.mxu1 %v3632_v12  ;;  %v3662_v32 = vld [vmem:[#allocation6 + $0x8] ss:$16 sps:$4 sm:$0xff]   ;;  %v363_v33 = vld [vmem:[%s4327_s9] sm:$0xff]  ;;  %v365_v39 = vld [vmem:[%s4327_s9 + $0x10] sm:$0xff]  ;;  %s5848_s30 = scalar_lea.vmem [#allocation11], %s3212_s1  ;;  %s3288_s27 = sshll.u32 %s4137_s21, 12 }
  0x6e   : > { %631 = vmatprep.subr.bf16.mxu0 %v3633_v13  ;;  %824 = vmatprep.subr.bf16.mxu1 %v3635_v14  ;;  %v3663_v35 = vld [vmem:[#allocation9 + $0x78] sm:$0xff]   ;;  %v395_v36 = vpack.c.bf16 %v364_v34, %v363_v33  ;;  %v3667_v42 = vld [vmem:[#allocation9 + $0x70] sm:$0xff]   ;;  %v3671_v47 = vld [vmem:[#allocation9 + $0x68] sm:$0xff]   ;;  %s3085_s10 = sshll.u32 %s5848_s30, 4  ;;  %s5942_s17 = scalar_lea.hbm %s5998_s5, %s3288_s27  ;;  %s5944_s10 = int_to_ptr.vmem [resolvable:$true] %s3085_s10 }
  0x6f   : > { %v3664_v37 = vld [vmem:[#allocation9 + $0xf8] sm:$0xff]   ;;  %v3668_v43 = vld [vmem:[#allocation9 + $0xf0] sm:$0xff]   ;;  %v3672_v48 = vld [vmem:[#allocation9 + $0xe8] sm:$0xff]   ;;  %s3072_s14 = scalar_lea.sflag [#allocation5], %s4321_s8  ;;  %s4057_s24 = scalar_lea.vmem %s5944_s10, 4096 }
  0x70   : > { %v3665_v38 = vld [vmem:[#allocation9 + $0x38] sm:$0xff]   ;;  %v3669_v44 = vld [vmem:[#allocation9 + $0x30] sm:$0xff]   ;;  %v368_v50 = vld [vmem:[%s4327_s9 + $0x28] sm:$0xff]  ;;  %p4058_p10 = scmp.ne.s32.totalorder %s5944_s10, %s4057_s24  ;;  %s4158_s21 = smov [#allocation11]  }
  0x71   : > { %632 = vmatpush1.bf16.msra.mxu0 %v3637_v15  ;;  %825 = vmatpush1.bf16.msra.mxu1 %v3638_v16  ;;  %v3666_v40 = vld [vmem:[#allocation9 + $0xb8] sm:$0xff]   ;;  %v3670_v46 = vld [vmem:[#allocation9 + $0xb0] sm:$0xff]   ;;  %v3673_v51 = vld [vmem:[#allocation9 + $0x28] sm:$0xff]   ;;  %s4061_s12 = sshll.u32 %s4158_s21, 4  ;;  %s4062_s12 = int_to_ptr.vmem [resolvable:$false] %s4061_s12 }
  0x72   : > { %633 = vmatprep.subr.bf16.mxu0 %v3639_v17  ;;  %826 = vmatprep.subr.bf16.mxu1 %v3641_v18  ;;  %v366_v41 = vld [vmem:[%s4327_s9 + $0x18] sm:$0xff]  ;;  %v367_v49 = vld [vmem:[%s4327_s9 + $0x20] sm:$0xff]  ;;  %v3674_v52 = vld [vmem:[#allocation9 + $0xa8] sm:$0xff]   ;;  %p4059_p2 = pnand %p4058_p10, %p4291_p0  ;;  %s4063_s6 = scalar_lea.vmem %s4062_s12, 8192 }
  0x73   : > { %v396_v45 = vpack.c.bf16 %v366_v41, %v365_v39  ;;  %v3675_v53 = vld [vmem:[#allocation9 + $0x60] sm:$0xff]   ;;  %v397_v56 = vpack.c.bf16 %v368_v50, %v367_v49  ;;  %v3679_v58 = vld [vmem:[#allocation9 + $0x58] sm:$0xff]   ;;  %v369_v60 = vld [vmem:[%s4327_s9 + $0x30] sm:$0xff]  ;;  %v445_v50 = vlaneseq  ;;  %p4064_p7 = scmp.lt.s32.totalorder %s5944_s10, %s4062_s12  ;;  %p4065_p6 = scmp.lt.s32.totalorder %s4063_s6, %s4057_s24 }
  0x74   : > { %v3676_v54 = vld [vmem:[#allocation9 + $0xe0] sm:$0xff]   ;;  %v3680_v59 = vld [vmem:[#allocation9 + $0xd8] sm:$0xff]   ;;  %v3683_v1 = vld [vmem:[#allocation9 + $0x50] sm:$0xff]   ;;  %p4060_p11 = pneg %p4059_p2 }
  0x75   : > { %634 = vmatpush1.bf16.msra.mxu0 %v3643_v19  ;;  %827 = vmatpush1.bf16.msra.mxu1 %v3644_v20  ;;  %v3677_v55 = vld [vmem:[#allocation9 + $0x20] sm:$0xff]   ;;  %v370_v61 = vld [vmem:[%s4327_s9 + $0x38] sm:$0xff]  ;;  %v373_v9 = vld [vmem:[%s4327_s9 + $0x50] sm:$0xff]  ;;  %p4066_p9 = por %p4065_p6, %p4064_p7 }
  0x76   : > { %635 = vmatprep.subr.bf16.mxu0 %v3645_v21  ;;  %828 = vmatprep.subr.bf16.mxu1 %v3647_v22  ;;  %v3678_v57 = vld [vmem:[#allocation9 + $0xa0] sm:$0xff]   ;;  %v3681_v62 = vld [vmem:[#allocation9 + $0x18] sm:$0xff]   ;;  %v3684_v2 = vld [vmem:[#allocation9 + $0xd0] sm:$0xff]   ;;  %v398_v4 = vpack.c.bf16 %v370_v61, %v369_v60 }
  0x77   : > { %v3682_v63 = vld [vmem:[#allocation9 + $0x98] sm:$0xff]   ;;  %v3685_v3 = vld [vmem:[#allocation9 + $0x10] sm:$0xff]   ;;  %v372_v7 = vld [vmem:[%s4327_s9 + $0x48] sm:$0xff]  ;;  %p4067_p13 = pnand %p4066_p9, %p4060_p11 }
  0x78   : > { %v3686_v5 = vld [vmem:[#allocation9 + $0x90] sm:$0xff]   ;;  %v371_v6 = vld [vmem:[%s4327_s9 + $0x40] sm:$0xff]  ;;  %v376_v13 = vld [vmem:[%s4327_s9 + $0x68] sm:$0xff] }
  0x79   : > { %636 = vmatpush1.bf16.msra.mxu0 %v3649_v23  ;;  %829 = vmatpush1.bf16.msra.mxu1 %v3650_v24  ;;  %v399_v8 = vpack.c.bf16 %v372_v7, %v371_v6  ;;  %v374_v10 = vld [vmem:[%s4327_s9 + $0x58] sm:$0xff]  ;;  %v375_v12 = vld [vmem:[%s4327_s9 + $0x60] sm:$0xff]  ;;  %v377_v15 = vld [vmem:[%s4327_s9 + $0x70] sm:$0xff] }
  0x7a   : > { %637 = vmatprep.subr.bf16.mxu0 %v3651_v25  ;;  %830 = vmatprep.subr.bf16.mxu1 %v3653_v26  ;;  %v400_v11 = vpack.c.bf16 %v374_v10, %v373_v9  ;;  %v401_v14 = vpack.c.bf16 %v376_v13, %v375_v12  ;;  %v378_v16 = vld [vmem:[%s4327_s9 + $0x78] sm:$0xff]  ;;  %v379_v18 = vld [vmem:[%s4327_s9 + $0x80] sm:$0xff]  ;;  %v380_v19 = vld [vmem:[%s4327_s9 + $0x88] sm:$0xff] }
  0x7b   : > { %v402_v17 = vpack.c.bf16 %v378_v16, %v377_v15  ;;  %v403_v20 = vpack.c.bf16 %v380_v19, %v379_v18  ;;  %v381_v21 = vld [vmem:[%s4327_s9 + $0x90] sm:$0xff]  ;;  %v382_v22 = vld [vmem:[%s4327_s9 + $0x98] sm:$0xff]  ;;  %v383_v24 = vld [vmem:[%s4327_s9 + $0xa0] sm:$0xff] }
  0x7c   : > { %v404_v23 = vpack.c.bf16 %v382_v22, %v381_v21  ;;  %v384_v25 = vld [vmem:[%s4327_s9 + $0xa8] sm:$0xff]  ;;  %v389_v33 = vld [vmem:[%s4327_s9 + $0xd0] sm:$0xff]  ;;  %v390_v34 = vld [vmem:[%s4327_s9 + $0xd8] sm:$0xff] }
  0x7d   : > { %638 = vmatpush1.bf16.msra.mxu0 %v3655_v27  ;;  %831 = vmatpush1.bf16.msra.mxu1 %v3656_v28  ;;  %v405_v26 = vpack.c.bf16 %v384_v25, %v383_v24  ;;  %v385_v27 = vld [vmem:[%s4327_s9 + $0xb0] sm:$0xff]  ;;  %v386_v28 = vld [vmem:[%s4327_s9 + $0xb8] sm:$0xff]  ;;  %v408_v39 = vpack.c.bf16 %v390_v34, %v389_v33  ;;  %v392_v41 = vld [vmem:[%s4327_s9 + $0xe8] sm:$0xff] }
  0x7e   : > { %639 = vmatprep.subr.bf16.mxu0 %v3657_v29  ;;  %832 = vmatprep.subr.bf16.mxu1 %v3659_v30  ;;  %v406_v29 = vpack.c.bf16 %v386_v28, %v385_v27  ;;  %v387_v30 = vld [vmem:[%s4327_s9 + $0xc0] sm:$0xff] }
  0x7f   : > { %v3694_v49 = vld [vmem:[#allocation9 + $0x80] sm:$0xff]  }
  0x81   : > { %640 = vmatpush1.bf16.msra.mxu0 %v3661_v31  ;;  %833 = vmatpush1.bf16.msra.mxu1 %v3662_v32  ;;  %v388_v31 = vld [vmem:[%s4327_s9 + $0xc8] sm:$0xff] }
  0x82   : > { %3289 = vmatprep.subr.bf16.mxu0 %v3663_v35  ;;  %3401 = vmatprep.subr.bf16.mxu1 %v3664_v37  ;;  %v407_v32 = vpack.c.bf16 %v388_v31, %v387_v30  ;;  %v3687_v35 = vld [vmem:[#allocation9 + $0x48] sm:$0xff]  }
  0x83   : > { %v3689_v37 = vld [vmem:[#allocation9 + $0x8] sm:$0xff]  }
  0x84   : > { %658 = vmatmul.mubr.bf16.vlgmr.msra.gmra.mxu0 %v395_v36  ;;  %851 = vmatmul.mubr.bf16.vlgmr.msra.gmra.mxu1 %v395_v36  ;;  %v3688_v36 = vld [vmem:[#allocation9 + $0xc8] sm:$0xff]  }
  0x85   : > { %667 = vmatprep.mubr.bf16.mxu0 %v4157_v0  ;;  %860 = vmatprep.mubr.bf16.mxu1 %v4157_v0 }
  0x86   : > { %3290 = vmatpush3.bf16.msra.mxu0 %v3665_v38  ;;  %3402 = vmatpush3.bf16.msra.mxu1 %v3666_v40  ;;  %v3690_v38 = vld [vmem:[#allocation9 + $0x88] sm:$0xff]   ;;  %v391_v40 = vld [vmem:[%s4327_s9 + $0xe0] sm:$0xff] }
  0x87   : > { %3291 = vmatprep.subr.bf16.mxu0 %v3667_v42  ;;  %3403 = vmatprep.subr.bf16.mxu1 %v3668_v43  ;;  %v409_v42 = vpack.c.bf16 %v392_v41, %v391_v40  ;;  %v393_v43 = vld [vmem:[%s4327_s9 + $0xf0] sm:$0xff] }
  0x8a   : > { %3292 = vmatpush3.bf16.msra.mxu0 %v3669_v44  ;;  %3404 = vmatpush3.bf16.msra.mxu1 %v3670_v46  ;;  %v394_v44 = vld [vmem:[%s4327_s9 + $0xf8] sm:$0xff]  ;;  %v3692_v46 = vld [vmem:[#allocation9 + $0xc0] sm:$0xff]  }
  0x8b   : > { %3293 = vmatprep.subr.bf16.mxu0 %v3671_v47  ;;  %3405 = vmatprep.subr.bf16.mxu1 %v3672_v48  ;;  %v410_v47 = vpack.c.bf16 %v394_v44, %v393_v43  ;;  %v3693_v48 = vld [vmem:[#allocation9] sm:$0xff]  }
  0x8c   : > { %668 = vmatmul.mubr.bf16.gmra.mxu0 %v396_v45  ;;  %861 = vmatmul.mubr.bf16.gmra.mxu1 %v396_v45  ;;  %v3691_v45 = vld [vmem:[#allocation9 + $0x40] sm:$0xff]  }
  0x8d   : > { %677 = vmatprep.mubr.bf16.mxu0 %v4157_v0  ;;  %870 = vmatprep.mubr.bf16.mxu1 %v4157_v0 }
  0x8e   : > { %3294 = vmatpush3.bf16.msra.mxu0 %v3673_v51  ;;  %3406 = vmatpush3.bf16.msra.mxu1 %v3674_v52  ;;  %v446_v51 = vshrl.u32 %v445_v50, 7 }
  0x8f   : > { %3295 = vmatprep.subr.bf16.mxu0 %v3675_v53  ;;  %3407 = vmatprep.subr.bf16.mxu1 %v3676_v54  ;;  %v443_v54 = vld [vmem:[#allocation8] sm:$0xf] }
  0x90   : > { %v447_v52 = vsub.s32 0, %v446_v51  ;;  %v455_v53 = vsub.s32 2, %v446_v51 }
  0x92   : > { %3296 = vmatpush3.bf16.msra.mxu0 %v3677_v55  ;;  %3408 = vmatpush3.bf16.msra.mxu1 %v3678_v57  ;;  %v451_v55 = vsub.s32 1, %v446_v51  ;;  %v4407_v57 = vrot.slane %v443_v54, %v455_v53 }
  0x93   : > { %3297 = vmatprep.subr.bf16.mxu0 %v3679_v58  ;;  %3409 = vmatprep.subr.bf16.mxu1 %v3680_v59 }
  0x94   : > { %678 = vmatmul.mubr.bf16.gmra.mxu0 %v397_v56  ;;  %871 = vmatmul.mubr.bf16.gmra.mxu1 %v397_v56  ;;  %v4405_v56 = vrot.slane %v443_v54, %v447_v52  ;;  %v4409_v60 = vrot.slane %v443_v54, %v451_v55 }
  0x95   : > { %687 = vmatprep.mubr.bf16.mxu0 %v4157_v0  ;;  %880 = vmatprep.mubr.bf16.mxu1 %v4157_v0 }
  0x96   : > { %3298 = vmatpush3.bf16.msra.mxu0 %v3681_v62  ;;  %3410 = vmatpush3.bf16.msra.mxu1 %v3682_v63 }
  0x97   : > { %3299 = vmatprep.subr.bf16.mxu0 %v3683_v1  ;;  %3411 = vmatprep.subr.bf16.mxu1 %v3684_v2 }
  0x9a   : > { %3300 = vmatpush3.bf16.msra.mxu0 %v3685_v3  ;;  %3412 = vmatpush3.bf16.msra.mxu1 %v3686_v5 }
  0x9b   : > { %3301 = vmatprep.subr.bf16.mxu0 %v3687_v35  ;;  %3413 = vmatprep.subr.bf16.mxu1 %v3688_v36 }
  0x9c   : > { %688 = vmatmul.mubr.bf16.gmra.mxu0 %v398_v4  ;;  %881 = vmatmul.mubr.bf16.gmra.mxu1 %v398_v4 }
  0x9d   : > { %697 = vmatprep.mubr.bf16.mxu0 %v4157_v0  ;;  %890 = vmatprep.mubr.bf16.mxu1 %v4157_v0 }
  0x9e   : > { %3302 = vmatpush3.bf16.msra.mxu0 %v3689_v37  ;;  %3414 = vmatpush3.bf16.msra.mxu1 %v3690_v38 }
  0x9f   : > { %3303 = vmatprep.subr.bf16.mxu0 %v3691_v45  ;;  %3415 = vmatprep.subr.bf16.mxu1 %v3692_v46 }
  0xa2   : > { %3304 = vmatpush3.bf16.msra.mxu0 %v3693_v48  ;;  %3416 = vmatpush3.bf16.msra.mxu1 %v3694_v49 }
  0xa4   : > { %698 = vmatmul.mubr.bf16.gmra.mxu0 %v399_v8  ;;  %891 = vmatmul.mubr.bf16.gmra.mxu1 %v399_v8 }
  0xa5   : > { %707 = vmatprep.mubr.bf16.mxu0 %v4157_v0  ;;  %900 = vmatprep.mubr.bf16.mxu1 %v4157_v0 }
  0xac   : > { %708 = vmatmul.mubr.bf16.gmra.mxu0 %v400_v11  ;;  %901 = vmatmul.mubr.bf16.gmra.mxu1 %v400_v11 }
  0xad   : > { %717 = vmatprep.mubr.bf16.mxu0 %v4157_v0  ;;  %910 = vmatprep.mubr.bf16.mxu1 %v4157_v0 }
  0xb4   : > { %718 = vmatmul.mubr.bf16.gmra.mxu0 %v401_v14  ;;  %911 = vmatmul.mubr.bf16.gmra.mxu1 %v401_v14 }
  0xb5   : > { %727 = vmatprep.mubr.bf16.mxu0 %v4157_v0  ;;  %920 = vmatprep.mubr.bf16.mxu1 %v4157_v0 }
  0xbc   : > { %728 = vmatmul.mubr.bf16.gmra.mxu0 %v402_v17  ;;  %921 = vmatmul.mubr.bf16.gmra.mxu1 %v402_v17 }
  0xbd   : > { %737 = vmatprep.mubr.bf16.mxu0 %v4157_v0  ;;  %930 = vmatprep.mubr.bf16.mxu1 %v4157_v0 }
  0xc4   : > { %738 = vmatmul.mubr.bf16.gmra.mxu0 %v403_v20  ;;  %931 = vmatmul.mubr.bf16.gmra.mxu1 %v403_v20 }
  0xc5   : > { %747 = vmatprep.mubr.bf16.mxu0 %v4157_v0  ;;  %940 = vmatprep.mubr.bf16.mxu1 %v4157_v0 }
  0xcc   : > { %748 = vmatmul.mubr.bf16.gmra.mxu0 %v404_v23  ;;  %941 = vmatmul.mubr.bf16.gmra.mxu1 %v404_v23 }
  0xcd   : > { %757 = vmatprep.mubr.bf16.mxu0 %v4157_v0  ;;  %950 = vmatprep.mubr.bf16.mxu1 %v4157_v0 }
  0xd4   : > { %758 = vmatmul.mubr.bf16.gmra.mxu0 %v405_v26  ;;  %951 = vmatmul.mubr.bf16.gmra.mxu1 %v405_v26 }
  0xd5   : > { %767 = vmatprep.mubr.bf16.mxu0 %v4157_v0  ;;  %960 = vmatprep.mubr.bf16.mxu1 %v4157_v0 }
  0xdc   : > { %768 = vmatmul.mubr.bf16.gmra.mxu0 %v406_v29  ;;  %961 = vmatmul.mubr.bf16.gmra.mxu1 %v406_v29 }
  0xdd   : > { %777 = vmatprep.mubr.bf16.mxu0 %v4157_v0  ;;  %970 = vmatprep.mubr.bf16.mxu1 %v4157_v0 }
  0xe4   : > { %778 = vmatmul.mubr.bf16.gmra.mxu0 %v407_v32  ;;  %971 = vmatmul.mubr.bf16.gmra.mxu1 %v407_v32 }
  0xe5   : > { %787 = vmatprep.mubr.bf16.mxu0 %v4157_v0  ;;  %980 = vmatprep.mubr.bf16.mxu1 %v4157_v0 }
  0xec   : > { %788 = vmatmul.mubr.bf16.gmra.mxu0 %v408_v39  ;;  %981 = vmatmul.mubr.bf16.gmra.mxu1 %v408_v39 }
  0xed   : > { %797 = vmatprep.mubr.bf16.mxu0 %v4157_v0  ;;  %990 = vmatprep.mubr.bf16.mxu1 %v4157_v0 }
  0xf4   : > { %798 = vmatmul.mubr.bf16.gmra.mxu0 %v409_v42  ;;  %991 = vmatmul.mubr.bf16.gmra.mxu1 %v409_v42 }
  0xf5   : > { %807 = vmatprep.mubr.bf16.mxu0 %v4157_v0  ;;  %1000 = vmatprep.mubr.bf16.mxu1 %v4157_v0  ;;  %v459_v0 = vsub.s32 3, %v446_v51 }
  0xf7   : > { %v4411_v61 = vrot.slane %v443_v54, %v459_v0 }
  0xfc   : > { %808 = vmatmul.mubr.bf16.gmra.mxu0 %v410_v47  ;;  %1001 = vmatmul.mubr.bf16.gmra.mxu1 %v410_v47 }
 0x144   : > { %v659_v58 = vpop.f32.mrf.mxu0  ;;  %v852_v59 = vpop.f32.mrf.mxu1 }
 0x145   : > { %v660_v62 = vadd.f32 %v659_v58, %v4405_v56  ;;  %v853_v63 = vadd.f32 %v852_v59, %v4407_v57 }
 0x146   : > { %v661_v1 = vpop.f32.mrf.mxu0  ;;  %v854_v2 = vpop.f32.mrf.mxu1 }
 0x147   : > { %v1139_v3 = vmul.f32 %v660_v62, %v660_v62  ;;  %v1141_v4 = vmul.f32 %v853_v63, %v853_v63  ;;  %v4415_v5 = vmul.f32 0.5, %v660_v62  ;;  %v4417_v6 = vmul.f32 0.5, %v853_v63 }
 0x148   : > { %v662_v7 = vadd.f32 %v661_v1, %v4409_v60  ;;  %v855_v8 = vadd.f32 %v854_v2, %v4411_v61  ;;  %v663_v9 = vpop.f32.mrf.mxu0  ;;  %v856_v10 = vpop.f32.mrf.mxu1 }
 0x149   : > { %v1267_v11 = vmul.f32 %v1139_v3, %v660_v62  ;;  %v1269_v12 = vmul.f32 %v1141_v4, %v853_v63  ;;  %v664_v13 = vadd.f32 %v663_v9, %v4405_v56  ;;  %v857_v14 = vadd.f32 %v856_v10, %v4407_v57 }
 0x14a   : > { %v1140_v15 = vmul.f32 %v662_v7, %v662_v7  ;;  %v1142_v16 = vmul.f32 %v855_v8, %v855_v8  ;;  %v665_v17 = vpop.f32.mrf.mxu0  ;;  %v858_v18 = vpop.f32.mrf.mxu1  ;;  %v4423_v19 = vmul.f32 0.5, %v662_v7  ;;  %v4425_v20 = vmul.f32 0.5, %v855_v8 }
 0x14b   : > { %v1395_v21 = vmul.f32 0.044715, %v1267_v11  ;;  %v1397_v22 = vmul.f32 0.044715, %v1269_v12  ;;  %v4427_v23 = vmul.f32 0.5, %v664_v13  ;;  %v1143_v24 = vmul.f32 %v664_v13, %v664_v13 }
 0x14c   : > { %v1268_v25 = vmul.f32 %v1140_v15, %v662_v7  ;;  %v1270_v26 = vmul.f32 %v1142_v16, %v855_v8  ;;  %v4429_v27 = vmul.f32 0.5, %v857_v14  ;;  %v1145_v28 = vmul.f32 %v857_v14, %v857_v14  ;;  %v669_v29 = vpop.f32.mrf.mxu0  ;;  %v862_v30 = vpop.f32.mrf.mxu1 }
 0x14d   : > { %v1523_v31 = vadd.f32 %v1395_v21, %v660_v62  ;;  %v1525_v32 = vadd.f32 %v1397_v22, %v853_v63  ;;  %v1271_v33 = vmul.f32 %v1143_v24, %v664_v13  ;;  %v4432_v34 = vadd.f32 %v665_v17, %v4409_v60 }
 0x14e   : > { %v1396_v35 = vmul.f32 0.044715, %v1268_v25  ;;  %v1398_v36 = vmul.f32 0.044715, %v1270_v26  ;;  %v1273_v37 = vmul.f32 %v1145_v28, %v857_v14  ;;  %v4435_v38 = vadd.f32 %v858_v18, %v4411_v61  ;;  %v671_v39 = vpop.f32.mrf.mxu0  ;;  %v864_v40 = vpop.f32.mrf.mxu1 }
 0x14f   : > { %v1651_v41 = vmul.f32 0.7978846, %v1523_v31  ;;  %v1653_v42 = vmul.f32 0.7978846, %v1525_v32  ;;  %v1399_v43 = vmul.f32 0.044715, %v1271_v33  ;;  %v1144_v44 = vmul.f32 %v4432_v34, %v4432_v34 }
 0x150   : > { %v1524_v45 = vadd.f32 %v1396_v35, %v662_v7  ;;  %v1526_v46 = vadd.f32 %v1398_v36, %v855_v8  ;;  %v1401_v47 = vmul.f32 0.044715, %v1273_v37  ;;  %v1146_v48 = vmul.f32 %v4435_v38, %v4435_v38  ;;  %v673_v49 = vpop.f32.mrf.mxu0  ;;  %v866_v50 = vpop.f32.mrf.mxu1 }
 0x151   : > { %3695 = vtanh.f32 %v1651_v41  ;;  %v1527_v51 = vadd.f32 %v1399_v43, %v664_v13  ;;  %v1272_v52 = vmul.f32 %v1144_v44, %v4432_v34  ;;  %v4443_v53 = vadd.f32 %v669_v29, %v4405_v56 }
 0x152   : > { %3697 = vtanh.f32 %v1653_v42  ;;  %v1652_v54 = vmul.f32 0.7978846, %v1524_v45  ;;  %v1654_v55 = vmul.f32 0.7978846, %v1526_v46  ;;  %v1529_v0 = vadd.f32 %v1401_v47, %v857_v14  ;;  %v675_v1 = vpop.f32.mrf.mxu0  ;;  %v868_v7 = vpop.f32.mrf.mxu1 }
 0x153   : > { %v1655_v58 = vmul.f32 0.7978846, %v1527_v51  ;;  %v1400_v59 = vmul.f32 0.044715, %v1272_v52  ;;  %v1274_v62 = vmul.f32 %v1146_v48, %v4435_v38  ;;  %v1147_v63 = vmul.f32 %v4443_v53, %v4443_v53 }
 0x154   : > { %3699 = vtanh.f32 %v1652_v54  ;;  %v1657_v2 = vmul.f32 0.7978846, %v1529_v0  ;;  %v4449_v3 = vadd.f32 %v862_v30, %v4407_v57  ;;  %v4452_v4 = vadd.f32 %v671_v39, %v4409_v60  ;;  %v679_v17 = vpop.f32.mrf.mxu0  ;;  %v872_v25 = vpop.f32.mrf.mxu1 }
 0x155   : > { %3701 = vtanh.f32 %v1654_v55  ;;  %v1528_v8 = vadd.f32 %v1400_v59, %v4432_v34  ;;  %v1402_v9 = vmul.f32 0.044715, %v1274_v62  ;;  %v1275_v10 = vmul.f32 %v1147_v63, %v4443_v53 }
 0x156   : > { %3703 = vtanh.f32 %v1655_v58  ;;  %v1149_v11 = vmul.f32 %v4449_v3, %v4449_v3  ;;  %v1148_v12 = vmul.f32 %v4452_v4, %v4452_v4  ;;  %v4461_v13 = vadd.f32 %v864_v40, %v4411_v61  ;;  %v681_v39 = vpop.f32.mrf.mxu0  ;;  %v874_v44 = vpop.f32.mrf.mxu1 }
 0x157   : > { %3705 = vtanh.f32 %v1657_v2  ;;  %v1656_v14 = vmul.f32 0.7978846, %v1528_v8  ;;  %v1530_v15 = vadd.f32 %v1402_v9, %v4435_v38  ;;  %v1403_v16 = vmul.f32 0.044715, %v1275_v10 }
 0x158   : > { %v1277_v18 = vmul.f32 %v1149_v11, %v4449_v3  ;;  %v1276_v21 = vmul.f32 %v1148_v12, %v4452_v4  ;;  %v1150_v22 = vmul.f32 %v4461_v13, %v4461_v13  ;;  %v4469_v24 = vadd.f32 %v673_v49, %v4405_v56  ;;  %v683_v62 = vpop.f32.mrf.mxu0 }
 0x159   : > { %3707 = vtanh.f32 %v1656_v14  ;;  %v1658_v26 = vmul.f32 0.7978846, %v1530_v15  ;;  %v1531_v28 = vadd.f32 %v1403_v16, %v4443_v53  ;;  %v4473_v29 = vadd.f32 %v866_v50, %v4407_v57 }
 0x15a   : > { %v1405_v30 = vmul.f32 0.044715, %v1277_v18  ;;  %v1404_v31 = vmul.f32 0.044715, %v1276_v21  ;;  %v1278_v32 = vmul.f32 %v1150_v22, %v4461_v13  ;;  %v1151_v33 = vmul.f32 %v4469_v24, %v4469_v24 }
 0x15b   : > { %3709 = vtanh.f32 %v1658_v26  ;;  %v1659_v35 = vmul.f32 0.7978846, %v1531_v28  ;;  %v1153_v36 = vmul.f32 %v4473_v29, %v4473_v29  ;;  %v4481_v37 = vadd.f32 %v675_v1, %v4409_v60  ;;  %v685_v28 = vpop.f32.mrf.mxu0 }
 0x15c   : > { %v1533_v40 = vadd.f32 %v1405_v30, %v4449_v3  ;;  %v1532_v41 = vadd.f32 %v1404_v31, %v4452_v4  ;;  %v1406_v42 = vmul.f32 0.044715, %v1278_v32  ;;  %v1279_v43 = vmul.f32 %v1151_v33, %v4469_v24 }
 0x15d   : > { %3711 = vtanh.f32 %v1659_v35  ;;  %v1281_v45 = vmul.f32 %v1153_v36, %v4473_v29  ;;  %v1152_v46 = vmul.f32 %v4481_v37, %v4481_v37  ;;  %v4490_v47 = vadd.f32 %v868_v7, %v4411_v61  ;;  %v876_v7 = vpop.f32.mrf.mxu1 }
 0x15e   : > { %v3696_v48 = vpop.eup %3695  ;;  %v1661_v49 = vmul.f32 0.7978846, %v1533_v40  ;;  %v1660_v50 = vmul.f32 0.7978846, %v1532_v41  ;;  %v1534_v51 = vadd.f32 %v1406_v42, %v4461_v13  ;;  %v1407_v52 = vmul.f32 0.044715, %v1279_v43 }
 0x15f   : > { %v3698_v54 = vpop.eup %3697  ;;  %v1907_v55 = vadd.f32 1.0, %v3696_v48  ;;  %v1409_v0 = vmul.f32 0.044715, %v1281_v45  ;;  %v1280_v58 = vmul.f32 %v1152_v46, %v4481_v37  ;;  %v1154_v59 = vmul.f32 %v4490_v47, %v4490_v47  ;;  %v878_v33 = vpop.f32.mrf.mxu1 }
 0x160   : > { %v1909_v63 = vadd.f32 1.0, %v3698_v54  ;;  %3713 = vtanh.f32 %v1661_v49  ;;  %v1662_v1 = vmul.f32 0.7978846, %v1534_v51  ;;  %v1535_v2 = vadd.f32 %v1407_v52, %v4469_v24  ;;  %v689_v48 = vpop.f32.mrf.mxu0 }
 0x161   : > { %v4497_v8 = vpop.eup %3699  ;;  %v4500_v9 = vmul.f32 %v1907_v55, %v4415_v5  ;;  %3715 = vtanh.f32 %v1660_v50  ;;  %v1537_v10 = vadd.f32 %v1409_v0, %v4473_v29  ;;  %v1408_v11 = vmul.f32 0.044715, %v1280_v58  ;;  %v882_v54 = vpop.f32.mrf.mxu1 }
 0x162   : > { %v4503_v12 = vpop.eup %3701  ;;  %v4506_v14 = vmul.f32 %v1909_v63, %v4417_v6  ;;  %3717 = vtanh.f32 %v1662_v1  ;;  %v1663_v15 = vmul.f32 0.7978846, %v1535_v2  ;;  %v1282_v16 = vmul.f32 %v1154_v59, %v4490_v47 }
 0x163   : > { %v3704_v18 = vpop.eup %3703  ;;  %v1665_v21 = vmul.f32 0.7978846, %v1537_v10  ;;  %v1536_v22 = vadd.f32 %v1408_v11, %v4481_v37  ;;  %v4511_v5 = vadd.f32 %v679_v17, %v4405_v56  ;;  %v4514_v26 = vadd.f32 %v872_v25, %v4407_v57  ;;  %v691_v11 = vpop.f32.mrf.mxu0 }
 0x164   : > { %v3706_v30 = vpop.eup %3705  ;;  %v1911_v31 = vadd.f32 1.0, %v3704_v18  ;;  %3719 = vtanh.f32 %v1663_v15  ;;  %v1410_v6 = vmul.f32 0.044715, %v1282_v16  ;;  %v4517_v32 = vadd.f32 %v681_v39, %v4409_v60 }
 0x165   : > { %6079 = vst [vmem:[#allocation16_spill] sm:$0xff] %v4511_v5  ;;  %6080 = vst [vmem:[#allocation17_spill] sm:$0xff] %v4514_v26  ;;  %v1913_v35 = vadd.f32 1.0, %v3706_v30  ;;  %3721 = vtanh.f32 %v1665_v21  ;;  %v1664_v36 = vmul.f32 0.7978846, %v1536_v22  ;;  %v1155_v40 = vmul.f32 %v4511_v5, %v4511_v5  ;;  %v884_v22 = vpop.f32.mrf.mxu1 }
 0x166   : > { %v4521_v17 = vpop.eup %3707  ;;  %v4524_v25 = vmul.f32 %v1911_v31, %v4427_v23  ;;  %v1538_v41 = vadd.f32 %v1410_v6, %v4490_v47  ;;  %v1157_v42 = vmul.f32 %v4514_v26, %v4514_v26  ;;  %v1156_v39 = vmul.f32 %v4517_v32, %v4517_v32 }
 0x167   : > { %v4532_v43 = vmul.f32 %v1913_v35, %v4429_v27  ;;  %3723 = vtanh.f32 %v1664_v36  ;;  %v1283_v45 = vmul.f32 %v1155_v40, %v4511_v5  ;;  %v4536_v46 = vadd.f32 %v874_v44, %v4411_v61 }
 0x168   : > { %v4538_v23 = vpop.eup %3709  ;;  %v1666_v49 = vmul.f32 0.7978846, %v1538_v41  ;;  %v1285_v50 = vmul.f32 %v1157_v42, %v4514_v26  ;;  %v1284_v51 = vmul.f32 %v1156_v39, %v4517_v32  ;;  %v4543_v52 = vadd.f32 %v683_v62, %v4405_v56 }
 0x169   : > { %v1411_v27 = vmul.f32 0.044715, %v1283_v45  ;;  %v1158_v55 = vmul.f32 %v4536_v46, %v4536_v46  ;;  %v4548_v0 = vadd.f32 %v876_v7, %v4407_v57  ;;  %v4551_v44 = vadd.f32 %v685_v28, %v4409_v60 }
 0x16a   : > { %6081 = vst [vmem:[#allocation18_spill] sm:$0xff] %v4543_v52  ;;  %v4553_v58 = vpop.eup %3711  ;;  %3725 = vtanh.f32 %v1666_v49  ;;  %v1413_v59 = vmul.f32 0.044715, %v1285_v50  ;;  %v1412_v63 = vmul.f32 0.044715, %v1284_v51  ;;  %v1159_v62 = vmul.f32 %v4543_v52, %v4543_v52  ;;  %v693_v51 = vpop.f32.mrf.mxu0 }
 0x16b   : > { %6082 = vst [vmem:[#allocation19_spill] sm:$0xff] %v4548_v0  ;;  %v1539_v1 = vadd.f32 %v1411_v27, %v4511_v5  ;;  %v1286_v2 = vmul.f32 %v1158_v55, %v4536_v46  ;;  %v1161_v10 = vmul.f32 %v4548_v0, %v4548_v0  ;;  %v1160_v7 = vmul.f32 %v4551_v44, %v4551_v44 }
 0x16c   : > { %v1541_v15 = vadd.f32 %v1413_v59, %v4514_v26  ;;  %v1540_v16 = vadd.f32 %v1412_v63, %v4517_v32  ;;  %v1287_v18 = vmul.f32 %v1159_v62, %v4543_v52  ;;  %v4567_v21 = vadd.f32 %v878_v33, %v4411_v61  ;;  %v886_v63 = vpop.f32.mrf.mxu1 }
 0x16d   : > { %v4569_v28 = vpop.eup %3713  ;;  %v1667_v30 = vmul.f32 0.7978846, %v1539_v1  ;;  %v1414_v31 = vmul.f32 0.044715, %v1286_v2  ;;  %v1289_v6 = vmul.f32 %v1161_v10, %v4548_v0  ;;  %v1288_v35 = vmul.f32 %v1160_v7, %v4551_v44 }
 0x16e   : > { %6083 = vst [vmem:[#allocation20_spill] sm:$0xff] %v4567_v21  ;;  %v4573_v36 = vpop.eup %3715  ;;  %v1669_v40 = vmul.f32 0.7978846, %v1541_v15  ;;  %v1668_v41 = vmul.f32 0.7978846, %v1540_v16  ;;  %v1162_v39 = vmul.f32 %v4567_v21, %v4567_v21  ;;  %v4583_v59 = vadd.f32 %v689_v48, %v4405_v56 }
 0x16f   : > { %v1415_v42 = vmul.f32 0.044715, %v1287_v18  ;;  %v4577_v45 = vpop.eup %3717  ;;  %3727 = vtanh.f32 %v1667_v30  ;;  %v1542_v33 = vadd.f32 %v1414_v31, %v4536_v46  ;;  %v1417_v49 = vmul.f32 0.044715, %v1289_v6 }
 0x170   : > { %v1416_v50 = vmul.f32 0.044715, %v1288_v35  ;;  %3729 = vtanh.f32 %v1669_v40  ;;  %v1290_v55 = vmul.f32 %v1162_v39, %v4567_v21  ;;  %6084 = vst [vmem:[#allocation21_spill] sm:$0xff] %v4583_v59  ;;  %v1163_v18 = vmul.f32 %v4583_v59, %v4583_v59  ;;  %v695_v35 = vpop.f32.mrf.mxu0 }
 0x171   : > { %v1543_v27 = vadd.f32 %v1415_v42, %v4543_v52  ;;  %v4585_v62 = vpop.eup %3719  ;;  %3731 = vtanh.f32 %v1668_v41  ;;  %v1670_v1 = vmul.f32 0.7978846, %v1542_v33  ;;  %v1545_v2 = vadd.f32 %v1417_v49, %v4548_v0  ;;  %v888_v33 = vpop.f32.mrf.mxu1 }
 0x172   : > { %v1544_v10 = vadd.f32 %v1416_v50, %v4551_v44  ;;  %v4589_v7 = vpop.eup %3721  ;;  %v1418_v16 = vmul.f32 0.044715, %v1290_v55  ;;  %v4594_v30 = vadd.f32 %v882_v54, %v4407_v57  ;;  %v4597_v6 = vadd.f32 %v691_v11, %v4409_v60 }
 0x173   : > { %v1671_v15 = vmul.f32 0.7978846, %v1543_v27  ;;  %3733 = vtanh.f32 %v1670_v1  ;;  %v1673_v48 = vmul.f32 0.7978846, %v1545_v2  ;;  %v1291_v42 = vmul.f32 %v1163_v18, %v4583_v59 }
 0x174   : > { %6085 = vst [vmem:[#allocation22_spill] sm:$0xff] %v4594_v30  ;;  %v1672_v31 = vmul.f32 0.7978846, %v1544_v10  ;;  %6086 = vst [vmem:[#allocation23_spill] sm:$0xff] %v4597_v6  ;;  %v4599_v40 = vpop.eup %3723  ;;  %v1546_v41 = vadd.f32 %v1418_v16, %v4567_v21  ;;  %v1165_v39 = vmul.f32 %v4594_v30, %v4594_v30  ;;  %v1164_v54 = vmul.f32 %v4597_v6, %v4597_v6 }
 0x175   : > { %3735 = vtanh.f32 %v1671_v15  ;;  %v4608_v49 = vadd.f32 %v884_v22, %v4411_v61  ;;  %v4611_v11 = vadd.f32 %v693_v51, %v4405_v56  ;;  %v1419_v27 = vmul.f32 0.044715, %v1291_v42  ;;  %v699_v51 = vpop.f32.mrf.mxu0 }
 0x176   : > { %3737 = vtanh.f32 %v1673_v48  ;;  %v1674_v50 = vmul.f32 0.7978846, %v1546_v41  ;;  %v1293_v55 = vmul.f32 %v1165_v39, %v4594_v30  ;;  %v1292_v2 = vmul.f32 %v1164_v54, %v4597_v6 }
 0x177   : > { %6087 = vst [vmem:[#allocation24_spill] sm:$0xff] %v4608_v49  ;;  %6088 = vst [vmem:[#allocation25_spill] sm:$0xff] %v4611_v11  ;;  %3739 = vtanh.f32 %v1672_v31  ;;  %v4614_v1 = vpop.eup %3725  ;;  %v1166_v10 = vmul.f32 %v4608_v49, %v4608_v49  ;;  %v1167_v15 = vmul.f32 %v4611_v11, %v4611_v11  ;;  %v4622_v22 = vadd.f32 %v886_v63, %v4407_v57  ;;  %v892_v31 = vpop.f32.mrf.mxu1 }
 0x178   : > { %3741 = vtanh.f32 %v1674_v50  ;;  %v1547_v16 = vadd.f32 %v1419_v27, %v4583_v59  ;;  %v1421_v18 = vmul.f32 0.044715, %v1293_v55  ;;  %v4626_v48 = vadd.f32 %v695_v35, %v4409_v60  ;;  %v701_v59 = vpop.f32.mrf.mxu0 }
 0x179   : > { %6089 = vst [vmem:[#allocation26_spill] sm:$0xff] %v4622_v22  ;;  %v1420_v41 = vmul.f32 0.044715, %v1292_v2  ;;  %v1294_v42 = vmul.f32 %v1166_v10, %v4608_v49  ;;  %v1295_v39 = vmul.f32 %v1167_v15, %v4611_v11  ;;  %v1169_v54 = vmul.f32 %v4622_v22, %v4622_v22 }
 0x17a   : > { %6090 = vst [vmem:[#allocation27_spill] sm:$0xff] %v4626_v48  ;;  %v1675_v0 = vmul.f32 0.7978846, %v1547_v16  ;;  %v1549_v63 = vadd.f32 %v1421_v18, %v4594_v30  ;;  %v1168_v50 = vmul.f32 %v4626_v48, %v4626_v48  ;;  %v4636_v27 = vadd.f32 %v888_v33, %v4411_v61  ;;  %v894_v30 = vpop.f32.mrf.mxu1 }
 0x17b   : > { %v1548_v35 = vadd.f32 %v1420_v41, %v4597_v6  ;;  %v1422_v55 = vmul.f32 0.044715, %v1294_v42  ;;  %v1423_v2 = vmul.f32 0.044715, %v1295_v39  ;;  %v1297_v10 = vmul.f32 %v1169_v54, %v4622_v22 }
 0x17c   : > { %6091 = vst [vmem:[#allocation28_spill] sm:$0xff] %v4636_v27  ;;  %v4640_v15 = vpop.eup %3727  ;;  %3743 = vtanh.f32 %v1675_v0  ;;  %v1677_v26 = vmul.f32 0.7978846, %v1549_v63  ;;  %v1296_v16 = vmul.f32 %v1168_v50, %v4626_v48  ;;  %v1170_v18 = vmul.f32 %v4636_v27, %v4636_v27 }
 0x17d   : > { %6092 = vst [vmem:[#allocation29_spill] sm:$0xff] %v4640_v15  ;;  %v4645_v52 = vpop.eup %3729  ;;  %v1676_v33 = vmul.f32 0.7978846, %v1548_v35  ;;  %v1550_v41 = vadd.f32 %v1422_v55, %v4608_v49  ;;  %v1551_v42 = vadd.f32 %v1423_v2, %v4611_v11  ;;  %v1425_v39 = vmul.f32 0.044715, %v1297_v10  ;;  %v703_v35 = vpop.f32.mrf.mxu0 }
 0x17e   : > { %6093 = vst [vmem:[#allocation30_spill] sm:$0xff] %v4645_v52  ;;  %v4649_v54 = vpop.eup %3731  ;;  %3745 = vtanh.f32 %v1677_v26  ;;  %v1424_v6 = vmul.f32 0.044715, %v1296_v16  ;;  %v1298_v0 = vmul.f32 %v1170_v18, %v4636_v27  ;;  %v4653_v63 = vadd.f32 %v699_v51, %v4405_v56  ;;  %v896_v16 = vpop.f32.mrf.mxu1 }
 0x17f   : > { %3747 = vtanh.f32 %v1676_v33  ;;  %v1678_v50 = vmul.f32 0.7978846, %v1550_v41  ;;  %v1679_v15 = vmul.f32 0.7978846, %v1551_v42  ;;  %v1553_v52 = vadd.f32 %v1425_v39, %v4622_v22 }
 0x180   : > { %6094 = vst [vmem:[#allocation31_spill] sm:$0xff] %v4653_v63  ;;  %v4656_v5 = vpop.eup %3733  ;;  %v1552_v55 = vadd.f32 %v1424_v6, %v4626_v48  ;;  %v1426_v2 = vmul.f32 0.044715, %v1298_v0  ;;  %v1171_v26 = vmul.f32 %v4653_v63, %v4653_v63  ;;  %v4662_v10 = vadd.f32 %v892_v31, %v4407_v57 }
 0x181   : > { %6095 = vst [vmem:[#allocation32_spill] sm:$0xff] %v4656_v5  ;;  %3749 = vtanh.f32 %v1678_v50  ;;  %v1681_v18 = vmul.f32 0.7978846, %v1553_v52  ;;  %v4667_v33 = vadd.f32 %v701_v59, %v4409_v60  ;;  %v4670_v41 = vadd.f32 %v894_v30, %v4411_v61  ;;  %v705_v50 = vpop.f32.mrf.mxu0 }
 0x182   : > { %6096 = vst [vmem:[#allocation33_spill] sm:$0xff] %v4662_v10  ;;  %v4664_v51 = vpop.eup %3735  ;;  %3751 = vtanh.f32 %v1679_v15  ;;  %v1680_v6 = vmul.f32 0.7978846, %v1552_v55  ;;  %v1554_v39 = vadd.f32 %v1426_v2, %v4636_v27  ;;  %v1299_v31 = vmul.f32 %v1171_v26, %v4653_v63  ;;  %v898_v26 = vpop.f32.mrf.mxu1 }
 0x183   : > { %6097 = vst [vmem:[#allocation34_spill] sm:$0xff] %v4664_v51  ;;  %6098 = vst [vmem:[#allocation35_spill] sm:$0xff] %v4667_v33  ;;  %v4672_v42 = vpop.eup %3737  ;;  %3753 = vtanh.f32 %v1681_v18  ;;  %v1173_v52 = vmul.f32 %v4662_v10, %v4662_v10  ;;  %v1172_v59 = vmul.f32 %v4667_v33, %v4667_v33  ;;  %v1174_v30 = vmul.f32 %v4670_v41, %v4670_v41 }
 0x184   : > { %6099 = vst [vmem:[#allocation36_spill] sm:$0xff] %v4670_v41  ;;  %6100 = vst [vmem:[#allocation37_spill] sm:$0xff] %v4672_v42  ;;  %v4676_v0 = vpop.eup %3739  ;;  %3755 = vtanh.f32 %v1680_v6  ;;  %v1682_v15 = vmul.f32 0.7978846, %v1554_v39  ;;  %v1427_v55 = vmul.f32 0.044715, %v1299_v31  ;;  %v4685_v2 = vadd.f32 %v703_v35, %v4405_v56 }
 0x185   : > { %v4687_v22 = vpop.eup %3741  ;;  %v1301_v18 = vmul.f32 %v1173_v52, %v4662_v10  ;;  %v1300_v11 = vmul.f32 %v1172_v59, %v4667_v33  ;;  %v1302_v27 = vmul.f32 %v1174_v30, %v4670_v41  ;;  %v4693_v49 = vadd.f32 %v896_v16, %v4407_v57 }
 0x186   : > { %6101 = vst [vmem:[#allocation38_spill] sm:$0xff] %v4685_v2  ;;  %6102 = vst [vmem:[#allocation39_spill] sm:$0xff] %v4687_v22  ;;  %3757 = vtanh.f32 %v1682_v15  ;;  %v1555_v6 = vadd.f32 %v1427_v55, %v4653_v63  ;;  %v1175_v39 = vmul.f32 %v4685_v2, %v4685_v2  ;;  %v4699_v35 = vadd.f32 %v705_v50, %v4409_v60  ;;  %v709_v55 = vpop.f32.mrf.mxu0  ;;  %v902_v63 = vpop.f32.mrf.mxu1 }
 0x187   : > { %v1429_v31 = vmul.f32 0.044715, %v1301_v18  ;;  %v1428_v48 = vmul.f32 0.044715, %v1300_v11  ;;  %v1430_v42 = vmul.f32 0.044715, %v1302_v27  ;;  %v1177_v52 = vmul.f32 %v4693_v49, %v4693_v49 }
 0x188   : > { %v1683_v59 = vmul.f32 0.7978846, %v1555_v6  ;;  %v1303_v30 = vmul.f32 %v1175_v39, %v4685_v2  ;;  %v1176_v16 = vmul.f32 %v4699_v35, %v4699_v35  ;;  %v4707_v15 = vadd.f32 %v898_v26, %v4411_v61 }
 0x189   : > { %v4709_v51 = vpop.eup %3743  ;;  %v1557_v50 = vadd.f32 %v1429_v31, %v4662_v10  ;;  %v1556_v11 = vadd.f32 %v1428_v48, %v4667_v33  ;;  %v1558_v27 = vadd.f32 %v1430_v42, %v4670_v41  ;;  %v1305_v18 = vmul.f32 %v1177_v52, %v4693_v49  ;;  %v904_v10 = vpop.f32.mrf.mxu1 }
 0x18a   : > { %6103 = vst [vmem:[#allocation40_spill] sm:$0xff] %v4709_v51  ;;  %3759 = vtanh.f32 %v1683_v59  ;;  %v1431_v6 = vmul.f32 0.044715, %v1303_v30  ;;  %v1304_v39 = vmul.f32 %v1176_v16, %v4699_v35  ;;  %v1178_v26 = vmul.f32 %v4707_v15, %v4707_v15  ;;  %v711_v16 = vpop.f32.mrf.mxu0 }
 0x18b   : > { %v4718_v22 = vpop.eup %3745  ;;  %v1685_v5 = vmul.f32 0.7978846, %v1557_v50  ;;  %v1684_v21 = vmul.f32 0.7978846, %v1556_v11  ;;  %v1686_v51 = vmul.f32 0.7978846, %v1558_v27  ;;  %v4721_v31 = vadd.f32 %v709_v55, %v4405_v56 }
 0x18c   : > { %6104 = vst [vmem:[#allocation41_spill] sm:$0xff] %v4718_v22  ;;  %v4723_v48 = vpop.eup %3747  ;;  %v1559_v42 = vadd.f32 %v1431_v6, %v4685_v2  ;;  %v1433_v52 = vmul.f32 0.044715, %v1305_v18  ;;  %v1432_v59 = vmul.f32 0.044715, %v1304_v39  ;;  %v1306_v30 = vmul.f32 %v1178_v26, %v4707_v15 }
 0x18d   : > { %6105 = vst [vmem:[#allocation42_spill] sm:$0xff] %v4721_v31  ;;  %3761 = vtanh.f32 %v1685_v5  ;;  %v1016_v41 = vmul.f32 0.5, %v4432_v34  ;;  %v1908_v50 = vadd.f32 1.0, %v4497_v8  ;;  %v1912_v11 = vadd.f32 1.0, %v4521_v17 }
 0x18e   : > { %v4730_v27 = vpop.eup %3749  ;;  %3763 = vtanh.f32 %v1684_v21  ;;  %v1687_v55 = vmul.f32 0.7978846, %v1559_v42  ;;  %v1561_v33 = vadd.f32 %v1433_v52, %v4693_v49  ;;  %v1560_v18 = vadd.f32 %v1432_v59, %v4699_v35  ;;  %v713_v21 = vpop.f32.mrf.mxu0 }
 0x18f   : > { %v4734_v6 = vpop.eup %3751  ;;  %3765 = vtanh.f32 %v1686_v51  ;;  %v1434_v39 = vmul.f32 0.044715, %v1306_v30  ;;  %v2036_v5 = vmul.f32 %v1908_v50, %v4423_v19  ;;  %v2040_v26 = vmul.f32 %v1912_v11, %v1016_v41  ;;  %v906_v42 = vpop.f32.mrf.mxu1 }
 0x190   : > { %v4737_v34 = vpop.eup %3753  ;;  %3767 = vtanh.f32 %v1687_v55  ;;  %v1689_v8 = vmul.f32 0.7978846, %v1561_v33  ;;  %v1688_v17 = vmul.f32 0.7978846, %v1560_v18  ;;  %v1018_v2 = vmul.f32 0.5, %v4435_v38 }
 0x191   : > { %v4740_v22 = vpop.eup %3755  ;;  %v1562_v52 = vadd.f32 %v1434_v39, %v4707_v15  ;;  %v2196_v59 = vpack.c.bf16 %v2040_v26, %v2036_v5  ;;  %v1910_v51 = vadd.f32 1.0, %v4503_v12  ;;  %v1914_v30 = vadd.f32 1.0, %v4538_v23 }
 0x192   : > { %3769 = vtanh.f32 %v1689_v8  ;;  %v1179_v19 = vmul.f32 %v4721_v31, %v4721_v31  ;;  %v4748_v33 = vadd.f32 %v902_v63, %v4407_v57  ;;  %v2195_v38 = vpack.c.bf16 %v4524_v25, %v4500_v9  ;;  %v715_v9 = vpop.f32.mrf.mxu0  ;;  %v908_v25 = vpop.f32.mrf.mxu1 }
 0x193   : > { %v4752_v41 = vpop.eup %3757  ;;  %3771 = vtanh.f32 %v1688_v17  ;;  %v1690_v50 = vmul.f32 0.7978846, %v1562_v52  ;;  %2547 = vmatprep.mubr.bf16.mxu0 %v2196_v59  ;;  %v2038_v11 = vmul.f32 %v1910_v51, %v4425_v20  ;;  %v2042_v12 = vmul.f32 %v1914_v30, %v1018_v2 }
 0x194   : > { %6106 = vst [vmem:[#allocation43_spill] sm:$0xff] %v4748_v33  ;;  %v1307_v23 = vmul.f32 %v1179_v19, %v4721_v31  ;;  %v1181_v55 = vmul.f32 %v4748_v33, %v4748_v33  ;;  %2548 = vmatmul.mubr.bf16.vlgmr.msra.gmra.mxu0 %v2195_v38  ;;  %v2197_v63 = vpack.c.bf16 %v4532_v43, %v4506_v14 }
 0x195   : > { %v4761_v18 = vadd.f32 %v711_v16, %v4409_v60  ;;  %3773 = vtanh.f32 %v1690_v50  ;;  %v2198_v39 = vpack.c.bf16 %v2042_v12, %v2038_v11  ;;  %v4764_v5 = vadd.f32 %v904_v10, %v4411_v61 }
 0x196   : > { %v4767_v20 = vadd.f32 %v713_v21, %v4405_v56  ;;  %v1435_v2 = vmul.f32 0.044715, %v1307_v23  ;;  %v1309_v26 = vmul.f32 %v1181_v55, %v4748_v33  ;;  %v4773_v14 = vadd.f32 %v906_v42, %v4407_v57 }
 0x197   : > { %6107 = vst [vmem:[#allocation44_spill] sm:$0xff] %v4761_v18  ;;  %v1180_v8 = vmul.f32 %v4761_v18, %v4761_v18  ;;  %v4775_v43 = vpop.eup %3759  ;;  %2708 = vmatprep.mubr.bf16.mxu1 %v2198_v39  ;;  %v1182_v16 = vmul.f32 %v4764_v5, %v4764_v5  ;;  %v4782_v17 = vadd.f32 %v715_v9, %v4409_v60 }
 0x198   : > { %v1183_v10 = vmul.f32 %v4767_v20, %v4767_v20  ;;  %v4785_v21 = vadd.f32 %v908_v25, %v4411_v61  ;;  %v1563_v52 = vadd.f32 %v1435_v2, %v4721_v31  ;;  %v1437_v59 = vmul.f32 0.044715, %v1309_v26  ;;  %2709 = vmatmul.mubr.bf16.vlgmr.msra.gmra.mxu1 %v2197_v63 }
 0x199   : > { %v1308_v42 = vmul.f32 %v1180_v8, %v4761_v18  ;;  %v1185_v51 = vmul.f32 %v4773_v14, %v4773_v14  ;;  %v1310_v30 = vmul.f32 %v1182_v16, %v4764_v5  ;;  %v1184_v38 = vmul.f32 %v4782_v17, %v4782_v17 }
 0x19a   : > { %v1311_v19 = vmul.f32 %v1183_v10, %v4767_v20  ;;  %v1186_v50 = vmul.f32 %v4785_v21, %v4785_v21  ;;  %v4797_v11 = vpop.eup %3761  ;;  %v1691_v12 = vmul.f32 0.7978846, %v1563_v52  ;;  %v1565_v23 = vadd.f32 %v1437_v59, %v4748_v33  ;;  %v719_v33 = vpop.f32.mrf.mxu0 }
 0x19b   : > { %v1436_v55 = vmul.f32 0.044715, %v1308_v42  ;;  %v1313_v63 = vmul.f32 %v1185_v51, %v4773_v14  ;;  %v4801_v9 = vpop.eup %3763  ;;  %v1438_v25 = vmul.f32 0.044715, %v1310_v30  ;;  %v1312_v2 = vmul.f32 %v1184_v38, %v4782_v17 }
 0x19c   : > { %v1439_v39 = vmul.f32 0.044715, %v1311_v19  ;;  %v1314_v26 = vmul.f32 %v1186_v50, %v4785_v21  ;;  %v4805_v8 = vpop.eup %3765  ;;  %3775 = vtanh.f32 %v1691_v12  ;;  %v1693_v16 = vmul.f32 0.7978846, %v1565_v23 }
 0x19d   : > { %v1564_v10 = vadd.f32 %v1436_v55, %v4761_v18  ;;  %v1441_v52 = vmul.f32 0.044715, %v1313_v63  ;;  %v4808_v31 = vpop.eup %3767  ;;  %v1566_v59 = vadd.f32 %v1438_v25, %v4764_v5  ;;  %v1440_v51 = vmul.f32 0.044715, %v1312_v2 }
 0x19e   : > { %v1567_v42 = vadd.f32 %v1439_v39, %v4767_v20  ;;  %v1442_v30 = vmul.f32 0.044715, %v1314_v26  ;;  %3777 = vtanh.f32 %v1693_v16  ;;  %v1020_v50 = vmul.f32 0.5, %v4452_v4  ;;  %v912_v16 = vpop.f32.mrf.mxu1 }
 0x19f   : > { %v1692_v19 = vmul.f32 0.7978846, %v1564_v10  ;;  %v1569_v38 = vadd.f32 %v1441_v52, %v4773_v14  ;;  %v4814_v12 = vpop.eup %3769  ;;  %v1694_v23 = vmul.f32 0.7978846, %v1566_v59  ;;  %v1568_v63 = vadd.f32 %v1440_v51, %v4782_v17 }
 0x1a0   : > { %v1695_v55 = vmul.f32 0.7978846, %v1567_v42  ;;  %v1570_v18 = vadd.f32 %v1442_v30, %v4785_v21  ;;  %v4818_v25 = vpop.eup %3771  ;;  %v1024_v2 = vmul.f32 0.5, %v4481_v37  ;;  %v1916_v26 = vadd.f32 1.0, %v4573_v36 }
 0x1a1   : > { %3779 = vtanh.f32 %v1692_v19  ;;  %v1697_v39 = vmul.f32 0.7978846, %v1569_v38  ;;  %v1696_v4 = vmul.f32 0.7978846, %v1568_v63  ;;  %v1920_v52 = vadd.f32 1.0, %v4599_v40  ;;  %v721_v19 = vpop.f32.mrf.mxu0 }
 0x1a2   : > { %3781 = vtanh.f32 %v1694_v23  ;;  %v1698_v10 = vmul.f32 0.7978846, %v1570_v18  ;;  %v4823_v59 = vpop.eup %3773  ;;  %v2044_v42 = vmul.f32 %v1916_v26, %v1020_v50  ;;  %v1022_v51 = vmul.f32 0.5, %v4461_v13  ;;  %v914_v23 = vpop.f32.mrf.mxu1 }
 0x1a3   : > { %3783 = vtanh.f32 %v1695_v55  ;;  %v1026_v30 = vmul.f32 0.5, %v4490_v47  ;;  %v2048_v38 = vmul.f32 %v1920_v52, %v1024_v2  ;;  %v1918_v37 = vadd.f32 1.0, %v4577_v45 }
 0x1a4   : > { %3785 = vtanh.f32 %v1697_v39  ;;  %v1922_v36 = vadd.f32 1.0, %v4614_v1  ;;  %v4830_v18 = vadd.f32 %v719_v33, %v4405_v56  ;;  %v4833_v40 = vadd.f32 %v912_v16, %v4407_v57  ;;  %v723_v39 = vpop.f32.mrf.mxu0 }
 0x1a5   : > { %3787 = vtanh.f32 %v1696_v4  ;;  %v1019_v50 = vmul.f32 0.5, %v4443_v53  ;;  %v2200_v13 = vpack.c.bf16 %v2048_v38, %v2044_v42  ;;  %v2046_v47 = vmul.f32 %v1918_v37, %v1022_v51  ;;  %v916_v51 = vpop.f32.mrf.mxu1 }
 0x1a6   : > { %6108 = vst [vmem:[#allocation45_spill] sm:$0xff] %v4830_v18  ;;  %6109 = vst [vmem:[#allocation46_spill] sm:$0xff] %v4833_v40  ;;  %3789 = vtanh.f32 %v1698_v10  ;;  %v2050_v55 = vmul.f32 %v1922_v36, %v1026_v30  ;;  %v1187_v63 = vmul.f32 %v4830_v18, %v4830_v18  ;;  %v1189_v45 = vmul.f32 %v4833_v40, %v4833_v40 }
 0x1a7   : > { %v1023_v1 = vmul.f32 0.5, %v4469_v24  ;;  %v1915_v33 = vadd.f32 1.0, %v4553_v58  ;;  %2555 = vmatprep.mubr.bf16.mxu0 %v2200_v13  ;;  %v1919_v53 = vadd.f32 1.0, %v4585_v62  ;;  %v1021_v26 = vmul.f32 0.5, %v4449_v3 }
 0x1a8   : > { %v2202_v2 = vpack.c.bf16 %v2050_v55, %v2046_v47  ;;  %v1025_v16 = vmul.f32 0.5, %v4473_v29  ;;  %v1315_v4 = vmul.f32 %v1187_v63, %v4830_v18  ;;  %v1317_v10 = vmul.f32 %v1189_v45, %v4833_v40 }
 0x1a9   : > { %v2043_v52 = vmul.f32 %v1915_v33, %v1019_v50  ;;  %v1917_v42 = vadd.f32 1.0, %v4569_v28  ;;  %v4848_v24 = vpop.eup %3775  ;;  %v2047_v58 = vmul.f32 %v1919_v53, %v1023_v1  ;;  %v1921_v30 = vadd.f32 1.0, %v4589_v7  ;;  %v725_v28 = vpop.f32.mrf.mxu0 }
 0x1aa   : > { %2716 = vmatprep.mubr.bf16.mxu1 %v2202_v2  ;;  %v4852_v62 = vadd.f32 %v721_v19, %v4409_v60  ;;  %v4855_v3 = vadd.f32 %v914_v23, %v4411_v61  ;;  %v1443_v29 = vmul.f32 0.044715, %v1315_v4  ;;  %v1445_v38 = vmul.f32 0.044715, %v1317_v10  ;;  %v918_v1 = vpop.f32.mrf.mxu1 }
 0x1ab   : > { %v2045_v37 = vmul.f32 %v1917_v42, %v1021_v26  ;;  %v4858_v36 = vadd.f32 %v723_v39, %v4405_v56  ;;  %v4860_v50 = vpop.eup %3777  ;;  %v2199_v13 = vpack.c.bf16 %v2047_v58, %v2043_v52  ;;  %v2049_v47 = vmul.f32 %v1921_v30, %v1025_v16 }
 0x1ac   : > { %6110 = vst [vmem:[#allocation47_spill] sm:$0xff] %v4855_v3  ;;  %v1188_v7 = vmul.f32 %v4852_v62, %v4852_v62  ;;  %v1190_v19 = vmul.f32 %v4855_v3, %v4855_v3  ;;  %v1571_v23 = vadd.f32 %v1443_v29, %v4830_v18  ;;  %v1573_v55 = vadd.f32 %v1445_v38, %v4833_v40  ;;  %v6117_v18 = vld [vmem:[#allocation39_spill] sm:$0xff] }
 0x1ad   : > { %6111 = vst [vmem:[#allocation48_spill] sm:$0xff] %v4858_v36  ;;  %v1191_v63 = vmul.f32 %v4858_v36, %v4858_v36  ;;  %v4871_v45 = vadd.f32 %v916_v51, %v4407_v57  ;;  %2556 = vmatmul.mubr.bf16.gmra.mxu0 %v2199_v13  ;;  %v2201_v39 = vpack.c.bf16 %v2049_v47, %v2045_v37  ;;  %v1028_v47 = vmul.f32 0.5, %v4517_v32 }
 0x1ae   : > { %v4873_v33 = vpop.eup %3779  ;;  %v1316_v2 = vmul.f32 %v1188_v7, %v4852_v62  ;;  %v1318_v53 = vmul.f32 %v1190_v19, %v4855_v3  ;;  %v4878_v26 = vadd.f32 %v725_v28, %v4409_v60  ;;  %v1699_v4 = vmul.f32 0.7978846, %v1571_v23  ;;  %v729_v7 = vpop.f32.mrf.mxu0 }
 0x1af   : > { %6112 = vst [vmem:[#allocation49_spill] sm:$0xff] %v4871_v45  ;;  %v4880_v16 = vpop.eup %3781  ;;  %v1701_v10 = vmul.f32 0.7978846, %v1573_v55  ;;  %v1319_v52 = vmul.f32 %v1191_v63, %v4858_v36  ;;  %v1193_v42 = vmul.f32 %v4871_v45, %v4871_v45  ;;  %2717 = vmatmul.mubr.bf16.gmra.mxu1 %v2201_v39  ;;  %v4890_v38 = vadd.f32 %v918_v1, %v4411_v61 }
 0x1b0   : > { %v4885_v51 = vpop.eup %3783  ;;  %v1444_v58 = vmul.f32 0.044715, %v1316_v2  ;;  %v1446_v30 = vmul.f32 0.044715, %v1318_v53  ;;  %v1192_v29 = vmul.f32 %v4878_v26, %v4878_v26  ;;  %3791 = vtanh.f32 %v1699_v4 }
 0x1b1   : > { %6113 = vst [vmem:[#allocation50_spill] sm:$0xff] %v4890_v38  ;;  %v4892_v37 = vpop.eup %3785  ;;  %v1447_v28 = vmul.f32 0.044715, %v1319_v52  ;;  %v1321_v13 = vmul.f32 %v1193_v42, %v4871_v45  ;;  %3793 = vtanh.f32 %v1701_v10  ;;  %v1194_v53 = vmul.f32 %v4890_v38, %v4890_v38 }
 0x1b2   : > { %v4896_v19 = vpop.eup %3787  ;;  %v1572_v23 = vadd.f32 %v1444_v58, %v4852_v62  ;;  %v1574_v55 = vadd.f32 %v1446_v30, %v4855_v3  ;;  %v1320_v63 = vmul.f32 %v1192_v29, %v4878_v26  ;;  %v1032_v32 = vmul.f32 0.5, %v4551_v44 }
 0x1b3   : > { %v4901_v1 = vpop.eup %3789  ;;  %v1575_v39 = vadd.f32 %v1447_v28, %v4858_v36  ;;  %v1449_v2 = vmul.f32 0.044715, %v1321_v13  ;;  %v4908_v10 = vadd.f32 %v729_v7, %v4405_v56  ;;  %v1322_v29 = vmul.f32 %v1194_v53, %v4890_v38  ;;  %v731_v53 = vpop.f32.mrf.mxu0 }
 0x1b4   : > { %v1700_v4 = vmul.f32 0.7978846, %v1572_v23  ;;  %v1702_v52 = vmul.f32 0.7978846, %v1574_v55  ;;  %v1448_v42 = vmul.f32 0.044715, %v1320_v63  ;;  %v922_v23 = vpop.f32.mrf.mxu1 }
 0x1b5   : > { %6114 = vst [vmem:[#allocation51_spill] sm:$0xff] %v4908_v10  ;;  %v1703_v58 = vmul.f32 0.7978846, %v1575_v39  ;;  %v1577_v30 = vadd.f32 %v1449_v2, %v4871_v45  ;;  %v1924_v40 = vadd.f32 1.0, %v4649_v54  ;;  %v1928_v13 = vadd.f32 1.0, %v4676_v0  ;;  %v6115_v2 = vld [vmem:[#allocation20_spill] sm:$0xff] }
 0x1b6   : > { %3795 = vtanh.f32 %v1700_v4  ;;  %v1576_v28 = vadd.f32 %v1448_v42, %v4878_v26  ;;  %v1030_v44 = vmul.f32 0.5, %v4536_v46  ;;  %v1450_v63 = vmul.f32 0.044715, %v1322_v29  ;;  %v6116_v4 = vld [vmem:[#allocation32_spill] sm:$0xff] }
 0x1b7   : > { %3797 = vtanh.f32 %v1702_v52  ;;  %v1705_v55 = vmul.f32 0.7978846, %v1577_v30  ;;  %v2052_v7 = vmul.f32 %v1924_v40, %v1028_v47  ;;  %v2056_v36 = vmul.f32 %v1928_v13, %v1032_v32  ;;  %v924_v47 = vpop.f32.mrf.mxu1  ;;  %v6119_v29 = vld [vmem:[#allocation16_spill] sm:$0xff] }
 0x1b8   : > { %3799 = vtanh.f32 %v1703_v58  ;;  %v1704_v39 = vmul.f32 0.7978846, %v1576_v28  ;;  %v1034_v45 = vmul.f32 0.5, %v6115_v2  ;;  %v1578_v54 = vadd.f32 %v1450_v63, %v4890_v38  ;;  %v6121_v63 = vld [vmem:[#allocation29_spill] sm:$0xff]  ;;  %v6122_v2 = vld [vmem:[#allocation34_spill] sm:$0xff] }
 0x1b9   : > { %3801 = vtanh.f32 %v1705_v55  ;;  %v1926_v42 = vadd.f32 1.0, %v6116_v4  ;;  %v1930_v0 = vadd.f32 1.0, %v6117_v18  ;;  %v2204_v46 = vpack.c.bf16 %v2056_v36, %v2052_v7  ;;  %v6120_v55 = vld [vmem:[#allocation18_spill] sm:$0xff]  ;;  %v926_v38 = vpop.f32.mrf.mxu1 }
 0x1ba   : > { %3803 = vtanh.f32 %v1704_v39  ;;  %v1195_v52 = vmul.f32 %v4908_v10, %v4908_v10  ;;  %v4923_v40 = vadd.f32 %v922_v23, %v4407_v57  ;;  %v1706_v32 = vmul.f32 0.7978846, %v1578_v54  ;;  %v733_v39 = vpop.f32.mrf.mxu0  ;;  %v6123_v54 = vld [vmem:[#allocation17_spill] sm:$0xff] }
 0x1bb   : > { %v2054_v58 = vmul.f32 %v1926_v42, %v1030_v44  ;;  %v2058_v30 = vmul.f32 %v1930_v0, %v1034_v45  ;;  %v1027_v28 = vmul.f32 0.5, %v6119_v29  ;;  %2563 = vmatprep.mubr.bf16.mxu0 %v2204_v46  ;;  %v1031_v36 = vmul.f32 0.5, %v6120_v55 }
 0x1bc   : > { %6118 = vst [vmem:[#allocation20_spill] sm:$0xff] %v4923_v40  ;;  %v1323_v13 = vmul.f32 %v1195_v52, %v4908_v10  ;;  %v1197_v18 = vmul.f32 %v4923_v40, %v4923_v40  ;;  %v1923_v7 = vadd.f32 1.0, %v6121_v63  ;;  %3805 = vtanh.f32 %v1706_v32  ;;  %v6125_v52 = vld [vmem:[#allocation19_spill] sm:$0xff]  ;;  %v6127_v63 = vld [vmem:[#allocation30_spill] sm:$0xff] }
 0x1bd   : > { %v2206_v23 = vpack.c.bf16 %v2058_v30, %v2054_v58  ;;  %v1927_v4 = vadd.f32 1.0, %v6122_v2  ;;  %v1029_v44 = vmul.f32 0.5, %v6123_v54  ;;  %v4933_v45 = vpop.eup %3791  ;;  %v1033_v29 = vmul.f32 0.5, %v6125_v52  ;;  %v6128_v58 = vld [vmem:[#allocation37_spill] sm:$0xff] }
 0x1be   : > { %6124 = vst [vmem:[#allocation32_spill] sm:$0xff] %v4933_v45  ;;  %v1451_v42 = vmul.f32 0.044715, %v1323_v13  ;;  %v1325_v0 = vmul.f32 %v1197_v18, %v4923_v40  ;;  %v2051_v46 = vmul.f32 %v1923_v7, %v1027_v28  ;;  %v4937_v3 = vpop.eup %3793  ;;  %v1925_v32 = vadd.f32 1.0, %v6127_v63  ;;  %v735_v7 = vpop.f32.mrf.mxu0 }
 0x1bf   : > { %6126 = vst [vmem:[#allocation39_spill] sm:$0xff] %v4937_v3  ;;  %2724 = vmatprep.mubr.bf16.mxu1 %v2206_v23  ;;  %v2055_v55 = vmul.f32 %v1927_v4, %v1031_v36  ;;  %v1929_v30 = vadd.f32 1.0, %v6128_v58  ;;  %v4942_v2 = vadd.f32 %v731_v53, %v4409_v60  ;;  %v4946_v18 = vadd.f32 %v924_v47, %v4411_v61 }
 0x1c0   : > { %v1579_v54 = vadd.f32 %v1451_v42, %v4908_v10  ;;  %v1453_v13 = vmul.f32 0.044715, %v1325_v0  ;;  %v4949_v28 = vadd.f32 %v733_v39, %v4405_v56  ;;  %v2053_v23 = vmul.f32 %v1925_v32, %v1029_v44  ;;  %v928_v0 = vpop.f32.mrf.mxu1 }
 0x1c1   : > { %6129 = vst [vmem:[#allocation16_spill] sm:$0xff] %v4942_v2  ;;  %6130 = vst [vmem:[#allocation18_spill] sm:$0xff] %v4946_v18  ;;  %v2203_v52 = vpack.c.bf16 %v2055_v55, %v2051_v46  ;;  %v2057_v36 = vmul.f32 %v1929_v30, %v1033_v29  ;;  %v1196_v4 = vmul.f32 %v4942_v2, %v4942_v2 }
 0x1c2   : > { %6131 = vst [vmem:[#allocation29_spill] sm:$0xff] %v4949_v28  ;;  %v1707_v63 = vmul.f32 0.7978846, %v1579_v54  ;;  %v1581_v53 = vadd.f32 %v1453_v13, %v4923_v40  ;;  %v1198_v42 = vmul.f32 %v4946_v18, %v4946_v18  ;;  %v1199_v47 = vmul.f32 %v4949_v28, %v4949_v28 }
 0x1c3   : > { %v4958_v58 = vpop.eup %3795  ;;  %2564 = vmatmul.mubr.bf16.gmra.mxu0 %v2203_v52  ;;  %v2205_v39 = vpack.c.bf16 %v2057_v36, %v2053_v23  ;;  %v1324_v44 = vmul.f32 %v1196_v4, %v4942_v2  ;;  %v4962_v46 = vadd.f32 %v926_v38, %v4407_v57  ;;  %v4965_v29 = vadd.f32 %v735_v7, %v4409_v60 }
 0x1c4   : > { %v4967_v55 = vpop.eup %3797  ;;  %3807 = vtanh.f32 %v1707_v63  ;;  %v1709_v32 = vmul.f32 0.7978846, %v1581_v53  ;;  %v1326_v30 = vmul.f32 %v1198_v42, %v4946_v18  ;;  %v1327_v54 = vmul.f32 %v1199_v47, %v4949_v28  ;;  %v6136_v53 = vld [vmem:[#allocation23_spill] sm:$0xff] }
 0x1c5   : > { %6132 = vst [vmem:[#allocation34_spill] sm:$0xff] %v4962_v46  ;;  %6133 = vst [vmem:[#allocation17_spill] sm:$0xff] %v4967_v55  ;;  %v4971_v13 = vpop.eup %3799  ;;  %2725 = vmatmul.mubr.bf16.gmra.mxu1 %v2205_v39  ;;  %v1452_v52 = vmul.f32 0.044715, %v1324_v44  ;;  %v1201_v23 = vmul.f32 %v4962_v46, %v4962_v46  ;;  %v1200_v38 = vmul.f32 %v4965_v29, %v4965_v29  ;;  %v1036_v42 = vmul.f32 0.5, %v6136_v53 }
 0x1c6   : > { %6134 = vst [vmem:[#allocation19_spill] sm:$0xff] %v4971_v13  ;;  %v4978_v7 = vadd.f32 %v928_v0, %v4411_v61  ;;  %v4980_v36 = vpop.eup %3801  ;;  %3809 = vtanh.f32 %v1709_v32  ;;  %v1454_v4 = vmul.f32 0.044715, %v1326_v30  ;;  %v1455_v63 = vmul.f32 0.044715, %v1327_v54  ;;  %v6138_v32 = vld [vmem:[#allocation27_spill] sm:$0xff] }
 0x1c7   : > { %6135 = vst [vmem:[#allocation30_spill] sm:$0xff] %v4980_v36  ;;  %v4983_v47 = vpop.eup %3803  ;;  %v1580_v39 = vadd.f32 %v1452_v52, %v4942_v2  ;;  %v1329_v44 = vmul.f32 %v1201_v23, %v4962_v46  ;;  %v1328_v40 = vmul.f32 %v1200_v38, %v4965_v29  ;;  %v1040_v30 = vmul.f32 0.5, %v6138_v32  ;;  %v739_v2 = vpop.f32.mrf.mxu0 }
 0x1c8   : > { %6137 = vst [vmem:[#allocation37_spill] sm:$0xff] %v4983_v47  ;;  %v1202_v10 = vmul.f32 %v4978_v7, %v4978_v7  ;;  %v1582_v0 = vadd.f32 %v1454_v4, %v4946_v18  ;;  %v1583_v36 = vadd.f32 %v1455_v63, %v4949_v28  ;;  %v1932_v54 = vadd.f32 1.0, %v4723_v48  ;;  %v932_v48 = vpop.f32.mrf.mxu1 }
 0x1c9   : > { %v1708_v53 = vmul.f32 0.7978846, %v1580_v39  ;;  %v1457_v3 = vmul.f32 0.044715, %v1329_v44  ;;  %v1456_v13 = vmul.f32 0.044715, %v1328_v40  ;;  %v4995_v23 = vpop.eup %3805 }
 0x1ca   : > { %v1330_v52 = vmul.f32 %v1202_v10, %v4978_v7  ;;  %v1710_v38 = vmul.f32 0.7978846, %v1582_v0  ;;  %v1711_v45 = vmul.f32 0.7978846, %v1583_v36  ;;  %v1936_v55 = vadd.f32 1.0, %v4740_v22  ;;  %v6139_v40 = vld [vmem:[#allocation24_spill] sm:$0xff]  ;;  %v741_v22 = vpop.f32.mrf.mxu0 }
 0x1cb   : > { %v2060_v47 = vmul.f32 %v1932_v54, %v1036_v42  ;;  %3811 = vtanh.f32 %v1708_v53  ;;  %v1585_v4 = vadd.f32 %v1457_v3, %v4962_v46  ;;  %v1584_v63 = vadd.f32 %v1456_v13, %v4965_v29  ;;  %v6140_v10 = vld [vmem:[#allocation28_spill] sm:$0xff]  ;;  %v6143_v53 = vld [vmem:[#allocation21_spill] sm:$0xff] }
 0x1cc   : > { %v1458_v32 = vmul.f32 0.044715, %v1330_v52  ;;  %3813 = vtanh.f32 %v1710_v38  ;;  %v2064_v39 = vmul.f32 %v1936_v55, %v1040_v30  ;;  %v1038_v44 = vmul.f32 0.5, %v6139_v40  ;;  %v934_v52 = vpop.f32.mrf.mxu1 }
 0x1cd   : > { %v1042_v28 = vmul.f32 0.5, %v6140_v10  ;;  %3815 = vtanh.f32 %v1711_v45  ;;  %v1713_v18 = vmul.f32 0.7978846, %v1585_v4  ;;  %v1712_v0 = vmul.f32 0.7978846, %v1584_v63  ;;  %v6145_v63 = vld [vmem:[#allocation40_spill] sm:$0xff] }
 0x1ce   : > { %v1586_v36 = vadd.f32 %v1458_v32, %v4978_v7  ;;  %v2208_v42 = vpack.c.bf16 %v2064_v39, %v2060_v47  ;;  %v1934_v54 = vadd.f32 1.0, %v4730_v27  ;;  %v1938_v3 = vadd.f32 1.0, %v4752_v41 }
 0x1cf   : > { %v5006_v13 = vadd.f32 %v739_v2, %v4405_v56  ;;  %3817 = vtanh.f32 %v1713_v18  ;;  %v5009_v30 = vadd.f32 %v932_v48, %v4407_v57  ;;  %v1035_v45 = vmul.f32 0.5, %v6143_v53  ;;  %v6144_v2 = vld [vmem:[#allocation25_spill] sm:$0xff]  ;;  %v743_v48 = vpop.f32.mrf.mxu0 }
 0x1d0   : > { %v1714_v55 = vmul.f32 0.7978846, %v1586_v36  ;;  %3819 = vtanh.f32 %v1712_v0  ;;  %2571 = vmatprep.mubr.bf16.mxu0 %v2208_v42  ;;  %v2062_v38 = vmul.f32 %v1934_v54, %v1038_v44  ;;  %v2066_v4 = vmul.f32 %v1938_v3, %v1042_v28  ;;  %v6146_v28 = vld [vmem:[#allocation22_spill] sm:$0xff] }
 0x1d1   : > { %6141 = vst [vmem:[#allocation23_spill] sm:$0xff] %v5006_v13  ;;  %6142 = vst [vmem:[#allocation27_spill] sm:$0xff] %v5009_v30  ;;  %v1203_v27 = vmul.f32 %v5006_v13, %v5006_v13  ;;  %v5014_v47 = vpop.eup %3807  ;;  %v1205_v41 = vmul.f32 %v5009_v30, %v5009_v30  ;;  %v1039_v18 = vmul.f32 0.5, %v6144_v2  ;;  %v1931_v32 = vadd.f32 1.0, %v6145_v63  ;;  %v6148_v54 = vld [vmem:[#allocation26_spill] sm:$0xff]  ;;  %v936_v2 = vpop.f32.mrf.mxu1 }
 0x1d2   : > { %3821 = vtanh.f32 %v1714_v55  ;;  %v2210_v39 = vpack.c.bf16 %v2066_v4, %v2062_v38  ;;  %v1935_v44 = vadd.f32 1.0, %v4734_v6  ;;  %v1037_v10 = vmul.f32 0.5, %v6146_v28  ;;  %v6149_v55 = vld [vmem:[#allocation41_spill] sm:$0xff] }
 0x1d3   : > { %v1331_v40 = vmul.f32 %v1203_v27, %v5006_v13  ;;  %v5023_v0 = vpop.eup %3809  ;;  %v1333_v36 = vmul.f32 %v1205_v41, %v5009_v30  ;;  %v2059_v42 = vmul.f32 %v1931_v32, %v1035_v45  ;;  %v1041_v3 = vmul.f32 0.5, %v6148_v54  ;;  %v745_v41 = vpop.f32.mrf.mxu0 }
 0x1d4   : > { %6147 = vst [vmem:[#allocation24_spill] sm:$0xff] %v5023_v0  ;;  %v1933_v53 = vadd.f32 1.0, %v6149_v55  ;;  %2732 = vmatprep.mubr.bf16.mxu1 %v2210_v39  ;;  %v2063_v46 = vmul.f32 %v1935_v44, %v1039_v18  ;;  %v1937_v38 = vadd.f32 1.0, %v4737_v34  ;;  %v5030_v4 = vadd.f32 %v741_v22, %v4409_v60 }
 0x1d5   : > { %v1459_v63 = vmul.f32 0.044715, %v1331_v40  ;;  %v1461_v6 = vmul.f32 0.044715, %v1333_v36  ;;  %v5033_v28 = vadd.f32 %v934_v52, %v4411_v61  ;;  %v5036_v45 = vadd.f32 %v743_v48, %v4405_v56  ;;  %v938_v48 = vpop.f32.mrf.mxu1 }
 0x1d6   : > { %6150 = vst [vmem:[#allocation28_spill] sm:$0xff] %v5030_v4  ;;  %v2061_v27 = vmul.f32 %v1933_v53, %v1037_v10  ;;  %v2207_v54 = vpack.c.bf16 %v2063_v46, %v2059_v42  ;;  %v2065_v39 = vmul.f32 %v1937_v38, %v1041_v3  ;;  %v1204_v18 = vmul.f32 %v5030_v4, %v5030_v4 }
 0x1d7   : > { %6151 = vst [vmem:[#allocation21_spill] sm:$0xff] %v5033_v28  ;;  %6152 = vst [vmem:[#allocation25_spill] sm:$0xff] %v5036_v45  ;;  %v1587_v32 = vadd.f32 %v1459_v63, %v5006_v13  ;;  %v1589_v34 = vadd.f32 %v1461_v6, %v5009_v30  ;;  %v1206_v22 = vmul.f32 %v5033_v28, %v5033_v28  ;;  %v1940_v13 = vadd.f32 1.0, %v4801_v9 }
 0x1d8   : > { %v1207_v52 = vmul.f32 %v5036_v45, %v5036_v45  ;;  %v5047_v40 = vadd.f32 %v936_v2, %v4407_v57  ;;  %v5049_v44 = vpop.eup %3811  ;;  %2572 = vmatmul.mubr.bf16.gmra.mxu0 %v2207_v54  ;;  %v2209_v46 = vpack.c.bf16 %v2065_v39, %v2061_v27  ;;  %v1332_v36 = vmul.f32 %v1204_v18, %v5030_v4 }
 0x1d9   : > { %v1715_v10 = vmul.f32 0.7978846, %v1587_v32  ;;  %v5053_v42 = vadd.f32 %v745_v41, %v4409_v60  ;;  %v5055_v3 = vpop.eup %3813  ;;  %v1717_v55 = vmul.f32 0.7978846, %v1589_v34  ;;  %v1334_v53 = vmul.f32 %v1206_v22, %v5033_v28 }
 0x1da   : > { %v1335_v63 = vmul.f32 %v1207_v52, %v5036_v45  ;;  %v1209_v2 = vmul.f32 %v5047_v40, %v5047_v40  ;;  %v5061_v38 = vpop.eup %3815  ;;  %2733 = vmatmul.mubr.bf16.gmra.mxu1 %v2209_v46  ;;  %v1460_v6 = vmul.f32 0.044715, %v1332_v36  ;;  %v5066_v41 = vadd.f32 %v938_v48, %v4411_v61 }
 0x1db   : > { %3823 = vtanh.f32 %v1715_v10  ;;  %v1208_v27 = vmul.f32 %v5053_v42, %v5053_v42  ;;  %v1462_v32 = vmul.f32 0.044715, %v1334_v53  ;;  %v6154_v10 = vld [vmem:[#allocation35_spill] sm:$0xff] }
 0x1dc   : > { %3825 = vtanh.f32 %v1717_v55  ;;  %v1463_v54 = vmul.f32 0.044715, %v1335_v63  ;;  %v1337_v39 = vmul.f32 %v1209_v2, %v5047_v40  ;;  %v5069_v18 = vpop.eup %3817  ;;  %v1588_v34 = vadd.f32 %v1460_v6, %v5030_v4  ;;  %v749_v4 = vpop.f32.mrf.mxu0 }
 0x1dd   : > { %6153 = vst [vmem:[#allocation40_spill] sm:$0xff] %v5069_v18  ;;  %v1336_v22 = vmul.f32 %v1208_v27, %v5053_v42  ;;  %v1210_v52 = vmul.f32 %v5066_v41, %v5066_v41  ;;  %v1044_v46 = vmul.f32 0.5, %v6154_v10  ;;  %v5076_v36 = vpop.eup %3819  ;;  %v1590_v48 = vadd.f32 %v1462_v32, %v5033_v28  ;;  %v6155_v28 = vld [vmem:[#allocation36_spill] sm:$0xff] }
 0x1de   : > { %v1591_v55 = vadd.f32 %v1463_v54, %v5036_v45  ;;  %v1465_v53 = vmul.f32 0.044715, %v1337_v39  ;;  %v1048_v63 = vmul.f32 0.5, %v4699_v35  ;;  %v1716_v30 = vmul.f32 0.7978846, %v1588_v34  ;;  %v942_v45 = vpop.f32.mrf.mxu1 }
 0x1df   : > { %v5081_v2 = vpop.eup %3821  ;;  %v1464_v6 = vmul.f32 0.044715, %v1336_v22  ;;  %v1338_v27 = vmul.f32 %v1210_v52, %v5066_v41  ;;  %v1718_v18 = vmul.f32 0.7978846, %v1590_v48  ;;  %v1944_v32 = vadd.f32 1.0, %v4818_v25 }
 0x1e0   : > { %v1719_v10 = vmul.f32 0.7978846, %v1591_v55  ;;  %v1593_v0 = vadd.f32 %v1465_v53, %v5047_v40  ;;  %3827 = vtanh.f32 %v1716_v30  ;;  %v2068_v35 = vmul.f32 %v1940_v13, %v1044_v46  ;;  %v751_v53 = vpop.f32.mrf.mxu0 }
 0x1e1   : > { %v1592_v54 = vadd.f32 %v1464_v6, %v5053_v42  ;;  %v1466_v39 = vmul.f32 0.044715, %v1338_v27  ;;  %3829 = vtanh.f32 %v1718_v18  ;;  %v2072_v22 = vmul.f32 %v1944_v32, %v1048_v63  ;;  %v944_v18 = vpop.f32.mrf.mxu1 }
 0x1e2   : > { %v1721_v34 = vmul.f32 0.7978846, %v1593_v0  ;;  %v1046_v52 = vmul.f32 0.5, %v6155_v28  ;;  %3831 = vtanh.f32 %v1719_v10  ;;  %v1050_v55 = vmul.f32 0.5, %v4707_v15  ;;  %v6158_v15 = vld [vmem:[#allocation31_spill] sm:$0xff]  ;;  %v6159_v10 = vld [vmem:[#allocation38_spill] sm:$0xff] }
 0x1e3   : > { %v1720_v9 = vmul.f32 0.7978846, %v1592_v54  ;;  %v1594_v48 = vadd.f32 %v1466_v39, %v5066_v41  ;;  %v2212_v25 = vpack.c.bf16 %v2072_v22, %v2068_v35  ;;  %v1942_v30 = vadd.f32 1.0, %v4805_v8  ;;  %v753_v54 = vpop.f32.mrf.mxu0 }
 0x1e4   : > { %3833 = vtanh.f32 %v1721_v34  ;;  %v1946_v6 = vadd.f32 1.0, %v4823_v59  ;;  %v5094_v0 = vadd.f32 %v749_v4, %v4405_v56  ;;  %v5097_v28 = vadd.f32 %v942_v45, %v4407_v57  ;;  %v6160_v34 = vld [vmem:[#allocation33_spill] sm:$0xff] }
 0x1e5   : > { %3835 = vtanh.f32 %v1720_v9  ;;  %v1722_v13 = vmul.f32 0.7978846, %v1594_v48  ;;  %2579 = vmatprep.mubr.bf16.mxu0 %v2212_v25  ;;  %v2070_v46 = vmul.f32 %v1942_v30, %v1046_v52  ;;  %v1043_v27 = vmul.f32 0.5, %v6158_v15 }
 0x1e6   : > { %6156 = vst [vmem:[#allocation22_spill] sm:$0xff] %v5094_v0  ;;  %6157 = vst [vmem:[#allocation26_spill] sm:$0xff] %v5097_v28  ;;  %v2074_v63 = vmul.f32 %v1946_v6, %v1050_v55  ;;  %v1047_v32 = vmul.f32 0.5, %v6159_v10  ;;  %v1211_v8 = vmul.f32 %v5094_v0, %v5094_v0  ;;  %v1213_v59 = vmul.f32 %v5097_v28, %v5097_v28 }
 0x1e7   : > { %3837 = vtanh.f32 %v1722_v13  ;;  %v1939_v4 = vadd.f32 1.0, %v4775_v43  ;;  %v1943_v35 = vadd.f32 1.0, %v4808_v31  ;;  %v1045_v22 = vmul.f32 0.5, %v6160_v34  ;;  %v946_v43 = vpop.f32.mrf.mxu1 }
 0x1e8   : > { %v5106_v45 = vpop.eup %3823  ;;  %v2214_v39 = vpack.c.bf16 %v2074_v63, %v2070_v46  ;;  %v1049_v52 = vmul.f32 0.5, %v4693_v49  ;;  %v1339_v48 = vmul.f32 %v1211_v8, %v5094_v0  ;;  %v1341_v55 = vmul.f32 %v1213_v59, %v5097_v28 }
 0x1e9   : > { %v5111_v9 = vpop.eup %3825  ;;  %v2067_v25 = vmul.f32 %v1939_v4, %v1043_v27  ;;  %v1941_v30 = vadd.f32 1.0, %v4797_v11  ;;  %v2071_v6 = vmul.f32 %v1943_v35, %v1047_v32  ;;  %v1945_v13 = vadd.f32 1.0, %v4814_v12  ;;  %v755_v27 = vpop.f32.mrf.mxu0 }
 0x1ea   : > { %2740 = vmatprep.mubr.bf16.mxu1 %v2214_v39  ;;  %v5118_v31 = vadd.f32 %v751_v53, %v4409_v60  ;;  %v5121_v46 = vadd.f32 %v944_v18, %v4411_v61  ;;  %v1467_v49 = vmul.f32 0.044715, %v1339_v48  ;;  %v1469_v63 = vmul.f32 0.044715, %v1341_v55 }
 0x1eb   : > { %v2069_v15 = vmul.f32 %v1941_v30, %v1045_v22  ;;  %v5124_v10 = vadd.f32 %v753_v54, %v4405_v56  ;;  %v2211_v8 = vpack.c.bf16 %v2071_v6, %v2067_v25  ;;  %v2073_v11 = vmul.f32 %v1945_v13, %v1049_v52  ;;  %v948_v54 = vpop.f32.mrf.mxu1 }
 0x1ec   : > { %6161 = vst [vmem:[#allocation41_spill] sm:$0xff] %v5121_v46  ;;  %v1212_v32 = vmul.f32 %v5118_v31, %v5118_v31  ;;  %v1214_v12 = vmul.f32 %v5121_v46, %v5121_v46  ;;  %v1595_v53 = vadd.f32 %v1467_v49, %v5094_v0  ;;  %v1597_v18 = vadd.f32 %v1469_v63, %v5097_v28 }
 0x1ed   : > { %6162 = vst [vmem:[#allocation35_spill] sm:$0xff] %v5124_v10  ;;  %v1215_v59 = vmul.f32 %v5124_v10, %v5124_v10  ;;  %v5135_v4 = vadd.f32 %v946_v43, %v4407_v57  ;;  %v5137_v39 = vpop.eup %3827  ;;  %2580 = vmatmul.mubr.bf16.gmra.mxu0 %v2211_v8  ;;  %v2213_v35 = vpack.c.bf16 %v2073_v11, %v2069_v15 }
 0x1ee   : > { %v1340_v34 = vmul.f32 %v1212_v32, %v5118_v31  ;;  %v1342_v22 = vmul.f32 %v1214_v12, %v5121_v46  ;;  %v5142_v52 = vadd.f32 %v755_v27, %v4409_v60  ;;  %v5144_v48 = vpop.eup %3829  ;;  %v1723_v55 = vmul.f32 0.7978846, %v1595_v53  ;;  %v6163_v32 = vld [vmem:[#allocation44_spill] sm:$0xff]  ;;  %v759_v53 = vpop.f32.mrf.mxu0 }
 0x1ef   : > { %v1725_v25 = vmul.f32 0.7978846, %v1597_v18  ;;  %v1343_v30 = vmul.f32 %v1215_v59, %v5124_v10  ;;  %v1217_v43 = vmul.f32 %v5135_v4, %v5135_v4  ;;  %v5149_v6 = vpop.eup %3831  ;;  %2741 = vmatmul.mubr.bf16.gmra.mxu1 %v2213_v35  ;;  %v5154_v15 = vadd.f32 %v948_v54, %v4411_v61 }
 0x1f0   : > { %v1468_v13 = vmul.f32 0.044715, %v1340_v34  ;;  %v1470_v49 = vmul.f32 0.044715, %v1342_v22  ;;  %v1216_v63 = vmul.f32 %v5142_v52, %v5142_v52  ;;  %3839 = vtanh.f32 %v1723_v55 }
 0x1f1   : > { %v5156_v27 = vpop.eup %3833  ;;  %v1471_v8 = vmul.f32 0.044715, %v1343_v30  ;;  %v1345_v11 = vmul.f32 %v1217_v43, %v5135_v4  ;;  %v1052_v12 = vmul.f32 0.5, %v6163_v32  ;;  %3841 = vtanh.f32 %v1725_v25 }
 0x1f2   : > { %v5160_v18 = vpop.eup %3835  ;;  %v1596_v59 = vadd.f32 %v1468_v13, %v5118_v31  ;;  %v1598_v35 = vadd.f32 %v1470_v49, %v5121_v46  ;;  %v1344_v34 = vmul.f32 %v1216_v63, %v5142_v52  ;;  %v1218_v55 = vmul.f32 %v5154_v15, %v5154_v15 }
 0x1f3   : > { %v1599_v54 = vadd.f32 %v1471_v8, %v5124_v10  ;;  %v1473_v22 = vmul.f32 0.044715, %v1345_v11  ;;  %v1056_v30 = vmul.f32 0.5, %v4782_v17  ;;  %v5172_v25 = vadd.f32 %v759_v53, %v4405_v56 }
 0x1f4   : > { %v5169_v43 = vpop.eup %3837  ;;  %v1724_v32 = vmul.f32 0.7978846, %v1596_v59  ;;  %v1726_v28 = vmul.f32 0.7978846, %v1598_v35  ;;  %v1472_v0 = vmul.f32 0.044715, %v1344_v34  ;;  %v1346_v63 = vmul.f32 %v1218_v55, %v5154_v15  ;;  %v952_v59 = vpop.f32.mrf.mxu1 }
 0x1f5   : > { %6164 = vst [vmem:[#allocation36_spill] sm:$0xff] %v5172_v25  ;;  %v1727_v13 = vmul.f32 0.7978846, %v1599_v54  ;;  %v1601_v49 = vadd.f32 %v1473_v22, %v5135_v4  ;;  %v1948_v8 = vadd.f32 1.0, %v4873_v33  ;;  %v1952_v17 = vadd.f32 1.0, %v4896_v19  ;;  %v761_v55 = vpop.f32.mrf.mxu0 }
 0x1f6   : > { %3843 = vtanh.f32 %v1724_v32  ;;  %v1600_v11 = vadd.f32 %v1472_v0, %v5142_v52  ;;  %v1054_v10 = vmul.f32 0.5, %v4764_v5  ;;  %v1474_v34 = vmul.f32 0.044715, %v1346_v63  ;;  %v954_v32 = vpop.f32.mrf.mxu1 }
 0x1f7   : > { %3845 = vtanh.f32 %v1726_v28  ;;  %v1729_v35 = vmul.f32 0.7978846, %v1601_v49  ;;  %v2076_v53 = vmul.f32 %v1948_v8, %v1052_v12  ;;  %v2080_v46 = vmul.f32 %v1952_v17, %v1056_v30  ;;  %v6166_v49 = vld [vmem:[#allocation42_spill] sm:$0xff] }
 0x1f8   : > { %3847 = vtanh.f32 %v1727_v13  ;;  %v1728_v54 = vmul.f32 0.7978846, %v1600_v11  ;;  %v1058_v22 = vmul.f32 0.5, %v4785_v21  ;;  %v1602_v33 = vadd.f32 %v1474_v34, %v5154_v15  ;;  %v763_v11 = vpop.f32.mrf.mxu0 }
 0x1f9   : > { %3849 = vtanh.f32 %v1729_v35  ;;  %v1950_v0 = vadd.f32 1.0, %v4880_v16  ;;  %v1954_v19 = vadd.f32 1.0, %v4901_v1  ;;  %v2216_v5 = vpack.c.bf16 %v2080_v46, %v2076_v53  ;;  %v6167_v35 = vld [vmem:[#allocation43_spill] sm:$0xff] }
 0x1fa   : > { %3851 = vtanh.f32 %v1728_v54  ;;  %v1219_v28 = vmul.f32 %v5172_v25, %v5172_v25  ;;  %v5187_v12 = vadd.f32 %v952_v59, %v4407_v57  ;;  %v1730_v30 = vmul.f32 0.7978846, %v1602_v33 }
 0x1fb   : > { %v2078_v13 = vmul.f32 %v1950_v0, %v1054_v10  ;;  %v2082_v21 = vmul.f32 %v1954_v19, %v1058_v22  ;;  %v1051_v63 = vmul.f32 0.5, %v6166_v49  ;;  %2587 = vmatprep.mubr.bf16.mxu0 %v2216_v5  ;;  %v1055_v1 = vmul.f32 0.5, %v4767_v20  ;;  %v956_v0 = vpop.f32.mrf.mxu1 }
 0x1fc   : > { %6165 = vst [vmem:[#allocation31_spill] sm:$0xff] %v5187_v12  ;;  %v1347_v8 = vmul.f32 %v1219_v28, %v5172_v25  ;;  %v1221_v16 = vmul.f32 %v5187_v12, %v5187_v12  ;;  %v1947_v46 = vadd.f32 1.0, %v4848_v24  ;;  %3853 = vtanh.f32 %v1730_v30 }
 0x1fd   : > { %v2218_v17 = vpack.c.bf16 %v2082_v21, %v2078_v13  ;;  %v1951_v59 = vadd.f32 1.0, %v4885_v51  ;;  %v1053_v10 = vmul.f32 0.5, %v6167_v35  ;;  %v5197_v34 = vpop.eup %3839  ;;  %v1057_v33 = vmul.f32 0.5, %v4773_v14  ;;  %v765_v21 = vpop.f32.mrf.mxu0 }
 0x1fe   : > { %v1475_v53 = vmul.f32 0.044715, %v1347_v8  ;;  %v1349_v54 = vmul.f32 %v1221_v16, %v5187_v12  ;;  %v2075_v22 = vmul.f32 %v1947_v46, %v1051_v63  ;;  %v5201_v19 = vpop.eup %3841  ;;  %v1949_v24 = vadd.f32 1.0, %v4860_v50 }
 0x1ff   : > { %2748 = vmatprep.mubr.bf16.mxu1 %v2218_v17  ;;  %v2079_v20 = vmul.f32 %v1951_v59, %v1055_v1  ;;  %v1953_v5 = vadd.f32 1.0, %v4892_v37  ;;  %v5206_v51 = vadd.f32 %v761_v55, %v4409_v60  ;;  %v5210_v13 = vadd.f32 %v954_v32, %v4411_v61  ;;  %v958_v1 = vpop.f32.mrf.mxu1 }
 0x200   : > { %v1603_v28 = vadd.f32 %v1475_v53, %v5172_v25  ;;  %v1477_v30 = vmul.f32 0.044715, %v1349_v54  ;;  %v5213_v14 = vadd.f32 %v763_v11, %v4405_v56  ;;  %v2077_v63 = vmul.f32 %v1949_v24, %v1053_v10 }
 0x201   : > { %6168 = vst [vmem:[#allocation38_spill] sm:$0xff] %v5206_v51  ;;  %6169 = vst [vmem:[#allocation33_spill] sm:$0xff] %v5210_v13  ;;  %v2215_v49 = vpack.c.bf16 %v2079_v20, %v2075_v22  ;;  %v2081_v8 = vmul.f32 %v1953_v5, %v1057_v33  ;;  %v1220_v50 = vmul.f32 %v5206_v51, %v5206_v51 }
 0x202   : > { %6170 = vst [vmem:[#allocation44_spill] sm:$0xff] %v5213_v14  ;;  %v1731_v37 = vmul.f32 0.7978846, %v1603_v28  ;;  %v1605_v55 = vadd.f32 %v1477_v30, %v5187_v12  ;;  %v1222_v16 = vmul.f32 %v5210_v13, %v5210_v13  ;;  %v1223_v32 = vmul.f32 %v5213_v14, %v5213_v14  ;;  %v6174_v12 = vld [vmem:[#allocation37_spill] sm:$0xff] }
 0x203   : > { %v5222_v46 = vpop.eup %3843  ;;  %2588 = vmatmul.mubr.bf16.gmra.mxu0 %v2215_v49  ;;  %v2217_v11 = vpack.c.bf16 %v2081_v8, %v2077_v63  ;;  %v1348_v17 = vmul.f32 %v1220_v50, %v5206_v51  ;;  %v5226_v59 = vadd.f32 %v956_v0, %v4407_v57  ;;  %v5229_v35 = vadd.f32 %v765_v21, %v4409_v60 }
 0x204   : > { %v5231_v10 = vpop.eup %3845  ;;  %3855 = vtanh.f32 %v1731_v37  ;;  %v1733_v53 = vmul.f32 0.7978846, %v1605_v55  ;;  %v1350_v54 = vmul.f32 %v1222_v16, %v5210_v13  ;;  %v1351_v22 = vmul.f32 %v1223_v32, %v5213_v14 }
 0x205   : > { %6171 = vst [vmem:[#allocation42_spill] sm:$0xff] %v5226_v59  ;;  %6172 = vst [vmem:[#allocation43_spill] sm:$0xff] %v5229_v35  ;;  %v5235_v33 = vpop.eup %3847  ;;  %2749 = vmatmul.mubr.bf16.gmra.mxu1 %v2217_v11  ;;  %v1476_v20 = vmul.f32 0.044715, %v1348_v17  ;;  %v1225_v24 = vmul.f32 %v5226_v59, %v5226_v59  ;;  %v1224_v0 = vmul.f32 %v5229_v35, %v5229_v35  ;;  %v1060_v49 = vmul.f32 0.5, %v4852_v62 }
 0x206   : > { %v5242_v5 = vadd.f32 %v958_v1, %v4411_v61  ;;  %v5244_v28 = vpop.eup %3849  ;;  %3857 = vtanh.f32 %v1733_v53  ;;  %v1478_v30 = vmul.f32 0.044715, %v1350_v54  ;;  %v1479_v21 = vmul.f32 0.044715, %v1351_v22  ;;  %v769_v22 = vpop.f32.mrf.mxu0 }
 0x207   : > { %v5247_v63 = vpop.eup %3851  ;;  %v1604_v8 = vadd.f32 %v1476_v20, %v5206_v51  ;;  %v1353_v50 = vmul.f32 %v1225_v24, %v5226_v59  ;;  %v1352_v37 = vmul.f32 %v1224_v0, %v5229_v35  ;;  %v1064_v1 = vmul.f32 0.5, %v4878_v26 }
 0x208   : > { %6173 = vst [vmem:[#allocation52_spill] sm:$0xff] %v5242_v5  ;;  %v1226_v55 = vmul.f32 %v5242_v5, %v5242_v5  ;;  %v1606_v16 = vadd.f32 %v1478_v30, %v5210_v13  ;;  %v1607_v32 = vadd.f32 %v1479_v21, %v5213_v14  ;;  %v1956_v11 = vadd.f32 1.0, %v4958_v58  ;;  %v962_v58 = vpop.f32.mrf.mxu1 }
 0x209   : > { %v1732_v62 = vmul.f32 0.7978846, %v1604_v8  ;;  %v1481_v17 = vmul.f32 0.044715, %v1353_v50  ;;  %v1480_v53 = vmul.f32 0.044715, %v1352_v37  ;;  %v5259_v20 = vpop.eup %3853 }
 0x20a   : > { %v1354_v54 = vmul.f32 %v1226_v55, %v5242_v5  ;;  %v1734_v24 = vmul.f32 0.7978846, %v1606_v16  ;;  %v1735_v0 = vmul.f32 0.7978846, %v1607_v32  ;;  %v1960_v25 = vadd.f32 1.0, %v6174_v12  ;;  %v6175_v50 = vld [vmem:[#allocation47_spill] sm:$0xff]  ;;  %v771_v12 = vpop.f32.mrf.mxu0 }
 0x20b   : > { %v2084_v51 = vmul.f32 %v1956_v11, %v1060_v49  ;;  %3859 = vtanh.f32 %v1732_v62  ;;  %v1609_v30 = vadd.f32 %v1481_v17, %v5226_v59  ;;  %v1608_v26 = vadd.f32 %v1480_v53, %v5229_v35  ;;  %v6176_v55 = vld [vmem:[#allocation50_spill] sm:$0xff]  ;;  %v6177_v11 = vld [vmem:[#allocation17_spill] sm:$0xff] }
 0x20c   : > { %v1482_v21 = vmul.f32 0.044715, %v1354_v54  ;;  %3861 = vtanh.f32 %v1734_v24  ;;  %v2088_v8 = vmul.f32 %v1960_v25, %v1064_v1  ;;  %v1062_v37 = vmul.f32 0.5, %v6175_v50  ;;  %v964_v54 = vpop.f32.mrf.mxu1  ;;  %v773_v50 = vpop.f32.mrf.mxu0 }
 0x20d   : > { %v1066_v14 = vmul.f32 0.5, %v6176_v55  ;;  %3863 = vtanh.f32 %v1735_v0  ;;  %v1737_v13 = vmul.f32 0.7978846, %v1609_v30  ;;  %v1736_v16 = vmul.f32 0.7978846, %v1608_v26 }
 0x20e   : > { %v1610_v32 = vadd.f32 %v1482_v21, %v5242_v5  ;;  %v2220_v49 = vpack.c.bf16 %v2088_v8, %v2084_v51  ;;  %v1958_v62 = vadd.f32 1.0, %v6177_v11  ;;  %v1962_v17 = vadd.f32 1.0, %v4995_v23  ;;  %v6180_v51 = vld [vmem:[#allocation45_spill] sm:$0xff]  ;;  %v6183_v8 = vld [vmem:[#allocation32_spill] sm:$0xff] }
 0x20f   : > { %v5270_v53 = vadd.f32 %v769_v22, %v4405_v56  ;;  %3865 = vtanh.f32 %v1737_v13  ;;  %v5273_v1 = vadd.f32 %v962_v58, %v4407_v57  ;;  %v1059_v26 = vmul.f32 0.5, %v6180_v51  ;;  %v6182_v13 = vld [vmem:[#allocation48_spill] sm:$0xff]  ;;  %v6187_v51 = vld [vmem:[#allocation49_spill] sm:$0xff] }
 0x210   : > { %v1738_v25 = vmul.f32 0.7978846, %v1610_v32  ;;  %2595 = vmatprep.mubr.bf16.mxu0 %v2220_v49  ;;  %v2086_v24 = vmul.f32 %v1958_v62, %v1062_v37  ;;  %v2090_v0 = vmul.f32 %v1962_v17, %v1066_v14  ;;  %3867 = vtanh.f32 %v1736_v16  ;;  %v6184_v14 = vld [vmem:[#allocation19_spill] sm:$0xff]  ;;  %v6185_v49 = vld [vmem:[#allocation46_spill] sm:$0xff] }
 0x211   : > { %6178 = vst [vmem:[#allocation37_spill] sm:$0xff] %v5270_v53  ;;  %6179 = vst [vmem:[#allocation47_spill] sm:$0xff] %v5273_v1  ;;  %v1227_v30 = vmul.f32 %v5270_v53, %v5270_v53  ;;  %v5278_v21 = vpop.eup %3855  ;;  %v1229_v23 = vmul.f32 %v5273_v1, %v5273_v1  ;;  %v1063_v22 = vmul.f32 0.5, %v6182_v13  ;;  %v1955_v58 = vadd.f32 1.0, %v6183_v8  ;;  %v966_v13 = vpop.f32.mrf.mxu1 }
 0x212   : > { %6181 = vst [vmem:[#allocation50_spill] sm:$0xff] %v5278_v21  ;;  %v2222_v55 = vpack.c.bf16 %v2090_v0, %v2086_v24  ;;  %v1959_v32 = vadd.f32 1.0, %v6184_v14  ;;  %v1061_v11 = vmul.f32 0.5, %v6185_v49  ;;  %v1065_v59 = vmul.f32 0.5, %v6187_v51  ;;  %v6188_v21 = vld [vmem:[#allocation39_spill] sm:$0xff]  ;;  %v6189_v24 = vld [vmem:[#allocation30_spill] sm:$0xff] }
 0x213   : > { %v1355_v37 = vmul.f32 %v1227_v30, %v5270_v53  ;;  %v5287_v62 = vpop.eup %3857  ;;  %v1357_v17 = vmul.f32 %v1229_v23, %v5273_v1  ;;  %v2083_v16 = vmul.f32 %v1955_v58, %v1059_v26  ;;  %v1957_v5 = vadd.f32 1.0, %v6188_v21  ;;  %v775_v23 = vpop.f32.mrf.mxu0 }
 0x214   : > { %6186 = vst [vmem:[#allocation17_spill] sm:$0xff] %v5287_v62  ;;  %2756 = vmatprep.mubr.bf16.mxu1 %v2222_v55  ;;  %v2087_v35 = vmul.f32 %v1959_v32, %v1063_v22  ;;  %v1961_v0 = vadd.f32 1.0, %v6189_v24  ;;  %v5294_v30 = vadd.f32 %v771_v12, %v4409_v60  ;;  %v5297_v62 = vadd.f32 %v964_v54, %v4411_v61 }
 0x215   : > { %v1483_v8 = vmul.f32 0.044715, %v1355_v37  ;;  %v1485_v14 = vmul.f32 0.044715, %v1357_v17  ;;  %v2085_v49 = vmul.f32 %v1957_v5, %v1061_v11  ;;  %v5300_v26 = vadd.f32 %v773_v50, %v4405_v56  ;;  %v968_v50 = vpop.f32.mrf.mxu1 }
 0x216   : > { %6190 = vst [vmem:[#allocation45_spill] sm:$0xff] %v5294_v30  ;;  %6191 = vst [vmem:[#allocation48_spill] sm:$0xff] %v5297_v62  ;;  %v2219_v58 = vpack.c.bf16 %v2087_v35, %v2083_v16  ;;  %v2089_v55 = vmul.f32 %v1961_v0, %v1065_v59  ;;  %v1228_v22 = vmul.f32 %v5294_v30, %v5294_v30  ;;  %3869 = vtanh.f32 %v1738_v25 }
 0x217   : > { %6192 = vst [vmem:[#allocation32_spill] sm:$0xff] %v5300_v26  ;;  %v1611_v21 = vadd.f32 %v1483_v8, %v5270_v53  ;;  %v1613_v37 = vadd.f32 %v1485_v14, %v5273_v1  ;;  %v1230_v12 = vmul.f32 %v5297_v62, %v5297_v62  ;;  %v1231_v5 = vmul.f32 %v5300_v26, %v5300_v26 }
 0x218   : > { %v5311_v54 = vadd.f32 %v966_v13, %v4407_v57  ;;  %v5313_v32 = vpop.eup %3859  ;;  %2596 = vmatmul.mubr.bf16.gmra.mxu0 %v2219_v58  ;;  %v2221_v59 = vpack.c.bf16 %v2089_v55, %v2085_v49  ;;  %v1356_v35 = vmul.f32 %v1228_v22, %v5294_v30  ;;  %v5317_v17 = vadd.f32 %v775_v23, %v4409_v60 }
 0x219   : > { %v1739_v11 = vmul.f32 0.7978846, %v1611_v21  ;;  %v5319_v16 = vpop.eup %3861  ;;  %v1741_v51 = vmul.f32 0.7978846, %v1613_v37  ;;  %v1358_v8 = vmul.f32 %v1230_v12, %v5297_v62  ;;  %v1359_v24 = vmul.f32 %v1231_v5, %v5300_v26 }
 0x21a   : > { %6193 = vst [vmem:[#allocation19_spill] sm:$0xff] %v5311_v54  ;;  %6194 = vst [vmem:[#allocation46_spill] sm:$0xff] %v5317_v17  ;;  %v1233_v13 = vmul.f32 %v5311_v54, %v5311_v54  ;;  %v5325_v0 = vpop.eup %3863  ;;  %2757 = vmatmul.mubr.bf16.gmra.mxu1 %v2221_v59  ;;  %v1484_v14 = vmul.f32 0.044715, %v1356_v35  ;;  %v1232_v49 = vmul.f32 %v5317_v17, %v5317_v17  ;;  %v1072_v53 = vmul.f32 0.5, %v4965_v29 }
 0x21b   : > { %v5330_v23 = vadd.f32 %v968_v50, %v4411_v61  ;;  %3871 = vtanh.f32 %v1739_v11  ;;  %v1486_v21 = vmul.f32 0.044715, %v1358_v8  ;;  %v1487_v58 = vmul.f32 0.044715, %v1359_v24  ;;  %v6196_v11 = vld [vmem:[#allocation16_spill] sm:$0xff] }
 0x21c   : > { %v1361_v55 = vmul.f32 %v1233_v13, %v5311_v54  ;;  %v5333_v22 = vpop.eup %3865  ;;  %3873 = vtanh.f32 %v1741_v51  ;;  %v1612_v37 = vadd.f32 %v1484_v14, %v5294_v30  ;;  %v1360_v25 = vmul.f32 %v1232_v49, %v5317_v17  ;;  %v972_v30 = vpop.f32.mrf.mxu1 }
 0x21d   : > { %6195 = vst [vmem:[#allocation49_spill] sm:$0xff] %v5330_v23  ;;  %v1234_v12 = vmul.f32 %v5330_v23, %v5330_v23  ;;  %v1614_v5 = vadd.f32 %v1486_v21, %v5297_v62  ;;  %v1615_v50 = vadd.f32 %v1487_v58, %v5300_v26  ;;  %v1068_v35 = vmul.f32 0.5, %v6196_v11  ;;  %v5342_v8 = vpop.eup %3867  ;;  %v779_v26 = vpop.f32.mrf.mxu0 }
 0x21e   : > { %v1489_v59 = vmul.f32 0.044715, %v1361_v55  ;;  %v1740_v24 = vmul.f32 0.7978846, %v1612_v37  ;;  %v1488_v13 = vmul.f32 0.044715, %v1360_v25 }
 0x21f   : > { %v1362_v51 = vmul.f32 %v1234_v12, %v5330_v23  ;;  %v1964_v14 = vadd.f32 1.0, %v5049_v44  ;;  %v1742_v1 = vmul.f32 0.7978846, %v1614_v5  ;;  %v1968_v21 = vadd.f32 1.0, %v5076_v36  ;;  %v6197_v12 = vld [vmem:[#allocation18_spill] sm:$0xff] }
 0x220   : > { %v1617_v49 = vadd.f32 %v1489_v59, %v5311_v54  ;;  %3875 = vtanh.f32 %v1740_v24  ;;  %v1743_v58 = vmul.f32 0.7978846, %v1615_v50  ;;  %v1616_v62 = vadd.f32 %v1488_v13, %v5317_v17  ;;  %v6205_v54 = vld [vmem:[#allocation40_spill] sm:$0xff] }
 0x221   : > { %v1490_v55 = vmul.f32 0.044715, %v1362_v51  ;;  %v2092_v37 = vmul.f32 %v1964_v14, %v1068_v35  ;;  %v2096_v25 = vmul.f32 %v1968_v21, %v1072_v53  ;;  %3877 = vtanh.f32 %v1742_v1  ;;  %v781_v35 = vpop.f32.mrf.mxu0  ;;  %v974_v14 = vpop.f32.mrf.mxu1 }
 0x222   : > { %v1745_v11 = vmul.f32 0.7978846, %v1617_v49  ;;  %v1070_v5 = vmul.f32 0.5, %v6197_v12  ;;  %v1074_v29 = vmul.f32 0.5, %v4978_v7  ;;  %v1966_v36 = vadd.f32 1.0, %v5055_v3  ;;  %v6201_v12 = vld [vmem:[#allocation20_spill] sm:$0xff] }
 0x223   : > { %v1618_v44 = vadd.f32 %v1490_v55, %v5330_v23  ;;  %v2224_v59 = vpack.c.bf16 %v2096_v25, %v2092_v37  ;;  %v1970_v50 = vadd.f32 1.0, %v5081_v2  ;;  %3879 = vtanh.f32 %v1743_v58  ;;  %v6198_v55 = vld [vmem:[#allocation51_spill] sm:$0xff]  ;;  %v6199_v37 = vld [vmem:[#allocation29_spill] sm:$0xff]  ;;  %v5359_v25 = vpop.eup %3869  ;;  %v976_v23 = vpop.f32.mrf.mxu1 }
 0x224   : > { %v780_v24 = vadd.f32 %v779_v26, %v4405_v56  ;;  %v973_v13 = vadd.f32 %v972_v30, %v4407_v57  ;;  %3881 = vtanh.f32 %v1745_v11  ;;  %v1744_v53 = vmul.f32 0.7978846, %v1616_v62 }
 0x225   : > { %2603 = vmatprep.mubr.bf16.mxu0 %v2224_v59  ;;  %v2094_v1 = vmul.f32 %v1966_v36, %v1070_v5  ;;  %v2098_v51 = vmul.f32 %v1970_v50, %v1074_v29  ;;  %v1746_v49 = vmul.f32 0.7978846, %v1618_v44  ;;  %v1067_v7 = vmul.f32 0.5, %v6198_v55  ;;  %v6202_v59 = vld [vmem:[#allocation34_spill] sm:$0xff]  ;;  %v6203_v29 = vld [vmem:[#allocation24_spill] sm:$0xff]  ;;  %v783_v50 = vpop.f32.mrf.mxu0 }
 0x226   : > { %v1235_v21 = vmul.f32 %v780_v24, %v780_v24  ;;  %v1071_v3 = vmul.f32 0.5, %v6199_v37  ;;  %v1237_v58 = vmul.f32 %v973_v13, %v973_v13  ;;  %v1963_v26 = vadd.f32 1.0, %v5014_v47 }
 0x227   : > { %v2226_v2 = vpack.c.bf16 %v2098_v51, %v2094_v1  ;;  %v1967_v30 = vadd.f32 1.0, %v5061_v38  ;;  %v1069_v5 = vmul.f32 0.5, %v6201_v12  ;;  %v1073_v44 = vmul.f32 0.5, %v6202_v59 }
 0x228   : > { %v5363_v11 = vpop.eup %3871  ;;  %v1363_v62 = vmul.f32 %v1235_v21, %v780_v24  ;;  %v1965_v36 = vadd.f32 1.0, %v6203_v29  ;;  %v1365_v37 = vmul.f32 %v1237_v58, %v973_v13  ;;  %v2091_v1 = vmul.f32 %v1963_v26, %v1067_v7 }
 0x229   : > { %6200 = vst [vmem:[#allocation39_spill] sm:$0xff] %v5363_v11  ;;  %v5368_v55 = vpop.eup %3873  ;;  %2764 = vmatprep.mubr.bf16.mxu1 %v2226_v2  ;;  %v2095_v51 = vmul.f32 %v1967_v30, %v1071_v3  ;;  %v1969_v47 = vadd.f32 1.0, %v6205_v54  ;;  %v5372_v21 = vadd.f32 %v781_v35, %v4409_v60  ;;  %v5375_v12 = vadd.f32 %v974_v14, %v4411_v61  ;;  %v785_v35 = vpop.f32.mrf.mxu0 }
 0x22a   : > { %6204 = vst [vmem:[#allocation30_spill] sm:$0xff] %v5368_v55  ;;  %v1491_v38 = vmul.f32 0.044715, %v1363_v62  ;;  %v2093_v17 = vmul.f32 %v1965_v36, %v1069_v5  ;;  %v1493_v59 = vmul.f32 0.044715, %v1365_v37  ;;  %v784_v55 = vadd.f32 %v783_v50, %v4405_v56  ;;  %v978_v62 = vpop.f32.mrf.mxu1 }
 0x22b   : > { %6206 = vst [vmem:[#allocation16_spill] sm:$0xff] %v5375_v12  ;;  %v2223_v29 = vpack.c.bf16 %v2095_v51, %v2091_v1  ;;  %v2097_v11 = vmul.f32 %v1969_v47, %v1073_v44  ;;  %v1236_v7 = vmul.f32 %v5372_v21, %v5372_v21  ;;  %v1238_v54 = vmul.f32 %v5375_v12, %v5375_v12 }
 0x22c   : > { %v1619_v2 = vadd.f32 %v1491_v38, %v780_v24  ;;  %v5383_v3 = vadd.f32 %v976_v23, %v4407_v57  ;;  %3883 = vtanh.f32 %v1744_v53  ;;  %v1621_v14 = vadd.f32 %v1493_v59, %v973_v13 }
 0x22d   : > { %v5385_v58 = vpop.eup %3875  ;;  %2604 = vmatmul.mubr.bf16.gmra.mxu0 %v2223_v29  ;;  %v2225_v26 = vpack.c.bf16 %v2097_v11, %v2093_v17  ;;  %v1239_v30 = vmul.f32 %v784_v55, %v784_v55  ;;  %3885 = vtanh.f32 %v1746_v49  ;;  %v1364_v44 = vmul.f32 %v1236_v7, %v5372_v21 }
 0x22e   : > { %v1747_v5 = vmul.f32 0.7978846, %v1619_v2  ;;  %v1366_v36 = vmul.f32 %v1238_v54, %v5375_v12  ;;  %v5389_v50 = vpop.eup %3877  ;;  %v5391_v37 = vmul.f32 0.5, %v780_v24  ;;  %v1241_v53 = vmul.f32 %v5383_v3, %v5383_v3 }
 0x22f   : > { %2765 = vmatmul.mubr.bf16.gmra.mxu1 %v2225_v26  ;;  %v1367_v23 = vmul.f32 %v1239_v30, %v784_v55  ;;  %v5396_v1 = vadd.f32 %v785_v35, %v4409_v60  ;;  %v5398_v17 = vmul.f32 0.5, %v973_v13  ;;  %v1492_v49 = vmul.f32 0.044715, %v1364_v44  ;;  %v6209_v30 = vld [vmem:[#allocation28_spill] sm:$0xff] }
 0x230   : > { %6207 = vst [vmem:[#allocation18_spill] sm:$0xff] %v5391_v37  ;;  %v1494_v11 = vmul.f32 0.044715, %v1366_v36  ;;  %v5401_v51 = vadd.f32 %v978_v62, %v4411_v61  ;;  %v5403_v47 = vpop.eup %3879  ;;  %v1749_v38 = vmul.f32 0.7978846, %v1621_v14  ;;  %v1369_v59 = vmul.f32 %v1241_v53, %v5383_v3  ;;  %v789_v37 = vpop.f32.mrf.mxu0 }
 0x231   : > { %6208 = vst [vmem:[#allocation51_spill] sm:$0xff] %v5398_v17  ;;  %v1495_v24 = vmul.f32 0.044715, %v1367_v23  ;;  %v1240_v29 = vmul.f32 %v5396_v1, %v5396_v1  ;;  %v5408_v2 = vpop.eup %3881  ;;  %3887 = vtanh.f32 %v1747_v5  ;;  %v1620_v13 = vadd.f32 %v1492_v49, %v5372_v21 }
 0x232   : > { %v1622_v7 = vadd.f32 %v1494_v11, %v5375_v12  ;;  %v1242_v54 = vmul.f32 %v5401_v51, %v5401_v51  ;;  %v1497_v26 = vmul.f32 0.044715, %v1369_v59  ;;  %v1076_v62 = vmul.f32 0.5, %v6209_v30 }
 0x233   : > { %v1623_v35 = vadd.f32 %v1495_v24, %v784_v55  ;;  %v1368_v14 = vmul.f32 %v1240_v29, %v5396_v1  ;;  %v1748_v44 = vmul.f32 0.7978846, %v1620_v13  ;;  %v1080_v23 = vmul.f32 0.5, %v5053_v42  ;;  %v982_v42 = vpop.f32.mrf.mxu1 }
 0x234   : > { %v1370_v36 = vmul.f32 %v1242_v54, %v5401_v51  ;;  %v1972_v5 = vadd.f32 1.0, %v5137_v39  ;;  %v1750_v53 = vmul.f32 0.7978846, %v1622_v7  ;;  %v1625_v49 = vadd.f32 %v1497_v26, %v5383_v3  ;;  %v6210_v7 = vld [vmem:[#allocation21_spill] sm:$0xff] }
 0x235   : > { %v1496_v11 = vmul.f32 0.044715, %v1368_v14  ;;  %v1976_v17 = vadd.f32 1.0, %v5160_v18  ;;  %3889 = vtanh.f32 %v1749_v38  ;;  %v5421_v24 = vmul.f32 0.5, %v784_v55 }
 0x236   : > { %v1751_v59 = vmul.f32 0.7978846, %v1623_v35  ;;  %v1498_v29 = vmul.f32 0.044715, %v1370_v36  ;;  %v1753_v30 = vmul.f32 0.7978846, %v1625_v49  ;;  %v2100_v54 = vmul.f32 %v1972_v5, %v1076_v62  ;;  %v791_v36 = vpop.f32.mrf.mxu0  ;;  %v984_v5 = vpop.f32.mrf.mxu1 }
 0x237   : > { %v1624_v13 = vadd.f32 %v1496_v11, %v5396_v1  ;;  %v2104_v12 = vmul.f32 %v1976_v17, %v1080_v23  ;;  %3891 = vtanh.f32 %v1748_v44  ;;  %v1078_v26 = vmul.f32 0.5, %v6210_v7  ;;  %v6212_v49 = vld [vmem:[#allocation23_spill] sm:$0xff] }
 0x238   : > { %v1626_v39 = vadd.f32 %v1498_v29, %v5401_v51  ;;  %v1974_v14 = vadd.f32 1.0, %v5144_v48  ;;  %3893 = vtanh.f32 %v1750_v53  ;;  %v1082_v55 = vmul.f32 0.5, %v5066_v41 }
 0x239   : > { %v2228_v18 = vpack.c.bf16 %v2104_v12, %v2100_v54  ;;  %v1978_v38 = vadd.f32 1.0, %v5169_v43  ;;  %v5429_v35 = vpop.eup %3883  ;;  %3895 = vtanh.f32 %v1751_v59  ;;  %v5432_v62 = vmul.f32 0.5, %v5383_v3  ;;  %v6213_v59 = vld [vmem:[#allocation25_spill] sm:$0xff] }
 0x23a   : > { %v790_v17 = vadd.f32 %v789_v37, %v4405_v56  ;;  %v983_v44 = vadd.f32 %v982_v42, %v4407_v57  ;;  %v5436_v23 = vpop.eup %3885  ;;  %3897 = vtanh.f32 %v1753_v30  ;;  %v1752_v48 = vmul.f32 0.7978846, %v1624_v13 }
 0x23b   : > { %6211 = vst [vmem:[#allocation29_spill] sm:$0xff] %v5432_v62  ;;  %2611 = vmatprep.mubr.bf16.mxu0 %v2228_v18  ;;  %v2102_v12 = vmul.f32 %v1974_v14, %v1078_v26  ;;  %v2106_v41 = vmul.f32 %v1978_v38, %v1082_v55  ;;  %v1754_v43 = vmul.f32 0.7978846, %v1626_v39  ;;  %v1075_v11 = vmul.f32 0.5, %v6212_v49  ;;  %v6214_v62 = vld [vmem:[#allocation27_spill] sm:$0xff]  ;;  %v793_v14 = vpop.f32.mrf.mxu0 }
 0x23c   : > { %v1243_v53 = vmul.f32 %v790_v17, %v790_v17  ;;  %v1079_v3 = vmul.f32 0.5, %v6213_v59  ;;  %v1245_v54 = vmul.f32 %v983_v44, %v983_v44  ;;  %v1971_v37 = vadd.f32 1.0, %v5106_v45 }
 0x23d   : > { %v2230_v29 = vpack.c.bf16 %v2106_v41, %v2102_v12  ;;  %v1975_v42 = vadd.f32 1.0, %v5149_v6  ;;  %v1077_v30 = vmul.f32 0.5, %v6214_v62  ;;  %v1081_v13 = vmul.f32 0.5, %v5047_v40  ;;  %v986_v41 = vpop.f32.mrf.mxu1 }
 0x23e   : > { %v1371_v7 = vmul.f32 %v1243_v53, %v790_v17  ;;  %v1973_v26 = vadd.f32 1.0, %v5111_v9  ;;  %v5445_v39 = vpop.eup %3887  ;;  %v1373_v18 = vmul.f32 %v1245_v54, %v983_v44  ;;  %v2099_v55 = vmul.f32 %v1971_v37, %v1075_v11 }
 0x23f   : > { %2772 = vmatprep.mubr.bf16.mxu1 %v2230_v29  ;;  %v2103_v38 = vmul.f32 %v1975_v42, %v1079_v3  ;;  %v1977_v12 = vadd.f32 1.0, %v5156_v27  ;;  %v5449_v6 = vadd.f32 %v791_v36, %v4409_v60  ;;  %v5452_v62 = vadd.f32 %v984_v5, %v4411_v61  ;;  %v795_v36 = vpop.f32.mrf.mxu0 }
 0x240   : > { %v1499_v45 = vmul.f32 0.044715, %v1371_v7  ;;  %v2101_v49 = vmul.f32 %v1973_v26, %v1077_v30  ;;  %v1501_v40 = vmul.f32 0.044715, %v1373_v18  ;;  %v794_v59 = vadd.f32 %v793_v14, %v4405_v56  ;;  %v988_v7 = vpop.f32.mrf.mxu1 }
 0x241   : > { %6215 = vst [vmem:[#allocation20_spill] sm:$0xff] %v5452_v62  ;;  %v2227_v9 = vpack.c.bf16 %v2103_v38, %v2099_v55  ;;  %v2105_v53 = vmul.f32 %v1977_v12, %v1081_v13  ;;  %v1244_v11 = vmul.f32 %v5449_v6, %v5449_v6  ;;  %v1246_v27 = vmul.f32 %v5452_v62, %v5452_v62 }
 0x242   : > { %v1627_v29 = vadd.f32 %v1499_v45, %v790_v17  ;;  %v5460_v3 = vadd.f32 %v986_v41, %v4407_v57  ;;  %v5462_v54 = vpop.eup %3889  ;;  %3899 = vtanh.f32 %v1752_v48  ;;  %v1629_v5 = vadd.f32 %v1501_v40, %v983_v44 }
 0x243   : > { %2612 = vmatmul.mubr.bf16.gmra.mxu0 %v2227_v9  ;;  %v2229_v37 = vpack.c.bf16 %v2105_v53, %v2101_v49  ;;  %v1247_v42 = vmul.f32 %v794_v59, %v794_v59  ;;  %3901 = vtanh.f32 %v1754_v43  ;;  %v1372_v13 = vmul.f32 %v1244_v11, %v5449_v6 }
 0x244   : > { %v1755_v30 = vmul.f32 0.7978846, %v1627_v29  ;;  %v1374_v26 = vmul.f32 %v1246_v27, %v5452_v62  ;;  %v5466_v14 = vpop.eup %3891  ;;  %v5468_v18 = vmul.f32 0.5, %v790_v17  ;;  %v1249_v48 = vmul.f32 %v5460_v3, %v5460_v3 }
 0x245   : > { %2773 = vmatmul.mubr.bf16.gmra.mxu1 %v2229_v37  ;;  %v1375_v55 = vmul.f32 %v1247_v42, %v794_v59  ;;  %v5473_v38 = vadd.f32 %v795_v36, %v4409_v60  ;;  %v5475_v12 = vpop.eup %3893  ;;  %v5477_v43 = vmul.f32 0.5, %v983_v44  ;;  %v1500_v41 = vmul.f32 0.044715, %v1372_v13 }
 0x246   : > { %6216 = vst [vmem:[#allocation34_spill] sm:$0xff] %v5468_v18  ;;  %v1502_v45 = vmul.f32 0.044715, %v1374_v26  ;;  %v5480_v49 = vadd.f32 %v988_v7, %v4411_v61  ;;  %v5482_v40 = vpop.eup %3895  ;;  %v1757_v17 = vmul.f32 0.7978846, %v1629_v5  ;;  %v1377_v53 = vmul.f32 %v1249_v48, %v5460_v3  ;;  %v799_v18 = vpop.f32.mrf.mxu0 }
 0x247   : > { %6217 = vst [vmem:[#allocation24_spill] sm:$0xff] %v5477_v43  ;;  %v1503_v9 = vmul.f32 0.044715, %v1375_v55  ;;  %v1248_v29 = vmul.f32 %v5473_v38, %v5473_v38  ;;  %v5487_v11 = vpop.eup %3897  ;;  %3903 = vtanh.f32 %v1755_v30  ;;  %v1628_v44 = vadd.f32 %v1500_v41, %v5449_v6 }
 0x248   : > { %v1630_v27 = vadd.f32 %v1502_v45, %v5452_v62  ;;  %v1250_v36 = vmul.f32 %v5480_v49, %v5480_v49  ;;  %v1505_v42 = vmul.f32 0.044715, %v1377_v53  ;;  %v1084_v7 = vmul.f32 0.5, %v5118_v31 }
 0x249   : > { %v1631_v37 = vadd.f32 %v1503_v9, %v794_v59  ;;  %v1376_v5 = vmul.f32 %v1248_v29, %v5473_v38  ;;  %v1756_v13 = vmul.f32 0.7978846, %v1628_v44  ;;  %v1088_v55 = vmul.f32 0.5, %v5142_v52  ;;  %v992_v52 = vpop.f32.mrf.mxu1 }
 0x24a   : > { %v1378_v26 = vmul.f32 %v1250_v36, %v5480_v49  ;;  %v1980_v30 = vadd.f32 1.0, %v5222_v46  ;;  %v1758_v48 = vmul.f32 0.7978846, %v1630_v27  ;;  %v1633_v41 = vadd.f32 %v1505_v42, %v5460_v3  ;;  %v6219_v27 = vld [vmem:[#allocation41_spill] sm:$0xff] }
 0x24b   : > { %v1504_v45 = vmul.f32 0.044715, %v1376_v5  ;;  %v1984_v43 = vadd.f32 1.0, %v5247_v63  ;;  %3905 = vtanh.f32 %v1757_v17  ;;  %v5500_v9 = vmul.f32 0.5, %v794_v59 }
 0x24c   : > { %v1759_v53 = vmul.f32 0.7978846, %v1631_v37  ;;  %v1506_v29 = vmul.f32 0.044715, %v1378_v26  ;;  %v1761_v31 = vmul.f32 0.7978846, %v1633_v41  ;;  %v2108_v36 = vmul.f32 %v1980_v30, %v1084_v7  ;;  %v801_v37 = vpop.f32.mrf.mxu0  ;;  %v994_v30 = vpop.f32.mrf.mxu1 }
 0x24d   : > { %6218 = vst [vmem:[#allocation40_spill] sm:$0xff] %v5500_v9  ;;  %v1632_v44 = vadd.f32 %v1504_v45, %v5473_v38  ;;  %v2112_v62 = vmul.f32 %v1984_v43, %v1088_v55  ;;  %3907 = vtanh.f32 %v1756_v13  ;;  %v1086_v42 = vmul.f32 0.5, %v6219_v27  ;;  %v6221_v41 = vld [vmem:[#allocation22_spill] sm:$0xff]  ;;  %v6233_v9 = vld [vmem:[#allocation43_spill] sm:$0xff] }
 0x24e   : > { %v1634_v46 = vadd.f32 %v1506_v29, %v5480_v49  ;;  %v1982_v5 = vadd.f32 1.0, %v5231_v10  ;;  %3909 = vtanh.f32 %v1758_v48  ;;  %v1090_v59 = vmul.f32 0.5, %v5154_v15  ;;  %v803_v27 = vpop.f32.mrf.mxu0 }
 0x24f   : > { %v2232_v63 = vpack.c.bf16 %v2112_v62, %v2108_v36  ;;  %v1986_v17 = vadd.f32 1.0, %v5259_v20  ;;  %v5508_v26 = vpop.eup %3899  ;;  %3911 = vtanh.f32 %v1759_v53  ;;  %v5511_v43 = vmul.f32 0.5, %v5460_v3  ;;  %v6222_v53 = vld [vmem:[#allocation35_spill] sm:$0xff] }
 0x250   : > { %v800_v7 = vadd.f32 %v799_v18, %v4405_v56  ;;  %v993_v13 = vadd.f32 %v992_v52, %v4407_v57  ;;  %v5515_v55 = vpop.eup %3901  ;;  %3913 = vtanh.f32 %v1761_v31  ;;  %v1760_v10 = vmul.f32 0.7978846, %v1632_v44  ;;  %v6223_v31 = vld [vmem:[#allocation26_spill] sm:$0xff] }
 0x251   : > { %6220 = vst [vmem:[#allocation28_spill] sm:$0xff] %v5511_v43  ;;  %2619 = vmatprep.mubr.bf16.mxu0 %v2232_v63  ;;  %v2110_v62 = vmul.f32 %v1982_v5, %v1086_v42  ;;  %v2114_v15 = vmul.f32 %v1986_v17, %v1090_v59  ;;  %v1762_v20 = vmul.f32 0.7978846, %v1634_v46  ;;  %v1083_v45 = vmul.f32 0.5, %v6221_v41 }
 0x252   : > { %v1251_v48 = vmul.f32 %v800_v7, %v800_v7  ;;  %v1087_v29 = vmul.f32 0.5, %v6222_v53  ;;  %v1253_v36 = vmul.f32 %v993_v13, %v993_v13  ;;  %v1979_v18 = vadd.f32 1.0, %v5197_v34 }
 0x253   : > { %v2234_v3 = vpack.c.bf16 %v2114_v15, %v2110_v62  ;;  %v1983_v52 = vadd.f32 1.0, %v5235_v33  ;;  %v1085_v44 = vmul.f32 0.5, %v6223_v31  ;;  %v1089_v42 = vmul.f32 0.5, %v5135_v4  ;;  %v996_v15 = vpop.f32.mrf.mxu1 }
 0x254   : > { %v1379_v43 = vmul.f32 %v1251_v48, %v800_v7  ;;  %v1981_v5 = vadd.f32 1.0, %v5201_v19  ;;  %v5524_v46 = vpop.eup %3903  ;;  %v1381_v63 = vmul.f32 %v1253_v36, %v993_v13  ;;  %v2107_v59 = vmul.f32 %v1979_v18, %v1083_v45 }
 0x255   : > { %2780 = vmatprep.mubr.bf16.mxu1 %v2234_v3  ;;  %v2111_v17 = vmul.f32 %v1983_v52, %v1087_v29  ;;  %v1985_v62 = vadd.f32 1.0, %v5244_v28  ;;  %v5528_v33 = vadd.f32 %v801_v37, %v4409_v60  ;;  %v5531_v48 = vadd.f32 %v994_v30, %v4411_v61  ;;  %v805_v3 = vpop.f32.mrf.mxu0  ;;  %v998_v52 = vpop.f32.mrf.mxu1 }
 0x256   : > { %v1507_v34 = vmul.f32 0.044715, %v1379_v43  ;;  %v2109_v41 = vmul.f32 %v1981_v5, %v1085_v44  ;;  %v1509_v4 = vmul.f32 0.044715, %v1381_v63  ;;  %v804_v31 = vadd.f32 %v803_v27, %v4405_v56 }
 0x257   : > { %6224 = vst [vmem:[#allocation21_spill] sm:$0xff] %v5528_v33  ;;  %6225 = vst [vmem:[#allocation23_spill] sm:$0xff] %v5531_v48  ;;  %v2231_v53 = vpack.c.bf16 %v2111_v17, %v2107_v59  ;;  %v2113_v19 = vmul.f32 %v1985_v62, %v1089_v42  ;;  %v1252_v45 = vmul.f32 %v5528_v33, %v5528_v33  ;;  %3915 = vtanh.f32 %v1760_v10  ;;  %v809_v62 = vpop.f32.mrf.mxu0 }
 0x258   : > { %v1635_v36 = vadd.f32 %v1507_v34, %v800_v7  ;;  %v1254_v28 = vmul.f32 %v5531_v48, %v5531_v48  ;;  %v5539_v43 = vadd.f32 %v996_v15, %v4407_v57  ;;  %v5541_v37 = vpop.eup %3905  ;;  %v1637_v30 = vadd.f32 %v1509_v4, %v993_v13 }
 0x259   : > { %6226 = vst [vmem:[#allocation25_spill] sm:$0xff] %v5541_v37  ;;  %2620 = vmatmul.mubr.bf16.gmra.mxu0 %v2231_v53  ;;  %v2233_v29 = vpack.c.bf16 %v2113_v19, %v2109_v41  ;;  %v1255_v18 = vmul.f32 %v804_v31, %v804_v31  ;;  %3917 = vtanh.f32 %v1762_v20  ;;  %v1380_v44 = vmul.f32 %v1252_v45, %v5528_v33  ;;  %v1002_v45 = vpop.f32.mrf.mxu1 }
 0x25a   : > { %v1763_v27 = vmul.f32 0.7978846, %v1635_v36  ;;  %v1382_v42 = vmul.f32 %v1254_v28, %v5531_v48  ;;  %v5545_v5 = vpop.eup %3907  ;;  %v5547_v63 = vmul.f32 0.5, %v800_v7  ;;  %v1257_v10 = vmul.f32 %v5539_v43, %v5539_v43 }
 0x25b   : > { %2781 = vmatmul.mubr.bf16.gmra.mxu1 %v2233_v29  ;;  %v1383_v59 = vmul.f32 %v1255_v18, %v804_v31  ;;  %v5552_v17 = vadd.f32 %v805_v3, %v4409_v60  ;;  %v5554_v15 = vpop.eup %3909  ;;  %v5556_v20 = vmul.f32 0.5, %v993_v13  ;;  %v1508_v34 = vmul.f32 0.044715, %v1380_v44 }
 0x25c   : > { %6227 = vst [vmem:[#allocation27_spill] sm:$0xff] %v5547_v63  ;;  %v1510_v41 = vmul.f32 0.044715, %v1382_v42  ;;  %v5559_v4 = vadd.f32 %v998_v52, %v4411_v61  ;;  %v5561_v7 = vpop.eup %3911  ;;  %v1765_v53 = vmul.f32 0.7978846, %v1637_v30  ;;  %v1385_v36 = vmul.f32 %v1257_v10, %v5539_v43  ;;  %v6232_v42 = vld [vmem:[#allocation38_spill] sm:$0xff]  ;;  %v5574_v10 = vpop.f32.mrf.mxu0 }
 0x25d   : > { %6228 = vst [vmem:[#allocation41_spill] sm:$0xff] %v5556_v20  ;;  %6230 = vst [vmem:[#allocation35_spill] sm:$0xff] %v5561_v7  ;;  %v1511_v19 = vmul.f32 0.044715, %v1383_v59  ;;  %v1256_v3 = vmul.f32 %v5552_v17, %v5552_v17  ;;  %v5566_v28 = vpop.eup %3913  ;;  %3919 = vtanh.f32 %v1763_v27  ;;  %v1636_v13 = vadd.f32 %v1508_v34, %v5528_v33 }
 0x25e   : > { %6229 = vst [vmem:[#allocation22_spill] sm:$0xff] %v5559_v4  ;;  %6231 = vst [vmem:[#allocation26_spill] sm:$0xff] %v5566_v28  ;;  %v1638_v29 = vadd.f32 %v1510_v41, %v5531_v48  ;;  %v1258_v18 = vmul.f32 %v5559_v4, %v5559_v4  ;;  %v1513_v44 = vmul.f32 0.044715, %v1385_v36  ;;  %v1092_v59 = vmul.f32 0.5, %v6232_v42  ;;  %v1004_v36 = vpop.f32.mrf.mxu1 }
 0x25f   : > { %v1639_v52 = vadd.f32 %v1511_v19, %v804_v31  ;;  %v1384_v30 = vmul.f32 %v1256_v3, %v5552_v17  ;;  %v1764_v20 = vmul.f32 0.7978846, %v1636_v13  ;;  %v1096_v27 = vmul.f32 0.5, %v6233_v9  ;;  %v813_v9 = vpop.f32.mrf.mxu0 }
 0x260   : > { %v1386_v63 = vmul.f32 %v1258_v18, %v5559_v4  ;;  %v1988_v34 = vadd.f32 1.0, %v5313_v32  ;;  %v1766_v33 = vmul.f32 0.7978846, %v1638_v29  ;;  %v1641_v41 = vadd.f32 %v1513_v44, %v5539_v43  ;;  %v6235_v29 = vld [vmem:[#allocation33_spill] sm:$0xff] }
 0x261   : > { %v1512_v48 = vmul.f32 0.044715, %v1384_v30  ;;  %v1992_v19 = vadd.f32 1.0, %v5342_v8  ;;  %3921 = vtanh.f32 %v1765_v53  ;;  %v5581_v3 = vmul.f32 0.5, %v804_v31  ;;  %v6236_v53 = vld [vmem:[#allocation52_spill] sm:$0xff] }
 0x262   : > { %v1767_v42 = vmul.f32 0.7978846, %v1639_v52  ;;  %v1514_v28 = vmul.f32 0.044715, %v1386_v63  ;;  %v1769_v37 = vmul.f32 0.7978846, %v1641_v41  ;;  %v2116_v18 = vmul.f32 %v1988_v34, %v1092_v59  ;;  %v1006_v63 = vpop.f32.mrf.mxu1  ;;  %v815_v59 = vpop.f32.mrf.mxu0 }
 0x263   : > { %6234 = vst [vmem:[#allocation38_spill] sm:$0xff] %v5581_v3  ;;  %v1640_v13 = vadd.f32 %v1512_v48, %v5552_v17  ;;  %v2120_v7 = vmul.f32 %v1992_v19, %v1096_v27  ;;  %3923 = vtanh.f32 %v1764_v20  ;;  %v1094_v44 = vmul.f32 0.5, %v6235_v29  ;;  %v6240_v29 = vld [vmem:[#allocation50_spill] sm:$0xff] }
 0x264   : > { %v1642_v32 = vadd.f32 %v1514_v28, %v5559_v4  ;;  %v1990_v30 = vadd.f32 1.0, %v5319_v16  ;;  %3925 = vtanh.f32 %v1766_v33  ;;  %v1098_v31 = vmul.f32 0.5, %v6236_v53  ;;  %v5589_v41 = vpop.eup %3915 }
 0x265   : > { %v2236_v8 = vpack.c.bf16 %v2120_v7, %v2116_v18  ;;  %v1994_v52 = vadd.f32 1.0, %v5359_v25  ;;  %3927 = vtanh.f32 %v1767_v42  ;;  %v5592_v48 = vmul.f32 0.5, %v5539_v43  ;;  %v6238_v43 = vld [vmem:[#allocation36_spill] sm:$0xff] }
 0x266   : > { %v5595_v20 = vadd.f32 %v809_v62, %v4405_v56  ;;  %v5598_v28 = vadd.f32 %v1002_v45, %v4407_v57  ;;  %v5600_v16 = vpop.eup %3917  ;;  %3929 = vtanh.f32 %v1769_v37  ;;  %v1768_v33 = vmul.f32 0.7978846, %v1640_v13  ;;  %v6239_v42 = vld [vmem:[#allocation44_spill] sm:$0xff]  ;;  %v1008_v13 = vpop.f32.mrf.mxu1 }
 0x267   : > { %6237 = vst [vmem:[#allocation43_spill] sm:$0xff] %v5592_v48  ;;  %2627 = vmatprep.mubr.bf16.mxu0 %v2236_v8  ;;  %v2118_v7 = vmul.f32 %v1990_v30, %v1094_v44  ;;  %v2122_v25 = vmul.f32 %v1994_v52, %v1098_v31  ;;  %v1770_v27 = vmul.f32 0.7978846, %v1642_v32  ;;  %v1091_v19 = vmul.f32 0.5, %v6238_v43  ;;  %v5610_v44 = vpop.f32.mrf.mxu0  ;;  %v6242_v30 = vld [vmem:[#allocation31_spill] sm:$0xff]  ;;  %v6243_v31 = vld [vmem:[#allocation42_spill] sm:$0xff] }
 0x268   : > { %v1259_v34 = vmul.f32 %v5595_v20, %v5595_v20  ;;  %v1095_v62 = vmul.f32 0.5, %v6239_v42  ;;  %v1261_v45 = vmul.f32 %v5598_v28, %v5598_v28  ;;  %v1987_v53 = vadd.f32 1.0, %v6240_v29  ;;  %6241 = vst [vmem:[#allocation33_spill] sm:$0xff] %v5610_v44  ;;  %v6244_v43 = vld [vmem:[#allocation17_spill] sm:$0xff]  ;;  %v5620_v3 = vpop.f32.mrf.mxu1 }
 0x269   : > { %v2238_v18 = vpack.c.bf16 %v2122_v25, %v2118_v7  ;;  %v1991_v37 = vadd.f32 1.0, %v5325_v0  ;;  %v1093_v8 = vmul.f32 0.5, %v6242_v30  ;;  %v1097_v52 = vmul.f32 0.5, %v6243_v31 }
 0x26a   : > { %v1387_v32 = vmul.f32 %v1259_v34, %v5595_v20  ;;  %v1989_v48 = vadd.f32 1.0, %v6244_v43  ;;  %v5616_v42 = vpop.eup %3919  ;;  %v1389_v7 = vmul.f32 %v1261_v45, %v5598_v28  ;;  %v2115_v25 = vmul.f32 %v1987_v53, %v1091_v19  ;;  %v5632_v19 = vpop.f32.mrf.mxu0 }
 0x26b   : > { %2788 = vmatprep.mubr.bf16.mxu1 %v2238_v18  ;;  %v2119_v29 = vmul.f32 %v1991_v37, %v1095_v62  ;;  %v1993_v0 = vadd.f32 1.0, %v5333_v22  ;;  %v5624_v34 = vadd.f32 %v5574_v10, %v4409_v60  ;;  %v5627_v30 = vadd.f32 %v1004_v36, %v4411_v61  ;;  %v5647_v37 = vpop.f32.mrf.mxu1 }
 0x26c   : > { %v1515_v44 = vmul.f32 0.044715, %v1387_v32  ;;  %v2117_v4 = vmul.f32 %v1989_v48, %v1093_v8  ;;  %v1517_v31 = vmul.f32 0.044715, %v1389_v7  ;;  %v5630_v45 = vadd.f32 %v813_v9, %v4405_v56  ;;  %6245 = vst [vmem:[#allocation52_spill] sm:$0xff] %v5647_v37  ;;  %v5659_v7 = vpop.f32.mrf.mxu0 }
 0x26d   : > { %v2235_v43 = vpack.c.bf16 %v2119_v29, %v2115_v25  ;;  %v2121_v18 = vmul.f32 %v1993_v0, %v1097_v52  ;;  %v1260_v48 = vmul.f32 %v5624_v34, %v5624_v34  ;;  %v1262_v10 = vmul.f32 %v5627_v30, %v5627_v30  ;;  %6246 = vst [vmem:[#allocation36_spill] sm:$0xff] %v5659_v7 }
 0x26e   : > { %v1643_v22 = vadd.f32 %v1515_v44, %v5595_v20  ;;  %v5640_v62 = vadd.f32 %v1006_v63, %v4407_v57  ;;  %v5642_v36 = vpop.eup %3921  ;;  %3931 = vtanh.f32 %v1768_v33  ;;  %v1645_v53 = vadd.f32 %v1517_v31, %v5598_v28 }
 0x26f   : > { %2628 = vmatmul.mubr.bf16.gmra.mxu0 %v2235_v43  ;;  %v2237_v56 = vpack.c.bf16 %v2121_v18, %v2117_v4  ;;  %v1263_v9 = vmul.f32 %v5630_v45, %v5630_v45  ;;  %3933 = vtanh.f32 %v1770_v27  ;;  %v1388_v32 = vmul.f32 %v1260_v48, %v5624_v34 }
 0x270   : > { %v1771_v44 = vmul.f32 0.7978846, %v1643_v22  ;;  %v1390_v8 = vmul.f32 %v1262_v10, %v5627_v30  ;;  %v5651_v57 = vpop.eup %3923  ;;  %v1773_v63 = vmul.f32 0.7978846, %v1645_v53  ;;  %v1265_v4 = vmul.f32 %v5640_v62, %v5640_v62 }
 0x271   : > { %2789 = vmatmul.mubr.bf16.gmra.mxu1 %v2237_v56  ;;  %v1391_v33 = vmul.f32 %v1263_v9, %v5630_v45  ;;  %v5657_v52 = vadd.f32 %v815_v59, %v4409_v60  ;;  %v5661_v27 = vpop.eup %3925  ;;  %v1516_v25 = vmul.f32 0.044715, %v1388_v32  ;;  %v5664_v0 = vadd.f32 %v1008_v13, %v4411_v61  ;;  %v5671_v59 = vpop.f32.mrf.mxu1  ;;  %v6248_v13 = vld [vmem:[#allocation45_spill] sm:$0xff]  ;;  %v6249_v32 = vld [vmem:[#allocation46_spill] sm:$0xff] }
 0x272   : > { %3935 = vtanh.f32 %v1771_v44  ;;  %v1518_v29 = vmul.f32 0.044715, %v1390_v8  ;;  %v5666_v31 = vpop.eup %3927  ;;  %v1393_v18 = vmul.f32 %v1265_v4, %v5640_v62  ;;  %6247 = vst [vmem:[#allocation44_spill] sm:$0xff] %v5671_v59  ;;  %v1100_v53 = vmul.f32 0.5, %v6248_v13 }
 0x273   : > { %3937 = vtanh.f32 %v1773_v63  ;;  %v1519_v43 = vmul.f32 0.044715, %v1391_v33  ;;  %v1264_v60 = vmul.f32 %v5657_v52, %v5657_v52  ;;  %v5673_v22 = vpop.eup %3929  ;;  %v1644_v48 = vadd.f32 %v1516_v25, %v5624_v34  ;;  %v5683_v63 = vpop.f32.mrf.mxu0 }
 0x274   : > { %v1646_v10 = vadd.f32 %v1518_v29, %v5627_v30  ;;  %v1266_v61 = vmul.f32 %v5664_v0, %v5664_v0  ;;  %v1521_v9 = vmul.f32 0.044715, %v1393_v18  ;;  %v1104_v8 = vmul.f32 0.5, %v6249_v32  ;;  %6250 = vst [vmem:[#allocation50_spill] sm:$0xff] %v5683_v63  ;;  %v6254_v63 = vld [vmem:[#allocation49_spill] sm:$0xff] }
 0x275   : > { %v1647_v56 = vadd.f32 %v1519_v43, %v5630_v45  ;;  %v1392_v44 = vmul.f32 %v1264_v60, %v5657_v52  ;;  %v1772_v33 = vmul.f32 0.7978846, %v1644_v48  ;;  %v1996_v29 = vadd.f32 1.0, %v5385_v58  ;;  %v5689_v43 = vpop.f32.mrf.mxu1 }
 0x276   : > { %v1774_v4 = vmul.f32 0.7978846, %v1646_v10  ;;  %v1394_v25 = vmul.f32 %v1266_v61, %v5664_v0  ;;  %v1649_v7 = vadd.f32 %v1521_v9, %v5640_v62  ;;  %v2000_v13 = vadd.f32 1.0, %v5429_v35  ;;  %6251 = vst [vmem:[#allocation31_spill] sm:$0xff] %v5689_v43  ;;  %v6252_v61 = vld [vmem:[#allocation48_spill] sm:$0xff] }
 0x277   : > { %v1775_v59 = vmul.f32 0.7978846, %v1647_v56  ;;  %v1520_v37 = vmul.f32 0.044715, %v1392_v44  ;;  %v5692_v18 = vmul.f32 0.5, %v5595_v20  ;;  %3939 = vtanh.f32 %v1772_v33  ;;  %v5696_v56 = vpop.f32.mrf.mxu0 }
 0x278   : > { %v1522_v60 = vmul.f32 0.044715, %v1394_v25  ;;  %v2124_v32 = vmul.f32 %v1996_v29, %v1100_v53  ;;  %3941 = vtanh.f32 %v1774_v4  ;;  %v2128_v10 = vmul.f32 %v2000_v13, %v1104_v8  ;;  %6253 = vst [vmem:[#allocation42_spill] sm:$0xff] %v5696_v56  ;;  %v5702_v4 = vpop.f32.mrf.mxu1  ;;  %v6256_v29 = vld [vmem:[#allocation37_spill] sm:$0xff] }
 0x279   : > { %v1648_v48 = vadd.f32 %v1520_v37, %v5657_v52  ;;  %v1102_v58 = vmul.f32 0.5, %v6252_v61  ;;  %3943 = vtanh.f32 %v1775_v59  ;;  %v1777_v9 = vmul.f32 0.7978846, %v1649_v7  ;;  %6255 = vst [vmem:[#allocation17_spill] sm:$0xff] %v5702_v4  ;;  %v6257_v59 = vld [vmem:[#allocation32_spill] sm:$0xff] }
 0x27a   : > { %v1650_v35 = vadd.f32 %v1522_v60, %v5664_v0  ;;  %v1998_v44 = vadd.f32 1.0, %v5389_v50  ;;  %v2240_v20 = vpack.c.bf16 %v2128_v10, %v2124_v32  ;;  %v1106_v33 = vmul.f32 0.5, %v6254_v63  ;;  %v6258_v60 = vld [vmem:[#allocation39_spill] sm:$0xff] }
 0x27b   : > { %v1776_v43 = vmul.f32 0.7978846, %v1648_v48  ;;  %v2002_v53 = vadd.f32 1.0, %v5436_v23  ;;  %v5704_v37 = vpop.eup %3931  ;;  %v1099_v13 = vmul.f32 0.5, %v6256_v29  ;;  %v1103_v7 = vmul.f32 0.5, %v6257_v59  ;;  %v5712_v23 = vpop.f32.mrf.mxu0  ;;  %v6259_v48 = vld [vmem:[#allocation47_spill] sm:$0xff] }
 0x27c   : > { %v1778_v8 = vmul.f32 0.7978846, %v1650_v35  ;;  %v2126_v25 = vmul.f32 %v1998_v44, %v1102_v58  ;;  %v5708_v61 = vpop.eup %3933  ;;  %2635 = vmatprep.mubr.bf16.mxu0 %v2240_v20  ;;  %v1995_v32 = vadd.f32 1.0, %v6258_v60  ;;  %v1999_v63 = vadd.f32 1.0, %v5403_v47  ;;  %v6260_v35 = vld [vmem:[#allocation19_spill] sm:$0xff]  ;;  %v6261_v44 = vld [vmem:[#allocation30_spill] sm:$0xff] }
 0x27d   : > { %3945 = vtanh.f32 %v1776_v43  ;;  %v2130_v50 = vmul.f32 %v2002_v53, %v1106_v33  ;;  %v1101_v10 = vmul.f32 0.5, %v6259_v48  ;;  %v1105_v58 = vmul.f32 0.5, %v6260_v35  ;;  %v5720_v33 = vpop.f32.mrf.mxu1 }
 0x27e   : > { %3947 = vtanh.f32 %v1778_v8  ;;  %v1997_v29 = vadd.f32 1.0, %v6261_v44  ;;  %v2123_v56 = vmul.f32 %v1995_v32, %v1099_v13  ;;  %v2127_v43 = vmul.f32 %v1999_v63, %v1103_v7  ;;  %v6262_v13 = vld [vmem:[#allocation16_spill] sm:$0xff] }
 0x27f   : > { %v5717_v4 = vpop.eup %3935  ;;  %v2242_v59 = vpack.c.bf16 %v2130_v50, %v2126_v25  ;;  %v2001_v20 = vadd.f32 1.0, %v5408_v2  ;;  %v1108_v8 = vmul.f32 0.5, %v5372_v21  ;;  %v1112_v60 = vmul.f32 0.5, %v5396_v1  ;;  %v5729_v50 = vpop.f32.mrf.mxu0 }
 0x280   : > { %v5722_v53 = vpop.eup %3937  ;;  %v2125_v47 = vmul.f32 %v1997_v29, %v1101_v10  ;;  %v2004_v48 = vadd.f32 1.0, %v5466_v14  ;;  %v2239_v35 = vpack.c.bf16 %v2127_v43, %v2123_v56  ;;  %v2008_v25 = vadd.f32 1.0, %v5508_v26 }
 0x281   : > { %2796 = vmatprep.mubr.bf16.mxu1 %v2242_v59  ;;  %v2129_v44 = vmul.f32 %v2001_v20, %v1105_v58  ;;  %v1110_v7 = vmul.f32 0.5, %v6262_v13  ;;  %v1114_v32 = vmul.f32 0.5, %v5401_v51  ;;  %v2006_v63 = vadd.f32 1.0, %v5475_v12  ;;  %v5736_v58 = vpop.f32.mrf.mxu1 }
 0x282   : > { %v2132_v2 = vmul.f32 %v2004_v48, %v1108_v8  ;;  %v2010_v21 = vadd.f32 1.0, %v5515_v55  ;;  %2636 = vmatmul.mubr.bf16.gmra.mxu0 %v2239_v35  ;;  %v2136_v10 = vmul.f32 %v2008_v25, %v1112_v60  ;;  %v2003_v14 = vadd.f32 1.0, %v5445_v39  ;;  %v6263_v55 = vld [vmem:[#allocation18_spill] sm:$0xff]  ;;  %v5744_v39 = vpop.f32.mrf.mxu0  ;;  %v6264_v60 = vld [vmem:[#allocation51_spill] sm:$0xff]  ;;  %v6265_v35 = vld [vmem:[#allocation29_spill] sm:$0xff] }
 0x283   : > { %v2241_v1 = vpack.c.bf16 %v2129_v44, %v2125_v47  ;;  %v2007_v56 = vadd.f32 1.0, %v5482_v40  ;;  %v2134_v26 = vmul.f32 %v2006_v63, %v1110_v7  ;;  %v2005_v59 = vadd.f32 1.0, %v5462_v54  ;;  %v5756_v7 = vpop.f32.mrf.mxu1 }
 0x284   : > { %v2138_v29 = vmul.f32 %v2010_v21, %v1114_v32  ;;  %v2009_v43 = vadd.f32 1.0, %v5487_v11  ;;  %v5740_v51 = vpop.eup %3939  ;;  %3949 = vtanh.f32 %v1777_v9  ;;  %v2244_v12 = vpack.c.bf16 %v2136_v10, %v2132_v2  ;;  %v6266_v2 = vld [vmem:[#allocation20_spill] sm:$0xff] }
 0x285   : > { %2797 = vmatmul.mubr.bf16.gmra.mxu1 %v2241_v1  ;;  %v2131_v20 = vmul.f32 %v2003_v14, %v6263_v55  ;;  %v2135_v47 = vmul.f32 %v2007_v56, %v5421_v24  ;;  %v5746_v40 = vpop.eup %3941  ;;  %v2133_v48 = vmul.f32 %v2005_v59, %v6264_v60  ;;  %v1116_v11 = vmul.f32 0.5, %v5449_v6  ;;  %v6268_v59 = vld [vmem:[#allocation25_spill] sm:$0xff] }
 0x286   : > { %v2246_v8 = vpack.c.bf16 %v2138_v29, %v2134_v26  ;;  %v2137_v54 = vmul.f32 %v2009_v43, %v6265_v35  ;;  %v5751_v44 = vpop.eup %3943  ;;  %2643 = vmatprep.mubr.bf16.mxu0 %v2244_v12  ;;  %v1120_v25 = vmul.f32 0.5, %v5473_v38  ;;  %v2012_v13 = vadd.f32 1.0, %v5545_v5  ;;  %v6267_v38 = vld [vmem:[#allocation35_spill] sm:$0xff]  ;;  %v5764_v5 = vpop.f32.mrf.mxu0  ;;  %v6269_v12 = vld [vmem:[#allocation26_spill] sm:$0xff]  ;;  %v6271_v35 = vld [vmem:[#allocation40_spill] sm:$0xff] }
 0x287   : > { %v2243_v9 = vpack.c.bf16 %v2135_v47, %v2131_v20  ;;  %v2016_v24 = vadd.f32 1.0, %v5589_v41  ;;  %v1118_v32 = vmul.f32 0.5, %v6266_v2  ;;  %v1122_v63 = vmul.f32 0.5, %v5480_v49  ;;  %v6270_v47 = vld [vmem:[#allocation34_spill] sm:$0xff] }
 0x288   : > { %2804 = vmatprep.mubr.bf16.mxu1 %v2246_v8  ;;  %v2014_v21 = vadd.f32 1.0, %v5554_v15  ;;  %v2018_v6 = vadd.f32 1.0, %v5600_v16  ;;  %v2140_v1 = vmul.f32 %v2012_v13, %v1116_v11  ;;  %v2011_v14 = vadd.f32 1.0, %v5524_v46  ;;  %v5772_v8 = vpop.f32.mrf.mxu1 }
 0x289   : > { %v2144_v10 = vmul.f32 %v2016_v24, %v1120_v25  ;;  %v2015_v56 = vadd.f32 1.0, %v6267_v38  ;;  %v2013_v43 = vadd.f32 1.0, %v6268_v59  ;;  %v2017_v55 = vadd.f32 1.0, %v6269_v12  ;;  %v6272_v25 = vld [vmem:[#allocation24_spill] sm:$0xff]  ;;  %v6273_v24 = vld [vmem:[#allocation21_spill] sm:$0xff] }
 0x28a   : > { %v3946_v41 = vpop.eup %3945  ;;  %v2142_v26 = vmul.f32 %v2014_v21, %v1118_v32  ;;  %v2146_v29 = vmul.f32 %v2018_v6, %v1122_v63  ;;  %v5769_v15 = vmul.f32 0.5, %v5598_v28  ;;  %2644 = vmatmul.mubr.bf16.gmra.mxu0 %v2243_v9  ;;  %v2245_v16 = vpack.c.bf16 %v2137_v54, %v2133_v48  ;;  %v6274_v32 = vld [vmem:[#allocation28_spill] sm:$0xff]  ;;  %v5781_v9 = vpop.f32.mrf.mxu0  ;;  %v6275_v21 = vld [vmem:[#allocation23_spill] sm:$0xff] }
 0x28b   : > { %v3948_v49 = vpop.eup %3947  ;;  %v2248_v20 = vpack.c.bf16 %v2144_v10, %v2140_v1  ;;  %v2139_v46 = vmul.f32 %v2011_v14, %v6270_v47  ;;  %v2143_v11 = vmul.f32 %v2015_v56, %v6271_v35  ;;  %v2141_v13 = vmul.f32 %v2013_v43, %v6272_v25  ;;  %v6276_v1 = vld [vmem:[#allocation22_spill] sm:$0xff]  ;;  %v6277_v35 = vld [vmem:[#allocation27_spill] sm:$0xff] }
 0x28c   : > { %v2250_v60 = vpack.c.bf16 %v2146_v29, %v2142_v26  ;;  %v1124_v2 = vmul.f32 0.5, %v6273_v24  ;;  %v2145_v63 = vmul.f32 %v2017_v55, %v6274_v32  ;;  %v1128_v28 = vmul.f32 0.5, %v5552_v17  ;;  %v3320_v47 = vpop.f32.mrf.mxu0 }
 0x28d   : > { %2805 = vmatmul.mubr.bf16.gmra.mxu1 %v2245_v16  ;;  %2651 = vmatprep.mubr.bf16.mxu0 %v2248_v20  ;;  %v2020_v48 = vadd.f32 1.0, %v5651_v57  ;;  %v2024_v54 = vadd.f32 1.0, %v5704_v37  ;;  %v1126_v6 = vmul.f32 0.5, %v6275_v21  ;;  %v1130_v10 = vmul.f32 0.5, %v6276_v1  ;;  %v3430_v57 = vpop.f32.mrf.mxu1 }
 0x28e   : > { %2812 = vmatprep.mubr.bf16.mxu1 %v2250_v60  ;;  %v2022_v14 = vadd.f32 1.0, %v5661_v27  ;;  %v2026_v38 = vadd.f32 1.0, %v5708_v61  ;;  %v2019_v29 = vadd.f32 1.0, %v5616_v42  ;;  %v2023_v17 = vadd.f32 1.0, %v5666_v31  ;;  %v6278_v42 = vld [vmem:[#allocation38_spill] sm:$0xff] }
 0x28f   : > { %v2148_v56 = vmul.f32 %v2020_v48, %v1124_v2  ;;  %v2152_v26 = vmul.f32 %v2024_v54, %v1128_v28  ;;  %v2021_v43 = vadd.f32 1.0, %v5642_v36  ;;  %v2025_v12 = vadd.f32 1.0, %v5673_v22  ;;  %v6279_v2 = vld [vmem:[#allocation43_spill] sm:$0xff] }
 0x290   : > { %v2150_v59 = vmul.f32 %v2022_v14, %v1126_v6  ;;  %v2154_v37 = vmul.f32 %v2026_v38, %v1130_v10  ;;  %v1135_v55 = vmul.f32 0.5, %v5630_v45  ;;  %v2247_v16 = vpack.c.bf16 %v2143_v11, %v2139_v46  ;;  %v3432_v46 = vpop.f32.mrf.mxu1  ;;  %v6280_v11 = vld [vmem:[#allocation41_spill] sm:$0xff]  ;;  %v3321_v6 = vpop.f32.mrf.mxu0 }
 0x291   : > { %v2249_v20 = vpack.c.bf16 %v2145_v63, %v2141_v13  ;;  %v2252_v27 = vpack.c.bf16 %v2152_v26, %v2148_v56  ;;  %v3950_v61 = vpop.eup %3949  ;;  %v2147_v25 = vmul.f32 %v2019_v29, %v6277_v35  ;;  %v2151_v24 = vmul.f32 %v2023_v17, %v6278_v42  ;;  %v5818_v17 = vld [vmem:[%s5997_s4] ss:$0 sm:$0xff] }
 0x292   : > { %v2254_v60 = vpack.c.bf16 %v2154_v37, %v2150_v59  ;;  %v1132_v31 = vmul.f32 0.5, %v5624_v34  ;;  %2652 = vmatmul.mubr.bf16.gmra.mxu0 %v2247_v16  ;;  %v2153_v32 = vmul.f32 %v2025_v12, %v6279_v2  ;;  %v1136_v36 = vmul.f32 0.5, %v5657_v52  ;;  %v3433_v56 = vpop.f32.mrf.mxu1  ;;  %v6284_v59 = vld [vmem:[#allocation50_spill] sm:$0xff]  ;;  %v6285_v37 = vld [vmem:[#allocation44_spill] sm:$0xff] }
 0x293   : > { %v2028_v22 = vadd.f32 1.0, %v5740_v51  ;;  %v2032_v45 = vadd.f32 1.0, %v3946_v41  ;;  %2659 = vmatprep.mubr.bf16.mxu0 %v2252_v27  ;;  %v2149_v13 = vmul.f32 %v2021_v43, %v6280_v11  ;;  %v1138_v63 = vmul.f32 0.5, %v5664_v0  ;;  %v6286_v43 = vld [vmem:[#allocation31_spill] sm:$0xff]  ;;  %v6287_v16 = vld [vmem:[#allocation42_spill] sm:$0xff] }
 0x294   : > { %v2030_v28 = vadd.f32 1.0, %v5746_v40  ;;  %v2034_v48 = vadd.f32 1.0, %v3948_v49  ;;  %v1134_v34 = vmul.f32 0.5, %v5627_v30  ;;  %v2027_v21 = vadd.f32 1.0, %v5717_v4  ;;  %v6281_v49 = vld [vmem:[#allocation33_spill] sm:$0xff]  ;;  %v2904_v35 = vld [vmem:[%s4327_s9] sm:$0xff] }
 0x295   : > { %2813 = vmatmul.mubr.bf16.gmra.mxu1 %v2249_v20  ;;  %v2160_v54 = vmul.f32 %v2032_v45, %v1136_v36  ;;  %v2031_v52 = vadd.f32 1.0, %v5751_v44  ;;  %v1137_v51 = vmul.f32 0.5, %v5640_v62  ;;  %v2251_v41 = vpack.c.bf16 %v2151_v24, %v2147_v25  ;;  %v6282_v62 = vld [vmem:[#allocation52_spill] sm:$0xff] }
 0x296   : > { %2820 = vmatprep.mubr.bf16.mxu1 %v2254_v60  ;;  %v2156_v1 = vmul.f32 %v2028_v22, %v1132_v31  ;;  %v2162_v10 = vmul.f32 %v2034_v48, %v1138_v63  ;;  %v2253_v14 = vpack.c.bf16 %v2153_v32, %v2149_v13  ;;  %v2158_v0 = vmul.f32 %v2030_v28, %v1134_v34  ;;  %v2905_v32 = vld [vmem:[%s4327_s9 + $0x8] sm:$0xff]  ;;  %v2907_v13 = vld [vmem:[%s4327_s9 + $0x18] sm:$0xff]  ;;  %v2908_v63 = vld [vmem:[%s4327_s9 + $0x20] sm:$0xff] }
 0x297   : > { %v2029_v40 = vadd.f32 1.0, %v5722_v53  ;;  %v3307_v38 = vadd.f32 %v5632_v19, %v6281_v49  ;;  %v5809_v4 = vmul.f32 %v2027_v21, %v5692_v18  ;;  %v2033_v44 = vadd.f32 1.0, %v3950_v61  ;;  %v6283_v53 = vld [vmem:[#allocation36_spill] sm:$0xff] }
 0x298   : > { %v2256_v30 = vpack.c.bf16 %v2160_v54, %v2156_v1  ;;  %v3419_v26 = vadd.f32 %v6282_v62, %v5620_v3  ;;  %v5813_v29 = vmul.f32 %v2031_v52, %v1135_v55  ;;  %v3310_v19 = vadd.f32 %v6284_v59, %v6283_v53  ;;  %v3323_v20 = vpop.f32.mrf.mxu0  ;;  %v6288_v55 = vld [vmem:[#allocation17_spill] sm:$0xff] }
 0x299   : > { %v3422_v12 = vadd.f32 %v6286_v43, %v6285_v37  ;;  %v3313_v18 = vadd.f32 %v5712_v23, %v6287_v16  ;;  %v2258_v27 = vpack.c.bf16 %v2162_v10, %v2158_v0  ;;  %v3425_v61 = vadd.f32 %v5720_v33, %v6288_v55  ;;  %v2909_v21 = vld [vmem:[%s4327_s9 + $0x28] sm:$0xff] }
 0x29a   : > { %v2711_v3 = vadd.f32 %v3419_v26, %v3307_v38  ;;  %v3316_v60 = vadd.f32 %v5744_v39, %v5729_v50  ;;  %2660 = vmatmul.mubr.bf16.gmra.mxu0 %v2251_v41  ;;  %v3428_v42 = vadd.f32 %v5756_v7, %v5736_v58  ;;  %v3319_v23 = vadd.f32 %v5781_v9, %v5764_v5  ;;  %v3435_v31 = vpop.f32.mrf.mxu1  ;;  %v3324_v2 = vpop.f32.mrf.mxu0  ;;  %v2906_v58 = vld [vmem:[%s4327_s9 + $0x10] sm:$0xff] }
 0x29b   : > { %v2714_v25 = vadd.f32 %v3422_v12, %v3310_v19  ;;  %v3431_v24 = vadd.f32 %v3430_v57, %v5772_v8  ;;  %2667 = vmatprep.mubr.bf16.mxu0 %v2256_v30  ;;  %v2719_v50 = vadd.f32 %v3425_v61, %v3313_v18  ;;  %v3322_v39 = vadd.f32 %v3321_v6, %v3320_v47 }
 0x29c   : > { %v2975_v33 = vadd.f32 %v5818_v17, %v2711_v3  ;;  %v3434_v36 = vadd.f32 %v3433_v56, %v3432_v46  ;;  %v2722_v7 = vadd.f32 %v3428_v42, %v3316_v60  ;;  %v3325_v9 = vadd.f32 %v3324_v2, %v3323_v20  ;;  %v3436_v8 = vpop.f32.mrf.mxu1  ;;  %v3326_v57 = vpop.f32.mrf.mxu0  ;;  %v2910_v56 = vld [vmem:[%s4327_s9 + $0x30] sm:$0xff]  ;;  %v2912_v60 = vld [vmem:[%s4327_s9 + $0x40] sm:$0xff] }
 0x29d   : > { %2821 = vmatmul.mubr.bf16.gmra.mxu1 %v2253_v14  ;;  %v2976_v22 = vadd.f32 %v5818_v17, %v2714_v25  ;;  %v2727_v5 = vadd.f32 %v3431_v24, %v3319_v23  ;;  %v2977_v11 = vadd.f32 %v5818_v17, %v2719_v50  ;;  %v3437_v47 = vadd.f32 %v3436_v8, %v3435_v31  ;;  %v2913_v31 = vld [vmem:[%s4327_s9 + $0x48] sm:$0xff] }
 0x29e   : > { %2828 = vmatprep.mubr.bf16.mxu1 %v2258_v27  ;;  %v3007_v45 = vadd.f32 %v2975_v33, %v2904_v35  ;;  %v2730_v28 = vadd.f32 %v3434_v36, %v3322_v39  ;;  %v2161_v46 = vmul.f32 %v2033_v44, %v1137_v51  ;;  %v2978_v54 = vadd.f32 %v5818_v17, %v2722_v7  ;;  %v3438_v52 = vpop.f32.mrf.mxu1  ;;  %v3327_v6 = vpop.f32.mrf.mxu0 }
 0x29f   : > { %v3008_v48 = vadd.f32 %v2976_v22, %v2905_v32  ;;  %v2979_v34 = vadd.f32 %v5818_v17, %v2727_v5  ;;  %v3009_v41 = vadd.f32 %v2977_v11, %v2906_v58  ;;  %v2735_v51 = vadd.f32 %v3437_v47, %v3325_v9 }
 0x2a0   : > { %3039 = vst [vmem:[%s5848_s30] sm:$0xff] %v3007_v45  ;;  %v2980_v1 = vadd.f32 %v5818_v17, %v2730_v28  ;;  %v3328_v10 = vadd.f32 %v3327_v6, %v3326_v57  ;;  %v2255_v14 = vpack.c.bf16 %v5813_v29, %v5809_v4  ;;  %v2157_v0 = vmul.f32 %v2029_v40, %v5769_v15  ;;  %v3439_v30 = vpop.f32.mrf.mxu1  ;;  %v2911_v40 = vld [vmem:[%s4327_s9 + $0x38] sm:$0xff]  ;;  %v2914_v45 = vld [vmem:[%s4327_s9 + $0x50] sm:$0xff] }
 0x2a1   : > { %3040 = vst [vmem:[%s5848_s30 + $0x8] sm:$0xff] %v3008_v48  ;;  %v3010_v49 = vadd.f32 %v2978_v54, %v2907_v13  ;;  %v3011_v38 = vadd.f32 %v2979_v34, %v2908_v63  ;;  %3041 = vst [vmem:[%s5848_s30 + $0x10] sm:$0xff] %v3009_v41  ;;  %v2981_v62 = vadd.f32 %v5818_v17, %v2735_v51 }
 0x2a2   : > { %v3012_v44 = vadd.f32 %v2980_v1, %v2909_v21  ;;  %v3440_v26 = vadd.f32 %v3439_v30, %v3438_v52  ;;  %2668 = vmatmul.mubr.bf16.gmra.mxu0 %v2255_v14  ;;  %v2257_v53 = vpack.c.bf16 %v2161_v46, %v2157_v0  ;;  %v2915_v46 = vld [vmem:[%s4327_s9 + $0x58] sm:$0xff] }
 0x2a3   : > { %3042 = vst [vmem:[%s5848_s30 + $0x18] sm:$0xff] %v3010_v49  ;;  %3043 = vst [vmem:[%s5848_s30 + $0x20] sm:$0xff] %v3011_v38  ;;  %v3013_v4 = vadd.f32 %v2981_v62, %v2910_v56  ;;  %v2916_v38 = vld [vmem:[%s4327_s9 + $0x60] sm:$0xff] }
 0x2a4   : > { %3044 = vst [vmem:[%s5848_s30 + $0x28] sm:$0xff] %v3012_v44  ;;  %v2738_v15 = vadd.f32 %v3440_v26, %v3328_v10 }
 0x2a5   : > { %2829 = vmatmul.mubr.bf16.gmra.mxu1 %v2257_v53  ;;  %3045 = vst [vmem:[%s5848_s30 + $0x30] sm:$0xff] %v3013_v4  ;;  %v2917_v53 = vld [vmem:[%s4327_s9 + $0x68] sm:$0xff] }
 0x2a6   : > { %v2982_v29 = vadd.f32 %v5818_v17, %v2738_v15 }
 0x2a8   : > { %v3014_v59 = vadd.f32 %v2982_v29, %v2911_v40 }
 0x2aa   : > { %3046 = vst [vmem:[%s5848_s30 + $0x38] sm:$0xff] %v3014_v59 }
 0x2ad   : > { %v3329_v19 = vpop.f32.mrf.mxu0 }
 0x2af   : > { %v3441_v37 = vpop.f32.mrf.mxu1  ;;  %v3330_v43 = vpop.f32.mrf.mxu0 }
 0x2b0   : > { %v3331_v12 = vadd.f32 %v3330_v43, %v3329_v19 }
 0x2b1   : > { %v3442_v16 = vpop.f32.mrf.mxu1  ;;  %v3332_v18 = vpop.f32.mrf.mxu0 }
 0x2b2   : > { %v3443_v20 = vadd.f32 %v3442_v16, %v3441_v37 }
 0x2b3   : > { %v3444_v27 = vpop.f32.mrf.mxu1  ;;  %v3333_v3 = vpop.f32.mrf.mxu0 }
 0x2b4   : > { %v2743_v55 = vadd.f32 %v3443_v20, %v3331_v12  ;;  %v3334_v61 = vadd.f32 %v3333_v3, %v3332_v18  ;;  %v2918_v3 = vld [vmem:[%s4327_s9 + $0x70] sm:$0xff] }
 0x2b5   : > { %v3445_v35 = vpop.f32.mrf.mxu1 }
 0x2b6   : > { %v2983_v25 = vadd.f32 %v5818_v17, %v2743_v55  ;;  %v3446_v42 = vadd.f32 %v3445_v35, %v3444_v27 }
 0x2b8   : > { %v3015_v23 = vadd.f32 %v2983_v25, %v2912_v60  ;;  %v2746_v24 = vadd.f32 %v3446_v42, %v3334_v61  ;;  %v2919_v42 = vld [vmem:[%s4327_s9 + $0x78] sm:$0xff] }
 0x2ba   : > { %3047 = vst [vmem:[%s5848_s30 + $0x40] sm:$0xff] %v3015_v23  ;;  %v2984_v2 = vadd.f32 %v5818_v17, %v2746_v24 }
 0x2bc   : > { %v3016_v33 = vadd.f32 %v2984_v2, %v2913_v31 }
 0x2be   : > { %3048 = vst [vmem:[%s5848_s30 + $0x48] sm:$0xff] %v3016_v33 }
 0x2c3   : > { %v3335_v32 = vpop.f32.mrf.mxu0 }
 0x2c5   : > { %v3447_v50 = vpop.f32.mrf.mxu1  ;;  %v3336_v39 = vpop.f32.mrf.mxu0 }
 0x2c6   : > { %v3337_v36 = vadd.f32 %v3336_v39, %v3335_v32 }
 0x2c7   : > { %v3448_v22 = vpop.f32.mrf.mxu1  ;;  %v3338_v58 = vpop.f32.mrf.mxu0 }
 0x2c8   : > { %v3449_v7 = vadd.f32 %v3448_v22, %v3447_v50 }
 0x2c9   : > { %v3450_v5 = vpop.f32.mrf.mxu1  ;;  %v3339_v9 = vpop.f32.mrf.mxu0 }
 0x2ca   : > { %v2751_v8 = vadd.f32 %v3449_v7, %v3337_v36  ;;  %v3340_v57 = vadd.f32 %v3339_v9, %v3338_v58  ;;  %v2920_v9 = vld [vmem:[%s4327_s9 + $0x80] sm:$0xff] }
 0x2cb   : > { %v3451_v11 = vpop.f32.mrf.mxu1 }
 0x2cc   : > { %v2985_v13 = vadd.f32 %v5818_v17, %v2751_v8  ;;  %v3452_v63 = vadd.f32 %v3451_v11, %v3450_v5 }
 0x2ce   : > { %v3017_v28 = vadd.f32 %v2985_v13, %v2914_v45  ;;  %v2754_v47 = vadd.f32 %v3452_v63, %v3340_v57  ;;  %v2921_v63 = vld [vmem:[%s4327_s9 + $0x88] sm:$0xff] }
 0x2d0   : > { %3049 = vst [vmem:[%s5848_s30 + $0x50] sm:$0xff] %v3017_v28  ;;  %v2986_v48 = vadd.f32 %v5818_v17, %v2754_v47 }
 0x2d2   : > { %v3018_v54 = vadd.f32 %v2986_v48, %v2915_v46 }
 0x2d4   : > { %3050 = vst [vmem:[%s5848_s30 + $0x58] sm:$0xff] %v3018_v54 }
 0x2d8   : > { %v3341_v34 = vpop.f32.mrf.mxu0 }
 0x2da   : > { %v3453_v21 = vpop.f32.mrf.mxu1  ;;  %v3342_v52 = vpop.f32.mrf.mxu0 }
 0x2db   : > { %v3343_v6 = vadd.f32 %v3342_v52, %v3341_v34 }
 0x2dc   : > { %v3454_v41 = vpop.f32.mrf.mxu1  ;;  %v3344_v1 = vpop.f32.mrf.mxu0 }
 0x2dd   : > { %v3455_v51 = vadd.f32 %v3454_v41, %v3453_v21 }
 0x2de   : > { %v3456_v10 = vpop.f32.mrf.mxu1  ;;  %v3345_v14 = vpop.f32.mrf.mxu0 }
 0x2df   : > { %v2759_v0 = vadd.f32 %v3455_v51, %v3343_v6  ;;  %v3346_v49 = vadd.f32 %v3345_v14, %v3344_v1  ;;  %v2922_v14 = vld [vmem:[%s4327_s9 + $0x90] sm:$0xff] }
 0x2e0   : > { %v3457_v56 = vpop.f32.mrf.mxu1 }
 0x2e1   : > { %v2987_v30 = vadd.f32 %v5818_v17, %v2759_v0  ;;  %v3458_v44 = vadd.f32 %v3457_v56, %v3456_v10 }
 0x2e3   : > { %v3019_v62 = vadd.f32 %v2987_v30, %v2916_v38  ;;  %v2762_v26 = vadd.f32 %v3458_v44, %v3346_v49  ;;  %v2923_v44 = vld [vmem:[%s4327_s9 + $0x98] sm:$0xff] }
 0x2e5   : > { %3051 = vst [vmem:[%s5848_s30 + $0x60] sm:$0xff] %v3019_v62  ;;  %v2988_v4 = vadd.f32 %v5818_v17, %v2762_v26 }
 0x2e7   : > { %v3020_v15 = vadd.f32 %v2988_v4, %v2917_v53 }
 0x2e9   : > { %3052 = vst [vmem:[%s5848_s30 + $0x68] sm:$0xff] %v3020_v15 }
 0x2ed   : > { %v3347_v40 = vpop.f32.mrf.mxu0 }
 0x2ef   : > { %v3459_v29 = vpop.f32.mrf.mxu1  ;;  %v3348_v59 = vpop.f32.mrf.mxu0 }
 0x2f0   : > { %v3349_v19 = vadd.f32 %v3348_v59, %v3347_v40 }
 0x2f1   : > { %v3460_v37 = vpop.f32.mrf.mxu1  ;;  %v3350_v43 = vpop.f32.mrf.mxu0 }
 0x2f2   : > { %v3461_v12 = vadd.f32 %v3460_v37, %v3459_v29 }
 0x2f3   : > { %v3462_v16 = vpop.f32.mrf.mxu1  ;;  %v3351_v18 = vpop.f32.mrf.mxu0 }
 0x2f4   : > { %v2767_v20 = vadd.f32 %v3461_v12, %v3349_v19  ;;  %v3352_v27 = vadd.f32 %v3351_v18, %v3350_v43  ;;  %v2924_v18 = vld [vmem:[%s4327_s9 + $0xa0] sm:$0xff] }
 0x2f5   : > { %v3463_v55 = vpop.f32.mrf.mxu1 }
 0x2f6   : > { %v2989_v61 = vadd.f32 %v5818_v17, %v2767_v20  ;;  %v3464_v60 = vadd.f32 %v3463_v55, %v3462_v16 }
 0x2f8   : > { %v3021_v35 = vadd.f32 %v2989_v61, %v2918_v3  ;;  %v2770_v25 = vadd.f32 %v3464_v60, %v3352_v27  ;;  %v2925_v60 = vld [vmem:[%s4327_s9 + $0xa8] sm:$0xff] }
 0x2fa   : > { %3053 = vst [vmem:[%s5848_s30 + $0x70] sm:$0xff] %v3021_v35  ;;  %v2990_v23 = vadd.f32 %v5818_v17, %v2770_v25 }
 0x2fc   : > { %v3022_v24 = vadd.f32 %v2990_v23, %v2919_v42 }
 0x2fe   : > { %3054 = vst [vmem:[%s5848_s30 + $0x78] sm:$0xff] %v3022_v24 }
 0x303   : > { %v3353_v31 = vpop.f32.mrf.mxu0 }
 0x305   : > { %v3465_v2 = vpop.f32.mrf.mxu1  ;;  %v3354_v33 = vpop.f32.mrf.mxu0 }
 0x306   : > { %v3355_v32 = vadd.f32 %v3354_v33, %v3353_v31 }
 0x307   : > { %v3466_v50 = vpop.f32.mrf.mxu1  ;;  %v3356_v39 = vpop.f32.mrf.mxu0 }
 0x308   : > { %v3467_v36 = vadd.f32 %v3466_v50, %v3465_v2 }
 0x309   : > { %v3468_v22 = vpop.f32.mrf.mxu1  ;;  %v3357_v58 = vpop.f32.mrf.mxu0 }
 0x30a   : > { %v2775_v7 = vadd.f32 %v3467_v36, %v3355_v32  ;;  %v3358_v5 = vadd.f32 %v3357_v58, %v3356_v39  ;;  %v2926_v58 = vld [vmem:[%s4327_s9 + $0xb0] sm:$0xff] }
 0x30b   : > { %v3469_v8 = vpop.f32.mrf.mxu1 }
 0x30c   : > { %v2991_v57 = vadd.f32 %v5818_v17, %v2775_v7  ;;  %v3470_v45 = vadd.f32 %v3469_v8, %v3468_v22 }
 0x30e   : > { %v3023_v11 = vadd.f32 %v2991_v57, %v2920_v9  ;;  %v2778_v13 = vadd.f32 %v3470_v45, %v3358_v5 }
 0x310   : > { %3055 = vst [vmem:[%s5848_s30 + $0x80] sm:$0xff] %v3023_v11  ;;  %v2992_v28 = vadd.f32 %v5818_v17, %v2778_v13 }
 0x312   : > { %v3024_v47 = vadd.f32 %v2992_v28, %v2921_v63  ;;  %v2927_v28 = vld [vmem:[%s4327_s9 + $0xb8] sm:$0xff] }
 0x314   : > { %3056 = vst [vmem:[%s5848_s30 + $0x88] sm:$0xff] %v3024_v47 }
 0x319   : > { %v3359_v46 = vpop.f32.mrf.mxu0 }
 0x31b   : > { %v3471_v48 = vpop.f32.mrf.mxu1  ;;  %v3360_v54 = vpop.f32.mrf.mxu0 }
 0x31c   : > { %v3361_v34 = vadd.f32 %v3360_v54, %v3359_v46 }
 0x31d   : > { %v3472_v21 = vpop.f32.mrf.mxu1  ;;  %v3362_v52 = vpop.f32.mrf.mxu0 }
 0x31e   : > { %v3473_v6 = vadd.f32 %v3472_v21, %v3471_v48 }
 0x31f   : > { %v3474_v41 = vpop.f32.mrf.mxu1  ;;  %v3363_v1 = vpop.f32.mrf.mxu0 }
 0x320   : > { %v2783_v51 = vadd.f32 %v3473_v6, %v3361_v34  ;;  %v3364_v10 = vadd.f32 %v3363_v1, %v3362_v52  ;;  %v2928_v1 = vld [vmem:[%s4327_s9 + $0xc0] sm:$0xff] }
 0x321   : > { %v3475_v0 = vpop.f32.mrf.mxu1 }
 0x322   : > { %v2993_v49 = vadd.f32 %v5818_v17, %v2783_v51  ;;  %v3476_v38 = vadd.f32 %v3475_v0, %v3474_v41 }
 0x324   : > { %v3025_v56 = vadd.f32 %v2993_v49, %v2922_v14  ;;  %v2786_v30 = vadd.f32 %v3476_v38, %v3364_v10 }
 0x326   : > { %3057 = vst [vmem:[%s5848_s30 + $0x90] sm:$0xff] %v3025_v56  ;;  %v2994_v62 = vadd.f32 %v5818_v17, %v2786_v30 }
 0x328   : > { %v3026_v26 = vadd.f32 %v2994_v62, %v2923_v44  ;;  %v2929_v62 = vld [vmem:[%s4327_s9 + $0xc8] sm:$0xff] }
 0x32a   : > { %3058 = vst [vmem:[%s5848_s30 + $0x98] sm:$0xff] %v3026_v26 }
 0x32f   : > { %v3365_v53 = vpop.f32.mrf.mxu0 }
 0x331   : > { %v3477_v4 = vpop.f32.mrf.mxu1  ;;  %v3366_v15 = vpop.f32.mrf.mxu0 }
 0x332   : > { %v3367_v40 = vadd.f32 %v3366_v15, %v3365_v53 }
 0x333   : > { %v3478_v29 = vpop.f32.mrf.mxu1  ;;  %v3368_v59 = vpop.f32.mrf.mxu0 }
 0x334   : > { %v3479_v19 = vadd.f32 %v3478_v29, %v3477_v4 }
 0x335   : > { %v3480_v37 = vpop.f32.mrf.mxu1  ;;  %v3369_v43 = vpop.f32.mrf.mxu0 }
 0x336   : > { %v2791_v12 = vadd.f32 %v3479_v19, %v3367_v40  ;;  %v3370_v16 = vadd.f32 %v3369_v43, %v3368_v59  ;;  %v2930_v43 = vld [vmem:[%s4327_s9 + $0xd0] sm:$0xff] }
 0x337   : > { %v3481_v20 = vpop.f32.mrf.mxu1 }
 0x338   : > { %v2995_v27 = vadd.f32 %v5818_v17, %v2791_v12  ;;  %v3482_v3 = vadd.f32 %v3481_v20, %v3480_v37 }
 0x33a   : > { %v3027_v55 = vadd.f32 %v2995_v27, %v2924_v18  ;;  %v2794_v61 = vadd.f32 %v3482_v3, %v3370_v16 }
 0x33c   : > { %3059 = vst [vmem:[%s5848_s30 + $0xa0] sm:$0xff] %v3027_v55  ;;  %v2996_v35 = vadd.f32 %v5818_v17, %v2794_v61 }
 0x33e   : > { %v3028_v25 = vadd.f32 %v2996_v35, %v2925_v60  ;;  %v2931_v35 = vld [vmem:[%s4327_s9 + $0xd8] sm:$0xff] }
 0x340   : > { %3060 = vst [vmem:[%s5848_s30 + $0xa8] sm:$0xff] %v3028_v25 }
 0x342   : > { %v3371_v42 = vpop.f32.mrf.mxu0 }
 0x344   : > { %v3372_v24 = vpop.f32.mrf.mxu0 }
 0x345   : > { %v3483_v23 = vpop.f32.mrf.mxu1  ;;  %v3373_v31 = vadd.f32 %v3372_v24, %v3371_v42 }
 0x346   : > { %v3374_v33 = vpop.f32.mrf.mxu0 }
 0x347   : > { %v3484_v2 = vpop.f32.mrf.mxu1 }
 0x348   : > { %v3485_v32 = vadd.f32 %v3484_v2, %v3483_v23  ;;  %v3375_v39 = vpop.f32.mrf.mxu0 }
 0x349   : > { %v3486_v50 = vpop.f32.mrf.mxu1  ;;  %v3376_v22 = vadd.f32 %v3375_v39, %v3374_v33  ;;  %v2932_v39 = vld [vmem:[%s4327_s9 + $0xe0] sm:$0xff] }
 0x34a   : > { %v2799_v36 = vadd.f32 %v3485_v32, %v3373_v31  ;;  %v3377_v5 = vpop.f32.mrf.mxu0 }
 0x34b   : > { %v3487_v7 = vpop.f32.mrf.mxu1 }
 0x34c   : > { %v2997_v9 = vadd.f32 %v5818_v17, %v2799_v36  ;;  %v3488_v8 = vadd.f32 %v3487_v7, %v3486_v50  ;;  %v3378_v45 = vpop.f32.mrf.mxu0 }
 0x34d   : > { %v3489_v57 = vpop.f32.mrf.mxu1  ;;  %v3379_v63 = vadd.f32 %v3378_v45, %v3377_v5 }
 0x34e   : > { %v3029_v11 = vadd.f32 %v2997_v9, %v2926_v58  ;;  %v2802_v13 = vadd.f32 %v3488_v8, %v3376_v22  ;;  %v3380_v46 = vpop.f32.mrf.mxu0 }
 0x34f   : > { %v3490_v47 = vpop.f32.mrf.mxu1 }
 0x350   : > { %3061 = vst [vmem:[%s5848_s30 + $0xb0] sm:$0xff] %v3029_v11  ;;  %v2998_v48 = vadd.f32 %v5818_v17, %v2802_v13  ;;  %v3491_v54 = vadd.f32 %v3490_v47, %v3489_v57  ;;  %v3381_v21 = vpop.f32.mrf.mxu0  ;;  %v2933_v11 = vld [vmem:[%s4327_s9 + $0xe8] sm:$0xff] }
 0x351   : > { %v3492_v34 = vpop.f32.mrf.mxu1  ;;  %v3382_v41 = vadd.f32 %v3381_v21, %v3380_v46 }
 0x352   : > { %v3030_v52 = vadd.f32 %v2998_v48, %v2927_v28  ;;  %v2807_v6 = vadd.f32 %v3491_v54, %v3379_v63  ;;  %v3383_v10 = vpop.f32.mrf.mxu0 }
 0x353   : > { %v3493_v51 = vpop.f32.mrf.mxu1 }
 0x354   : > { %3062 = vst [vmem:[%s5848_s30 + $0xb8] sm:$0xff] %v3030_v52  ;;  %v2999_v14 = vadd.f32 %v5818_v17, %v2807_v6  ;;  %v3494_v0 = vadd.f32 %v3493_v51, %v3492_v34  ;;  %v3384_v38 = vpop.f32.mrf.mxu0  ;;  %v2934_v52 = vld [vmem:[%s4327_s9 + $0xf0] sm:$0xff] }
 0x355   : > { %v3495_v49 = vpop.f32.mrf.mxu1  ;;  %v3385_v44 = vadd.f32 %v3384_v38, %v3383_v10 }
 0x356   : > { %v3031_v56 = vadd.f32 %v2999_v14, %v2928_v1  ;;  %v2810_v30 = vadd.f32 %v3494_v0, %v3382_v41  ;;  %v3386_v53 = vpop.f32.mrf.mxu0  ;;  %v2935_v14 = vld [vmem:[%s4327_s9 + $0xf8] sm:$0xff] }
 0x357   : > { %v3496_v26 = vpop.f32.mrf.mxu1 }
 0x358   : > { %3063 = vst [vmem:[%s5848_s30 + $0xc0] sm:$0xff] %v3031_v56  ;;  %v3000_v4 = vadd.f32 %v5818_v17, %v2810_v30  ;;  %v3497_v15 = vadd.f32 %v3496_v26, %v3495_v49  ;;  %v3387_v29 = vpop.f32.mrf.mxu0 }
 0x359   : > { %v3498_v40 = vpop.f32.mrf.mxu1  ;;  %v3388_v37 = vadd.f32 %v3387_v29, %v3386_v53 }
 0x35a   : > { %v3032_v59 = vadd.f32 %v3000_v4, %v2929_v62  ;;  %v2815_v19 = vadd.f32 %v3497_v15, %v3385_v44  ;;  %v3389_v16 = vpop.f32.mrf.mxu0 }
 0x35b   : > { %v3499_v12 = vpop.f32.mrf.mxu1 }
 0x35c   : > { %3064 = vst [vmem:[%s5848_s30 + $0xc8] sm:$0xff] %v3032_v59  ;;  %v3001_v18 = vadd.f32 %v5818_v17, %v2815_v19  ;;  %v3500_v20 = vadd.f32 %v3499_v12, %v3498_v40  ;;  %v3390_v3 = vpop.f32.mrf.mxu0 }
 0x35d   : > { %v3501_v27 = vpop.f32.mrf.mxu1  ;;  %v3391_v60 = vadd.f32 %v3390_v3, %v3389_v16 }
 0x35e   : > { %v3033_v55 = vadd.f32 %v3001_v18, %v2930_v43  ;;  %v2818_v61 = vadd.f32 %v3500_v20, %v3388_v37  ;;  %v3392_v42 = vpop.f32.mrf.mxu0 }
 0x35f   : > { %v3502_v25 = vpop.f32.mrf.mxu1 }
 0x360   : > { %3065 = vst [vmem:[%s5848_s30 + $0xd0] sm:$0xff] %v3033_v55  ;;  %v3002_v23 = vadd.f32 %v5818_v17, %v2818_v61  ;;  %v3503_v24 = vadd.f32 %v3502_v25, %v3501_v27  ;;  %v3393_v2 = vpop.f32.mrf.mxu0 }
 0x361   : > { %v3504_v31 = vpop.f32.mrf.mxu1  ;;  %v3394_v50 = vadd.f32 %v3393_v2, %v3392_v42 }
 0x362   : > { %v3034_v33 = vadd.f32 %v3002_v23, %v2931_v35  ;;  %v2823_v32 = vadd.f32 %v3503_v24, %v3391_v60  ;;  %v3395_v22 = vpop.f32.mrf.mxu0 }
 0x363   : > { %v3505_v36 = vpop.f32.mrf.mxu1 }
 0x364   : > { %3066 = vst [vmem:[%s5848_s30 + $0xd8] sm:$0xff] %v3034_v33  ;;  %v3003_v58 = vadd.f32 %v5818_v17, %v2823_v32  ;;  %v3506_v7 = vadd.f32 %v3505_v36, %v3504_v31  ;;  %v3396_v9 = vpop.f32.mrf.mxu0 }
 0x365   : > { %v3507_v5 = vpop.f32.mrf.mxu1  ;;  %v3397_v45 = vadd.f32 %v3396_v9, %v3395_v22 }
 0x366   : > { %v3035_v8 = vadd.f32 %v3003_v58, %v2932_v39  ;;  %v2826_v57 = vadd.f32 %v3506_v7, %v3394_v50  ;;  %v3398_v63 = vpop.f32.mrf.mxu0 }
 0x367   : > { %v3508_v13 = vpop.f32.mrf.mxu1 }
 0x368   : > { %3067 = vst [vmem:[%s5848_s30 + $0xe0] sm:$0xff] %v3035_v8  ;;  %v3004_v28 = vadd.f32 %v5818_v17, %v2826_v57  ;;  %v3509_v47 = vadd.f32 %v3508_v13, %v3507_v5  ;;  %v3399_v48 = vpop.f32.mrf.mxu0 }
 0x369   : > { %v3510_v46 = vpop.f32.mrf.mxu1  ;;  %v3400_v21 = vadd.f32 %v3399_v48, %v3398_v63 }
 0x36a   : > { %v3036_v54 = vadd.f32 %v3004_v28, %v2933_v11  ;;  %v2831_v34 = vadd.f32 %v3509_v47, %v3397_v45 }
 0x36b   : > { %v3511_v6 = vpop.f32.mrf.mxu1 }
 0x36c   : > { %3068 = vst [vmem:[%s5848_s30 + $0xe8] sm:$0xff] %v3036_v54  ;;  %v3005_v41 = vadd.f32 %v5818_v17, %v2831_v34  ;;  %v3512_v1 = vadd.f32 %v3511_v6, %v3510_v46 }
 0x36e   : > { %v3037_v51 = vadd.f32 %v3005_v41, %v2934_v52  ;;  %v2834_v10 = vadd.f32 %v3512_v1, %v3400_v21 }
 0x370   : > { %3069 = vst [vmem:[%s5848_s30 + $0xf0] sm:$0xff] %v3037_v51  ;;  %v3006_v0 = vadd.f32 %v5818_v17, %v2834_v10 }
 0x372   : > { %v3038_v49 = vadd.f32 %v3006_v0, %v2935_v14 }
 0x374   : > { %3070 = vst [vmem:[%s5848_s30 + $0xf8] sm:$0xff] %v3038_v49 }
 0x375   : > { %4070 = shalt.err (!%p4067_p13)
}
 0x376   : > { %s4071_s1 = scalar_lea.hbm %s5942_s17, 4096  ;;  %s4075_s26 = scalar_lea.hbm %s5998_s5, 8192 }
 0x377   : > { %p4072_p1 = scmp.ne.s32.totalorder %s5942_s17, %s4071_s1  ;;  %p4076_p12 = scmp.lt.s32.totalorder %s5942_s17, %s5998_s5 }
 0x378   : > { %p4077_p5 = scmp.lt.s32.totalorder %s4075_s26, %s4071_s1 }
 0x379   : > { %p4073_p4 = pnand %p4072_p1, %p4291_p0 }
 0x37a   : > { %p4078_p3 = por %p4077_p5, %p4076_p12 }
 0x37b   : > { %p4074_p8 = pneg %p4073_p4 }
 0x37d   : > { %p4079_p10 = pnand %p4078_p3, %p4074_p8 }
 0x37f   : > { %4082 = shalt.err (!%p4079_p10)
}
 0x380   : > { %s4159_s27 = smov 128   ;;  %s4160_s11 = smov 8  }
 0x381   : > { %3527 = dma.vmem_to_hbm [thread:$0]  (%p4291_p0), %s5944_s10, 4096, %s5942_s17, %s3072_s14, %s4159_s27, %s4159_s27, %s4160_s11  }
 0x382 PF: > { %s3100_s13 = sand.u32 1, %s4125_s18   ;;  %p6289_p2 = scmp.ne.s32.totalorder %s6070_s29, 0 }
 0x383   : > { %p6290_p11 = scmp.ge.s32.totalorder %s4145_s23, 2  ;;  %s3101_s24 = scalar_lea.sflag [#allocation5], %s3100_s13 }
 0x385   : > { %p3544_p7 = pnand %p6290_p11, %p6289_p2 }
 0x387   : > { %p3545_p6 = pneg %p3544_p7 }
 0x389   : > { %4120 = dma.done.wait (%p3545_p6), %s3101_s24, 4096  }
 0x38a   : > { %4122 = vsyncadd (%p3545_p6), %s3101_s24, 4294963200  ;;  %s23_s23 = sadd.s32 1, %s4145_s23   ;;  %s6291_s18 = smov %s4129_s19 }
 0x38b   : > { %p20_p9 = scmp.ge.s32.totalorder %s23_s23, 4   ;;  %s6292_s19 = smov %s4133_s20 }
 0x38c   : > { %s6293_s20 = smov %s4303_s25  ;;  %s6294_s21 = smov %s4141_s22 }
 0x38d   : > { %s6295_s22 = smov %s6297_s15  ;;  %22 = sbr.rel (!%p20_p9) target bundleno = 10 (0xa), region = 108 }
 0x392   :  { %3106 = vsyncpa [#allocation4], 1 }
 0x393   :  { %3108 = vsyncpa [#allocation4 + $0x1], 1 }
 0x394   :  { %3109 = vsyncpa [#allocation7], 1 }
 0x395   :  { %3110 = vsyncpa [#allocation10], 1 }
 0x396   :  { %3111 = vsyncpa [#allocation5], 1 }
 0x397   :  { %3113 = vsyncpa [#allocation5 + $0x1], 1 }

</bundles_post_ra>
